<compile_context>
chip_gen: v7x
topology: tpu7x:2x2x1
jax: 0.10.0
libtpu: 0.0.40
codegen_flags: <defaults>
</compile_context>

<pallas_src>
import math

import jax
import jax.numpy as jnp
from jax.experimental import pallas as pl
from jax.experimental.pallas import tpu as pltpu

# ----- model hyper-parameters (match the PyTorch module defaults) -----
POS_DIM = 3
POS_MIN_DEG, POS_MAX_DEG = 0, 10
VIEW_MIN_DEG, VIEW_MAX_DEG = 0, 4
POS_LATENT = (1 + (POS_MAX_DEG - POS_MIN_DEG) * 2) * POS_DIM     # 63
VIEW_LATENT = (1 + (VIEW_MAX_DEG - VIEW_MIN_DEG) * 2) * POS_DIM  # 27

NET_DEPTH = 8
NET_WIDTH = 256
SKIP_LAYER = 4
NET_DEPTH_COND = 1
NET_WIDTH_COND = 128

HEADS_W = 8       # packed output width: cols 0..2 = rgb, col 3 = sigma, rest 0
SIGMA_COL = 3

# MACs per row (x2 = FLOPs): fused layer0+skip, 7 hidden + bottleneck 256x256,
# packed sigma head, rgb hidden (split K), packed rgb head.
_FLOPS_PER_ROW = 2 * (
    POS_LATENT * 2 * NET_WIDTH
    + 8 * NET_WIDTH * NET_WIDTH
    + NET_WIDTH * HEADS_W
    + NET_WIDTH * NET_WIDTH_COND
    + VIEW_LATENT * NET_WIDTH_COND
    + NET_WIDTH_COND * HEADS_W
)


# ----------------- plain-JAX glue: sinusoidal encoder -----------------
def sinusoidal_encode(x, min_deg, max_deg, use_identity=True):
    if max_deg == min_deg:
        return x
    scales = jnp.asarray([2.0 ** i for i in range(min_deg, max_deg)], dtype=x.dtype)
    xb = (x[..., None, :] * scales[:, None]).reshape(
        x.shape[:-1] + ((max_deg - min_deg) * x.shape[-1],))
    latent = jnp.sin(jnp.concatenate([xb, xb + 0.5 * math.pi], axis=-1))
    if use_identity:
        latent = jnp.concatenate([x, latent], axis=-1)
    return latent


# ----------------------- parameter construction -----------------------
def xavier_uniform(key, fan_in, fan_out, dtype=jnp.float32):
    a = math.sqrt(6.0 / (fan_in + fan_out))
    return jax.random.uniform(key, (fan_in, fan_out), dtype, minval=-a, maxval=a)


def init_params(key):
    """Flat parameter list in the original PyTorch layout (24 f32 arrays)."""
    params = []

    def linear(k, fan_in, fan_out):
        w = xavier_uniform(k, fan_in, fan_out)
        b = jnp.zeros((1, fan_out), jnp.float32)     # bias_init = zeros_
        return w, b

    keys = jax.random.split(key, 16)
    ki = 0

    # base MLP: 8 hidden layers, skip (concat with input) after layer 4
    in_features = POS_LATENT
    for i in range(NET_DEPTH):
        w, b = linear(keys[ki], in_features, NET_WIDTH); ki += 1
        params += [w, b]
        if SKIP_LAYER is not None and i % SKIP_LAYER == 0 and i > 0:
            in_features = NET_WIDTH + POS_LATENT
        else:
            in_features = NET_WIDTH

    # sigma head: Linear(256, 1)
    w, b = linear(keys[ki], NET_WIDTH, 1); ki += 1
    params += [w, b]
    # bottleneck: Linear(256, 256)
    w, b = linear(keys[ki], NET_WIDTH, NET_WIDTH); ki += 1
    params += [w, b]
    # rgb MLP: Linear(256+27, 128) -> ReLU -> Linear(128, 3)
    w, b = linear(keys[ki], NET_WIDTH + VIEW_LATENT, NET_WIDTH_COND); ki += 1
    params += [w, b]
    w, b = linear(keys[ki], NET_WIDTH_COND, 3); ki += 1
    params += [w, b]
    return params


def pack_params(params):
    """Repack the 24 PyTorch-layout arrays into 9 kernel slabs (bf16 weights)."""
    bf16 = jnp.bfloat16
    Ws = [params[2 * i] for i in range(NET_DEPTH)]        # W0..W7
    Bs = [params[2 * i + 1] for i in range(NET_DEPTH)]    # b0..b7
    w_sig, b_sig = params[16], params[17]                 # (256,1), (1,1)
    w_bot, b_bot = params[18], params[19]                 # (256,256), (1,256)
    w_r0, b_r0 = params[20], params[21]                   # (283,128), (1,128)
    w_r1, b_r1 = params[22], params[23]                   # (128,3), (1,3)

    W5 = Ws[5]   # (319,256): rows 0..255 = hidden h, rows 256.. = skip input x

    # Fused layer-0 + layer-5-skip weight: x @ [W0 | W5_skip] -> (63, 512).
    w_first = jnp.concatenate([Ws[0], W5[NET_WIDTH:, :]], axis=1).astype(bf16)  # (63,512)
    # (256,256) weights: layers 1..4, hidden half of 5, layers 6,7, bottleneck.
    w_mid = jnp.stack([Ws[1], Ws[2], Ws[3], Ws[4], W5[:NET_WIDTH, :],
                       Ws[6], Ws[7], w_bot], axis=0).astype(bf16)               # (8,256,256)
    b_main = jnp.concatenate(Bs + [b_bot], axis=0).astype(jnp.float32)          # (9,256)

    # rgb hidden layer: split along the concat axis (rows 0..255 bottleneck, 256.. cond)
    w_rgb0_b = w_r0[:NET_WIDTH, :].astype(bf16)            # (256,128)
    w_rgb0_c = w_r0[NET_WIDTH:, :].astype(bf16)            # (27,128)
    b_rgb0 = b_r0.astype(jnp.float32)                      # (1,128)

    # packed heads (lane-padded to HEADS_W): rgb -> cols 0..2, sigma -> col 3
    w_heads_sigma = (jnp.zeros((NET_WIDTH, HEADS_W), jnp.float32)
                     .at[:, SIGMA_COL:SIGMA_COL + 1].set(w_sig)).astype(bf16)   # (256,8)
    w_heads_rgb = (jnp.zeros((NET_WIDTH_COND, HEADS_W), jnp.float32)
                   .at[:, 0:3].set(w_r1)).astype(bf16)                          # (128,8)
    b_heads = (jnp.zeros((1, HEADS_W), jnp.float32)
               .at[:, 0:3].set(b_r1)
               .at[:, SIGMA_COL:SIGMA_COL + 1].set(b_sig))                      # (1,8)

    return (w_first, w_mid, b_main, w_rgb0_b, w_rgb0_c, b_rgb0,
            w_heads_sigma, w_heads_rgb, b_heads)


# ----------------------------- the kernel ------------------------------
def nerf_kernel(xenc_ref, cenc_ref,
                w_first_ref, w_mid_ref, b_main_ref,
                w_rgb0_b_ref, w_rgb0_c_ref, b_rgb0_ref,
                w_hs_ref, w_hr_ref, b_heads_ref,
                out_ref):
    f32 = jnp.float32
    bf16 = jnp.bfloat16

    x_bf = xenc_ref[...]                  # (TM, 63) bf16

    # ---- layer 0 + layer-5 skip addend in ONE matmul (K=63, N=512) ----
    h0s = jnp.dot(x_bf, w_first_ref[...], preferred_element_type=f32)   # (TM, 512)
    skip = h0s[:, NET_WIDTH:]             # f32 addend for layer 5 (bias added there)
    h = jnp.maximum(h0s[:, :NET_WIDTH] + b_main_ref[0:1, :], 0.0)

    # ---- base MLP layers 1..4 (K=256 aligned) ----
    for i in range(1, SKIP_LAYER + 1):
        h = (jnp.dot(h.astype(bf16), w_mid_ref[i - 1], preferred_element_type=f32)
             + b_main_ref[i:i + 1, :])
        h = jnp.maximum(h, 0.0)

    # layer 5: concat([h, x]) @ W5 == h @ W5[:256] + x @ W5[256:]  (skip precomputed)
    h = (jnp.dot(h.astype(bf16), w_mid_ref[SKIP_LAYER], preferred_element_type=f32)
         + skip + b_main_ref[SKIP_LAYER + 1:SKIP_LAYER + 2, :])
    h = jnp.maximum(h, 0.0)

    for i in range(SKIP_LAYER + 2, NET_DEPTH):   # layers 6, 7
        h = (jnp.dot(h.astype(bf16), w_mid_ref[i - 1], preferred_element_type=f32)
             + b_main_ref[i:i + 1, :])
        h = jnp.maximum(h, 0.0)

    h_bf = h.astype(bf16)                 # shared by sigma head and bottleneck

    # ---- bottleneck (no activation) + view-conditioned rgb hidden (split K) ----
    bottleneck = (jnp.dot(h_bf, w_mid_ref[7], preferred_element_type=f32)
                  + b_main_ref[8:9, :])
    cond_bf = cenc_ref[...]               # (TM, 27) bf16
    r = (jnp.dot(bottleneck.astype(bf16), w_rgb0_b_ref[...], preferred_element_type=f32)
         + jnp.dot(cond_bf, w_rgb0_c_ref[...], preferred_element_type=f32)
         + b_rgb0_ref[...])
    r = jnp.maximum(r, 0.0)

    # ---- packed heads: sigma (col 3) + rgb (cols 0..2), disjoint zero-padded cols ----
    raw = (jnp.dot(h_bf, w_hs_ref[...], preferred_element_type=f32)
           + jnp.dot(r.astype(bf16), w_hr_ref[...], preferred_element_type=f32)
           + b_heads_ref[...])                                    # (TM, 8)
    col = jax.lax.broadcasted_iota(jnp.int32, raw.shape, 1)
    out_ref[...] = jnp.where(col < SIGMA_COL,
                             jax.nn.sigmoid(raw),                 # rgb columns
                             jnp.maximum(raw, 0.0))               # sigma column (+zeros)


# ------------------------------ wrapper --------------------------------
def _choose_tm(n, min_tm=512, max_tm=2048, target_steps=8):
    """tm = clamp(round_up(n / target_steps, 512), 512, 2048).

    Keeps several grid steps per core (>=2 TCs on v7x) while bounding pad waste
    at small N and amortizing per-step overhead at large N."""
    per_step = -(-n // target_steps)
    tm = -(-per_step // min_tm) * min_tm
    return max(min_tm, min(max_tm, tm))


def nerf_forward(x, condition, packed, tm=None):
    """x: [N,3] positions, condition: [N,3] view dirs -> (rgb[N,3], sigma[N,1])."""
    # Encoders stay as XLA-fused elementwise glue; emit bf16 (the kernel's matmul
    # operand dtype) to halve their HBM writeback and the kernel input DMA.
    xenc = sinusoidal_encode(x, POS_MIN_DEG, POS_MAX_DEG, True).astype(jnp.bfloat16)
    cenc = sinusoidal_encode(condition, VIEW_MIN_DEG, VIEW_MAX_DEG, True).astype(jnp.bfloat16)

    n = xenc.shape[0]
    if tm is None:
        tm = _choose_tm(n)
    n_pad = pl.cdiv(n, tm) * tm
    if n_pad != n:
        xenc = jnp.pad(xenc, ((0, n_pad - n), (0, 0)))
        cenc = jnp.pad(cenc, ((0, n_pad - n), (0, 0)))

    def resident_spec(a):                 # whole-array block, resident across the grid
        z = (0,) * a.ndim
        return pl.BlockSpec(a.shape, lambda i, _z=z: _z)

    in_specs = [
        pl.BlockSpec((tm, POS_LATENT), lambda i: (i, 0)),
        pl.BlockSpec((tm, VIEW_LATENT), lambda i: (i, 0)),
    ] + [resident_spec(a) for a in packed]

    weight_bytes = sum(int(a.size) * a.dtype.itemsize for a in packed)
    cost = pl.CostEstimate(
        flops=int(n_pad) * _FLOPS_PER_ROW,
        transcendentals=int(n_pad) * 4,                       # sigmoid on rgb cols
        bytes_accessed=int(n_pad) * (2 * (POS_LATENT + VIEW_LATENT) + 4 * HEADS_W)
                       + weight_bytes,
    )

    out = pl.pallas_call(
        nerf_kernel,
        out_shape=jax.ShapeDtypeStruct((n_pad, HEADS_W), jnp.float32),
        grid_spec=pltpu.PrefetchScalarGridSpec(
            num_scalar_prefetch=0,
            grid=(n_pad // tm,),
            in_specs=in_specs,
            out_specs=pl.BlockSpec((tm, HEADS_W), lambda i: (i, 0)),
        ),
        compiler_params=pltpu.CompilerParams(
            dimension_semantics=("parallel",),
            # >= default on v6e/v7x; raises v5e's 16 MiB default so tm=2048 fits.
            vmem_limit_bytes=32 * 1024 * 1024,
        ),
        cost_estimate=cost,
    )(xenc, cenc, *packed)

    rgb = out[:n, 0:3]
    sigma = out[:n, SIGMA_COL:SIGMA_COL + 1]
    return rgb, sigma


# ------------------------ pure-JAX references ----------------------------
def _reference(x, condition, params, cast):
    """Reference forward. `cast` is applied to every matmul operand."""
    dot = lambda a, b: jnp.dot(cast(a), cast(b), precision="highest")
    xenc = sinusoidal_encode(x, POS_MIN_DEG, POS_MAX_DEG, True)
    cenc = sinusoidal_encode(condition, VIEW_MIN_DEG, VIEW_MAX_DEG, True)
    h = xenc
    idx = 0
    for i in range(NET_DEPTH):
        w, b = params[idx], params[idx + 1]; idx += 2
        h = jnp.maximum(dot(h, w) + b, 0.0)
        if SKIP_LAYER is not None and i % SKIP_LAYER == 0 and i > 0:
            h = jnp.concatenate([h, xenc], axis=-1)
    raw_sigma = dot(h, params[16]) + params[17]
    bottleneck = dot(h, params[18]) + params[19]
    hc = jnp.concatenate([bottleneck, cenc], axis=-1)
    r = jnp.maximum(dot(hc, params[20]) + params[21], 0.0)
    raw_rgb = dot(r, params[22]) + params[23]
    return jax.nn.sigmoid(raw_rgb), jnp.maximum(raw_sigma, 0.0)


def reference_forward_bf16(x, condition, params):
    """Mirrors the kernel numerics: bf16 matmul operands, f32 accumulation."""
    bf = lambda a: a.astype(jnp.bfloat16).astype(jnp.float32)
    return _reference(x, condition, params, bf)


def reference_forward_f32(x, condition, params):
    """Full-precision f32 reference of the original module."""
    return _reference(x, condition, params, lambda a: a)


if __name__ == "__main__":
    key = jax.random.PRNGKey(0)
    kp, kx, kc = jax.random.split(key, 3)

    params = init_params(kp)
    packed = pack_params(params)

    N = 1000  # NOT a multiple of tm: exercises the pad-and-slice path; adaptive tm=512, grid=2
    x = jax.random.normal(kx, (N, 3), jnp.float32)
    cond = jax.random.normal(kc, (N, 3), jnp.float32)
    cond = cond / jnp.linalg.norm(cond, axis=-1, keepdims=True)  # unit view dirs

    fwd = jax.jit(lambda xx, cc, pp: nerf_forward(xx, cc, pp))
    rgb, sigma = fwd(x, cond, packed)
    jax.block_until_ready((rgb, sigma))
    assert rgb.shape == (N, 3) and sigma.shape == (N, 1)

    # Tight check vs. a reference that mirrors the kernel numerics (bf16 operands,
    # f32 accumulate) — validates the fused layer0+skip / split-matmul / packed-head
    # rewrite exactly.
    rgb_bf, sigma_bf = reference_forward_bf16(x, cond, params)
    assert bool(jnp.allclose(rgb, rgb_bf, atol=1e-2, rtol=1e-2))
    assert bool(jnp.allclose(sigma, sigma_bf, atol=1e-2, rtol=1e-2))

    # Loose sanity check vs. the full-f32 reference (bounds the bf16 approximation).
    rgb_f32, sigma_f32 = reference_forward_f32(x, cond, params)
    assert bool(jnp.allclose(rgb, rgb_f32, atol=1e-1, rtol=1e-1))
    assert bool(jnp.allclose(sigma, sigma_f32, atol=1e-1, rtol=1e-1))

    print("KERNEL_OK")
</pallas_src>

<mosaic_0001>
module attributes {stable_mosaic.version = 11 : i64} {
  func.func @nerf_kernel(%arg0: i32, %arg1: memref<512x63xbf16, #tpu.memory_space<vmem>>, %arg2: memref<512x27xbf16, #tpu.memory_space<vmem>>, %arg3: memref<63x512xbf16, #tpu.memory_space<vmem>>, %arg4: memref<8x256x256xbf16, #tpu.memory_space<vmem>>, %arg5: memref<9x256xf32, #tpu.memory_space<vmem>>, %arg6: memref<256x128xbf16, #tpu.memory_space<vmem>>, %arg7: memref<27x128xbf16, #tpu.memory_space<vmem>>, %arg8: memref<1x128xf32, #tpu.memory_space<vmem>>, %arg9: memref<256x8xbf16, #tpu.memory_space<vmem>>, %arg10: memref<128x8xbf16, #tpu.memory_space<vmem>>, %arg11: memref<1x8xf32, #tpu.memory_space<vmem>>, %arg12: memref<512x8xf32, #tpu.memory_space<vmem>>) attributes {dimension_semantics = [#tpu.dimension_semantics<parallel>], iteration_bounds = array<i64: 2>, scalar_prefetch = 0 : i64, scratch_operands = 0 : i64, tpu.core_type = #tpu.core_type<tc>, window_params = [{transform_indices = @transform_0, window_bounds = array<i64: 512, 63>}, {transform_indices = @transform_1, window_bounds = array<i64: 512, 27>}, {pipeline_mode = #tpu.pipeline_mode<synchronous>, transform_indices = @transform_2, window_bounds = array<i64: 63, 512>}, {pipeline_mode = #tpu.pipeline_mode<synchronous>, transform_indices = @transform_3, window_bounds = array<i64: 8, 256, 256>}, {pipeline_mode = #tpu.pipeline_mode<synchronous>, transform_indices = @transform_4, window_bounds = array<i64: 9, 256>}, {pipeline_mode = #tpu.pipeline_mode<synchronous>, transform_indices = @transform_5, window_bounds = array<i64: 256, 128>}, {pipeline_mode = #tpu.pipeline_mode<synchronous>, transform_indices = @transform_6, window_bounds = array<i64: 27, 128>}, {pipeline_mode = #tpu.pipeline_mode<synchronous>, transform_indices = @transform_7, window_bounds = array<i64: 1, 128>}, {pipeline_mode = #tpu.pipeline_mode<synchronous>, transform_indices = @transform_8, window_bounds = array<i64: 256, 8>}, {pipeline_mode = #tpu.pipeline_mode<synchronous>, transform_indices = @transform_9, window_bounds = array<i64: 128, 8>}, {pipeline_mode = #tpu.pipeline_mode<synchronous>, transform_indices = @transform_10, window_bounds = array<i64: 1, 8>}, {transform_indices = @transform_11, window_bounds = array<i64: 512, 8>}]} {
    %c0 = arith.constant 0 : index
    %c0_0 = arith.constant 0 : index
    %0 = vector.load %arg1[%c0, %c0_0] : memref<512x63xbf16, #tpu.memory_space<vmem>>, vector<512x63xbf16>
    %c0_1 = arith.constant 0 : index
    %c0_2 = arith.constant 0 : index
    %1 = vector.load %arg3[%c0_1, %c0_2] : memref<63x512xbf16, #tpu.memory_space<vmem>>, vector<63x512xbf16>
    %cst = arith.constant dense<0.000000e+00> : vector<512x512xf32>
    %2 = tpu.matmul %0, %1, %cst {dimension_numbers = #tpu.dot_dimension_numbers<[1], [0], [0], [1], [0, 0, 1, 1], [], []>} : vector<512x63xbf16>, vector<63x512xbf16>, vector<512x512xf32> -> vector<512x512xf32>
    %3 = vector.extract_strided_slice %2 {offsets = [0, 256], sizes = [512, 256], strides = [1, 1]} : vector<512x512xf32> to vector<512x256xf32>
    %4 = vector.extract_strided_slice %2 {offsets = [0, 0], sizes = [512, 256], strides = [1, 1]} : vector<512x512xf32> to vector<512x256xf32>
    %c0_3 = arith.constant 0 : index
    %c0_4 = arith.constant 0 : index
    %5 = vector.load %arg5[%c0_3, %c0_4] : memref<9x256xf32, #tpu.memory_space<vmem>>, vector<1x256xf32>
    %6 = vector.broadcast %5 : vector<1x256xf32> to vector<512x256xf32>
    %7 = arith.addf %4, %6 : vector<512x256xf32>
    %cst_5 = arith.constant 0.000000e+00 : f32
    %8 = vector.broadcast %cst_5 : f32 to vector<512x256xf32>
    %9 = arith.maximumf %7, %8 : vector<512x256xf32>
    %10 = arith.truncf %9 : vector<512x256xf32> to vector<512x256xbf16>
    %c0_6 = arith.constant 0 : index
    %c0_7 = arith.constant 0 : index
    %c0_8 = arith.constant 0 : index
    %11 = vector.load %arg4[%c0_6, %c0_7, %c0_8] : memref<8x256x256xbf16, #tpu.memory_space<vmem>>, vector<1x256x256xbf16>
    %12 = vector.shape_cast %11 : vector<1x256x256xbf16> to vector<256x256xbf16>
    %cst_9 = arith.constant dense<0.000000e+00> : vector<512x256xf32>
    %13 = tpu.matmul %10, %12, %cst_9 {dimension_numbers = #tpu.dot_dimension_numbers<[1], [0], [0], [1], [0, 0, 1, 1], [], []>} : vector<512x256xbf16>, vector<256x256xbf16>, vector<512x256xf32> -> vector<512x256xf32>
    %c1 = arith.constant 1 : index
    %c0_10 = arith.constant 0 : index
    %14 = vector.load %arg5[%c1, %c0_10] : memref<9x256xf32, #tpu.memory_space<vmem>>, vector<1x256xf32>
    %15 = vector.broadcast %14 : vector<1x256xf32> to vector<512x256xf32>
    %16 = arith.addf %13, %15 : vector<512x256xf32>
    %cst_11 = arith.constant 0.000000e+00 : f32
    %17 = vector.broadcast %cst_11 : f32 to vector<512x256xf32>
    %18 = arith.maximumf %16, %17 : vector<512x256xf32>
    %19 = arith.truncf %18 : vector<512x256xf32> to vector<512x256xbf16>
    %c1_12 = arith.constant 1 : index
    %c0_13 = arith.constant 0 : index
    %c0_14 = arith.constant 0 : index
    %20 = vector.load %arg4[%c1_12, %c0_13, %c0_14] : memref<8x256x256xbf16, #tpu.memory_space<vmem>>, vector<1x256x256xbf16>
    %21 = vector.shape_cast %20 : vector<1x256x256xbf16> to vector<256x256xbf16>
    %cst_15 = arith.constant dense<0.000000e+00> : vector<512x256xf32>
    %22 = tpu.matmul %19, %21, %cst_15 {dimension_numbers = #tpu.dot_dimension_numbers<[1], [0], [0], [1], [0, 0, 1, 1], [], []>} : vector<512x256xbf16>, vector<256x256xbf16>, vector<512x256xf32> -> vector<512x256xf32>
    %c2 = arith.constant 2 : index
    %c0_16 = arith.constant 0 : index
    %23 = vector.load %arg5[%c2, %c0_16] : memref<9x256xf32, #tpu.memory_space<vmem>>, vector<1x256xf32>
    %24 = vector.broadcast %23 : vector<1x256xf32> to vector<512x256xf32>
    %25 = arith.addf %22, %24 : vector<512x256xf32>
    %cst_17 = arith.constant 0.000000e+00 : f32
    %26 = vector.broadcast %cst_17 : f32 to vector<512x256xf32>
    %27 = arith.maximumf %25, %26 : vector<512x256xf32>
    %28 = arith.truncf %27 : vector<512x256xf32> to vector<512x256xbf16>
    %c2_18 = arith.constant 2 : index
    %c0_19 = arith.constant 0 : index
    %c0_20 = arith.constant 0 : index
    %29 = vector.load %arg4[%c2_18, %c0_19, %c0_20] : memref<8x256x256xbf16, #tpu.memory_space<vmem>>, vector<1x256x256xbf16>
    %30 = vector.shape_cast %29 : vector<1x256x256xbf16> to vector<256x256xbf16>
    %cst_21 = arith.constant dense<0.000000e+00> : vector<512x256xf32>
    %31 = tpu.matmul %28, %30, %cst_21 {dimension_numbers = #tpu.dot_dimension_numbers<[1], [0], [0], [1], [0, 0, 1, 1], [], []>} : vector<512x256xbf16>, vector<256x256xbf16>, vector<512x256xf32> -> vector<512x256xf32>
    %c3 = arith.constant 3 : index
    %c0_22 = arith.constant 0 : index
    %32 = vector.load %arg5[%c3, %c0_22] : memref<9x256xf32, #tpu.memory_space<vmem>>, vector<1x256xf32>
    %33 = vector.broadcast %32 : vector<1x256xf32> to vector<512x256xf32>
    %34 = arith.addf %31, %33 : vector<512x256xf32>
    %cst_23 = arith.constant 0.000000e+00 : f32
    %35 = vector.broadcast %cst_23 : f32 to vector<512x256xf32>
    %36 = arith.maximumf %34, %35 : vector<512x256xf32>
    %37 = arith.truncf %36 : vector<512x256xf32> to vector<512x256xbf16>
    %c3_24 = arith.constant 3 : index
    %c0_25 = arith.constant 0 : index
    %c0_26 = arith.constant 0 : index
    %38 = vector.load %arg4[%c3_24, %c0_25, %c0_26] : memref<8x256x256xbf16, #tpu.memory_space<vmem>>, vector<1x256x256xbf16>
    %39 = vector.shape_cast %38 : vector<1x256x256xbf16> to vector<256x256xbf16>
    %cst_27 = arith.constant dense<0.000000e+00> : vector<512x256xf32>
    %40 = tpu.matmul %37, %39, %cst_27 {dimension_numbers = #tpu.dot_dimension_numbers<[1], [0], [0], [1], [0, 0, 1, 1], [], []>} : vector<512x256xbf16>, vector<256x256xbf16>, vector<512x256xf32> -> vector<512x256xf32>
    %c4 = arith.constant 4 : index
    %c0_28 = arith.constant 0 : index
    %41 = vector.load %arg5[%c4, %c0_28] : memref<9x256xf32, #tpu.memory_space<vmem>>, vector<1x256xf32>
    %42 = vector.broadcast %41 : vector<1x256xf32> to vector<512x256xf32>
    %43 = arith.addf %40, %42 : vector<512x256xf32>
    %cst_29 = arith.constant 0.000000e+00 : f32
    %44 = vector.broadcast %cst_29 : f32 to vector<512x256xf32>
    %45 = arith.maximumf %43, %44 : vector<512x256xf32>
    %46 = arith.truncf %45 : vector<512x256xf32> to vector<512x256xbf16>
    %c4_30 = arith.constant 4 : index
    %c0_31 = arith.constant 0 : index
    %c0_32 = arith.constant 0 : index
    %47 = vector.load %arg4[%c4_30, %c0_31, %c0_32] : memref<8x256x256xbf16, #tpu.memory_space<vmem>>, vector<1x256x256xbf16>
    %48 = vector.shape_cast %47 : vector<1x256x256xbf16> to vector<256x256xbf16>
    %cst_33 = arith.constant dense<0.000000e+00> : vector<512x256xf32>
    %49 = tpu.matmul %46, %48, %cst_33 {dimension_numbers = #tpu.dot_dimension_numbers<[1], [0], [0], [1], [0, 0, 1, 1], [], []>} : vector<512x256xbf16>, vector<256x256xbf16>, vector<512x256xf32> -> vector<512x256xf32>
    %50 = arith.addf %49, %3 : vector<512x256xf32>
    %c5 = arith.constant 5 : index
    %c0_34 = arith.constant 0 : index
    %51 = vector.load %arg5[%c5, %c0_34] : memref<9x256xf32, #tpu.memory_space<vmem>>, vector<1x256xf32>
    %52 = vector.broadcast %51 : vector<1x256xf32> to vector<512x256xf32>
    %53 = arith.addf %50, %52 : vector<512x256xf32>
    %cst_35 = arith.constant 0.000000e+00 : f32
    %54 = vector.broadcast %cst_35 : f32 to vector<512x256xf32>
    %55 = arith.maximumf %53, %54 : vector<512x256xf32>
    %56 = arith.truncf %55 : vector<512x256xf32> to vector<512x256xbf16>
    %c5_36 = arith.constant 5 : index
    %c0_37 = arith.constant 0 : index
    %c0_38 = arith.constant 0 : index
    %57 = vector.load %arg4[%c5_36, %c0_37, %c0_38] : memref<8x256x256xbf16, #tpu.memory_space<vmem>>, vector<1x256x256xbf16>
    %58 = vector.shape_cast %57 : vector<1x256x256xbf16> to vector<256x256xbf16>
    %cst_39 = arith.constant dense<0.000000e+00> : vector<512x256xf32>
    %59 = tpu.matmul %56, %58, %cst_39 {dimension_numbers = #tpu.dot_dimension_numbers<[1], [0], [0], [1], [0, 0, 1, 1], [], []>} : vector<512x256xbf16>, vector<256x256xbf16>, vector<512x256xf32> -> vector<512x256xf32>
    %c6 = arith.constant 6 : index
    %c0_40 = arith.constant 0 : index
    %60 = vector.load %arg5[%c6, %c0_40] : memref<9x256xf32, #tpu.memory_space<vmem>>, vector<1x256xf32>
    %61 = vector.broadcast %60 : vector<1x256xf32> to vector<512x256xf32>
    %62 = arith.addf %59, %61 : vector<512x256xf32>
    %cst_41 = arith.constant 0.000000e+00 : f32
    %63 = vector.broadcast %cst_41 : f32 to vector<512x256xf32>
    %64 = arith.maximumf %62, %63 : vector<512x256xf32>
    %65 = arith.truncf %64 : vector<512x256xf32> to vector<512x256xbf16>
    %c6_42 = arith.constant 6 : index
    %c0_43 = arith.constant 0 : index
    %c0_44 = arith.constant 0 : index
    %66 = vector.load %arg4[%c6_42, %c0_43, %c0_44] : memref<8x256x256xbf16, #tpu.memory_space<vmem>>, vector<1x256x256xbf16>
    %67 = vector.shape_cast %66 : vector<1x256x256xbf16> to vector<256x256xbf16>
    %cst_45 = arith.constant dense<0.000000e+00> : vector<512x256xf32>
    %68 = tpu.matmul %65, %67, %cst_45 {dimension_numbers = #tpu.dot_dimension_numbers<[1], [0], [0], [1], [0, 0, 1, 1], [], []>} : vector<512x256xbf16>, vector<256x256xbf16>, vector<512x256xf32> -> vector<512x256xf32>
    %c7 = arith.constant 7 : index
    %c0_46 = arith.constant 0 : index
    %69 = vector.load %arg5[%c7, %c0_46] : memref<9x256xf32, #tpu.memory_space<vmem>>, vector<1x256xf32>
    %70 = vector.broadcast %69 : vector<1x256xf32> to vector<512x256xf32>
    %71 = arith.addf %68, %70 : vector<512x256xf32>
    %cst_47 = arith.constant 0.000000e+00 : f32
    %72 = vector.broadcast %cst_47 : f32 to vector<512x256xf32>
    %73 = arith.maximumf %71, %72 : vector<512x256xf32>
    %74 = arith.truncf %73 : vector<512x256xf32> to vector<512x256xbf16>
    %c7_48 = arith.constant 7 : index
    %c0_49 = arith.constant 0 : index
    %c0_50 = arith.constant 0 : index
    %75 = vector.load %arg4[%c7_48, %c0_49, %c0_50] : memref<8x256x256xbf16, #tpu.memory_space<vmem>>, vector<1x256x256xbf16>
    %76 = vector.shape_cast %75 : vector<1x256x256xbf16> to vector<256x256xbf16>
    %cst_51 = arith.constant dense<0.000000e+00> : vector<512x256xf32>
    %77 = tpu.matmul %74, %76, %cst_51 {dimension_numbers = #tpu.dot_dimension_numbers<[1], [0], [0], [1], [0, 0, 1, 1], [], []>} : vector<512x256xbf16>, vector<256x256xbf16>, vector<512x256xf32> -> vector<512x256xf32>
    %c8 = arith.constant 8 : index
    %c0_52 = arith.constant 0 : index
    %78 = vector.load %arg5[%c8, %c0_52] : memref<9x256xf32, #tpu.memory_space<vmem>>, vector<1x256xf32>
    %79 = vector.broadcast %78 : vector<1x256xf32> to vector<512x256xf32>
    %80 = arith.addf %77, %79 : vector<512x256xf32>
    %c0_53 = arith.constant 0 : index
    %c0_54 = arith.constant 0 : index
    %81 = vector.load %arg2[%c0_53, %c0_54] : memref<512x27xbf16, #tpu.memory_space<vmem>>, vector<512x27xbf16>
    %82 = arith.truncf %80 : vector<512x256xf32> to vector<512x256xbf16>
    %c0_55 = arith.constant 0 : index
    %c0_56 = arith.constant 0 : index
    %83 = vector.load %arg6[%c0_55, %c0_56] : memref<256x128xbf16, #tpu.memory_space<vmem>>, vector<256x128xbf16>
    %cst_57 = arith.constant dense<0.000000e+00> : vector<512x128xf32>
    %84 = tpu.matmul %82, %83, %cst_57 {dimension_numbers = #tpu.dot_dimension_numbers<[1], [0], [0], [1], [0, 0, 1, 1], [], []>} : vector<512x256xbf16>, vector<256x128xbf16>, vector<512x128xf32> -> vector<512x128xf32>
    %c0_58 = arith.constant 0 : index
    %c0_59 = arith.constant 0 : index
    %85 = vector.load %arg7[%c0_58, %c0_59] : memref<27x128xbf16, #tpu.memory_space<vmem>>, vector<27x128xbf16>
    %cst_60 = arith.constant dense<0.000000e+00> : vector<512x128xf32>
    %86 = tpu.matmul %81, %85, %cst_60 {dimension_numbers = #tpu.dot_dimension_numbers<[1], [0], [0], [1], [0, 0, 1, 1], [], []>} : vector<512x27xbf16>, vector<27x128xbf16>, vector<512x128xf32> -> vector<512x128xf32>
    %87 = arith.addf %84, %86 : vector<512x128xf32>
    %c0_61 = arith.constant 0 : index
    %c0_62 = arith.constant 0 : index
    %88 = vector.load %arg8[%c0_61, %c0_62] : memref<1x128xf32, #tpu.memory_space<vmem>>, vector<1x128xf32>
    %89 = vector.broadcast %88 : vector<1x128xf32> to vector<512x128xf32>
    %90 = arith.addf %87, %89 : vector<512x128xf32>
    %cst_63 = arith.constant 0.000000e+00 : f32
    %91 = vector.broadcast %cst_63 : f32 to vector<512x128xf32>
    %92 = arith.maximumf %90, %91 : vector<512x128xf32>
    %c0_64 = arith.constant 0 : index
    %c0_65 = arith.constant 0 : index
    %93 = vector.load %arg9[%c0_64, %c0_65] : memref<256x8xbf16, #tpu.memory_space<vmem>>, vector<256x8xbf16>
    %cst_66 = arith.constant dense<0.000000e+00> : vector<512x8xf32>
    %94 = tpu.matmul %74, %93, %cst_66 {dimension_numbers = #tpu.dot_dimension_numbers<[1], [0], [0], [1], [0, 0, 1, 1], [], []>} : vector<512x256xbf16>, vector<256x8xbf16>, vector<512x8xf32> -> vector<512x8xf32>
    %95 = arith.truncf %92 : vector<512x128xf32> to vector<512x128xbf16>
    %c0_67 = arith.constant 0 : index
    %c0_68 = arith.constant 0 : index
    %96 = vector.load %arg10[%c0_67, %c0_68] : memref<128x8xbf16, #tpu.memory_space<vmem>>, vector<128x8xbf16>
    %cst_69 = arith.constant dense<0.000000e+00> : vector<512x8xf32>
    %97 = tpu.matmul %95, %96, %cst_69 {dimension_numbers = #tpu.dot_dimension_numbers<[1], [0], [0], [1], [0, 0, 1, 1], [], []>} : vector<512x128xbf16>, vector<128x8xbf16>, vector<512x8xf32> -> vector<512x8xf32>
    %98 = arith.addf %94, %97 : vector<512x8xf32>
    %c0_70 = arith.constant 0 : index
    %c0_71 = arith.constant 0 : index
    %99 = vector.load %arg11[%c0_70, %c0_71] : memref<1x8xf32, #tpu.memory_space<vmem>>, vector<1x8xf32>
    %100 = vector.broadcast %99 : vector<1x8xf32> to vector<512x8xf32>
    %101 = arith.addf %98, %100 : vector<512x8xf32>
    %102 = tpu.iota {dimensions = array<i32: 1>} : vector<512x8xi32>
    %c3_i32 = arith.constant 3 : i32
    %103 = vector.broadcast %c3_i32 : i32 to vector<512x8xi32>
    %104 = arith.cmpi slt, %102, %103 : vector<512x8xi32>
    %105 = arith.negf %101 : vector<512x8xf32>
    %106 = math.exp %105 : vector<512x8xf32>
    %cst_72 = arith.constant 1.000000e+00 : f32
    %107 = vector.broadcast %cst_72 : f32 to vector<512x8xf32>
    %108 = arith.addf %107, %106 : vector<512x8xf32>
    %109 = arith.divf %107, %108 : vector<512x8xf32>
    %cst_73 = arith.constant 0.000000e+00 : f32
    %110 = vector.broadcast %cst_73 : f32 to vector<512x8xf32>
    %111 = arith.maximumf %101, %110 : vector<512x8xf32>
    %112 = arith.select %104, %109, %111 : vector<512x8xi1>, vector<512x8xf32>
    %c0_74 = arith.constant 0 : index
    %c0_75 = arith.constant 0 : index
    %113 = vector.load %arg12[%c0_74, %c0_75] : memref<512x8xf32, #tpu.memory_space<vmem>>, vector<512x8xf32>
    tpu.vector_store %arg12[%c0_74, %c0_75], %112 {strides = array<i32>} : memref<512x8xf32, #tpu.memory_space<vmem>>, vector<512x8xf32>,
    return
  }
  func.func @transform_0(%arg0: i32) -> (i32, i32) {
    %c0_i32 = arith.constant 0 : i32
    %c0_i32_0 = arith.constant 0 : i32
    return %arg0, %c0_i32 : i32, i32
  }
  func.func @transform_1(%arg0: i32) -> (i32, i32) {
    %c0_i32 = arith.constant 0 : i32
    %c0_i32_0 = arith.constant 0 : i32
    return %arg0, %c0_i32 : i32, i32
  }
  func.func @transform_2(%arg0: i32) -> (i32, i32) {
    %c0_i32 = arith.constant 0 : i32
    %c0_i32_0 = arith.constant 0 : i32
    %c0_i32_1 = arith.constant 0 : i32
    return %c0_i32, %c0_i32_0 : i32, i32
  }
  func.func @transform_3(%arg0: i32) -> (i32, i32, i32) {
    %c0_i32 = arith.constant 0 : i32
    %c0_i32_0 = arith.constant 0 : i32
    %c0_i32_1 = arith.constant 0 : i32
    %c0_i32_2 = arith.constant 0 : i32
    return %c0_i32, %c0_i32_0, %c0_i32_1 : i32, i32, i32
  }
  func.func @transform_4(%arg0: i32) -> (i32, i32) {
    %c0_i32 = arith.constant 0 : i32
    %c0_i32_0 = arith.constant 0 : i32
    %c0_i32_1 = arith.constant 0 : i32
    return %c0_i32, %c0_i32_0 : i32, i32
  }
  func.func @transform_5(%arg0: i32) -> (i32, i32) {
    %c0_i32 = arith.constant 0 : i32
    %c0_i32_0 = arith.constant 0 : i32
    %c0_i32_1 = arith.constant 0 : i32
    return %c0_i32, %c0_i32_0 : i32, i32
  }
  func.func @transform_6(%arg0: i32) -> (i32, i32) {
    %c0_i32 = arith.constant 0 : i32
    %c0_i32_0 = arith.constant 0 : i32
    %c0_i32_1 = arith.constant 0 : i32
    return %c0_i32, %c0_i32_0 : i32, i32
  }
  func.func @transform_7(%arg0: i32) -> (i32, i32) {
    %c0_i32 = arith.constant 0 : i32
    %c0_i32_0 = arith.constant 0 : i32
    %c0_i32_1 = arith.constant 0 : i32
    return %c0_i32, %c0_i32_0 : i32, i32
  }
  func.func @transform_8(%arg0: i32) -> (i32, i32) {
    %c0_i32 = arith.constant 0 : i32
    %c0_i32_0 = arith.constant 0 : i32
    %c0_i32_1 = arith.constant 0 : i32
    return %c0_i32, %c0_i32_0 : i32, i32
  }
  func.func @transform_9(%arg0: i32) -> (i32, i32) {
    %c0_i32 = arith.constant 0 : i32
    %c0_i32_0 = arith.constant 0 : i32
    %c0_i32_1 = arith.constant 0 : i32
    return %c0_i32, %c0_i32_0 : i32, i32
  }
  func.func @transform_10(%arg0: i32) -> (i32, i32) {
    %c0_i32 = arith.constant 0 : i32
    %c0_i32_0 = arith.constant 0 : i32
    %c0_i32_1 = arith.constant 0 : i32
    return %c0_i32, %c0_i32_0 : i32, i32
  }
  func.func @transform_11(%arg0: i32) -> (i32, i32) {
    %c0_i32 = arith.constant 0 : i32
    %c0_i32_0 = arith.constant 0 : i32
    return %arg0, %c0_i32 : i32, i32
  }
}

</mosaic_0001>

<bundles_post_ra>
// kernel: _lambda_.1
= control target key start
LH: loop header
LB: loop body
LE: loop exit
PB: predicated region body
PF: predicated region fallthrough
CT: control target
= control target key end

     0   :  { %s12606_s17 = smov 0   ;;  %s17256_s0 = inlined_call_operand.vmem [shape: bf16[1024,63], index: 0, kind: input, shape index: {}]   ;;  %s17257_s1 = inlined_call_operand.vmem [shape: bf16[1024,27], index: 1, kind: input, shape index: {}]   ;;  %s17258_s2 = inlined_call_operand.vmem [shape: bf16[63,512], index: 2, kind: input, shape index: {}]   ;;  %s17259_s3 = inlined_call_operand.vmem [shape: bf16[8,256,256], index: 3, kind: input, shape index: {}]   ;;  %s17260_s4 = inlined_call_operand.vmem [shape: f32[9,256], index: 4, kind: input, shape index: {}]   ;;  %s17261_s5 = inlined_call_operand.vmem [shape: bf16[256,128], index: 5, kind: input, shape index: {}]   ;;  %s17262_s6 = inlined_call_operand.vmem [shape: bf16[27,128], index: 6, kind: input, shape index: {}]   ;;  %s17263_s7 = inlined_call_operand.vmem [shape: f32[1,128], index: 7, kind: input, shape index: {}]   ;;  %s17264_s8 = inlined_call_operand.vmem [shape: bf16[256,8], index: 8, kind: input, shape index: {}]   ;;  %s17265_s9 = inlined_call_operand.vmem [shape: bf16[128,8], index: 9, kind: input, shape index: {}]   ;;  %s17266_s10 = inlined_call_operand.vmem [shape: f32[1,8], index: 10, kind: input, shape index: {}]   ;;  %s17267_s11 = inlined_call_operand.vmem [shape: f32[1024,8], index: 11, kind: output, shape index: {}]  }
   0x1 LB: > { %s10592_s18 = sadd.s32 4294967295, %s12542_s17   ;;  %p10596_p0 = scmp.ge.s32.totalorder %s12542_s17, 1  ;;  %s12542_s17 = sphi %s12606_s17, %s21_s17  }
   0x2   : > { %p349_p1 = scmp.lt.s32.totalorder %s12542_s17, 3 }
   0x4   : > { %p350_p2 = pnand %p10596_p0, %p349_p1 }
   0x6   : > { %353 = sbr.rel (%p350_p2) target bundleno = 3102 (0xc1e), region = 64 }
   0xd   : > { %v11745_v0 = vld [vmem:[%s17258_s2 + $0x4] ss:$16 sps:$4 sm:$0xff]   ;;  %vm826_vm0 = vcmask 1046528   ;;  %v11747_v1 = vld [vmem:[%s17258_s2] ss:$16 sps:$4 sm:$0xff]   ;;  %vm827_vm1 = vcmask 1047552  }
   0xe   : > { %842 = vmatprep.subr.bf16.mxu0 %v11745_v0  ;;  %v11748_v2 = vld [vmem:[%s17258_s2 + $0x24] ss:$16 sps:$4 sm:$0xff]   ;;  %v12544_v3 = vmov 65535   ;;  %v17269_v5 = vmov 0   ;;  %v11750_v6 = vld [vmem:[%s17258_s2 + $0x20] ss:$16 sps:$4 sm:$0xff]   ;;  %11599 = vmatprep.subr.bf16.mxu1 %v11745_v0 }
   0xf   : > { %v828_v4 = vsel %vm826_vm0, 4294967295, %v12544_v3  ;;  %874 = vmatprep.mubr.bf16.mxu0 %v17269_v5  ;;  %843 = vmatpush1.bf16.msra.mxu0 %v11747_v1  ;;  %v11751_v7 = vld [vmem:[%s17258_s2 + $0x44] ss:$16 sps:$4 sm:$0xff]   ;;  %s10597_s12 = sshll.u32 %s10592_s18, 6  ;;  %v11753_v10 = vld [vmem:[%s17258_s2 + $0x40] ss:$16 sps:$4 sm:$0xff]  }
  0x10   : > { %844 = vmatprep.subr.bf16.mxu0 %v11748_v2  ;;  %v11754_v8 = vld [vmem:[%s17258_s2 + $0x64] ss:$16 sps:$4 sm:$0xff]   ;;  %11603 = vmatpush1.bf16.msra.mxu1 %v11747_v1  ;;  %v12634_v9 = vsel %vm827_vm1, %v828_v4, 0  ;;  %p395_p3 = scmp.lt.s32.totalorder %s10597_s12, 127  ;;  %v11756_v11 = vld [vmem:[%s17258_s2 + $0x60] ss:$16 sps:$4 sm:$0xff]  }
  0x11   : > { %11600 = vmatprep.subr.bf16.mxu1 %v11748_v2  ;;  %1034 = vmatprep.mubr.bf16.mxu1 %v17269_v5  ;;  %v834_v12 = vand.u32 %v11754_v8, %v12634_v9  ;;  %v831_v13 = vand.u32 %v11756_v11, %v12634_v9  ;;  %v11782_v14 = vld [vmem:[%s17259_s3 + $0x4] ss:$8 sps:$4 sm:$0xff]   ;;  %vm729_vm2 = vcmask 515072   ;;  %v11780_v17 = vld [vmem:[%s17259_s3] ss:$8 sps:$4 sm:$0xff]   ;;  %vm8255_vm3 = vcmask 1044480  }
  0x12   : > { %s17540_s12 = smov (!%p395_p3, %s10597_s12), 127  ;;  %v11768_v15 = vld [vmem:[%s17258_s2 + $0xc] ss:$16 sps:$4 sm:$0xff]   ;;  %v11766_v18 = vld [vmem:[%s17258_s2 + $0x8] ss:$16 sps:$4 sm:$0xff]   ;;  %vm8256_vm4 = vcmask 1045504  }
  0x13   : > { %845 = vmatpush1.bf16.msra.mxu0 %v11750_v6  ;;  %s10598_s18 = sshll.u32 %s17540_s12, 2  ;;  %v11787_v19 = vld [vmem:[%s17259_s3 + $0x14] ss:$8 sps:$4 sm:$0xff]   ;;  %v11785_v21 = vld [vmem:[%s17259_s3 + $0x10] ss:$8 sps:$4 sm:$0xff]   ;;  %vm8158_vm5 = vcmask 220160  }
  0x14   : > { %846 = vmatprep.subr.bf16.mxu0 %v11751_v7  ;;  %11604 = vmatpush1.bf16.msra.mxu1 %v11750_v6  ;;  %s12652_s21 = scalar_lea.vmem %s17256_s0, %s10598_s18  ;;  %v11779_v20 = vld [vmem:[%s17258_s2 + $0x2c] ss:$16 sps:$4 sm:$0xff]   ;;  %v11777_v23 = vld [vmem:[%s17258_s2 + $0x28] ss:$16 sps:$4 sm:$0xff]   ;;  %s15296_s23 = scalar_lea.vmem %s17257_s1, %s10598_s18  ;;  %vm10459_vm7 = vcmask 64512  }
  0x15   : > { %11601 = vmatprep.subr.bf16.mxu1 %v11751_v7  ;;  %v11757_v16 = vld [vmem:[%s12652_s21] sm:$0xff]   ;;  %v11758_v24 = vld [vmem:[%s12652_s21 + $0x8] sm:$0xff]   ;;  %v11759_v26 = vld [vmem:[%s12652_s21 + $0x10] sm:$0xff]   ;;  %s10602_s26 = sshll.u32 %s17540_s12, 3 }
  0x16   : > { %v11765_v22 = vld [vmem:[%s12652_s21 + $0x80] sm:$0xff]   ;;  %v11770_v25 = vld [vmem:[%s12652_s21 + $0x88] sm:$0xff]   ;;  %v11772_v29 = vld [vmem:[%s12652_s21 + $0x90] sm:$0xff]   ;;  %s16646_s29 = scalar_lea.vmem %s17267_s11, %s10602_s26 }
  0x17   : > { %847 = vmatpush1.bf16.msra.mxu0 %v11753_v10  ;;  %v11790_v27 = vld [vmem:[%s17259_s3 + $0x20] ss:$8 sps:$4 sm:$0xff]   ;;  %v11792_v28 = vld [vmem:[%s17259_s3 + $0x24] ss:$8 sps:$4 sm:$0xff]   ;;  %v11795_v30 = vld [vmem:[%s17259_s3 + $0x30] ss:$8 sps:$4 sm:$0xff]  }
  0x18   : > { %848 = vmatprep.subr.bf16.mxu0 %v834_v12  ;;  %11605 = vmatpush1.bf16.msra.mxu1 %v11753_v10  ;;  %v11797_v31 = vld [vmem:[%s17259_s3 + $0x34] ss:$8 sps:$4 sm:$0xff]   ;;  %v11800_v33 = vld [vmem:[%s17258_s2 + $0x48] ss:$16 sps:$4 sm:$0xff]   ;;  %v11805_v36 = vld [vmem:[%s17259_s3 + $0x44] ss:$8 sps:$4 sm:$0xff]  }
  0x19   : > { %11602 = vmatprep.subr.bf16.mxu1 %v834_v12  ;;  %v11760_v32 = vld [vmem:[%s12652_s21 + $0x18] sm:$0xff]   ;;  %v11803_v35 = vld [vmem:[%s17259_s3 + $0x40] ss:$8 sps:$4 sm:$0xff]   ;;  %v11813_v40 = vld [vmem:[%s17259_s3 + $0x64] ss:$8 sps:$4 sm:$0xff]  }
  0x1a   : > { %v11802_v34 = vld [vmem:[%s17258_s2 + $0x4c] ss:$16 sps:$4 sm:$0xff]   ;;  %v11807_v39 = vld [vmem:[%s17259_s3 + $0x50] ss:$8 sps:$4 sm:$0xff]   ;;  %v12736_v41 = vld [vmem:[%s12652_s21 + $0x20] sm:$0xff]  }
  0x1b   : > { %849 = vmatpush1.bf16.msra.mxu0 %v831_v13  ;;  %v11774_v37 = vld [vmem:[%s12652_s21 + $0x98] sm:$0xff]   ;;  %v11776_v42 = vld [vmem:[%s12652_s21 + $0xa0] sm:$0xff]   ;;  %v12765_v51 = vld [vmem:[%s12652_s21 + $0x28] sm:$0xff]  }
  0x1c   : > { %11606 = vmatpush1.bf16.msra.mxu1 %v831_v13  ;;  %2085 = vmatprep.subr.bf16.mxu0 %v11782_v14  ;;  %v11809_v38 = vld [vmem:[%s17259_s3 + $0x54] ss:$8 sps:$4 sm:$0xff]   ;;  %v11811_v43 = vld [vmem:[%s17259_s3 + $0x60] ss:$8 sps:$4 sm:$0xff]   ;;  %v11815_v48 = vld [vmem:[%s17259_s3 + $0x70] ss:$8 sps:$4 sm:$0xff]  }
  0x1d   : > { %1195 = vmatprep.subr.bf16.mxu1 %v11768_v15  ;;  %v11817_v44 = vld [vmem:[%s17259_s3 + $0x74] ss:$8 sps:$4 sm:$0xff]   ;;  %v11819_v45 = vld [vmem:[%s17258_s2 + $0x68] ss:$16 sps:$4 sm:$0xff]   ;;  %v11824_v50 = vld [vmem:[%s17259_s3 + $0x84] ss:$8 sps:$4 sm:$0xff]  }
  0x1e   : > { %10651 = vmatmul.mubr.msk.bf16.vlgmr.msra.gmra.mrb[0].mxu0 %vm729_vm2, %v11757_v16  ;;  %v11821_v46 = vld [vmem:[%s17258_s2 + $0x6c] ss:$16 sps:$4 sm:$0xff]   ;;  %v837_v47 = vand.u32 %v11819_v45, %v12634_v9  ;;  %v11822_v53 = vld [vmem:[%s17259_s3 + $0x80] ss:$8 sps:$4 sm:$0xff]   ;;  %v11826_v56 = vld [vmem:[%s17259_s3 + $0x90] ss:$8 sps:$4 sm:$0xff]  }
  0x1f   : > { %884 = vmatprep.mubr.bf16.mxu0 %v17269_v5  ;;  %2086 = vmatpush1.bf16.msra.mxu0 %v11780_v17  ;;  %v840_v49 = vand.u32 %v11821_v46, %v12634_v9  ;;  %v11784_v52 = vld [vmem:[%s12652_s21 + $0xa8] sm:$0xff]   ;;  %v11828_v54 = vld [vmem:[%s17259_s3 + $0x94] ss:$8 sps:$4 sm:$0xff]   ;;  %v11834_v62 = vld [vmem:[%s17259_s3 + $0xb0] ss:$8 sps:$4 sm:$0xff]  }
  0x20   : > { %2087 = vmatprep.subr.bf16.mxu0 %v11787_v19  ;;  %10667 = vmatmul.mubr.msk.bf16.vlgmr.msra.gmra.mrb[0].mxu1 %vm729_vm2, %v11765_v22  ;;  %v11839_v55 = vld [vmem:[%s17259_s3 + $0x104] ss:$8 sps:$4 sm:$0xff]   ;;  %v12789_v58 = vld [vmem:[%s12652_s21 + $0x30] sm:$0xff]   ;;  %v11830_v60 = vld [vmem:[%s17259_s3 + $0xa0] ss:$8 sps:$4 sm:$0xff]  }
  0x21   : > { %1196 = vmatpush1.bf16.msra.mxu1 %v11766_v18  ;;  %1044 = vmatprep.mubr.bf16.mxu1 %v17269_v5  ;;  %v11832_v57 = vld [vmem:[%s17259_s3 + $0xa4] ss:$8 sps:$4 sm:$0xff]   ;;  %v11789_v59 = vld [vmem:[%s12652_s21 + $0xb0] sm:$0xff]   ;;  %v12809_v0 = vld [vmem:[%s12652_s21 + $0x38] sm:$0xff]  }
  0x22   : > { %1197 = vmatprep.subr.bf16.mxu1 %v11779_v20  ;;  %v11836_v61 = vld [vmem:[%s17259_s3 + $0xb4] ss:$8 sps:$4 sm:$0xff]   ;;  %v11842_v63 = vld [vmem:[%s17259_s3 + $0xc4] ss:$8 sps:$4 sm:$0xff]   ;;  %v11840_v1 = vld [vmem:[%s17259_s3 + $0xc0] ss:$8 sps:$4 sm:$0xff]  }
  0x23   : > { %2088 = vmatpush1.bf16.msra.mxu0 %v11785_v21  ;;  %v11794_v2 = vld [vmem:[%s12652_s21 + $0xb8] sm:$0xff]   ;;  %v11851_v7 = vld [vmem:[%s17259_s3 + $0xe4] ss:$8 sps:$4 sm:$0xff]   ;;  %v11849_v9 = vld [vmem:[%s17259_s3 + $0xe0] ss:$8 sps:$4 sm:$0xff]  }
  0x24   : > { %2089 = vmatprep.subr.bf16.mxu0 %v11792_v28  ;;  %v11845_v4 = vld [vmem:[%s17259_s3 + $0xd4] ss:$8 sps:$4 sm:$0xff]   ;;  %v11843_v6 = vld [vmem:[%s17259_s3 + $0xd0] ss:$8 sps:$4 sm:$0xff]   ;;  %v12830_v8 = vld [vmem:[%s12652_s21 + $0x40] sm:$0xff]  }
  0x25   : > { %1198 = vmatpush1.bf16.msra.mxu1 %v11777_v23  ;;  %v11799_v10 = vld [vmem:[%s12652_s21 + $0xc0] sm:$0xff]   ;;  %v12842_v11 = vld [vmem:[%s12652_s21 + $0x48] sm:$0xff]   ;;  %v12851_v13 = vld [vmem:[%s12652_s21 + $0x50] sm:$0xff]  }
  0x26   : > { %10652 = vmatmul.mubr.msk.bf16.gmra.mrb[4].mxu0 %vm729_vm2, %v11758_v24  ;;  %1199 = vmatprep.subr.bf16.mxu1 %v11802_v34  ;;  %v11806_v12 = vld [vmem:[%s12652_s21 + $0xc8] sm:$0xff]   ;;  %v11810_v14 = vld [vmem:[%s12652_s21 + $0xd0] sm:$0xff]   ;;  %v12860_v15 = vld [vmem:[%s12652_s21 + $0x58] sm:$0xff]  }
  0x27   : > { %894 = vmatprep.mubr.bf16.mxu0 %v17269_v5  ;;  %2090 = vmatpush1.bf16.msra.mxu0 %v11790_v27  ;;  %v11814_v16 = vld [vmem:[%s12652_s21 + $0xd8] sm:$0xff]   ;;  %v12875_v19 = vld [vmem:[%s12652_s21 + $0x60] sm:$0xff]   ;;  %v12884_v21 = vld [vmem:[%s12652_s21 + $0x68] sm:$0xff]  }
  0x28   : > { %10668 = vmatmul.mubr.msk.bf16.gmra.mrb[4].mxu1 %vm729_vm2, %v11770_v25  ;;  %2091 = vmatprep.subr.bf16.mxu0 %v11797_v31  ;;  %v11854_v17 = vld [vmem:[%s17259_s3 + $0xf4] ss:$8 sps:$4 sm:$0xff]   ;;  %v11852_v18 = vld [vmem:[%s17259_s3 + $0xf0] ss:$8 sps:$4 sm:$0xff]   ;;  %v11818_v20 = vld [vmem:[%s12652_s21 + $0xe0] sm:$0xff]  }
  0x29   : > { %1054 = vmatprep.mubr.bf16.mxu1 %v17269_v5  ;;  %1200 = vmatpush1.bf16.msra.mxu1 %v11800_v33  ;;  %v11825_v22 = vld [vmem:[%s12652_s21 + $0xe8] sm:$0xff]   ;;  %v12893_v23 = vld [vmem:[%s12652_s21 + $0x70] sm:$0xff]   ;;  %v12902_v25 = vld [vmem:[%s12652_s21 + $0x78] sm:$0xff]  }
  0x2a   : > { %1201 = vmatprep.subr.bf16.mxu1 %v840_v49  ;;  %v11829_v24 = vld [vmem:[%s12652_s21 + $0xf0] sm:$0xff]   ;;  %v11837_v27 = vld [vmem:[%s17259_s3 + $0x100] ss:$8 sps:$4 sm:$0xff]   ;;  %v11857_v31 = vld [vmem:[%s17259_s3 + $0x124] ss:$8 sps:$4 sm:$0xff]  }
  0x2b   : > { %2092 = vmatpush1.bf16.msra.mxu0 %v11795_v30  ;;  %v11848_v28 = vld [vmem:[%s17259_s3 + $0x114] ss:$8 sps:$4 sm:$0xff]   ;;  %v12515_v30 = vld [vmem:[%s12652_s21] sm:$0xff]   ;;  %v11858_v34 = vld [vmem:[%s17259_s3 + $0x130] ss:$8 sps:$4 sm:$0xff]  }
  0x2c   : > { %2093 = vmatprep.subr.bf16.mxu0 %v11805_v36  ;;  %v11860_v33 = vld [vmem:[%s17259_s3 + $0x134] ss:$8 sps:$4 sm:$0xff]   ;;  %v11863_v36 = vld [vmem:[%s17259_s3 + $0x144] ss:$8 sps:$4 sm:$0xff]   ;;  %v11870_v45 = vld [vmem:[%s17259_s3 + $0x170] ss:$8 sps:$4 sm:$0xff]  }
  0x2d   : > { %1202 = vmatpush1.bf16.msra.mxu1 %v837_v47  ;;  %v11872_v46 = vld [vmem:[%s17259_s3 + $0x174] ss:$8 sps:$4 sm:$0xff]   ;;  %v11875_v47 = vld [vmem:[%s17259_s3 + $0x184] ss:$8 sps:$4 sm:$0xff]  }
  0x2e   : > { %10653 = vmatmul.mubr.msk.bf16.gmra.mrb[8].mxu0 %vm729_vm2, %v11759_v26  ;;  %2836 = vmatprep.subr.bf16.mxu1 %v11839_v55  ;;  %v11833_v26 = vld [vmem:[%s12652_s21 + $0xf8] sm:$0xff]  }
  0x2f   : > { %904 = vmatprep.mubr.bf16.mxu0 %v17269_v5  ;;  %2094 = vmatpush1.bf16.msra.mxu0 %v11803_v35  ;;  %v12516_v35 = vld [vmem:[%s12652_s21 + $0x8] sm:$0xff]  }
  0x30   : > { %10669 = vmatmul.mubr.msk.bf16.gmra.mrb[8].mxu1 %vm729_vm2, %v11772_v29  ;;  %2095 = vmatprep.subr.bf16.mxu0 %v11809_v38  ;;  %v11846_v29 = vld [vmem:[%s17259_s3 + $0x110] ss:$8 sps:$4 sm:$0xff]   ;;  %v11866_v38 = vld [vmem:[%s17259_s3 + $0x154] ss:$8 sps:$4 sm:$0xff]  }
  0x31   : > { %1064 = vmatprep.mubr.bf16.mxu1 %v17269_v5 }
  0x33   : > { %2096 = vmatpush1.bf16.msra.mxu0 %v11807_v39  ;;  %v11864_v39 = vld [vmem:[%s17259_s3 + $0x150] ss:$8 sps:$4 sm:$0xff]  }
  0x34   : > { %2097 = vmatprep.subr.bf16.mxu0 %v11813_v40  ;;  %v12517_v40 = vld [vmem:[%s12652_s21 + $0x10] sm:$0xff]  }
  0x36   : > { %10654 = vmatmul.mubr.msk.bf16.gmra.mrb[12].mxu0 %vm729_vm2, %v11760_v32  ;;  %v11855_v32 = vld [vmem:[%s17259_s3 + $0x120] ss:$8 sps:$4 sm:$0xff]  }
  0x37   : > { %914 = vmatprep.mubr.bf16.mxu0 %v17269_v5  ;;  %2098 = vmatpush1.bf16.msra.mxu0 %v11811_v43  ;;  %v11867_v43 = vld [vmem:[%s17259_s3 + $0x160] ss:$8 sps:$4 sm:$0xff]  }
  0x38   : > { %10670 = vmatmul.mubr.msk.bf16.gmra.mrb[12].mxu1 %vm729_vm2, %v11774_v37  ;;  %2099 = vmatprep.subr.bf16.mxu0 %v11817_v44  ;;  %v11861_v37 = vld [vmem:[%s17259_s3 + $0x140] ss:$8 sps:$4 sm:$0xff]   ;;  %v11869_v44 = vld [vmem:[%s17259_s3 + $0x164] ss:$8 sps:$4 sm:$0xff]  }
  0x39   : > { %1074 = vmatprep.mubr.bf16.mxu1 %v17269_v5 }
  0x3b   : > { %2100 = vmatpush1.bf16.msra.mxu0 %v11815_v48  ;;  %v17268_v48 = vlaneseq }
  0x3c   : > { %2101 = vmatprep.subr.bf16.mxu0 %v11824_v50 }
  0x3d   : > { %v1551_v49 = vshrl.u32 %v17268_v48, 7 }
  0x3e   : > { %10655 = vmatmul.mubr.msk.bf16.gmra.mrb[16].mxu0 %vm729_vm2, %v12736_v41 }
  0x3f   : > { %924 = vmatprep.mubr.bf16.mxu0 %v17269_v5  ;;  %2102 = vmatpush1.bf16.msra.mxu0 %v11822_v53  ;;  %v12992_v50 = vsub.s32 0, %v1551_v49  ;;  %v11876_v53 = vld [vmem:[%s17259_s3 + $0x190] ss:$8 sps:$4 sm:$0xff]  }
  0x40   : > { %10671 = vmatmul.mubr.msk.bf16.gmra.mrb[16].mxu1 %vm729_vm2, %v11776_v42  ;;  %2103 = vmatprep.subr.bf16.mxu0 %v11828_v54  ;;  %v12518_v42 = vld [vmem:[%s12652_s21 + $0x18] sm:$0xff]  }
  0x41   : > { %1084 = vmatprep.mubr.bf16.mxu1 %v17269_v5  ;;  %v11878_v54 = vld [vmem:[%s17259_s3 + $0x194] ss:$8 sps:$4 sm:$0xff]  }
  0x43   : > { %2104 = vmatpush1.bf16.msra.mxu0 %v11826_v56 }
  0x44   : > { %2105 = vmatprep.subr.bf16.mxu0 %v11832_v57 }
  0x46   : > { %10656 = vmatmul.mubr.msk.bf16.gmra.mrb[20].mxu0 %vm729_vm2, %v12765_v51 }
  0x47   : > { %934 = vmatprep.mubr.bf16.mxu0 %v17269_v5  ;;  %2106 = vmatpush1.bf16.msra.mxu0 %v11830_v60 }
  0x48   : > { %10672 = vmatmul.mubr.msk.bf16.gmra.mrb[20].mxu1 %vm729_vm2, %v11784_v52  ;;  %2107 = vmatprep.subr.bf16.mxu0 %v11836_v61  ;;  %v12998_v52 = vsub.s32 1, %v1551_v49 }
  0x49   : > { %1094 = vmatprep.mubr.bf16.mxu1 %v17269_v5 }
  0x4b   : > { %2108 = vmatpush1.bf16.msra.mxu0 %v11834_v62 }
  0x4c   : > { %2109 = vmatprep.subr.bf16.mxu0 %v11842_v63 }
  0x4e   : > { %10657 = vmatmul.mubr.msk.bf16.gmra.mrb[24].mxu0 %vm729_vm2, %v12789_v58 }
  0x4f   : > { %944 = vmatprep.mubr.bf16.mxu0 %v17269_v5  ;;  %2110 = vmatpush1.bf16.msra.mxu0 %v11840_v1 }
  0x50   : > { %10673 = vmatmul.mubr.msk.bf16.gmra.mrb[24].mxu1 %vm729_vm2, %v11789_v59  ;;  %2111 = vmatprep.subr.bf16.mxu0 %v11845_v4 }
  0x51   : > { %1104 = vmatprep.mubr.bf16.mxu1 %v17269_v5 }
  0x53   : > { %2112 = vmatpush1.bf16.msra.mxu0 %v11843_v6  ;;  %v11879_v6 = vld [vmem:[%s17259_s3 + $0x1a0] ss:$8 sps:$4 sm:$0xff]  }
  0x54   : > { %2113 = vmatprep.subr.bf16.mxu0 %v11851_v7  ;;  %v11881_v7 = vld [vmem:[%s17259_s3 + $0x1a4] ss:$8 sps:$4 sm:$0xff]  }
  0x56   : > { %10658 = vmatmul.mubr.msk.bf16.gmra.mrb[28].mxu0 %vm729_vm2, %v12809_v0 }
  0x57   : > { %954 = vmatprep.mubr.bf16.mxu0 %v17269_v5  ;;  %2114 = vmatpush1.bf16.msra.mxu0 %v11849_v9 }
  0x58   : > { %10674 = vmatmul.mubr.msk.bf16.gmra.mrb[28].mxu1 %vm729_vm2, %v11794_v2  ;;  %2115 = vmatprep.subr.bf16.mxu0 %v11854_v17 }
  0x59   : > { %1114 = vmatprep.mubr.bf16.mxu1 %v17269_v5 }
  0x5b   : > { %2116 = vmatpush1.bf16.msra.mxu0 %v11852_v18 }
  0x5e   : > { %10659 = vmatmul.mubr.msk.bf16.gmra.mrb[32].mxu0 %vm729_vm2, %v12830_v8 }
  0x5f   : > { %964 = vmatprep.mubr.bf16.mxu0 %v17269_v5 }
  0x60   : > { %10675 = vmatmul.mubr.msk.bf16.gmra.mrb[32].mxu1 %vm729_vm2, %v11799_v10 }
  0x61   : > { %1124 = vmatprep.mubr.bf16.mxu1 %v17269_v5 }
  0x66   : > { %10660 = vmatmul.mubr.msk.bf16.gmra.mrb[36].mxu0 %vm729_vm2, %v12842_v11 }
  0x67   : > { %974 = vmatprep.mubr.bf16.mxu0 %v17269_v5 }
  0x68   : > { %10676 = vmatmul.mubr.msk.bf16.gmra.mrb[36].mxu1 %vm729_vm2, %v11806_v12 }
  0x69   : > { %1134 = vmatprep.mubr.bf16.mxu1 %v17269_v5 }
  0x6e   : > { %10661 = vmatmul.mubr.msk.bf16.gmra.mrb[40].mxu0 %vm729_vm2, %v12851_v13 }
  0x6f   : > { %984 = vmatprep.mubr.bf16.mxu0 %v17269_v5 }
  0x70   : > { %10677 = vmatmul.mubr.msk.bf16.gmra.mrb[40].mxu1 %vm729_vm2, %v11810_v14 }
  0x71   : > { %1144 = vmatprep.mubr.bf16.mxu1 %v17269_v5 }
  0x76   : > { %10662 = vmatmul.mubr.msk.bf16.gmra.mrb[44].mxu0 %vm729_vm2, %v12860_v15 }
  0x77   : > { %994 = vmatprep.mubr.bf16.mxu0 %v17269_v5 }
  0x78   : > { %10678 = vmatmul.mubr.msk.bf16.gmra.mrb[44].mxu1 %vm729_vm2, %v11814_v16 }
  0x79   : > { %1154 = vmatprep.mubr.bf16.mxu1 %v17269_v5 }
  0x7e   : > { %10663 = vmatmul.mubr.msk.bf16.gmra.mrb[48].mxu0 %vm729_vm2, %v12875_v19 }
  0x7f   : > { %1004 = vmatprep.mubr.bf16.mxu0 %v17269_v5 }
  0x80   : > { %10679 = vmatmul.mubr.msk.bf16.gmra.mrb[48].mxu1 %vm729_vm2, %v11818_v20 }
  0x81   : > { %1164 = vmatprep.mubr.bf16.mxu1 %v17269_v5 }
  0x86   : > { %10664 = vmatmul.mubr.msk.bf16.gmra.mrb[52].mxu0 %vm729_vm2, %v12884_v21 }
  0x87   : > { %1014 = vmatprep.mubr.bf16.mxu0 %v17269_v5 }
  0x88   : > { %10680 = vmatmul.mubr.msk.bf16.gmra.mrb[52].mxu1 %vm729_vm2, %v11825_v22 }
  0x89   : > { %1174 = vmatprep.mubr.bf16.mxu1 %v17269_v5 }
  0x8e   : > { %10665 = vmatmul.mubr.msk.bf16.gmra.mrb[56].mxu0 %vm729_vm2, %v12893_v23 }
  0x8f   : > { %1024 = vmatprep.mubr.bf16.mxu0 %v17269_v5 }
  0x90   : > { %10681 = vmatmul.mubr.msk.bf16.gmra.mrb[56].mxu1 %vm729_vm2, %v11829_v24 }
  0x91   : > { %1184 = vmatprep.mubr.bf16.mxu1 %v17269_v5 }
  0x96   : > { %10666 = vmatmul.mubr.msk.bf16.gmra.mrb[60].mxu0 %vm729_vm2, %v12902_v25 }
  0x98   : > { %10682 = vmatmul.mubr.msk.bf16.gmra.mrb[60].mxu1 %vm729_vm2, %v11833_v26 }
  0x99   : > { %1227 = vmatprep.mubr.bf16.mxu1 %v17269_v5 }
  0xa0   : > { %10683 = vmatmul.mubr.msk.bf16.vlgmr.msra.gmra.mrb[64].mxu1 %vm729_vm2, %v12515_v30 }
  0xa1   : > { %2837 = vmatpush1.bf16.msra.mxu1 %v11837_v27  ;;  %1237 = vmatprep.mubr.bf16.mxu1 %v17269_v5 }
  0xa2   : > { %2838 = vmatprep.subr.bf16.mxu1 %v11848_v28 }
  0xa5   : > { %2839 = vmatpush1.bf16.msra.mxu1 %v11846_v29 }
  0xa6   : > { %2840 = vmatprep.subr.bf16.mxu1 %v11857_v31 }
  0xa8   : > { %10684 = vmatmul.mubr.msk.bf16.gmra.mrb[68].mxu1 %vm729_vm2, %v12516_v35 }
  0xa9   : > { %1247 = vmatprep.mubr.bf16.mxu1 %v17269_v5  ;;  %2841 = vmatpush1.bf16.msra.mxu1 %v11855_v32 }
  0xaa   : > { %2842 = vmatprep.subr.bf16.mxu1 %v11860_v33 }
  0xad   : > { %2843 = vmatpush1.bf16.msra.mxu1 %v11858_v34 }
  0xae   : > { %2844 = vmatprep.subr.bf16.mxu1 %v11863_v36 }
  0xb0   : > { %10685 = vmatmul.mubr.msk.bf16.gmra.mrb[72].mxu1 %vm729_vm2, %v12517_v40 }
  0xb1   : > { %1257 = vmatprep.mubr.bf16.mxu1 %v17269_v5  ;;  %2845 = vmatpush1.bf16.msra.mxu1 %v11861_v37 }
  0xb2   : > { %2846 = vmatprep.subr.bf16.mxu1 %v11866_v38 }
  0xb5   : > { %2847 = vmatpush1.bf16.msra.mxu1 %v11864_v39 }
  0xb6   : > { %2848 = vmatprep.subr.bf16.mxu1 %v11869_v44 }
  0xb8   : > { %10686 = vmatmul.mubr.msk.bf16.gmra.mrb[76].mxu1 %vm729_vm2, %v12518_v42 }
  0xb9   : > { %1267 = vmatprep.mubr.bf16.mxu1 %v17269_v5  ;;  %2849 = vmatpush1.bf16.msra.mxu1 %v11867_v43 }
  0xba   : > { %2850 = vmatprep.subr.bf16.mxu1 %v11872_v46 }
  0xbd   : > { %2851 = vmatpush1.bf16.msra.mxu1 %v11870_v45 }
  0xbe   : > { %2852 = vmatprep.subr.bf16.mxu1 %v11875_v47 }
  0xc0   : > { %10687 = vmatmul.mubr.msk.bf16.gmra.mrb[80].mxu1 %vm729_vm2, %v12736_v41  ;;  %v11873_v41 = vld [vmem:[%s17259_s3 + $0x180] ss:$8 sps:$4 sm:$0xff]  }
  0xc1   : > { %1277 = vmatprep.mubr.bf16.mxu1 %v17269_v5  ;;  %2853 = vmatpush1.bf16.msra.mxu1 %v11873_v41 }
  0xc2   : > { %2854 = vmatprep.subr.bf16.mxu1 %v11878_v54 }
  0xc5   : > { %2855 = vmatpush1.bf16.msra.mxu1 %v11876_v53 }
  0xc6   : > { %2856 = vmatprep.subr.bf16.mxu1 %v11881_v7 }
  0xc8   : > { %10688 = vmatmul.mubr.msk.bf16.gmra.mrb[84].mxu1 %vm729_vm2, %v12765_v51  ;;  %v1548_v51 = vld [vmem:[%s17260_s4] ss:$8 sm:$0x3] }
  0xc9   : > { %1287 = vmatprep.mubr.bf16.mxu1 %v17269_v5  ;;  %v13007_v55 = vrot.slane %v1548_v51, %v12992_v50  ;;  %v13010_v56 = vrot.slane %v1548_v51, %v12998_v52  ;;  %2857 = vmatpush1.bf16.msra.mxu1 %v11879_v6 }
  0xd0   : > { %10689 = vmatmul.mubr.msk.bf16.gmra.mrb[88].mxu1 %vm729_vm2, %v12789_v58 }
  0xd1   : > { %1297 = vmatprep.mubr.bf16.mxu1 %v17269_v5 }
  0xd8   : > { %10690 = vmatmul.mubr.msk.bf16.gmra.mrb[92].mxu1 %vm729_vm2, %v12809_v0 }
  0xd9   : > { %1307 = vmatprep.mubr.bf16.mxu1 %v17269_v5 }
  0xe0   : > { %10691 = vmatmul.mubr.msk.bf16.gmra.mrb[96].mxu1 %vm729_vm2, %v12830_v8 }
  0xe1   : > { %1317 = vmatprep.mubr.bf16.mxu1 %v17269_v5 }
  0xe8   : > { %10692 = vmatmul.mubr.msk.bf16.gmra.mrb[100].mxu1 %vm729_vm2, %v12842_v11 }
  0xe9   : > { %1327 = vmatprep.mubr.bf16.mxu1 %v17269_v5 }
  0xf0   : > { %10693 = vmatmul.mubr.msk.bf16.gmra.mrb[104].mxu1 %vm729_vm2, %v12851_v13 }
  0xf1   : > { %v876_v57 = vpop.f32.mrb[0].mxu0  ;;  %1337 = vmatprep.mubr.bf16.mxu1 %v17269_v5 }
  0xf2   : > { %v1560_v58 = vadd.f32 %v13007_v55, %v876_v57  ;;  %v878_v59 = vpop.f32.mrb[1].mxu0 }
  0xf3   : > { %v1561_v60 = vadd.f32 %v13010_v56, %v878_v59  ;;  %v880_v61 = vpop.f32.mrb[2].mxu0  ;;  %v1036_v0 = vpop.f32.mrb[0].mxu1 }
  0xf4   : > { %v1562_v62 = vadd.f32 %v13007_v55, %v880_v61  ;;  %v882_v63 = vpop.f32.mrb[3].mxu0  ;;  %v1624_v2 = vadd.f32 %v13007_v55, %v1036_v0  ;;  %v1038_v4 = vpop.f32.mrb[1].mxu1  ;;  %v1688_v8 = vmax.f32 %v1560_v58, 0.0 }
  0xf5   : > { %v1563_v1 = vadd.f32 %v13010_v56, %v882_v63  ;;  %v1625_v10 = vadd.f32 %v13010_v56, %v1038_v4  ;;  %v1040_v11 = vpop.f32.mrb[2].mxu1  ;;  %v1689_v12 = vmax.f32 %v1561_v60, 0.0 }
  0xf6   : > { %v1690_v9 = vmax.f32 %v1562_v62, 0.0  ;;  %v1752_v14 = vmax.f32 %v1624_v2, 0.0  ;;  %v1626_v16 = vadd.f32 %v13007_v55, %v1040_v11  ;;  %v1042_v17 = vpop.f32.mrb[3].mxu1  ;;  %v11884_v11 = vld [vmem:[%s17259_s3 + $0x1b4] ss:$8 sps:$4 sm:$0xff]  }
  0xf7   : > { %v1691_v13 = vmax.f32 %v1563_v1, 0.0  ;;  %v1753_v20 = vmax.f32 %v1625_v10, 0.0  ;;  %v1627_v22 = vadd.f32 %v13010_v56, %v1042_v17  ;;  %v11882_v10 = vld [vmem:[%s17259_s3 + $0x1b0] ss:$8 sps:$4 sm:$0xff]   ;;  %2858 = vmatprep.subr.bf16.mxu1 %v11884_v11 }
  0xf8   : > { %v1816_v18 = vpack.c.bf16 %v1690_v9, %v1688_v8  ;;  %v1754_v27 = vmax.f32 %v1626_v16, 0.0  ;;  %10694 = vmatmul.mubr.msk.bf16.gmra.mrb[108].mxu1 %vm729_vm2, %v12860_v15 }
  0xf9   : > { %v886_v24 = vpop.f32.mrb[4].mxu0  ;;  %v1817_v26 = vpack.c.bf16 %v1691_v13, %v1689_v12  ;;  %v1755_v30 = vmax.f32 %v1627_v22, 0.0  ;;  %1347 = vmatprep.mubr.bf16.mxu1 %v17269_v5  ;;  %2859 = vmatpush1.bf16.msra.mxu1 %v11882_v10 }
  0xfa   : > { %v1564_v28 = vadd.f32 %v13007_v55, %v886_v24  ;;  %v888_v29 = vpop.f32.mrb[5].mxu0  ;;  %v13034_v33 = vpack.c.bf16 %v1754_v27, %v1752_v14 }
  0xfb   : > { %v1565_v31 = vadd.f32 %v13010_v56, %v888_v29  ;;  %v890_v32 = vpop.f32.mrb[6].mxu0  ;;  %2117 = vmatprep.mubr.bf16.mxu0 %v1817_v26  ;;  %v1046_v36 = vpop.f32.mrb[4].mxu1  ;;  %v13037_v37 = vpack.c.bf16 %v1755_v30, %v1753_v20 }
  0xfc   : > { %v1566_v34 = vadd.f32 %v13007_v55, %v890_v32  ;;  %v892_v35 = vpop.f32.mrb[7].mxu0  ;;  %2118 = vmatmul.mubr.bf16.vlgmr.msra.gmra.mrb[64].mxu0 %v1816_v18  ;;  %v1628_v38 = vadd.f32 %v13007_v55, %v1046_v36  ;;  %v1048_v39 = vpop.f32.mrb[5].mxu1  ;;  %v1692_v40 = vmax.f32 %v1564_v28, 0.0 }
  0xfd   : > { %v1567_v15 = vadd.f32 %v13010_v56, %v892_v35  ;;  %v1629_v43 = vadd.f32 %v13010_v56, %v1048_v39  ;;  %v1050_v44 = vpop.f32.mrb[6].mxu1  ;;  %v1693_v45 = vmax.f32 %v1565_v31, 0.0 }
  0xfe   : > { %v1694_v42 = vmax.f32 %v1566_v34, 0.0  ;;  %v1756_v41 = vmax.f32 %v1628_v38, 0.0  ;;  %v1630_v47 = vadd.f32 %v13007_v55, %v1050_v44  ;;  %v1052_v49 = vpop.f32.mrb[7].mxu1 }
  0xff   : > { %v1695_v46 = vmax.f32 %v1567_v15, 0.0  ;;  %v1757_v53 = vmax.f32 %v1629_v43, 0.0  ;;  %v1631_v54 = vadd.f32 %v13010_v56, %v1052_v49 }
 0x100   : > { %v1818_v51 = vpack.c.bf16 %v1694_v42, %v1692_v40  ;;  %v1758_v59 = vmax.f32 %v1630_v47, 0.0  ;;  %10695 = vmatmul.mubr.msk.bf16.gmra.mrb[112].mxu1 %vm729_vm2, %v12875_v19 }
 0x101   : > { %v896_v57 = vpop.f32.mrb[8].mxu0  ;;  %v1819_v58 = vpack.c.bf16 %v1695_v46, %v1693_v45  ;;  %v1759_v62 = vmax.f32 %v1631_v54, 0.0  ;;  %1357 = vmatprep.mubr.bf16.mxu1 %v17269_v5 }
 0x102   : > { %v1568_v60 = vadd.f32 %v13007_v55, %v896_v57  ;;  %v898_v61 = vpop.f32.mrb[9].mxu0  ;;  %v13049_v1 = vpack.c.bf16 %v1758_v59, %v1756_v41 }
 0x103   : > { %v1569_v63 = vadd.f32 %v13010_v56, %v898_v61  ;;  %v900_v0 = vpop.f32.mrb[10].mxu0  ;;  %2127 = vmatprep.mubr.bf16.mxu0 %v1819_v58  ;;  %v1056_v6 = vpop.f32.mrb[8].mxu1  ;;  %v13052_v7 = vpack.c.bf16 %v1759_v62, %v1757_v53 }
 0x104   : > { %v1570_v2 = vadd.f32 %v13007_v55, %v900_v0  ;;  %v902_v4 = vpop.f32.mrb[11].mxu0  ;;  %2128 = vmatmul.mubr.bf16.gmra.mrb[68].mxu0 %v1818_v51  ;;  %v1632_v8 = vadd.f32 %v13007_v55, %v1056_v6  ;;  %v1058_v9 = vpop.f32.mrb[9].mxu1  ;;  %v1696_v12 = vmax.f32 %v1568_v60, 0.0 }
 0x105   : > { %v1571_v19 = vadd.f32 %v13010_v56, %v902_v4  ;;  %v1633_v14 = vadd.f32 %v13010_v56, %v1058_v9  ;;  %v1060_v16 = vpop.f32.mrb[10].mxu1  ;;  %v1697_v17 = vmax.f32 %v1569_v63, 0.0 }
 0x106   : > { %v1698_v13 = vmax.f32 %v1570_v2, 0.0  ;;  %v1760_v20 = vmax.f32 %v1632_v8, 0.0  ;;  %v1634_v22 = vadd.f32 %v13007_v55, %v1060_v16  ;;  %v1062_v24 = vpop.f32.mrb[11].mxu1 }
 0x107   : > { %v1699_v18 = vmax.f32 %v1571_v19, 0.0  ;;  %v1761_v27 = vmax.f32 %v1633_v14, 0.0  ;;  %v1635_v28 = vadd.f32 %v13010_v56, %v1062_v24 }
 0x108   : > { %v1820_v26 = vpack.c.bf16 %v1698_v13, %v1696_v12  ;;  %v1762_v31 = vmax.f32 %v1634_v22, 0.0  ;;  %10696 = vmatmul.mubr.msk.bf16.gmra.mrb[116].mxu1 %vm729_vm2, %v12884_v21 }
 0x109   : > { %v906_v29 = vpop.f32.mrb[12].mxu0  ;;  %v1821_v30 = vpack.c.bf16 %v1699_v18, %v1697_v17  ;;  %v1763_v35 = vmax.f32 %v1635_v28, 0.0  ;;  %1367 = vmatprep.mubr.bf16.mxu1 %v17269_v5  ;;  %v11885_v17 = vld [vmem:[%s17259_s3 + $0x1c0] ss:$8 sps:$4 sm:$0xff]   ;;  %v11887_v18 = vld [vmem:[%s17259_s3 + $0x1c4] ss:$8 sps:$4 sm:$0xff]  }
 0x10a   : > { %v1572_v32 = vadd.f32 %v13007_v55, %v906_v29  ;;  %v908_v34 = vpop.f32.mrb[13].mxu0  ;;  %v13070_v38 = vpack.c.bf16 %v1762_v31, %v1760_v20  ;;  %2860 = vmatprep.subr.bf16.mxu1 %v11887_v18 }
 0x10b   : > { %v1573_v36 = vadd.f32 %v13010_v56, %v908_v34  ;;  %v910_v15 = vpop.f32.mrb[14].mxu0  ;;  %2137 = vmatprep.mubr.bf16.mxu0 %v1821_v30  ;;  %v1066_v42 = vpop.f32.mrb[12].mxu1  ;;  %v13073_v43 = vpack.c.bf16 %v1763_v35, %v1761_v27  ;;  %2861 = vmatpush1.bf16.msra.mxu1 %v11885_v17 }
 0x10c   : > { %v1574_v39 = vadd.f32 %v13007_v55, %v910_v15  ;;  %v912_v40 = vpop.f32.mrb[15].mxu0  ;;  %2138 = vmatmul.mubr.bf16.gmra.mrb[72].mxu0 %v1820_v26  ;;  %v1636_v44 = vadd.f32 %v13007_v55, %v1066_v42  ;;  %v1068_v45 = vpop.f32.mrb[13].mxu1  ;;  %v1700_v46 = vmax.f32 %v1572_v32, 0.0 }
 0x10d   : > { %v1575_v21 = vadd.f32 %v13010_v56, %v912_v40  ;;  %v1637_v47 = vadd.f32 %v13010_v56, %v1068_v45  ;;  %v1070_v49 = vpop.f32.mrb[14].mxu1  ;;  %v1701_v51 = vmax.f32 %v1573_v36, 0.0 }
 0x10e   : > { %v1702_v41 = vmax.f32 %v1574_v39, 0.0  ;;  %v1764_v54 = vmax.f32 %v1636_v44, 0.0  ;;  %v1638_v57 = vadd.f32 %v13007_v55, %v1070_v49  ;;  %v1072_v58 = vpop.f32.mrb[15].mxu1 }
 0x10f   : > { %v1703_v53 = vmax.f32 %v1575_v21, 0.0  ;;  %v1765_v60 = vmax.f32 %v1637_v47, 0.0  ;;  %v1639_v61 = vadd.f32 %v13010_v56, %v1072_v58 }
 0x110   : > { %v1822_v59 = vpack.c.bf16 %v1702_v41, %v1700_v46  ;;  %v1766_v0 = vmax.f32 %v1638_v57, 0.0  ;;  %10697 = vmatmul.mubr.msk.bf16.gmra.mrb[120].mxu1 %vm729_vm2, %v12893_v23 }
 0x111   : > { %v916_v62 = vpop.f32.mrb[16].mxu0  ;;  %v1823_v63 = vpack.c.bf16 %v1703_v53, %v1701_v51  ;;  %v1767_v6 = vmax.f32 %v1639_v61, 0.0  ;;  %1377 = vmatprep.mubr.bf16.mxu1 %v17269_v5 }
 0x112   : > { %v1576_v2 = vadd.f32 %v13007_v55, %v916_v62  ;;  %v918_v4 = vpop.f32.mrb[17].mxu0  ;;  %v13085_v9 = vpack.c.bf16 %v1766_v0, %v1764_v54 }
 0x113   : > { %v1577_v19 = vadd.f32 %v13010_v56, %v918_v4  ;;  %v920_v8 = vpop.f32.mrb[18].mxu0  ;;  %2147 = vmatprep.mubr.bf16.mxu0 %v1823_v63  ;;  %v1076_v12 = vpop.f32.mrb[16].mxu1  ;;  %v13088_v13 = vpack.c.bf16 %v1767_v6, %v1765_v60 }
 0x114   : > { %v1578_v10 = vadd.f32 %v13007_v55, %v920_v8  ;;  %v922_v11 = vpop.f32.mrb[19].mxu0  ;;  %2148 = vmatmul.mubr.bf16.gmra.mrb[76].mxu0 %v1822_v59  ;;  %v1640_v14 = vadd.f32 %v13007_v55, %v1076_v12  ;;  %v1078_v16 = vpop.f32.mrb[17].mxu1  ;;  %v1704_v20 = vmax.f32 %v1576_v2, 0.0  ;;  %v12519_v12 = vld [vmem:[%s12652_s21 + $0x80] sm:$0xff]  }
 0x115   : > { %v1579_v23 = vadd.f32 %v13010_v56, %v922_v11  ;;  %v1641_v24 = vadd.f32 %v13010_v56, %v1078_v16  ;;  %v1080_v26 = vpop.f32.mrb[18].mxu1  ;;  %v1705_v27 = vmax.f32 %v1577_v19, 0.0 }
 0x116   : > { %v1706_v22 = vmax.f32 %v1578_v10, 0.0  ;;  %v1768_v29 = vmax.f32 %v1640_v14, 0.0  ;;  %v1642_v30 = vadd.f32 %v13007_v55, %v1080_v26  ;;  %v1082_v31 = vpop.f32.mrb[19].mxu1 }
 0x117   : > { %v1707_v28 = vmax.f32 %v1579_v23, 0.0  ;;  %v1769_v34 = vmax.f32 %v1641_v24, 0.0  ;;  %v1643_v35 = vadd.f32 %v13010_v56, %v1082_v31  ;;  %v11888_v31 = vld [vmem:[%s17259_s3 + $0x1d0] ss:$8 sps:$4 sm:$0xff]  }
 0x118   : > { %v1824_v32 = vpack.c.bf16 %v1706_v22, %v1704_v20  ;;  %v1770_v39 = vmax.f32 %v1642_v30, 0.0  ;;  %10698 = vmatmul.mubr.msk.bf16.gmra.mrb[124].mxu1 %vm729_vm2, %v12902_v25 }
 0x119   : > { %v926_v36 = vpop.f32.mrb[20].mxu0  ;;  %v1825_v15 = vpack.c.bf16 %v1707_v28, %v1705_v27  ;;  %v1771_v21 = vmax.f32 %v1643_v35, 0.0  ;;  %1387 = vmatprep.mubr.bf16.mxu1 %v17269_v5 }
 0x11a   : > { %v1580_v40 = vadd.f32 %v13007_v55, %v926_v36  ;;  %v928_v42 = vpop.f32.mrb[21].mxu0  ;;  %v13106_v46 = vpack.c.bf16 %v1770_v39, %v1768_v29 }
 0x11b   : > { %v1581_v44 = vadd.f32 %v13010_v56, %v928_v42  ;;  %v930_v45 = vpop.f32.mrb[22].mxu0  ;;  %2157 = vmatprep.mubr.bf16.mxu0 %v1825_v15  ;;  %v1086_v49 = vpop.f32.mrb[20].mxu1  ;;  %v13109_v51 = vpack.c.bf16 %v1771_v21, %v1769_v34 }
 0x11c   : > { %v1582_v41 = vadd.f32 %v13007_v55, %v930_v45  ;;  %v932_v47 = vpop.f32.mrb[23].mxu0  ;;  %2158 = vmatmul.mubr.bf16.gmra.mrb[80].mxu0 %v1824_v32  ;;  %v1644_v53 = vadd.f32 %v13007_v55, %v1086_v49  ;;  %v1088_v54 = vpop.f32.mrb[21].mxu1  ;;  %v1708_v57 = vmax.f32 %v1580_v40, 0.0  ;;  %v11890_v32 = vld [vmem:[%s17259_s3 + $0x1d4] ss:$8 sps:$4 sm:$0xff]  }
 0x11d   : > { %v1583_v25 = vadd.f32 %v13010_v56, %v932_v47  ;;  %v1645_v59 = vadd.f32 %v13010_v56, %v1088_v54  ;;  %v1090_v60 = vpop.f32.mrb[22].mxu1  ;;  %v1709_v61 = vmax.f32 %v1581_v44, 0.0  ;;  %2862 = vmatprep.subr.bf16.mxu1 %v11890_v32  ;;  %v12520_v54 = vld [vmem:[%s12652_s21 + $0x88] sm:$0xff]   ;;  %v12521_v32 = vld [vmem:[%s12652_s21 + $0x90] sm:$0xff]  }
 0x11e   : > { %v1710_v58 = vmax.f32 %v1582_v41, 0.0  ;;  %v1772_v63 = vmax.f32 %v1644_v53, 0.0  ;;  %v1646_v0 = vadd.f32 %v13007_v55, %v1090_v60  ;;  %v1092_v2 = vpop.f32.mrb[23].mxu1  ;;  %2863 = vmatpush1.bf16.msra.mxu1 %v11888_v31 }
 0x11f   : > { %v1711_v62 = vmax.f32 %v1583_v25, 0.0  ;;  %v1773_v6 = vmax.f32 %v1645_v59, 0.0  ;;  %v1647_v19 = vadd.f32 %v13010_v56, %v1092_v2 }
 0x120   : > { %v1826_v4 = vpack.c.bf16 %v1710_v58, %v1708_v57  ;;  %v1774_v11 = vmax.f32 %v1646_v0, 0.0  ;;  %10699 = vmatmul.mubr.msk.bf16.gmra.mrb[128].mxu1 %vm729_vm2, %v12519_v12 }
 0x121   : > { %v936_v8 = vpop.f32.mrb[24].mxu0  ;;  %v1827_v10 = vpack.c.bf16 %v1711_v62, %v1709_v61  ;;  %v1775_v16 = vmax.f32 %v1647_v19, 0.0  ;;  %1397 = vmatprep.mubr.bf16.mxu1 %v17269_v5 }
 0x122   : > { %v1584_v23 = vadd.f32 %v13007_v55, %v936_v8  ;;  %v938_v14 = vpop.f32.mrb[25].mxu0  ;;  %v13121_v20 = vpack.c.bf16 %v1774_v11, %v1772_v63 }
 0x123   : > { %v1585_v17 = vadd.f32 %v13010_v56, %v938_v14  ;;  %v940_v18 = vpop.f32.mrb[26].mxu0  ;;  %2167 = vmatprep.mubr.bf16.mxu0 %v1827_v10  ;;  %v1096_v26 = vpop.f32.mrb[24].mxu1  ;;  %v13124_v27 = vpack.c.bf16 %v1775_v16, %v1773_v6 }
 0x124   : > { %v1586_v22 = vadd.f32 %v13007_v55, %v940_v18  ;;  %v942_v24 = vpop.f32.mrb[27].mxu0  ;;  %2168 = vmatmul.mubr.bf16.gmra.mrb[84].mxu0 %v1826_v4  ;;  %v1648_v29 = vadd.f32 %v13007_v55, %v1096_v26  ;;  %v1098_v30 = vpop.f32.mrb[25].mxu1  ;;  %v1712_v34 = vmax.f32 %v1584_v23, 0.0 }
 0x125   : > { %v1587_v28 = vadd.f32 %v13010_v56, %v942_v24  ;;  %v1649_v36 = vadd.f32 %v13010_v56, %v1098_v30  ;;  %v1100_v15 = vpop.f32.mrb[26].mxu1  ;;  %v1713_v39 = vmax.f32 %v1585_v17, 0.0 }
 0x126   : > { %v1714_v35 = vmax.f32 %v1586_v22, 0.0  ;;  %v1776_v42 = vmax.f32 %v1648_v29, 0.0  ;;  %v1650_v21 = vadd.f32 %v13007_v55, %v1100_v15  ;;  %v1102_v44 = vpop.f32.mrb[27].mxu1 }
 0x127   : > { %v1715_v40 = vmax.f32 %v1587_v28, 0.0  ;;  %v1777_v41 = vmax.f32 %v1649_v36, 0.0  ;;  %v1651_v47 = vadd.f32 %v13010_v56, %v1102_v44 }
 0x128   : > { %v1828_v45 = vpack.c.bf16 %v1714_v35, %v1712_v34  ;;  %v1778_v53 = vmax.f32 %v1650_v21, 0.0  ;;  %10700 = vmatmul.mubr.msk.bf16.gmra.mrb[132].mxu1 %vm729_vm2, %v12520_v54  ;;  %v11893_v54 = vld [vmem:[%s17259_s3 + $0x204] ss:$8 sps:$4 sm:$0xff]  }
 0x129   : > { %v946_v49 = vpop.f32.mrb[28].mxu0  ;;  %v1829_v25 = vpack.c.bf16 %v1715_v40, %v1713_v39  ;;  %v1779_v59 = vmax.f32 %v1651_v47, 0.0  ;;  %1407 = vmatprep.mubr.bf16.mxu1 %v17269_v5  ;;  %3587 = vmatprep.subr.bf16.mxu0 %v11893_v54 }
 0x12a   : > { %v1588_v57 = vadd.f32 %v13007_v55, %v946_v49  ;;  %v948_v58 = vpop.f32.mrb[29].mxu0  ;;  %v13142_v62 = vpack.c.bf16 %v1778_v53, %v1776_v42  ;;  %v11891_v53 = vld [vmem:[%s17259_s3 + $0x200] ss:$8 sps:$4 sm:$0xff]  }
 0x12b   : > { %v1589_v60 = vadd.f32 %v13010_v56, %v948_v58  ;;  %v950_v61 = vpop.f32.mrb[30].mxu0  ;;  %2177 = vmatprep.mubr.bf16.mxu0 %v1829_v25  ;;  %v1106_v2 = vpop.f32.mrb[28].mxu1  ;;  %v13145_v4 = vpack.c.bf16 %v1779_v59, %v1777_v41  ;;  %3588 = vmatpush1.bf16.msra.mxu0 %v11891_v53 }
 0x12c   : > { %v1590_v63 = vadd.f32 %v13007_v55, %v950_v61  ;;  %v952_v0 = vpop.f32.mrb[31].mxu0  ;;  %2178 = vmatmul.mubr.bf16.gmra.mrb[88].mxu0 %v1828_v45  ;;  %v1652_v19 = vadd.f32 %v13007_v55, %v1106_v2  ;;  %v1108_v8 = vpop.f32.mrb[29].mxu1  ;;  %v1716_v10 = vmax.f32 %v1588_v57, 0.0  ;;  %v11896_v61 = vld [vmem:[%s17259_s3 + $0x1e4] ss:$8 sps:$4 sm:$0xff]  }
 0x12d   : > { %v1591_v6 = vadd.f32 %v13010_v56, %v952_v0  ;;  %v1653_v12 = vadd.f32 %v13010_v56, %v1108_v8  ;;  %v1110_v23 = vpop.f32.mrb[30].mxu1  ;;  %v1717_v14 = vmax.f32 %v1589_v60, 0.0  ;;  %v11894_v60 = vld [vmem:[%s17259_s3 + $0x1e0] ss:$8 sps:$4 sm:$0xff]   ;;  %2864 = vmatprep.subr.bf16.mxu1 %v11896_v61 }
 0x12e   : > { %v1718_v11 = vmax.f32 %v1590_v63, 0.0  ;;  %v1780_v17 = vmax.f32 %v1652_v19, 0.0  ;;  %v1654_v18 = vadd.f32 %v13007_v55, %v1110_v23  ;;  %v1112_v22 = vpop.f32.mrb[31].mxu1  ;;  %2865 = vmatpush1.bf16.msra.mxu1 %v11894_v60  ;;  %v12523_v61 = vld [vmem:[%s12652_s21 + $0xa0] sm:$0xff]  }
 0x12f   : > { %v1719_v16 = vmax.f32 %v1591_v6, 0.0  ;;  %v1781_v26 = vmax.f32 %v1653_v12, 0.0  ;;  %v1655_v28 = vadd.f32 %v13010_v56, %v1112_v22 }
 0x130   : > { %v1830_v24 = vpack.c.bf16 %v1718_v11, %v1716_v10  ;;  %v1782_v31 = vmax.f32 %v1654_v18, 0.0  ;;  %10701 = vmatmul.mubr.msk.bf16.gmra.mrb[136].mxu1 %vm729_vm2, %v12521_v32 }
 0x131   : > { %v956_v29 = vpop.f32.mrb[32].mxu0  ;;  %v1831_v30 = vpack.c.bf16 %v1719_v16, %v1717_v14  ;;  %v1783_v36 = vmax.f32 %v1655_v28, 0.0  ;;  %1417 = vmatprep.mubr.bf16.mxu1 %v17269_v5  ;;  %v12522_v16 = vld [vmem:[%s12652_s21 + $0x98] sm:$0xff]  }
 0x132   : > { %v1592_v34 = vadd.f32 %v13007_v55, %v956_v29  ;;  %v958_v35 = vpop.f32.mrb[33].mxu0  ;;  %v13157_v40 = vpack.c.bf16 %v1782_v31, %v1780_v17 }
 0x133   : > { %v1593_v15 = vadd.f32 %v13010_v56, %v958_v35  ;;  %v960_v39 = vpop.f32.mrb[34].mxu0  ;;  %2187 = vmatprep.mubr.bf16.mxu0 %v1831_v30  ;;  %v1116_v44 = vpop.f32.mrb[32].mxu1  ;;  %v13160_v45 = vpack.c.bf16 %v1783_v36, %v1781_v26 }
 0x134   : > { %v1594_v42 = vadd.f32 %v13007_v55, %v960_v39  ;;  %v962_v21 = vpop.f32.mrb[35].mxu0  ;;  %2188 = vmatmul.mubr.bf16.gmra.mrb[92].mxu0 %v1830_v24  ;;  %v1720_v41 = vmax.f32 %v1592_v34, 0.0  ;;  %v1656_v49 = vadd.f32 %v13007_v55, %v1116_v44  ;;  %v1118_v25 = vpop.f32.mrb[33].mxu1 }
 0x135   : > { %v1595_v47 = vadd.f32 %v13010_v56, %v962_v21  ;;  %v1657_v58 = vadd.f32 %v13010_v56, %v1118_v25  ;;  %v1120_v59 = vpop.f32.mrb[34].mxu1  ;;  %v1721_v63 = vmax.f32 %v1593_v15, 0.0 }
 0x136   : > { %v1722_v57 = vmax.f32 %v1594_v42, 0.0  ;;  %v1784_v2 = vmax.f32 %v1656_v49, 0.0  ;;  %v1658_v6 = vadd.f32 %v13007_v55, %v1120_v59  ;;  %v1122_v19 = vpop.f32.mrb[35].mxu1 }
 0x137   : > { %v1723_v0 = vmax.f32 %v1595_v47, 0.0  ;;  %v1785_v10 = vmax.f32 %v1657_v58, 0.0  ;;  %v1659_v11 = vadd.f32 %v13010_v56, %v1122_v19 }
 0x138   : > { %v1832_v8 = vpack.c.bf16 %v1722_v57, %v1720_v41  ;;  %v1786_v14 = vmax.f32 %v1658_v6, 0.0  ;;  %10702 = vmatmul.mubr.msk.bf16.gmra.mrb[140].mxu1 %vm729_vm2, %v12522_v16 }
 0x139   : > { %v966_v12 = vpop.f32.mrb[36].mxu0  ;;  %v1833_v23 = vpack.c.bf16 %v1723_v0, %v1721_v63  ;;  %v1787_v22 = vmax.f32 %v1659_v11, 0.0  ;;  %1427 = vmatprep.mubr.bf16.mxu1 %v17269_v5 }
 0x13a   : > { %v1596_v17 = vadd.f32 %v13007_v55, %v966_v12  ;;  %v968_v18 = vpop.f32.mrb[37].mxu0  ;;  %v13184_v28 = vpack.c.bf16 %v1786_v14, %v1784_v2 }
 0x13b   : > { %v1597_v24 = vadd.f32 %v13010_v56, %v968_v18  ;;  %v970_v26 = vpop.f32.mrb[38].mxu0  ;;  %2197 = vmatprep.mubr.bf16.mxu0 %v1833_v23  ;;  %v1126_v31 = vpop.f32.mrb[36].mxu1  ;;  %v13187_v32 = vpack.c.bf16 %v1787_v22, %v1785_v10  ;;  %v11897_v22 = vld [vmem:[%s17259_s3 + $0x210] ss:$8 sps:$4 sm:$0xff]  }
 0x13c   : > { %v1598_v29 = vadd.f32 %v13007_v55, %v970_v26  ;;  %v972_v30 = vpop.f32.mrb[39].mxu0  ;;  %2198 = vmatmul.mubr.bf16.gmra.mrb[96].mxu0 %v1832_v8  ;;  %v1660_v35 = vadd.f32 %v13007_v55, %v1126_v31  ;;  %v1128_v36 = vpop.f32.mrb[37].mxu1  ;;  %v1724_v15 = vmax.f32 %v1596_v17, 0.0  ;;  %v11900_v31 = vld [vmem:[%s17259_s3 + $0x1f0] ss:$8 sps:$4 sm:$0xff]  }
 0x13d   : > { %v1599_v34 = vadd.f32 %v13010_v56, %v972_v30  ;;  %v1661_v42 = vadd.f32 %v13010_v56, %v1128_v36  ;;  %v1130_v21 = vpop.f32.mrb[38].mxu1  ;;  %v1725_v44 = vmax.f32 %v1597_v24, 0.0  ;;  %v11899_v24 = vld [vmem:[%s17259_s3 + $0x214] ss:$8 sps:$4 sm:$0xff]  }
 0x13e   : > { %v1726_v39 = vmax.f32 %v1598_v29, 0.0  ;;  %v1788_v47 = vmax.f32 %v1660_v35, 0.0  ;;  %v1662_v49 = vadd.f32 %v13007_v55, %v1130_v21  ;;  %v1132_v25 = vpop.f32.mrb[39].mxu1  ;;  %3589 = vmatprep.subr.bf16.mxu0 %v11899_v24 }
 0x13f   : > { %v1727_v41 = vmax.f32 %v1599_v34, 0.0  ;;  %v1789_v54 = vmax.f32 %v1661_v42, 0.0  ;;  %v1663_v57 = vadd.f32 %v13010_v56, %v1132_v25  ;;  %v11902_v34 = vld [vmem:[%s17259_s3 + $0x1f4] ss:$8 sps:$4 sm:$0xff]   ;;  %3590 = vmatpush1.bf16.msra.mxu0 %v11897_v22 }
 0x140   : > { %v1834_v53 = vpack.c.bf16 %v1726_v39, %v1724_v15  ;;  %v1790_v60 = vmax.f32 %v1662_v49, 0.0  ;;  %10703 = vmatmul.mubr.msk.bf16.gmra.mrb[144].mxu1 %vm729_vm2, %v12523_v61  ;;  %2866 = vmatprep.subr.bf16.mxu1 %v11902_v34 }
 0x141   : > { %v976_v58 = vpop.f32.mrb[40].mxu0  ;;  %v1835_v59 = vpack.c.bf16 %v1727_v41, %v1725_v44  ;;  %v1791_v2 = vmax.f32 %v1663_v57, 0.0  ;;  %1437 = vmatprep.mubr.bf16.mxu1 %v17269_v5  ;;  %2867 = vmatpush1.bf16.msra.mxu1 %v11900_v31 }
 0x142   : > { %v1600_v63 = vadd.f32 %v13007_v55, %v976_v58  ;;  %v978_v0 = vpop.f32.mrb[41].mxu0  ;;  %v13199_v8 = vpack.c.bf16 %v1790_v60, %v1788_v47 }
 0x143   : > { %v1601_v6 = vadd.f32 %v13010_v56, %v978_v0  ;;  %v980_v19 = vpop.f32.mrb[42].mxu0  ;;  %2207 = vmatprep.mubr.bf16.mxu0 %v1835_v59  ;;  %v1136_v12 = vpop.f32.mrb[40].mxu1  ;;  %v13202_v23 = vpack.c.bf16 %v1791_v2, %v1789_v54 }
 0x144   : > { %v1602_v10 = vadd.f32 %v13007_v55, %v980_v19  ;;  %v982_v11 = vpop.f32.mrb[43].mxu0  ;;  %2208 = vmatmul.mubr.bf16.gmra.mrb[100].mxu0 %v1834_v53  ;;  %v1728_v14 = vmax.f32 %v1600_v63, 0.0  ;;  %v1664_v17 = vadd.f32 %v13007_v55, %v1136_v12  ;;  %v1138_v18 = vpop.f32.mrb[41].mxu1  ;;  %v12524_v53 = vld [vmem:[%s12652_s21 + $0xa8] sm:$0xff]  }
 0x145   : > { %v1603_v16 = vadd.f32 %v13010_v56, %v982_v11  ;;  %v1665_v29 = vadd.f32 %v13010_v56, %v1138_v18  ;;  %v1140_v30 = vpop.f32.mrb[42].mxu1  ;;  %v1729_v35 = vmax.f32 %v1601_v6, 0.0 }
 0x146   : > { %v1730_v26 = vmax.f32 %v1602_v10, 0.0  ;;  %v1792_v15 = vmax.f32 %v1664_v17, 0.0  ;;  %v1666_v39 = vadd.f32 %v13007_v55, %v1140_v30  ;;  %v1142_v42 = vpop.f32.mrb[43].mxu1 }
 0x147   : > { %v1731_v36 = vmax.f32 %v1603_v16, 0.0  ;;  %v1793_v44 = vmax.f32 %v1665_v29, 0.0  ;;  %v1667_v41 = vadd.f32 %v13010_v56, %v1142_v42 }
 0x148   : > { %v1836_v21 = vpack.c.bf16 %v1730_v26, %v1728_v14  ;;  %v1794_v25 = vmax.f32 %v1666_v39, 0.0  ;;  %10704 = vmatmul.mubr.msk.bf16.gmra.mrb[148].mxu1 %vm729_vm2, %v12524_v53  ;;  %v12525_v39 = vld [vmem:[%s12652_s21 + $0xb0] sm:$0xff]  }
 0x149   : > { %v986_v47 = vpop.f32.mrb[44].mxu0  ;;  %v1837_v49 = vpack.c.bf16 %v1731_v36, %v1729_v35  ;;  %v1795_v58 = vmax.f32 %v1667_v41, 0.0  ;;  %1447 = vmatprep.mubr.bf16.mxu1 %v17269_v5 }
 0x14a   : > { %v1604_v54 = vadd.f32 %v13007_v55, %v986_v47  ;;  %v988_v57 = vpop.f32.mrb[45].mxu0  ;;  %v13226_v61 = vpack.c.bf16 %v1794_v25, %v1792_v15 }
 0x14b   : > { %v1605_v59 = vadd.f32 %v13010_v56, %v988_v57  ;;  %v990_v60 = vpop.f32.mrb[46].mxu0  ;;  %2217 = vmatprep.mubr.bf16.mxu0 %v1837_v49  ;;  %v1146_v2 = vpop.f32.mrb[44].mxu1  ;;  %v13229_v6 = vpack.c.bf16 %v1795_v58, %v1793_v44 }
 0x14c   : > { %v1606_v63 = vadd.f32 %v13007_v55, %v990_v60  ;;  %v992_v0 = vpop.f32.mrb[47].mxu0  ;;  %2218 = vmatmul.mubr.bf16.gmra.mrb[104].mxu0 %v1836_v21  ;;  %v1668_v10 = vadd.f32 %v13007_v55, %v1146_v2  ;;  %v1148_v11 = vpop.f32.mrb[45].mxu1  ;;  %v1732_v12 = vmax.f32 %v1604_v54, 0.0 }
 0x14d   : > { %v1607_v19 = vadd.f32 %v13010_v56, %v992_v0  ;;  %v1669_v16 = vadd.f32 %v13010_v56, %v1148_v11  ;;  %v1150_v17 = vpop.f32.mrb[46].mxu1  ;;  %v1733_v18 = vmax.f32 %v1605_v59, 0.0 }
 0x14e   : > { %v1734_v14 = vmax.f32 %v1606_v63, 0.0  ;;  %v1796_v24 = vmax.f32 %v1668_v10, 0.0  ;;  %v1670_v26 = vadd.f32 %v13007_v55, %v1150_v17  ;;  %v1152_v29 = vpop.f32.mrb[47].mxu1 }
 0x14f   : > { %v1735_v22 = vmax.f32 %v1607_v19, 0.0  ;;  %v1797_v31 = vmax.f32 %v1669_v16, 0.0  ;;  %v1671_v34 = vadd.f32 %v13010_v56, %v1152_v29 }
 0x150   : > { %v1838_v30 = vpack.c.bf16 %v1734_v14, %v1732_v12  ;;  %v1798_v15 = vmax.f32 %v1670_v26, 0.0  ;;  %10705 = vmatmul.mubr.msk.bf16.gmra.mrb[152].mxu1 %vm729_vm2, %v12525_v39 }
 0x151   : > { %v996_v35 = vpop.f32.mrb[48].mxu0  ;;  %v1839_v36 = vpack.c.bf16 %v1735_v22, %v1733_v18  ;;  %v1799_v44 = vmax.f32 %v1671_v34, 0.0  ;;  %1457 = vmatprep.mubr.bf16.mxu1 %v17269_v5 }
 0x152   : > { %v1608_v42 = vadd.f32 %v13007_v55, %v996_v35  ;;  %v998_v21 = vpop.f32.mrb[49].mxu0  ;;  %v13241_v49 = vpack.c.bf16 %v1798_v15, %v1796_v24  ;;  %v11905_v15 = vld [vmem:[%s17259_s3 + $0x224] ss:$8 sps:$4 sm:$0xff]  }
 0x153   : > { %v1609_v41 = vadd.f32 %v13010_v56, %v998_v21  ;;  %v1000_v47 = vpop.f32.mrb[50].mxu0  ;;  %2227 = vmatprep.mubr.bf16.mxu0 %v1839_v36  ;;  %v1156_v54 = vpop.f32.mrb[48].mxu1  ;;  %v13244_v57 = vpack.c.bf16 %v1799_v44, %v1797_v31  ;;  %v11903_v36 = vld [vmem:[%s17259_s3 + $0x220] ss:$8 sps:$4 sm:$0xff]   ;;  %3591 = vmatprep.subr.bf16.mxu0 %v11905_v15 }
 0x154   : > { %v1610_v25 = vadd.f32 %v13007_v55, %v1000_v47  ;;  %v1002_v53 = vpop.f32.mrb[51].mxu0  ;;  %2228 = vmatmul.mubr.bf16.gmra.mrb[108].mxu0 %v1838_v30  ;;  %v1672_v59 = vadd.f32 %v13007_v55, %v1156_v54  ;;  %v1158_v60 = vpop.f32.mrb[49].mxu1  ;;  %v1736_v63 = vmax.f32 %v1608_v42, 0.0  ;;  %v12526_v30 = vld [vmem:[%s12652_s21 + $0xb8] sm:$0xff]  }
 0x155   : > { %v1611_v58 = vadd.f32 %v13010_v56, %v1002_v53  ;;  %v1673_v2 = vadd.f32 %v13010_v56, %v1158_v60  ;;  %v1160_v19 = vpop.f32.mrb[50].mxu1  ;;  %v1737_v10 = vmax.f32 %v1609_v41, 0.0  ;;  %3592 = vmatpush1.bf16.msra.mxu0 %v11903_v36 }
 0x156   : > { %v1738_v0 = vmax.f32 %v1610_v25, 0.0  ;;  %v1800_v12 = vmax.f32 %v1672_v59, 0.0  ;;  %v1674_v14 = vadd.f32 %v13007_v55, %v1160_v19  ;;  %v1162_v16 = vpop.f32.mrb[51].mxu1 }
 0x157   : > { %v1739_v11 = vmax.f32 %v1611_v58, 0.0  ;;  %v1801_v18 = vmax.f32 %v1673_v2, 0.0  ;;  %v1675_v22 = vadd.f32 %v13010_v56, %v1162_v16 }
 0x158   : > { %v1840_v17 = vpack.c.bf16 %v1738_v0, %v1736_v63  ;;  %v1802_v29 = vmax.f32 %v1674_v14, 0.0  ;;  %10706 = vmatmul.mubr.msk.bf16.gmra.mrb[156].mxu1 %vm729_vm2, %v12526_v30 }
 0x159   : > { %v1006_v24 = vpop.f32.mrb[52].mxu0  ;;  %v1841_v26 = vpack.c.bf16 %v1739_v11, %v1737_v10  ;;  %v1803_v35 = vmax.f32 %v1675_v22, 0.0  ;;  %1467 = vmatprep.mubr.bf16.mxu1 %v17269_v5 }
 0x15a   : > { %v1612_v31 = vadd.f32 %v13007_v55, %v1006_v24  ;;  %v1008_v34 = vpop.f32.mrb[53].mxu0  ;;  %v13262_v21 = vpack.c.bf16 %v1802_v29, %v1800_v12 }
 0x15b   : > { %v1613_v39 = vadd.f32 %v13010_v56, %v1008_v34  ;;  %v1010_v42 = vpop.f32.mrb[54].mxu0  ;;  %2237 = vmatprep.mubr.bf16.mxu0 %v1841_v26  ;;  %v1166_v47 = vpop.f32.mrb[52].mxu1  ;;  %v13265_v25 = vpack.c.bf16 %v1803_v35, %v1801_v18  ;;  %v12527_v26 = vld [vmem:[%s12652_s21 + $0xc0] sm:$0xff]  }
 0x15c   : > { %v1614_v44 = vadd.f32 %v13007_v55, %v1010_v42  ;;  %v1012_v41 = vpop.f32.mrb[55].mxu0  ;;  %2238 = vmatmul.mubr.bf16.gmra.mrb[112].mxu0 %v1840_v17  ;;  %v1676_v54 = vadd.f32 %v13007_v55, %v1166_v47  ;;  %v1168_v58 = vpop.f32.mrb[53].mxu1  ;;  %v1740_v59 = vmax.f32 %v1612_v31, 0.0 }
 0x15d   : > { %v1615_v53 = vadd.f32 %v13010_v56, %v1012_v41  ;;  %v1677_v63 = vadd.f32 %v13010_v56, %v1168_v58  ;;  %v1170_v0 = vpop.f32.mrb[54].mxu1  ;;  %v1741_v2 = vmax.f32 %v1613_v39, 0.0 }
 0x15e   : > { %v1742_v60 = vmax.f32 %v1614_v44, 0.0  ;;  %v1804_v10 = vmax.f32 %v1676_v54, 0.0  ;;  %v1678_v11 = vadd.f32 %v13007_v55, %v1170_v0  ;;  %v1172_v12 = vpop.f32.mrb[55].mxu1 }
 0x15f   : > { %v1743_v19 = vmax.f32 %v1615_v53, 0.0  ;;  %v1805_v16 = vmax.f32 %v1677_v63, 0.0  ;;  %v1679_v17 = vadd.f32 %v13010_v56, %v1172_v12 }
 0x160   : > { %v1842_v14 = vpack.c.bf16 %v1742_v60, %v1740_v59  ;;  %v1806_v24 = vmax.f32 %v1678_v11, 0.0  ;;  %10707 = vmatmul.mubr.msk.bf16.gmra.mrb[160].mxu1 %vm729_vm2, %v12527_v26 }
 0x161   : > { %v1016_v18 = vpop.f32.mrb[56].mxu0  ;;  %v1843_v22 = vpack.c.bf16 %v1743_v19, %v1741_v2  ;;  %v1807_v31 = vmax.f32 %v1679_v17, 0.0  ;;  %1477 = vmatprep.mubr.bf16.mxu1 %v17269_v5 }
 0x162   : > { %v1616_v29 = vadd.f32 %v13007_v55, %v1016_v18  ;;  %v1018_v30 = vpop.f32.mrb[57].mxu0  ;;  %v13277_v36 = vpack.c.bf16 %v1806_v24, %v1804_v10 }
 0x163   : > { %v1617_v34 = vadd.f32 %v13010_v56, %v1018_v30  ;;  %v1020_v35 = vpop.f32.mrb[58].mxu0  ;;  %2247 = vmatprep.mubr.bf16.mxu0 %v1843_v22  ;;  %v1176_v42 = vpop.f32.mrb[56].mxu1  ;;  %v13280_v44 = vpack.c.bf16 %v1807_v31, %v1805_v16  ;;  %v12528_v22 = vld [vmem:[%s12652_s21 + $0xc8] sm:$0xff]   ;;  %v11906_v30 = vld [vmem:[%s17259_s3 + $0x230] ss:$8 sps:$4 sm:$0xff]  }
 0x164   : > { %v1618_v15 = vadd.f32 %v13007_v55, %v1020_v35  ;;  %v1022_v39 = vpop.f32.mrb[59].mxu0  ;;  %2248 = vmatmul.mubr.bf16.gmra.mrb[116].mxu0 %v1842_v14  ;;  %v1680_v47 = vadd.f32 %v13007_v55, %v1176_v42  ;;  %v1178_v53 = vpop.f32.mrb[57].mxu1  ;;  %v1744_v54 = vmax.f32 %v1616_v29, 0.0  ;;  %v11908_v31 = vld [vmem:[%s17259_s3 + $0x234] ss:$8 sps:$4 sm:$0xff]  }
 0x165   : > { %v1619_v41 = vadd.f32 %v13010_v56, %v1022_v39  ;;  %v1681_v59 = vadd.f32 %v13010_v56, %v1178_v53  ;;  %v1180_v60 = vpop.f32.mrb[58].mxu1  ;;  %v1745_v63 = vmax.f32 %v1617_v34, 0.0  ;;  %3593 = vmatprep.subr.bf16.mxu0 %v11908_v31  ;;  %v11911_v31 = vld [vmem:[%s17259_s3 + $0x244] ss:$8 sps:$4 sm:$0xff]  }
 0x166   : > { %v1746_v58 = vmax.f32 %v1618_v15, 0.0  ;;  %v1808_v2 = vmax.f32 %v1680_v47, 0.0  ;;  %v1682_v19 = vadd.f32 %v13007_v55, %v1180_v60  ;;  %v1182_v10 = vpop.f32.mrb[59].mxu1  ;;  %3594 = vmatpush1.bf16.msra.mxu0 %v11906_v30  ;;  %v12530_v30 = vld [vmem:[%s12652_s21 + $0xd8] sm:$0xff]  }
 0x167   : > { %v1747_v0 = vmax.f32 %v1619_v41, 0.0  ;;  %v1809_v12 = vmax.f32 %v1681_v59, 0.0  ;;  %v1683_v14 = vadd.f32 %v13010_v56, %v1182_v10  ;;  %3595 = vmatprep.subr.bf16.mxu0 %v11911_v31 }
 0x168   : > { %v1844_v11 = vpack.c.bf16 %v1746_v58, %v1744_v54  ;;  %v1810_v18 = vmax.f32 %v1682_v19, 0.0  ;;  %10708 = vmatmul.mubr.msk.bf16.gmra.mrb[164].mxu1 %vm729_vm2, %v12528_v22 }
 0x169   : > { %v1026_v16 = vpop.f32.mrb[60].mxu0  ;;  %v1845_v17 = vpack.c.bf16 %v1747_v0, %v1745_v63  ;;  %v1811_v29 = vmax.f32 %v1683_v14, 0.0  ;;  %1487 = vmatprep.mubr.bf16.mxu1 %v17269_v5 }
 0x16a   : > { %v1620_v24 = vadd.f32 %v13007_v55, %v1026_v16  ;;  %v1028_v26 = vpop.f32.mrb[61].mxu0  ;;  %v13298_v15 = vpack.c.bf16 %v1810_v18, %v1808_v2 }
 0x16b   : > { %v1621_v34 = vadd.f32 %v13010_v56, %v1028_v26  ;;  %v1030_v35 = vpop.f32.mrb[62].mxu0  ;;  %2257 = vmatprep.mubr.bf16.mxu0 %v1845_v17  ;;  %v1186_v41 = vpop.f32.mrb[60].mxu1  ;;  %v13301_v47 = vpack.c.bf16 %v1811_v29, %v1809_v12  ;;  %v12529_v26 = vld [vmem:[%s12652_s21 + $0xd0] sm:$0xff]  }
 0x16c   : > { %v1622_v39 = vadd.f32 %v13007_v55, %v1030_v35  ;;  %v1032_v42 = vpop.f32.mrb[63].mxu0  ;;  %2258 = vmatmul.mubr.bf16.gmra.mrb[120].mxu0 %v1844_v11  ;;  %v1684_v54 = vadd.f32 %v13007_v55, %v1186_v41  ;;  %v1188_v58 = vpop.f32.mrb[61].mxu1  ;;  %v1748_v59 = vmax.f32 %v1620_v24, 0.0 }
 0x16d   : > { %v1623_v53 = vadd.f32 %v13010_v56, %v1032_v42  ;;  %v1685_v63 = vadd.f32 %v13010_v56, %v1188_v58  ;;  %v1190_v0 = vpop.f32.mrb[62].mxu1  ;;  %v1749_v2 = vmax.f32 %v1621_v34, 0.0  ;;  %v12532_v34 = vld [vmem:[%s12652_s21 + $0xe8] sm:$0xff]  }
 0x16e   : > { %v1750_v60 = vmax.f32 %v1622_v39, 0.0  ;;  %v1812_v10 = vmax.f32 %v1684_v54, 0.0  ;;  %v1686_v11 = vadd.f32 %v13007_v55, %v1190_v0  ;;  %v1192_v12 = vpop.f32.mrb[63].mxu1 }
 0x16f   : > { %v1751_v19 = vmax.f32 %v1623_v53, 0.0  ;;  %v1813_v16 = vmax.f32 %v1685_v63, 0.0  ;;  %v1687_v17 = vadd.f32 %v13010_v56, %v1192_v12  ;;  %v11909_v56 = vld [vmem:[%s17259_s3 + $0x240] ss:$8 sps:$4 sm:$0xff]  }
 0x170   : > { %v1846_v14 = vpack.c.bf16 %v1750_v60, %v1748_v59  ;;  %v1814_v22 = vmax.f32 %v1686_v11, 0.0  ;;  %10709 = vmatmul.mubr.msk.bf16.gmra.mrb[168].mxu1 %vm729_vm2, %v12529_v26  ;;  %3596 = vmatpush1.bf16.msra.mxu0 %v11909_v56 }
 0x171   : > { %v1847_v18 = vpack.c.bf16 %v1751_v19, %v1749_v2  ;;  %v1815_v24 = vmax.f32 %v1687_v17, 0.0  ;;  %1497 = vmatprep.mubr.bf16.mxu1 %v17269_v5 }
 0x172   : > { %v13311_v29 = vpack.c.bf16 %v1814_v22, %v1812_v10 }
 0x173   : > { %2267 = vmatprep.mubr.bf16.mxu0 %v1847_v18  ;;  %v13313_v55 = vpack.c.bf16 %v1815_v24, %v1813_v16 }
 0x174   : > { %2268 = vmatmul.mubr.bf16.gmra.mrb[124].mxu0 %v1846_v14 }
 0x175   : > { %2277 = vmatprep.mubr.bf16.mxu0 %v13037_v37  ;;  %v12531_v37 = vld [vmem:[%s12652_s21 + $0xe0] sm:$0xff]  }
 0x178   : > { %10710 = vmatmul.mubr.msk.bf16.gmra.mrb[172].mxu1 %vm729_vm2, %v12530_v30 }
 0x179   : > { %1507 = vmatprep.mubr.bf16.mxu1 %v17269_v5 }
 0x17c   : > { %2278 = vmatmul.mubr.bf16.gmra.mrb[128].mxu0 %v13034_v33  ;;  %v11912_v33 = vld [vmem:[%s17259_s3 + $0x250] ss:$8 sps:$4 sm:$0xff]  }
 0x17d   : > { %2287 = vmatprep.mubr.bf16.mxu0 %v13052_v7  ;;  %v11914_v7 = vld [vmem:[%s17259_s3 + $0x254] ss:$8 sps:$4 sm:$0xff]  }
 0x17e   : > { %3597 = vmatprep.subr.bf16.mxu0 %v11914_v7 }
 0x17f   : > { %3598 = vmatpush1.bf16.msra.mxu0 %v11912_v33 }
 0x180   : > { %10711 = vmatmul.mubr.msk.bf16.gmra.mrb[176].mxu1 %vm729_vm2, %v12531_v37 }
 0x181   : > { %1517 = vmatprep.mubr.bf16.mxu1 %v17269_v5 }
 0x184   : > { %2288 = vmatmul.mubr.bf16.gmra.mrb[132].mxu0 %v13049_v1  ;;  %v12533_v1 = vld [vmem:[%s12652_s21 + $0xf0] sm:$0xff]  }
 0x185   : > { %2297 = vmatprep.mubr.bf16.mxu0 %v13073_v43  ;;  %v12534_v43 = vld [vmem:[%s12652_s21 + $0xf8] sm:$0xff]  }
 0x188   : > { %10712 = vmatmul.mubr.msk.bf16.gmra.mrb[180].mxu1 %vm729_vm2, %v12532_v34 }
 0x189   : > { %1527 = vmatprep.mubr.bf16.mxu1 %v17269_v5 }
 0x18c   : > { %2298 = vmatmul.mubr.bf16.gmra.mrb[136].mxu0 %v13070_v38  ;;  %v11915_v38 = vld [vmem:[%s17259_s3 + $0x260] ss:$8 sps:$4 sm:$0xff]  }
 0x18d   : > { %2307 = vmatprep.mubr.bf16.mxu0 %v13088_v13  ;;  %v11917_v13 = vld [vmem:[%s17259_s3 + $0x264] ss:$8 sps:$4 sm:$0xff]  }
 0x18e   : > { %3599 = vmatprep.subr.bf16.mxu0 %v11917_v13 }
 0x18f   : > { %3600 = vmatpush1.bf16.msra.mxu0 %v11915_v38 }
 0x190   : > { %10713 = vmatmul.mubr.msk.bf16.gmra.mrb[184].mxu1 %vm729_vm2, %v12533_v1 }
 0x191   : > { %1537 = vmatprep.mubr.bf16.mxu1 %v17269_v5 }
 0x194   : > { %2308 = vmatmul.mubr.bf16.gmra.mrb[140].mxu0 %v13085_v9  ;;  %v11918_v9 = vld [vmem:[%s17259_s3 + $0x270] ss:$8 sps:$4 sm:$0xff]  }
 0x195   : > { %2317 = vmatprep.mubr.bf16.mxu0 %v13109_v51  ;;  %v11920_v51 = vld [vmem:[%s17259_s3 + $0x274] ss:$8 sps:$4 sm:$0xff]  }
 0x196   : > { %3601 = vmatprep.subr.bf16.mxu0 %v11920_v51 }
 0x197   : > { %3602 = vmatpush1.bf16.msra.mxu0 %v11918_v9 }
 0x198   : > { %10714 = vmatmul.mubr.msk.bf16.gmra.mrb[188].mxu1 %vm729_vm2, %v12534_v43 }
 0x19c   : > { %2318 = vmatmul.mubr.bf16.gmra.mrb[144].mxu0 %v13106_v46  ;;  %v11921_v46 = vld [vmem:[%s17259_s3 + $0x280] ss:$8 sps:$4 sm:$0xff]  }
 0x19d   : > { %2327 = vmatprep.mubr.bf16.mxu0 %v13124_v27  ;;  %v10715_v27 = vld [vmem:[%s17260_s4 + $0x1] ss:$8 sm:$0x3] }
 0x1a4   : > { %2328 = vmatmul.mubr.bf16.gmra.mrb[148].mxu0 %v13121_v20  ;;  %v11923_v20 = vld [vmem:[%s17259_s3 + $0x284] ss:$8 sps:$4 sm:$0xff]  }
 0x1a5   : > { %2337 = vmatprep.mubr.bf16.mxu0 %v13145_v4  ;;  %3603 = vmatprep.subr.bf16.mxu0 %v11923_v20  ;;  %v11926_v4 = vld [vmem:[%s17259_s3 + $0x294] ss:$8 sps:$4 sm:$0xff]  }
 0x1a6   : > { %3604 = vmatpush1.bf16.msra.mxu0 %v11921_v46 }
 0x1a7   : > { %3605 = vmatprep.subr.bf16.mxu0 %v11926_v4 }
 0x1ac   : > { %2338 = vmatmul.mubr.bf16.gmra.mrb[152].mxu0 %v13142_v62  ;;  %v11924_v62 = vld [vmem:[%s17259_s3 + $0x290] ss:$8 sps:$4 sm:$0xff]  }
 0x1ad   : > { %2347 = vmatprep.mubr.bf16.mxu0 %v13160_v45  ;;  %v13395_v45 = vrot.slane %v10715_v27, %v12998_v52  ;;  %3606 = vmatpush1.bf16.msra.mxu0 %v11924_v62 }
 0x1b4   : > { %2348 = vmatmul.mubr.bf16.gmra.mrb[156].mxu0 %v13157_v40  ;;  %v13391_v40 = vrot.slane %v10715_v27, %v12992_v50 }
 0x1b5   : > { %2357 = vmatprep.mubr.bf16.mxu0 %v13187_v32 }
 0x1bc   : > { %2358 = vmatmul.mubr.bf16.gmra.mrb[160].mxu0 %v13184_v28 }
 0x1bd   : > { %2367 = vmatprep.mubr.bf16.mxu0 %v13202_v23 }
 0x1c4   : > { %2368 = vmatmul.mubr.bf16.gmra.mrb[164].mxu0 %v13199_v8 }
 0x1c5   : > { %2377 = vmatprep.mubr.bf16.mxu0 %v13229_v6 }
 0x1cc   : > { %2378 = vmatmul.mubr.bf16.gmra.mrb[168].mxu0 %v13226_v61 }
 0x1cd   : > { %2387 = vmatprep.mubr.bf16.mxu0 %v13244_v57 }
 0x1cf   : > { %v2119_v28 = vpop.f32.mrb[64].mxu0 }
 0x1d0   : > { %v2120_v32 = vadd.f32 %v2119_v28, %v13391_v40  ;;  %v2121_v8 = vpop.f32.mrb[65].mxu0 }
 0x1d1   : > { %v2122_v23 = vadd.f32 %v2121_v8, %v13395_v45  ;;  %v2123_v6 = vpop.f32.mrb[66].mxu0 }
 0x1d2   : > { %v2124_v35 = vadd.f32 %v2123_v6, %v13391_v40  ;;  %v2125_v61 = vpop.f32.mrb[67].mxu0  ;;  %v2438_v42 = vmax.f32 %v2120_v32, 0.0 }
 0x1d3   : > { %v2126_v39 = vadd.f32 %v2125_v61, %v13395_v45  ;;  %v2439_v57 = vmax.f32 %v2122_v23, 0.0 }
 0x1d4   : > { %v2440_v41 = vmax.f32 %v2124_v35, 0.0  ;;  %2388 = vmatmul.mubr.bf16.gmra.mrb[172].mxu0 %v13241_v49  ;;  %v11927_v49 = vld [vmem:[%s17259_s3 + $0x2a0] ss:$8 sps:$4 sm:$0xff]  }
 0x1d5   : > { %v2441_v53 = vmax.f32 %v2126_v39, 0.0  ;;  %2397 = vmatprep.mubr.bf16.mxu0 %v13265_v25  ;;  %v11929_v25 = vld [vmem:[%s17259_s3 + $0x2a4] ss:$8 sps:$4 sm:$0xff]  }
 0x1d6   : > { %v2566_v54 = vpack.c.bf16 %v2440_v41, %v2438_v42  ;;  %3607 = vmatprep.subr.bf16.mxu0 %v11929_v25 }
 0x1d7   : > { %v2129_v58 = vpop.f32.mrb[68].mxu0  ;;  %v2567_v59 = vpack.c.bf16 %v2441_v53, %v2439_v57  ;;  %3608 = vmatpush1.bf16.msra.mxu0 %v11927_v49 }
 0x1d8   : > { %v2130_v60 = vadd.f32 %v2129_v58, %v13391_v40  ;;  %v2131_v63 = vpop.f32.mrb[69].mxu0 }
 0x1d9   : > { %v2132_v0 = vadd.f32 %v2131_v63, %v13395_v45  ;;  %v2133_v2 = vpop.f32.mrb[70].mxu0  ;;  %2868 = vmatprep.mubr.bf16.mxu1 %v2567_v59 }
 0x1da   : > { %v2134_v19 = vadd.f32 %v2133_v2, %v13391_v40  ;;  %v2135_v10 = vpop.f32.mrb[71].mxu0  ;;  %2869 = vmatmul.mubr.bf16.vlgmr.msra.gmra.mrb[192].mxu1 %v2566_v54  ;;  %v2442_v12 = vmax.f32 %v2130_v60, 0.0 }
 0x1db   : > { %v2136_v11 = vadd.f32 %v2135_v10, %v13395_v45  ;;  %v2443_v16 = vmax.f32 %v2132_v0, 0.0 }
 0x1dc   : > { %v2444_v14 = vmax.f32 %v2134_v19, 0.0  ;;  %2398 = vmatmul.mubr.bf16.gmra.mrb[176].mxu0 %v13262_v21 }
 0x1dd   : > { %v2445_v17 = vmax.f32 %v2136_v11, 0.0  ;;  %2407 = vmatprep.mubr.bf16.mxu0 %v13280_v44 }
 0x1de   : > { %v2568_v18 = vpack.c.bf16 %v2444_v14, %v2442_v12  ;;  %v11935_v14 = vld [vmem:[%s17259_s3 + $0x2c4] ss:$8 sps:$4 sm:$0xff]  }
 0x1df   : > { %v2139_v22 = vpop.f32.mrb[72].mxu0  ;;  %v2569_v26 = vpack.c.bf16 %v2445_v17, %v2443_v16 }
 0x1e0   : > { %v2140_v24 = vadd.f32 %v2139_v22, %v13391_v40  ;;  %v2141_v30 = vpop.f32.mrb[73].mxu0 }
 0x1e1   : > { %v2142_v56 = vadd.f32 %v2141_v30, %v13395_v45  ;;  %v2143_v31 = vpop.f32.mrb[74].mxu0  ;;  %2878 = vmatprep.mubr.bf16.mxu1 %v2569_v26 }
 0x1e2   : > { %v2144_v37 = vadd.f32 %v2143_v31, %v13391_v40  ;;  %v2145_v34 = vpop.f32.mrb[75].mxu0  ;;  %2879 = vmatmul.mubr.bf16.gmra.mrb[196].mxu1 %v2568_v18  ;;  %v2446_v33 = vmax.f32 %v2140_v24, 0.0 }
 0x1e3   : > { %v2146_v21 = vadd.f32 %v2145_v34, %v13395_v45  ;;  %v2447_v44 = vmax.f32 %v2142_v56, 0.0 }
 0x1e4   : > { %v2448_v7 = vmax.f32 %v2144_v37, 0.0  ;;  %2408 = vmatmul.mubr.bf16.gmra.mrb[180].mxu0 %v13277_v36  ;;  %v11930_v36 = vld [vmem:[%s17259_s3 + $0x2b0] ss:$8 sps:$4 sm:$0xff]  }
 0x1e5   : > { %v2449_v1 = vmax.f32 %v2146_v21, 0.0  ;;  %2417 = vmatprep.mubr.bf16.mxu0 %v13301_v47  ;;  %v11932_v47 = vld [vmem:[%s17259_s3 + $0x2b4] ss:$8 sps:$4 sm:$0xff]  }
 0x1e6   : > { %v2570_v43 = vpack.c.bf16 %v2448_v7, %v2446_v33  ;;  %3609 = vmatprep.subr.bf16.mxu0 %v11932_v47 }
 0x1e7   : > { %v2149_v38 = vpop.f32.mrb[76].mxu0  ;;  %v2571_v13 = vpack.c.bf16 %v2449_v1, %v2447_v44  ;;  %3610 = vmatpush1.bf16.msra.mxu0 %v11930_v36 }
 0x1e8   : > { %v2150_v9 = vadd.f32 %v2149_v38, %v13391_v40  ;;  %v2151_v51 = vpop.f32.mrb[77].mxu0  ;;  %3611 = vmatprep.subr.bf16.mxu0 %v11935_v14 }
 0x1e9   : > { %v2152_v46 = vadd.f32 %v2151_v51, %v13395_v45  ;;  %v2153_v20 = vpop.f32.mrb[78].mxu0  ;;  %2888 = vmatprep.mubr.bf16.mxu1 %v2571_v13 }
 0x1ea   : > { %v2154_v27 = vadd.f32 %v2153_v20, %v13391_v40  ;;  %v2155_v62 = vpop.f32.mrb[79].mxu0  ;;  %2889 = vmatmul.mubr.bf16.gmra.mrb[200].mxu1 %v2570_v43  ;;  %v2450_v28 = vmax.f32 %v2150_v9, 0.0 }
 0x1eb   : > { %v2156_v4 = vadd.f32 %v2155_v62, %v13395_v45  ;;  %v2451_v8 = vmax.f32 %v2152_v46, 0.0 }
 0x1ec   : > { %v2452_v32 = vmax.f32 %v2154_v27, 0.0  ;;  %2418 = vmatmul.mubr.bf16.gmra.mrb[184].mxu0 %v13298_v15 }
 0x1ed   : > { %v2453_v23 = vmax.f32 %v2156_v4, 0.0  ;;  %2427 = vmatprep.mubr.bf16.mxu0 %v13313_v55 }
 0x1ee   : > { %v2572_v6 = vpack.c.bf16 %v2452_v32, %v2450_v28  ;;  %v11936_v28 = vld [vmem:[%s17259_s3 + $0x2d0] ss:$8 sps:$4 sm:$0xff]   ;;  %v11938_v32 = vld [vmem:[%s17259_s3 + $0x2d4] ss:$8 sps:$4 sm:$0xff]  }
 0x1ef   : > { %v2159_v35 = vpop.f32.mrb[80].mxu0  ;;  %v2573_v61 = vpack.c.bf16 %v2453_v23, %v2451_v8 }
 0x1f0   : > { %v2160_v39 = vadd.f32 %v2159_v35, %v13391_v40  ;;  %v2161_v42 = vpop.f32.mrb[81].mxu0 }
 0x1f1   : > { %v2162_v41 = vadd.f32 %v2161_v42, %v13395_v45  ;;  %v2163_v57 = vpop.f32.mrb[82].mxu0  ;;  %2898 = vmatprep.mubr.bf16.mxu1 %v2573_v61 }
 0x1f2   : > { %v2164_v53 = vadd.f32 %v2163_v57, %v13391_v40  ;;  %v2165_v54 = vpop.f32.mrb[83].mxu0  ;;  %2899 = vmatmul.mubr.bf16.gmra.mrb[204].mxu1 %v2572_v6  ;;  %v2454_v58 = vmax.f32 %v2160_v39, 0.0 }
 0x1f3   : > { %v2166_v15 = vadd.f32 %v2165_v54, %v13395_v45  ;;  %v2455_v55 = vmax.f32 %v2162_v41, 0.0 }
 0x1f4   : > { %v2456_v59 = vmax.f32 %v2164_v53, 0.0  ;;  %2428 = vmatmul.mubr.bf16.gmra.mrb[188].mxu0 %v13311_v29  ;;  %v11933_v29 = vld [vmem:[%s17259_s3 + $0x2c0] ss:$8 sps:$4 sm:$0xff]  }
 0x1f5   : > { %v2457_v60 = vmax.f32 %v2166_v15, 0.0  ;;  %3612 = vmatpush1.bf16.msra.mxu0 %v11933_v29 }
 0x1f6   : > { %v2574_v63 = vpack.c.bf16 %v2456_v59, %v2454_v58  ;;  %3613 = vmatprep.subr.bf16.mxu0 %v11938_v32 }
 0x1f7   : > { %v2169_v0 = vpop.f32.mrb[84].mxu0  ;;  %v2575_v2 = vpack.c.bf16 %v2457_v60, %v2455_v55 }
 0x1f8   : > { %v2170_v19 = vadd.f32 %v2169_v0, %v13391_v40  ;;  %v2171_v10 = vpop.f32.mrb[85].mxu0 }
 0x1f9   : > { %v2172_v49 = vadd.f32 %v2171_v10, %v13395_v45  ;;  %v2173_v25 = vpop.f32.mrb[86].mxu0  ;;  %2908 = vmatprep.mubr.bf16.mxu1 %v2575_v2  ;;  %3614 = vmatpush1.bf16.msra.mxu0 %v11936_v28  ;;  %v11939_v10 = vld [vmem:[%s17259_s3 + $0x300] ss:$8 sps:$4 sm:$0xff]  }
 0x1fa   : > { %v2174_v11 = vadd.f32 %v2173_v25, %v13391_v40  ;;  %v2175_v12 = vpop.f32.mrb[87].mxu0  ;;  %2909 = vmatmul.mubr.bf16.gmra.mrb[208].mxu1 %v2574_v63  ;;  %v2458_v17 = vmax.f32 %v2170_v19, 0.0 }
 0x1fb   : > { %v2176_v16 = vadd.f32 %v2175_v12, %v13395_v45  ;;  %v2459_v22 = vmax.f32 %v2172_v49, 0.0  ;;  %v11941_v49 = vld [vmem:[%s17259_s3 + $0x304] ss:$8 sps:$4 sm:$0xff]  }
 0x1fc   : > { %v2460_v18 = vmax.f32 %v2174_v11, 0.0  ;;  %4338 = vmatprep.subr.bf16.mxu1 %v11941_v49 }
 0x1fd   : > { %v2461_v26 = vmax.f32 %v2176_v16, 0.0  ;;  %4339 = vmatpush1.bf16.msra.mxu1 %v11939_v10 }
 0x1fe   : > { %v2576_v24 = vpack.c.bf16 %v2460_v18, %v2458_v17 }
 0x1ff   : > { %v2179_v30 = vpop.f32.mrb[88].mxu0  ;;  %v2577_v56 = vpack.c.bf16 %v2461_v26, %v2459_v22  ;;  %v11942_v22 = vld [vmem:[%s17259_s3 + $0x2e0] ss:$8 sps:$4 sm:$0xff]   ;;  %v11944_v26 = vld [vmem:[%s17259_s3 + $0x2e4] ss:$8 sps:$4 sm:$0xff]  }
 0x200   : > { %v2180_v31 = vadd.f32 %v2179_v30, %v13391_v40  ;;  %v2181_v37 = vpop.f32.mrb[89].mxu0  ;;  %3615 = vmatprep.subr.bf16.mxu0 %v11944_v26  ;;  %v11951_v26 = vld [vmem:[%s17259_s3 + $0x320] ss:$8 sps:$4 sm:$0xff]  }
 0x201   : > { %v2182_v34 = vadd.f32 %v2181_v37, %v13395_v45  ;;  %v2183_v21 = vpop.f32.mrb[90].mxu0  ;;  %2918 = vmatprep.mubr.bf16.mxu1 %v2577_v56  ;;  %3616 = vmatpush1.bf16.msra.mxu0 %v11942_v22 }
 0x202   : > { %v2184_v33 = vadd.f32 %v2183_v21, %v13391_v40  ;;  %v2185_v7 = vpop.f32.mrb[91].mxu0  ;;  %2919 = vmatmul.mubr.bf16.gmra.mrb[212].mxu1 %v2576_v24  ;;  %v2462_v1 = vmax.f32 %v2180_v31, 0.0 }
 0x203   : > { %v2186_v44 = vadd.f32 %v2185_v7, %v13395_v45  ;;  %v2463_v38 = vmax.f32 %v2182_v34, 0.0 }
 0x204   : > { %v2464_v43 = vmax.f32 %v2184_v33, 0.0 }
 0x205   : > { %v2465_v13 = vmax.f32 %v2186_v44, 0.0 }
 0x206   : > { %v2578_v9 = vpack.c.bf16 %v2464_v43, %v2462_v1 }
 0x207   : > { %v2189_v51 = vpop.f32.mrb[92].mxu0  ;;  %v2579_v46 = vpack.c.bf16 %v2465_v13, %v2463_v38 }
 0x208   : > { %v2190_v20 = vadd.f32 %v2189_v51, %v13391_v40  ;;  %v2191_v27 = vpop.f32.mrb[93].mxu0 }
 0x209   : > { %v2192_v62 = vadd.f32 %v2191_v27, %v13395_v45  ;;  %v2193_v36 = vpop.f32.mrb[94].mxu0  ;;  %2928 = vmatprep.mubr.bf16.mxu1 %v2579_v46 }
 0x20a   : > { %v2194_v47 = vadd.f32 %v2193_v36, %v13391_v40  ;;  %v2195_v4 = vpop.f32.mrb[95].mxu0  ;;  %2929 = vmatmul.mubr.bf16.gmra.mrb[216].mxu1 %v2578_v9  ;;  %v2466_v23 = vmax.f32 %v2190_v20, 0.0  ;;  %v11945_v36 = vld [vmem:[%s17259_s3 + $0x310] ss:$8 sps:$4 sm:$0xff]  }
 0x20b   : > { %v2196_v8 = vadd.f32 %v2195_v4, %v13395_v45  ;;  %v2467_v35 = vmax.f32 %v2192_v62, 0.0 }
 0x20c   : > { %v2468_v6 = vmax.f32 %v2194_v47, 0.0  ;;  %v11947_v47 = vld [vmem:[%s17259_s3 + $0x314] ss:$8 sps:$4 sm:$0xff]  }
 0x20d   : > { %v2469_v61 = vmax.f32 %v2196_v8, 0.0  ;;  %4340 = vmatprep.subr.bf16.mxu1 %v11947_v47 }
 0x20e   : > { %v2580_v39 = vpack.c.bf16 %v2468_v6, %v2466_v23  ;;  %4341 = vmatpush1.bf16.msra.mxu1 %v11945_v36 }
 0x20f   : > { %v2199_v42 = vpop.f32.mrb[96].mxu0  ;;  %v2581_v41 = vpack.c.bf16 %v2469_v61, %v2467_v35 }
 0x210   : > { %v2200_v57 = vadd.f32 %v2199_v42, %v13391_v40  ;;  %v2201_v53 = vpop.f32.mrb[97].mxu0  ;;  %v11950_v42 = vld [vmem:[%s17259_s3 + $0x2f4] ss:$8 sps:$4 sm:$0xff]  }
 0x211   : > { %v2202_v54 = vadd.f32 %v2201_v53, %v13395_v45  ;;  %v2203_v15 = vpop.f32.mrb[98].mxu0  ;;  %2938 = vmatprep.mubr.bf16.mxu1 %v2581_v41  ;;  %3617 = vmatprep.subr.bf16.mxu0 %v11950_v42 }
 0x212   : > { %v2204_v58 = vadd.f32 %v2203_v15, %v13391_v40  ;;  %v2205_v59 = vpop.f32.mrb[99].mxu0  ;;  %2939 = vmatmul.mubr.bf16.gmra.mrb[220].mxu1 %v2580_v39  ;;  %v2470_v60 = vmax.f32 %v2200_v57, 0.0  ;;  %v11948_v39 = vld [vmem:[%s17259_s3 + $0x2f0] ss:$8 sps:$4 sm:$0xff]  }
 0x213   : > { %v2206_v55 = vadd.f32 %v2205_v59, %v13395_v45  ;;  %v2471_v0 = vmax.f32 %v2202_v54, 0.0  ;;  %3618 = vmatpush1.bf16.msra.mxu0 %v11948_v39  ;;  %v11956_v39 = vld [vmem:[%s17259_s3 + $0x334] ss:$8 sps:$4 sm:$0xff]  }
 0x214   : > { %v2472_v63 = vmax.f32 %v2204_v58, 0.0 }
 0x215   : > { %v2473_v2 = vmax.f32 %v2206_v55, 0.0 }
 0x216   : > { %v2582_v19 = vpack.c.bf16 %v2472_v63, %v2470_v60 }
 0x217   : > { %v2209_v25 = vpop.f32.mrb[100].mxu0  ;;  %v2583_v11 = vpack.c.bf16 %v2473_v2, %v2471_v0 }
 0x218   : > { %v2210_v12 = vadd.f32 %v2209_v25, %v13391_v40  ;;  %v2211_v29 = vpop.f32.mrb[101].mxu0 }
 0x219   : > { %v2212_v14 = vadd.f32 %v2211_v29, %v13395_v45  ;;  %v2213_v16 = vpop.f32.mrb[102].mxu0  ;;  %2948 = vmatprep.mubr.bf16.mxu1 %v2583_v11 }
 0x21a   : > { %v2214_v17 = vadd.f32 %v2213_v16, %v13391_v40  ;;  %v2215_v18 = vpop.f32.mrb[103].mxu0  ;;  %2949 = vmatmul.mubr.bf16.gmra.mrb[224].mxu1 %v2582_v19  ;;  %v2474_v30 = vmax.f32 %v2210_v12, 0.0 }
 0x21b   : > { %v2216_v24 = vadd.f32 %v2215_v18, %v13395_v45  ;;  %v2475_v31 = vmax.f32 %v2212_v14, 0.0 }
 0x21c   : > { %v2476_v56 = vmax.f32 %v2214_v17, 0.0 }
 0x21d   : > { %v2477_v37 = vmax.f32 %v2216_v24, 0.0  ;;  %v11953_v24 = vld [vmem:[%s17259_s3 + $0x324] ss:$8 sps:$4 sm:$0xff]  }
 0x21e   : > { %v2584_v34 = vpack.c.bf16 %v2476_v56, %v2474_v30  ;;  %4342 = vmatprep.subr.bf16.mxu1 %v11953_v24 }
 0x21f   : > { %v2219_v21 = vpop.f32.mrb[104].mxu0  ;;  %v2585_v33 = vpack.c.bf16 %v2477_v37, %v2475_v31  ;;  %4343 = vmatpush1.bf16.msra.mxu1 %v11951_v26 }
 0x220   : > { %v2220_v7 = vadd.f32 %v2219_v21, %v13391_v40  ;;  %v2221_v44 = vpop.f32.mrb[105].mxu0  ;;  %4344 = vmatprep.subr.bf16.mxu1 %v11956_v39 }
 0x221   : > { %v2222_v1 = vadd.f32 %v2221_v44, %v13395_v45  ;;  %v2223_v43 = vpop.f32.mrb[106].mxu0  ;;  %2958 = vmatprep.mubr.bf16.mxu1 %v2585_v33 }
 0x222   : > { %v2224_v38 = vadd.f32 %v2223_v43, %v13391_v40  ;;  %v2225_v13 = vpop.f32.mrb[107].mxu0  ;;  %2959 = vmatmul.mubr.bf16.gmra.mrb[228].mxu1 %v2584_v34  ;;  %v2478_v51 = vmax.f32 %v2220_v7, 0.0 }
 0x223   : > { %v2226_v9 = vadd.f32 %v2225_v13, %v13395_v45  ;;  %v2479_v20 = vmax.f32 %v2222_v1, 0.0 }
 0x224   : > { %v2480_v46 = vmax.f32 %v2224_v38, 0.0 }
 0x225   : > { %v2481_v27 = vmax.f32 %v2226_v9, 0.0 }
 0x226   : > { %v2586_v62 = vpack.c.bf16 %v2480_v46, %v2478_v51 }
 0x227   : > { %v2229_v4 = vpop.f32.mrb[108].mxu0  ;;  %v2587_v28 = vpack.c.bf16 %v2481_v27, %v2479_v20 }
 0x228   : > { %v2230_v32 = vadd.f32 %v2229_v4, %v13391_v40  ;;  %v2231_v8 = vpop.f32.mrb[109].mxu0 }
 0x229   : > { %v2232_v23 = vadd.f32 %v2231_v8, %v13395_v45  ;;  %v2233_v6 = vpop.f32.mrb[110].mxu0  ;;  %2968 = vmatprep.mubr.bf16.mxu1 %v2587_v28 }
 0x22a   : > { %v2234_v35 = vadd.f32 %v2233_v6, %v13391_v40  ;;  %v2235_v61 = vpop.f32.mrb[111].mxu0  ;;  %2969 = vmatmul.mubr.bf16.gmra.mrb[232].mxu1 %v2586_v62  ;;  %v2482_v57 = vmax.f32 %v2230_v32, 0.0 }
 0x22b   : > { %v2236_v41 = vadd.f32 %v2235_v61, %v13395_v45  ;;  %v2483_v54 = vmax.f32 %v2232_v23, 0.0  ;;  %v11954_v61 = vld [vmem:[%s17259_s3 + $0x330] ss:$8 sps:$4 sm:$0xff]  }
 0x22c   : > { %v2484_v53 = vmax.f32 %v2234_v35, 0.0  ;;  %4345 = vmatpush1.bf16.msra.mxu1 %v11954_v61 }
 0x22d   : > { %v2485_v15 = vmax.f32 %v2236_v41, 0.0 }
 0x22e   : > { %v2588_v58 = vpack.c.bf16 %v2484_v53, %v2482_v57 }
 0x22f   : > { %v2239_v59 = vpop.f32.mrb[112].mxu0  ;;  %v2589_v55 = vpack.c.bf16 %v2485_v15, %v2483_v54 }
 0x230   : > { %v2240_v60 = vadd.f32 %v2239_v59, %v13391_v40  ;;  %v2241_v63 = vpop.f32.mrb[113].mxu0 }
 0x231   : > { %v2242_v0 = vadd.f32 %v2241_v63, %v13395_v45  ;;  %v2243_v2 = vpop.f32.mrb[114].mxu0  ;;  %2978 = vmatprep.mubr.bf16.mxu1 %v2589_v55 }
 0x232   : > { %v2244_v19 = vadd.f32 %v2243_v2, %v13391_v40  ;;  %v2245_v10 = vpop.f32.mrb[115].mxu0  ;;  %2979 = vmatmul.mubr.bf16.gmra.mrb[236].mxu1 %v2588_v58  ;;  %v2486_v25 = vmax.f32 %v2240_v60, 0.0 }
 0x233   : > { %v2246_v49 = vadd.f32 %v2245_v10, %v13395_v45  ;;  %v2487_v12 = vmax.f32 %v2242_v0, 0.0 }
 0x234   : > { %v2488_v11 = vmax.f32 %v2244_v19, 0.0 }
 0x235   : > { %v2489_v29 = vmax.f32 %v2246_v49, 0.0 }
 0x236   : > { %v2590_v14 = vpack.c.bf16 %v2488_v11, %v2486_v25 }
 0x237   : > { %v2249_v16 = vpop.f32.mrb[116].mxu0  ;;  %v2591_v17 = vpack.c.bf16 %v2489_v29, %v2487_v12 }
 0x238   : > { %v2250_v18 = vadd.f32 %v2249_v16, %v13391_v40  ;;  %v2251_v22 = vpop.f32.mrb[117].mxu0 }
 0x239   : > { %v2252_v30 = vadd.f32 %v2251_v22, %v13395_v45  ;;  %v2253_v56 = vpop.f32.mrb[118].mxu0  ;;  %2988 = vmatprep.mubr.bf16.mxu1 %v2591_v17 }
 0x23a   : > { %v2254_v31 = vadd.f32 %v2253_v56, %v13391_v40  ;;  %v2255_v37 = vpop.f32.mrb[119].mxu0  ;;  %2989 = vmatmul.mubr.bf16.gmra.mrb[240].mxu1 %v2590_v14  ;;  %v2490_v21 = vmax.f32 %v2250_v18, 0.0  ;;  %v11957_v56 = vld [vmem:[%s17259_s3 + $0x340] ss:$8 sps:$4 sm:$0xff]  }
 0x23b   : > { %v2256_v34 = vadd.f32 %v2255_v37, %v13395_v45  ;;  %v2491_v7 = vmax.f32 %v2252_v30, 0.0 }
 0x23c   : > { %v2492_v33 = vmax.f32 %v2254_v31, 0.0  ;;  %v11959_v31 = vld [vmem:[%s17259_s3 + $0x344] ss:$8 sps:$4 sm:$0xff]  }
 0x23d   : > { %v2493_v44 = vmax.f32 %v2256_v34, 0.0  ;;  %4346 = vmatprep.subr.bf16.mxu1 %v11959_v31 }
 0x23e   : > { %v2592_v1 = vpack.c.bf16 %v2492_v33, %v2490_v21  ;;  %4347 = vmatpush1.bf16.msra.mxu1 %v11957_v56 }
 0x23f   : > { %v2259_v43 = vpop.f32.mrb[120].mxu0  ;;  %v2593_v38 = vpack.c.bf16 %v2493_v44, %v2491_v7 }
 0x240   : > { %v2260_v13 = vadd.f32 %v2259_v43, %v13391_v40  ;;  %v2261_v9 = vpop.f32.mrb[121].mxu0 }
 0x241   : > { %v2262_v51 = vadd.f32 %v2261_v9, %v13395_v45  ;;  %v2263_v46 = vpop.f32.mrb[122].mxu0  ;;  %2998 = vmatprep.mubr.bf16.mxu1 %v2593_v38 }
 0x242   : > { %v2264_v20 = vadd.f32 %v2263_v46, %v13391_v40  ;;  %v2265_v27 = vpop.f32.mrb[123].mxu0  ;;  %2999 = vmatmul.mubr.bf16.gmra.mrb[244].mxu1 %v2592_v1  ;;  %v2494_v36 = vmax.f32 %v2260_v13, 0.0 }
 0x243   : > { %v2266_v62 = vadd.f32 %v2265_v27, %v13395_v45  ;;  %v2495_v4 = vmax.f32 %v2262_v51, 0.0 }
 0x244   : > { %v2496_v47 = vmax.f32 %v2264_v20, 0.0 }
 0x245   : > { %v2497_v28 = vmax.f32 %v2266_v62, 0.0 }
 0x246   : > { %v2594_v32 = vpack.c.bf16 %v2496_v47, %v2494_v36 }
 0x247   : > { %v2269_v8 = vpop.f32.mrb[124].mxu0  ;;  %v2595_v23 = vpack.c.bf16 %v2497_v28, %v2495_v4 }
 0x248   : > { %v2270_v6 = vadd.f32 %v2269_v8, %v13391_v40  ;;  %v2271_v35 = vpop.f32.mrb[125].mxu0 }
 0x249   : > { %v2272_v42 = vadd.f32 %v2271_v35, %v13395_v45  ;;  %v2273_v41 = vpop.f32.mrb[126].mxu0  ;;  %3008 = vmatprep.mubr.bf16.mxu1 %v2595_v23 }
 0x24a   : > { %v2274_v57 = vadd.f32 %v2273_v41, %v13391_v40  ;;  %v2275_v53 = vpop.f32.mrb[127].mxu0  ;;  %3009 = vmatmul.mubr.bf16.gmra.mrb[248].mxu1 %v2594_v32  ;;  %v2498_v15 = vmax.f32 %v2270_v6, 0.0  ;;  %v11960_v41 = vld [vmem:[%s17259_s3 + $0x350] ss:$8 sps:$4 sm:$0xff]  }
 0x24b   : > { %v2276_v54 = vadd.f32 %v2275_v53, %v13395_v45  ;;  %v2499_v59 = vmax.f32 %v2272_v42, 0.0 }
 0x24c   : > { %v2500_v58 = vmax.f32 %v2274_v57, 0.0  ;;  %v11962_v57 = vld [vmem:[%s17259_s3 + $0x354] ss:$8 sps:$4 sm:$0xff]  }
 0x24d   : > { %v2501_v55 = vmax.f32 %v2276_v54, 0.0  ;;  %4348 = vmatprep.subr.bf16.mxu1 %v11962_v57 }
 0x24e   : > { %v2596_v60 = vpack.c.bf16 %v2500_v58, %v2498_v15  ;;  %4349 = vmatpush1.bf16.msra.mxu1 %v11960_v41 }
 0x24f   : > { %v2279_v63 = vpop.f32.mrb[128].mxu0  ;;  %v2597_v0 = vpack.c.bf16 %v2501_v55, %v2499_v59 }
 0x250   : > { %v2280_v2 = vadd.f32 %v2279_v63, %v13391_v40  ;;  %v2281_v19 = vpop.f32.mrb[129].mxu0 }
 0x251   : > { %v2282_v10 = vadd.f32 %v2281_v19, %v13395_v45  ;;  %v2283_v49 = vpop.f32.mrb[130].mxu0  ;;  %3018 = vmatprep.mubr.bf16.mxu1 %v2597_v0 }
 0x252   : > { %v2284_v25 = vadd.f32 %v2283_v49, %v13391_v40  ;;  %v2285_v11 = vpop.f32.mrb[131].mxu0  ;;  %3019 = vmatmul.mubr.bf16.gmra.mrb[252].mxu1 %v2596_v60  ;;  %v2502_v29 = vmax.f32 %v2280_v2, 0.0 }
 0x253   : > { %v2286_v12 = vadd.f32 %v2285_v11, %v13395_v45  ;;  %v2503_v16 = vmax.f32 %v2282_v10, 0.0 }
 0x254   : > { %v2504_v14 = vmax.f32 %v2284_v25, 0.0 }
 0x255   : > { %v2505_v17 = vmax.f32 %v2286_v12, 0.0 }
 0x256   : > { %v2598_v18 = vpack.c.bf16 %v2504_v14, %v2502_v29 }
 0x257   : > { %v2289_v22 = vpop.f32.mrb[132].mxu0  ;;  %v2599_v26 = vpack.c.bf16 %v2505_v17, %v2503_v16 }
 0x258   : > { %v2290_v24 = vadd.f32 %v2289_v22, %v13391_v40  ;;  %v2291_v30 = vpop.f32.mrb[133].mxu0 }
 0x259   : > { %v2292_v37 = vadd.f32 %v2291_v30, %v13395_v45  ;;  %v2293_v34 = vpop.f32.mrb[134].mxu0  ;;  %3028 = vmatprep.mubr.bf16.mxu1 %v2599_v26 }
 0x25a   : > { %v2294_v21 = vadd.f32 %v2293_v34, %v13391_v40  ;;  %v2295_v33 = vpop.f32.mrb[135].mxu0  ;;  %3029 = vmatmul.mubr.bf16.gmra.mrb[0].mxu1 %v2598_v18  ;;  %v2506_v44 = vmax.f32 %v2290_v24, 0.0  ;;  %v11963_v34 = vld [vmem:[%s17259_s3 + $0x360] ss:$8 sps:$4 sm:$0xff]  }
 0x25b   : > { %v2296_v7 = vadd.f32 %v2295_v33, %v13395_v45  ;;  %v2507_v43 = vmax.f32 %v2292_v37, 0.0 }
 0x25c   : > { %v2508_v1 = vmax.f32 %v2294_v21, 0.0  ;;  %v11965_v21 = vld [vmem:[%s17259_s3 + $0x364] ss:$8 sps:$4 sm:$0xff]  }
 0x25d   : > { %v2509_v38 = vmax.f32 %v2296_v7, 0.0  ;;  %4350 = vmatprep.subr.bf16.mxu1 %v11965_v21 }
 0x25e   : > { %v2600_v13 = vpack.c.bf16 %v2508_v1, %v2506_v44  ;;  %4351 = vmatpush1.bf16.msra.mxu1 %v11963_v34 }
 0x25f   : > { %v2299_v9 = vpop.f32.mrb[136].mxu0  ;;  %v2601_v51 = vpack.c.bf16 %v2509_v38, %v2507_v43 }
 0x260   : > { %v2300_v46 = vadd.f32 %v2299_v9, %v13391_v40  ;;  %v2301_v20 = vpop.f32.mrb[137].mxu0 }
 0x261   : > { %v2302_v27 = vadd.f32 %v2301_v20, %v13395_v45  ;;  %v2303_v62 = vpop.f32.mrb[138].mxu0  ;;  %3038 = vmatprep.mubr.bf16.mxu1 %v2601_v51 }
 0x262   : > { %v2304_v36 = vadd.f32 %v2303_v62, %v13391_v40  ;;  %v2305_v47 = vpop.f32.mrb[139].mxu0  ;;  %3039 = vmatmul.mubr.bf16.gmra.mrb[4].mxu1 %v2600_v13  ;;  %v2510_v28 = vmax.f32 %v2300_v46, 0.0 }
 0x263   : > { %v2306_v4 = vadd.f32 %v2305_v47, %v13395_v45  ;;  %v2511_v8 = vmax.f32 %v2302_v27, 0.0 }
 0x264   : > { %v2512_v32 = vmax.f32 %v2304_v36, 0.0 }
 0x265   : > { %v2513_v23 = vmax.f32 %v2306_v4, 0.0 }
 0x266   : > { %v2602_v6 = vpack.c.bf16 %v2512_v32, %v2510_v28 }
 0x267   : > { %v2309_v35 = vpop.f32.mrb[140].mxu0  ;;  %v2603_v61 = vpack.c.bf16 %v2513_v23, %v2511_v8 }
 0x268   : > { %v2310_v39 = vadd.f32 %v2309_v35, %v13391_v40  ;;  %v2311_v42 = vpop.f32.mrb[141].mxu0 }
 0x269   : > { %v2312_v53 = vadd.f32 %v2311_v42, %v13395_v45  ;;  %v2313_v54 = vpop.f32.mrb[142].mxu0  ;;  %3048 = vmatprep.mubr.bf16.mxu1 %v2603_v61 }
 0x26a   : > { %v2314_v15 = vadd.f32 %v2313_v54, %v13391_v40  ;;  %v2315_v58 = vpop.f32.mrb[143].mxu0  ;;  %3049 = vmatmul.mubr.bf16.gmra.mrb[8].mxu1 %v2602_v6  ;;  %v2514_v55 = vmax.f32 %v2310_v39, 0.0  ;;  %v11966_v54 = vld [vmem:[%s17259_s3 + $0x370] ss:$8 sps:$4 sm:$0xff]  }
 0x26b   : > { %v2316_v59 = vadd.f32 %v2315_v58, %v13395_v45  ;;  %v2515_v63 = vmax.f32 %v2312_v53, 0.0 }
 0x26c   : > { %v2516_v60 = vmax.f32 %v2314_v15, 0.0  ;;  %v11968_v15 = vld [vmem:[%s17259_s3 + $0x374] ss:$8 sps:$4 sm:$0xff]  }
 0x26d   : > { %v2517_v0 = vmax.f32 %v2316_v59, 0.0  ;;  %4352 = vmatprep.subr.bf16.mxu1 %v11968_v15  ;;  %v10780_v15 = vld [vmem:[%s17260_s4 + $0x2] ss:$8 sm:$0x3] }
 0x26e   : > { %v2604_v2 = vpack.c.bf16 %v2516_v60, %v2514_v55  ;;  %4353 = vmatpush1.bf16.msra.mxu1 %v11966_v54 }
 0x26f   : > { %v2319_v19 = vpop.f32.mrb[144].mxu0  ;;  %v2605_v10 = vpack.c.bf16 %v2517_v0, %v2515_v63 }
 0x270   : > { %v2320_v49 = vadd.f32 %v2319_v19, %v13391_v40  ;;  %v2321_v25 = vpop.f32.mrb[145].mxu0 }
 0x271   : > { %v2322_v11 = vadd.f32 %v2321_v25, %v13395_v45  ;;  %v2323_v12 = vpop.f32.mrb[146].mxu0  ;;  %3058 = vmatprep.mubr.bf16.mxu1 %v2605_v10 }
 0x272   : > { %v2324_v29 = vadd.f32 %v2323_v12, %v13391_v40  ;;  %v2325_v14 = vpop.f32.mrb[147].mxu0  ;;  %3059 = vmatmul.mubr.bf16.gmra.mrb[12].mxu1 %v2604_v2  ;;  %v2518_v17 = vmax.f32 %v2320_v49, 0.0 }
 0x273   : > { %v2326_v16 = vadd.f32 %v2325_v14, %v13395_v45  ;;  %v2519_v22 = vmax.f32 %v2322_v11, 0.0 }
 0x274   : > { %v2520_v18 = vmax.f32 %v2324_v29, 0.0 }
 0x275   : > { %v2521_v26 = vmax.f32 %v2326_v16, 0.0 }
 0x276   : > { %v2606_v24 = vpack.c.bf16 %v2520_v18, %v2518_v17 }
 0x277   : > { %v2329_v30 = vpop.f32.mrb[148].mxu0  ;;  %v2607_v56 = vpack.c.bf16 %v2521_v26, %v2519_v22 }
 0x278   : > { %v2330_v31 = vadd.f32 %v2329_v30, %v13391_v40  ;;  %v2331_v37 = vpop.f32.mrb[149].mxu0 }
 0x279   : > { %v2332_v33 = vadd.f32 %v2331_v37, %v13395_v45  ;;  %v2333_v7 = vpop.f32.mrb[150].mxu0  ;;  %3068 = vmatprep.mubr.bf16.mxu1 %v2607_v56 }
 0x27a   : > { %v2334_v44 = vadd.f32 %v2333_v7, %v13391_v40  ;;  %v2335_v1 = vpop.f32.mrb[151].mxu0  ;;  %3069 = vmatmul.mubr.bf16.gmra.mrb[16].mxu1 %v2606_v24  ;;  %v2522_v38 = vmax.f32 %v2330_v31, 0.0  ;;  %v11969_v7 = vld [vmem:[%s17259_s3 + $0x380] ss:$8 sps:$4 sm:$0xff]  }
 0x27b   : > { %v2336_v43 = vadd.f32 %v2335_v1, %v13395_v45  ;;  %v2523_v9 = vmax.f32 %v2332_v33, 0.0 }
 0x27c   : > { %v2524_v13 = vmax.f32 %v2334_v44, 0.0  ;;  %v11971_v44 = vld [vmem:[%s17259_s3 + $0x384] ss:$8 sps:$4 sm:$0xff]  }
 0x27d   : > { %v2525_v51 = vmax.f32 %v2336_v43, 0.0  ;;  %4354 = vmatprep.subr.bf16.mxu1 %v11971_v44 }
 0x27e   : > { %v2608_v46 = vpack.c.bf16 %v2524_v13, %v2522_v38  ;;  %4355 = vmatpush1.bf16.msra.mxu1 %v11969_v7 }
 0x27f   : > { %v2339_v20 = vpop.f32.mrb[152].mxu0  ;;  %v2609_v27 = vpack.c.bf16 %v2525_v51, %v2523_v9 }
 0x280   : > { %v2340_v62 = vadd.f32 %v2339_v20, %v13391_v40  ;;  %v2341_v36 = vpop.f32.mrb[153].mxu0 }
 0x281   : > { %v2342_v47 = vadd.f32 %v2341_v36, %v13395_v45  ;;  %v2343_v4 = vpop.f32.mrb[154].mxu0  ;;  %3078 = vmatprep.mubr.bf16.mxu1 %v2609_v27 }
 0x282   : > { %v2344_v28 = vadd.f32 %v2343_v4, %v13391_v40  ;;  %v2345_v32 = vpop.f32.mrb[155].mxu0  ;;  %3079 = vmatmul.mubr.bf16.gmra.mrb[20].mxu1 %v2608_v46  ;;  %v2526_v23 = vmax.f32 %v2340_v62, 0.0 }
 0x283   : > { %v2346_v8 = vadd.f32 %v2345_v32, %v13395_v45  ;;  %v2527_v35 = vmax.f32 %v2342_v47, 0.0 }
 0x284   : > { %v2528_v6 = vmax.f32 %v2344_v28, 0.0 }
 0x285   : > { %v2529_v61 = vmax.f32 %v2346_v8, 0.0 }
 0x286   : > { %v2610_v39 = vpack.c.bf16 %v2528_v6, %v2526_v23 }
 0x287   : > { %v2349_v42 = vpop.f32.mrb[156].mxu0  ;;  %v2611_v41 = vpack.c.bf16 %v2529_v61, %v2527_v35 }
 0x288   : > { %v2350_v57 = vadd.f32 %v2349_v42, %v13391_v40  ;;  %v2351_v53 = vpop.f32.mrb[157].mxu0 }
 0x289   : > { %v2352_v58 = vadd.f32 %v2351_v53, %v13395_v45  ;;  %v2353_v59 = vpop.f32.mrb[158].mxu0  ;;  %3088 = vmatprep.mubr.bf16.mxu1 %v2611_v41 }
 0x28a   : > { %v2354_v55 = vadd.f32 %v2353_v59, %v13391_v40  ;;  %v2355_v60 = vpop.f32.mrb[159].mxu0  ;;  %3089 = vmatmul.mubr.bf16.gmra.mrb[24].mxu1 %v2610_v39  ;;  %v2530_v0 = vmax.f32 %v2350_v57, 0.0 }
 0x28b   : > { %v2356_v63 = vadd.f32 %v2355_v60, %v13395_v45  ;;  %v2531_v19 = vmax.f32 %v2352_v58, 0.0  ;;  %v11974_v60 = vld [vmem:[%s17259_s3 + $0x394] ss:$8 sps:$4 sm:$0xff]  }
 0x28c   : > { %v2532_v2 = vmax.f32 %v2354_v55, 0.0  ;;  %v11972_v55 = vld [vmem:[%s17259_s3 + $0x390] ss:$8 sps:$4 sm:$0xff]   ;;  %4356 = vmatprep.subr.bf16.mxu1 %v11974_v60 }
 0x28d   : > { %v2533_v10 = vmax.f32 %v2356_v63, 0.0  ;;  %4357 = vmatpush1.bf16.msra.mxu1 %v11972_v55  ;;  %v11977_v55 = vld [vmem:[%s17259_s3 + $0x3a4] ss:$8 sps:$4 sm:$0xff]  }
 0x28e   : > { %v2612_v49 = vpack.c.bf16 %v2532_v2, %v2530_v0  ;;  %4358 = vmatprep.subr.bf16.mxu1 %v11977_v55 }
 0x28f   : > { %v2359_v25 = vpop.f32.mrb[160].mxu0  ;;  %v2613_v11 = vpack.c.bf16 %v2533_v10, %v2531_v19  ;;  %v13617_v10 = vrot.slane %v10780_v15, %v12992_v50 }
 0x290   : > { %v2360_v12 = vadd.f32 %v2359_v25, %v13391_v40  ;;  %v2361_v29 = vpop.f32.mrb[161].mxu0  ;;  %v13621_v25 = vrot.slane %v10780_v15, %v12998_v52 }
 0x291   : > { %v2362_v14 = vadd.f32 %v2361_v29, %v13395_v45  ;;  %v2363_v16 = vpop.f32.mrb[162].mxu0  ;;  %3098 = vmatprep.mubr.bf16.mxu1 %v2613_v11 }
 0x292   : > { %v2364_v17 = vadd.f32 %v2363_v16, %v13391_v40  ;;  %v2365_v18 = vpop.f32.mrb[163].mxu0  ;;  %3099 = vmatmul.mubr.bf16.gmra.mrb[28].mxu1 %v2612_v49  ;;  %v2534_v26 = vmax.f32 %v2360_v12, 0.0 }
 0x293   : > { %v2366_v22 = vadd.f32 %v2365_v18, %v13395_v45  ;;  %v2535_v30 = vmax.f32 %v2362_v14, 0.0 }
 0x294   : > { %v2536_v24 = vmax.f32 %v2364_v17, 0.0 }
 0x295   : > { %v2537_v56 = vmax.f32 %v2366_v22, 0.0 }
 0x296   : > { %v2614_v31 = vpack.c.bf16 %v2536_v24, %v2534_v26 }
 0x297   : > { %v2369_v37 = vpop.f32.mrb[164].mxu0  ;;  %v2615_v34 = vpack.c.bf16 %v2537_v56, %v2535_v30 }
 0x298   : > { %v2370_v21 = vadd.f32 %v2369_v37, %v13391_v40  ;;  %v2371_v33 = vpop.f32.mrb[165].mxu0 }
 0x299   : > { %v2372_v1 = vadd.f32 %v2371_v33, %v13395_v45  ;;  %v2373_v43 = vpop.f32.mrb[166].mxu0  ;;  %3108 = vmatprep.mubr.bf16.mxu1 %v2615_v34 }
 0x29a   : > { %v2374_v38 = vadd.f32 %v2373_v43, %v13391_v40  ;;  %v2375_v13 = vpop.f32.mrb[167].mxu0  ;;  %3109 = vmatmul.mubr.bf16.gmra.mrb[32].mxu1 %v2614_v31  ;;  %v2538_v51 = vmax.f32 %v2370_v21, 0.0 }
 0x29b   : > { %v2376_v9 = vadd.f32 %v2375_v13, %v13395_v45  ;;  %v2539_v20 = vmax.f32 %v2372_v1, 0.0 }
 0x29c   : > { %v2540_v46 = vmax.f32 %v2374_v38, 0.0 }
 0x29d   : > { %v2541_v27 = vmax.f32 %v2376_v9, 0.0 }
 0x29e   : > { %v2616_v62 = vpack.c.bf16 %v2540_v46, %v2538_v51 }
 0x29f   : > { %v2379_v36 = vpop.f32.mrb[168].mxu0  ;;  %v2617_v47 = vpack.c.bf16 %v2541_v27, %v2539_v20 }
 0x2a0   : > { %v2380_v4 = vadd.f32 %v2379_v36, %v13391_v40  ;;  %v2381_v28 = vpop.f32.mrb[169].mxu0 }
 0x2a1   : > { %v2382_v32 = vadd.f32 %v2381_v28, %v13395_v45  ;;  %v2383_v8 = vpop.f32.mrb[170].mxu0  ;;  %3118 = vmatprep.mubr.bf16.mxu1 %v2617_v47 }
 0x2a2   : > { %v2384_v23 = vadd.f32 %v2383_v8, %v13391_v40  ;;  %v2385_v6 = vpop.f32.mrb[171].mxu0  ;;  %3119 = vmatmul.mubr.bf16.gmra.mrb[36].mxu1 %v2616_v62  ;;  %v2542_v61 = vmax.f32 %v2380_v4, 0.0 }
 0x2a3   : > { %v2386_v35 = vadd.f32 %v2385_v6, %v13395_v45  ;;  %v2543_v42 = vmax.f32 %v2382_v32, 0.0 }
 0x2a4   : > { %v2544_v39 = vmax.f32 %v2384_v23, 0.0 }
 0x2a5   : > { %v2545_v41 = vmax.f32 %v2386_v35, 0.0 }
 0x2a6   : > { %v2618_v57 = vpack.c.bf16 %v2544_v39, %v2542_v61 }
 0x2a7   : > { %v2389_v53 = vpop.f32.mrb[172].mxu0  ;;  %v2619_v54 = vpack.c.bf16 %v2545_v41, %v2543_v42 }
 0x2a8   : > { %v2390_v58 = vadd.f32 %v2389_v53, %v13391_v40  ;;  %v2391_v59 = vpop.f32.mrb[173].mxu0 }
 0x2a9   : > { %v2392_v63 = vadd.f32 %v2391_v59, %v13395_v45  ;;  %v2393_v0 = vpop.f32.mrb[174].mxu0  ;;  %3128 = vmatprep.mubr.bf16.mxu1 %v2619_v54  ;;  %v11975_v54 = vld [vmem:[%s17259_s3 + $0x3a0] ss:$8 sps:$4 sm:$0xff]  }
 0x2aa   : > { %v2394_v2 = vadd.f32 %v2393_v0, %v13391_v40  ;;  %v2395_v19 = vpop.f32.mrb[175].mxu0  ;;  %3129 = vmatmul.mubr.bf16.gmra.mrb[40].mxu1 %v2618_v57  ;;  %v2546_v11 = vmax.f32 %v2390_v58, 0.0 }
 0x2ab   : > { %v2396_v49 = vadd.f32 %v2395_v19, %v13395_v45  ;;  %v2547_v29 = vmax.f32 %v2392_v63, 0.0  ;;  %4359 = vmatpush1.bf16.msra.mxu1 %v11975_v54 }
 0x2ac   : > { %v2548_v12 = vmax.f32 %v2394_v2, 0.0 }
 0x2ad   : > { %v2549_v14 = vmax.f32 %v2396_v49, 0.0  ;;  %v2870_v16 = vpop.f32.mrb[192].mxu1 }
 0x2ae   : > { %v2620_v17 = vpack.c.bf16 %v2548_v12, %v2546_v11  ;;  %v2871_v18 = vadd.f32 %v2870_v16, %v13617_v10  ;;  %v2872_v22 = vpop.f32.mrb[193].mxu1 }
 0x2af   : > { %v2873_v26 = vadd.f32 %v2872_v22, %v13621_v25  ;;  %v2399_v24 = vpop.f32.mrb[176].mxu0  ;;  %v2874_v30 = vpop.f32.mrb[194].mxu1  ;;  %v2621_v56 = vpack.c.bf16 %v2549_v14, %v2547_v29 }
 0x2b0   : > { %v2400_v31 = vadd.f32 %v2399_v24, %v13391_v40  ;;  %v2875_v37 = vadd.f32 %v2874_v30, %v13617_v10  ;;  %v2401_v34 = vpop.f32.mrb[177].mxu0  ;;  %v2876_v21 = vpop.f32.mrb[195].mxu1  ;;  %v3189_v1 = vmax.f32 %v2871_v18, 0.0 }
 0x2b1   : > { %v2402_v33 = vadd.f32 %v2401_v34, %v13395_v45  ;;  %v2877_v7 = vadd.f32 %v2876_v21, %v13621_v25  ;;  %v2403_v44 = vpop.f32.mrb[178].mxu0  ;;  %3138 = vmatprep.mubr.bf16.mxu1 %v2621_v56  ;;  %v3190_v9 = vmax.f32 %v2873_v26, 0.0 }
 0x2b2   : > { %v3191_v43 = vmax.f32 %v2875_v37, 0.0  ;;  %v2404_v38 = vadd.f32 %v2403_v44, %v13391_v40  ;;  %v2405_v13 = vpop.f32.mrb[179].mxu0  ;;  %3139 = vmatmul.mubr.bf16.gmra.mrb[44].mxu1 %v2620_v17  ;;  %v2550_v20 = vmax.f32 %v2400_v31, 0.0 }
 0x2b3   : > { %v3192_v51 = vmax.f32 %v2877_v7, 0.0  ;;  %v2406_v46 = vadd.f32 %v2405_v13, %v13395_v45  ;;  %v2551_v36 = vmax.f32 %v2402_v33, 0.0 }
 0x2b4   : > { %v3317_v27 = vpack.c.bf16 %v3191_v43, %v3189_v1  ;;  %v2552_v62 = vmax.f32 %v2404_v38, 0.0 }
 0x2b5   : > { %v2553_v47 = vmax.f32 %v2406_v46, 0.0  ;;  %v2880_v4 = vpop.f32.mrb[196].mxu1  ;;  %v3318_v28 = vpack.c.bf16 %v3192_v51, %v3190_v9 }
 0x2b6   : > { %v2622_v32 = vpack.c.bf16 %v2552_v62, %v2550_v20  ;;  %v2881_v8 = vadd.f32 %v2880_v4, %v13617_v10  ;;  %v2882_v23 = vpop.f32.mrb[197].mxu1 }
 0x2b7   : > { %v2883_v6 = vadd.f32 %v2882_v23, %v13621_v25  ;;  %v2409_v35 = vpop.f32.mrb[180].mxu0  ;;  %v2884_v61 = vpop.f32.mrb[198].mxu1  ;;  %3619 = vmatprep.mubr.bf16.mxu0 %v3318_v28  ;;  %v2623_v39 = vpack.c.bf16 %v2553_v47, %v2551_v36 }
 0x2b8   : > { %v2410_v42 = vadd.f32 %v2409_v35, %v13391_v40  ;;  %v2885_v41 = vadd.f32 %v2884_v61, %v13617_v10  ;;  %v2411_v57 = vpop.f32.mrb[181].mxu0  ;;  %v2886_v53 = vpop.f32.mrb[199].mxu1  ;;  %3620 = vmatmul.mubr.bf16.vlgmr.msra.gmra.mrb[192].mxu0 %v3317_v27  ;;  %v3193_v60 = vmax.f32 %v2881_v8, 0.0 }
 0x2b9   : > { %v2412_v15 = vadd.f32 %v2411_v57, %v13395_v45  ;;  %v2887_v58 = vadd.f32 %v2886_v53, %v13621_v25  ;;  %v2413_v59 = vpop.f32.mrb[182].mxu0  ;;  %3148 = vmatprep.mubr.bf16.mxu1 %v2623_v39  ;;  %v3194_v19 = vmax.f32 %v2883_v6, 0.0 }
 0x2ba   : > { %v3195_v63 = vmax.f32 %v2885_v41, 0.0  ;;  %v2414_v0 = vadd.f32 %v2413_v59, %v13391_v40  ;;  %v2415_v2 = vpop.f32.mrb[183].mxu0  ;;  %3149 = vmatmul.mubr.bf16.gmra.mrb[48].mxu1 %v2622_v32  ;;  %v2554_v12 = vmax.f32 %v2410_v42, 0.0  ;;  %v11978_v59 = vld [vmem:[%s17259_s3 + $0x3b0] ss:$8 sps:$4 sm:$0xff]  }
 0x2bb   : > { %v3196_v49 = vmax.f32 %v2887_v58, 0.0  ;;  %v2416_v11 = vadd.f32 %v2415_v2, %v13395_v45  ;;  %v2555_v16 = vmax.f32 %v2412_v15, 0.0 }
 0x2bc   : > { %v2556_v29 = vmax.f32 %v2414_v0, 0.0  ;;  %v3319_v14 = vpack.c.bf16 %v3195_v63, %v3193_v60  ;;  %v11980_v0 = vld [vmem:[%s17259_s3 + $0x3b4] ss:$8 sps:$4 sm:$0xff]  }
 0x2bd   : > { %v2557_v17 = vmax.f32 %v2416_v11, 0.0  ;;  %v2890_v18 = vpop.f32.mrb[200].mxu1  ;;  %v3320_v22 = vpack.c.bf16 %v3196_v49, %v3194_v19  ;;  %4360 = vmatprep.subr.bf16.mxu1 %v11980_v0 }
 0x2be   : > { %v2624_v26 = vpack.c.bf16 %v2556_v29, %v2554_v12  ;;  %v2891_v24 = vadd.f32 %v2890_v18, %v13617_v10  ;;  %v2892_v30 = vpop.f32.mrb[201].mxu1  ;;  %4361 = vmatpush1.bf16.msra.mxu1 %v11978_v59 }
 0x2bf   : > { %v2893_v56 = vadd.f32 %v2892_v30, %v13621_v25  ;;  %v2419_v31 = vpop.f32.mrb[184].mxu0  ;;  %v2894_v37 = vpop.f32.mrb[202].mxu1  ;;  %3629 = vmatprep.mubr.bf16.mxu0 %v3320_v22  ;;  %v2625_v34 = vpack.c.bf16 %v2557_v17, %v2555_v16 }
 0x2c0   : > { %v2420_v21 = vadd.f32 %v2419_v31, %v13391_v40  ;;  %v2895_v33 = vadd.f32 %v2894_v37, %v13617_v10  ;;  %v2421_v7 = vpop.f32.mrb[185].mxu0  ;;  %v2896_v44 = vpop.f32.mrb[203].mxu1  ;;  %3630 = vmatmul.mubr.bf16.gmra.mrb[196].mxu0 %v3319_v14  ;;  %v3197_v13 = vmax.f32 %v2891_v24, 0.0 }
 0x2c1   : > { %v2422_v1 = vadd.f32 %v2421_v7, %v13395_v45  ;;  %v2897_v43 = vadd.f32 %v2896_v44, %v13621_v25  ;;  %v2423_v38 = vpop.f32.mrb[186].mxu0  ;;  %3158 = vmatprep.mubr.bf16.mxu1 %v2625_v34  ;;  %v3198_v20 = vmax.f32 %v2893_v56, 0.0 }
 0x2c2   : > { %v3199_v9 = vmax.f32 %v2895_v33, 0.0  ;;  %v2424_v51 = vadd.f32 %v2423_v38, %v13391_v40  ;;  %v2425_v46 = vpop.f32.mrb[187].mxu0  ;;  %3159 = vmatmul.mubr.bf16.gmra.mrb[52].mxu1 %v2624_v26  ;;  %v2558_v36 = vmax.f32 %v2420_v21, 0.0 }
 0x2c3   : > { %v3200_v27 = vmax.f32 %v2897_v43, 0.0  ;;  %v2426_v62 = vadd.f32 %v2425_v46, %v13395_v45  ;;  %v2559_v28 = vmax.f32 %v2422_v1, 0.0 }
 0x2c4   : > { %v2560_v47 = vmax.f32 %v2424_v51, 0.0  ;;  %v3321_v4 = vpack.c.bf16 %v3199_v9, %v3197_v13 }
 0x2c5   : > { %v2561_v32 = vmax.f32 %v2426_v62, 0.0  ;;  %v2900_v8 = vpop.f32.mrb[204].mxu1  ;;  %v3322_v23 = vpack.c.bf16 %v3200_v27, %v3198_v20 }
 0x2c6   : > { %v2626_v6 = vpack.c.bf16 %v2560_v47, %v2558_v36  ;;  %v2901_v35 = vadd.f32 %v2900_v8, %v13617_v10  ;;  %v2902_v61 = vpop.f32.mrb[205].mxu1 }
 0x2c7   : > { %v2903_v39 = vadd.f32 %v2902_v61, %v13621_v25  ;;  %v2429_v42 = vpop.f32.mrb[188].mxu0  ;;  %v2904_v41 = vpop.f32.mrb[206].mxu1  ;;  %3639 = vmatprep.mubr.bf16.mxu0 %v3322_v23  ;;  %v2627_v57 = vpack.c.bf16 %v2561_v32, %v2559_v28  ;;  %v11983_v28 = vld [vmem:[%s17259_s3 + $0x3c4] ss:$8 sps:$4 sm:$0xff]  }
 0x2c8   : > { %v2430_v53 = vadd.f32 %v2429_v42, %v13391_v40  ;;  %v2905_v54 = vadd.f32 %v2904_v41, %v13617_v10  ;;  %v2431_v15 = vpop.f32.mrb[189].mxu0  ;;  %v2906_v58 = vpop.f32.mrb[207].mxu1  ;;  %3640 = vmatmul.mubr.bf16.gmra.mrb[200].mxu0 %v3321_v4  ;;  %v3201_v2 = vmax.f32 %v2901_v35, 0.0  ;;  %v11981_v4 = vld [vmem:[%s17259_s3 + $0x3c0] ss:$8 sps:$4 sm:$0xff]   ;;  %4362 = vmatprep.subr.bf16.mxu1 %v11983_v28 }
 0x2c9   : > { %v2432_v55 = vadd.f32 %v2431_v15, %v13395_v45  ;;  %v2907_v60 = vadd.f32 %v2906_v58, %v13621_v25  ;;  %v2433_v63 = vpop.f32.mrb[190].mxu0  ;;  %3168 = vmatprep.mubr.bf16.mxu1 %v2627_v57  ;;  %v3202_v12 = vmax.f32 %v2903_v39, 0.0  ;;  %4363 = vmatpush1.bf16.msra.mxu1 %v11981_v4 }
 0x2ca   : > { %v3203_v19 = vmax.f32 %v2905_v54, 0.0  ;;  %v2434_v49 = vadd.f32 %v2433_v63, %v13391_v40  ;;  %v2435_v11 = vpop.f32.mrb[191].mxu0  ;;  %3169 = vmatmul.mubr.bf16.gmra.mrb[56].mxu1 %v2626_v6  ;;  %v2562_v16 = vmax.f32 %v2430_v53, 0.0 }
 0x2cb   : > { %v3204_v29 = vmax.f32 %v2907_v60, 0.0  ;;  %v2436_v14 = vadd.f32 %v2435_v11, %v13395_v45  ;;  %v2563_v22 = vmax.f32 %v2432_v55, 0.0 }
 0x2cc   : > { %v2564_v17 = vmax.f32 %v2434_v49, 0.0  ;;  %v3323_v18 = vpack.c.bf16 %v3203_v19, %v3201_v2 }
 0x2cd   : > { %v2565_v26 = vmax.f32 %v2436_v14, 0.0  ;;  %v2910_v24 = vpop.f32.mrb[208].mxu1  ;;  %v3324_v30 = vpack.c.bf16 %v3204_v29, %v3202_v12 }
 0x2ce   : > { %v2628_v56 = vpack.c.bf16 %v2564_v17, %v2562_v16  ;;  %v2911_v31 = vadd.f32 %v2910_v24, %v13617_v10  ;;  %v2912_v37 = vpop.f32.mrb[209].mxu1 }
 0x2cf   : > { %v2913_v40 = vadd.f32 %v2912_v37, %v13621_v25  ;;  %v2914_v34 = vpop.f32.mrb[210].mxu1  ;;  %3649 = vmatprep.mubr.bf16.mxu0 %v3324_v30  ;;  %v2629_v21 = vpack.c.bf16 %v2565_v26, %v2563_v22  ;;  %v11986_v22 = vld [vmem:[%s17259_s3 + $0x3d4] ss:$8 sps:$4 sm:$0xff]  }
 0x2d0   : > { %v2915_v45 = vadd.f32 %v2914_v34, %v13617_v10  ;;  %v2916_v33 = vpop.f32.mrb[211].mxu1  ;;  %3650 = vmatmul.mubr.bf16.gmra.mrb[204].mxu0 %v3323_v18  ;;  %v3205_v44 = vmax.f32 %v2911_v31, 0.0  ;;  %v11984_v18 = vld [vmem:[%s17259_s3 + $0x3d0] ss:$8 sps:$4 sm:$0xff]   ;;  %4364 = vmatprep.subr.bf16.mxu1 %v11986_v22 }
 0x2d1   : > { %v2917_v7 = vadd.f32 %v2916_v33, %v13621_v25  ;;  %3178 = vmatprep.mubr.bf16.mxu1 %v2629_v21  ;;  %v3206_v43 = vmax.f32 %v2913_v40, 0.0  ;;  %4365 = vmatpush1.bf16.msra.mxu1 %v11984_v18 }
 0x2d2   : > { %v3207_v1 = vmax.f32 %v2915_v45, 0.0  ;;  %3179 = vmatmul.mubr.bf16.gmra.mrb[60].mxu1 %v2628_v56 }
 0x2d3   : > { %v3208_v38 = vmax.f32 %v2917_v7, 0.0 }
 0x2d4   : > { %v3325_v13 = vpack.c.bf16 %v3207_v1, %v3205_v44 }
 0x2d5   : > { %v2920_v9 = vpop.f32.mrb[212].mxu1  ;;  %v3326_v51 = vpack.c.bf16 %v3208_v38, %v3206_v43 }
 0x2d6   : > { %v2921_v46 = vadd.f32 %v2920_v9, %v13617_v10  ;;  %v2922_v20 = vpop.f32.mrb[213].mxu1 }
 0x2d7   : > { %v2923_v27 = vadd.f32 %v2922_v20, %v13621_v25  ;;  %v2924_v62 = vpop.f32.mrb[214].mxu1  ;;  %3659 = vmatprep.mubr.bf16.mxu0 %v3326_v51 }
 0x2d8   : > { %v2925_v36 = vadd.f32 %v2924_v62, %v13617_v10  ;;  %v2926_v47 = vpop.f32.mrb[215].mxu1  ;;  %3660 = vmatmul.mubr.bf16.gmra.mrb[208].mxu0 %v3325_v13  ;;  %v3209_v8 = vmax.f32 %v2921_v46, 0.0 }
 0x2d9   : > { %v2927_v32 = vadd.f32 %v2926_v47, %v13621_v25  ;;  %v3210_v6 = vmax.f32 %v2923_v27, 0.0 }
 0x2da   : > { %v3211_v23 = vmax.f32 %v2925_v36, 0.0 }
 0x2db   : > { %v3212_v35 = vmax.f32 %v2927_v32, 0.0 }
 0x2dc   : > { %v3327_v61 = vpack.c.bf16 %v3211_v23, %v3209_v8  ;;  %v11987_v8 = vld [vmem:[%s17259_s3 + $0x3e0] ss:$8 sps:$4 sm:$0xff]   ;;  %v11989_v23 = vld [vmem:[%s17259_s3 + $0x3e4] ss:$8 sps:$4 sm:$0xff]  }
 0x2dd   : > { %v2930_v39 = vpop.f32.mrb[216].mxu1  ;;  %v3328_v42 = vpack.c.bf16 %v3212_v35, %v3210_v6  ;;  %4366 = vmatprep.subr.bf16.mxu1 %v11989_v23 }
 0x2de   : > { %v2931_v41 = vadd.f32 %v2930_v39, %v13617_v10  ;;  %v2932_v57 = vpop.f32.mrb[217].mxu1  ;;  %4367 = vmatpush1.bf16.msra.mxu1 %v11987_v8 }
 0x2df   : > { %v2933_v53 = vadd.f32 %v2932_v57, %v13621_v25  ;;  %v2934_v54 = vpop.f32.mrb[218].mxu1  ;;  %3669 = vmatprep.mubr.bf16.mxu0 %v3328_v42 }
 0x2e0   : > { %v2935_v15 = vadd.f32 %v2934_v54, %v13617_v10  ;;  %v2936_v58 = vpop.f32.mrb[219].mxu1  ;;  %3670 = vmatmul.mubr.bf16.gmra.mrb[212].mxu0 %v3327_v61  ;;  %v3213_v55 = vmax.f32 %v2931_v41, 0.0 }
 0x2e1   : > { %v2937_v59 = vadd.f32 %v2936_v58, %v13621_v25  ;;  %v3214_v63 = vmax.f32 %v2933_v53, 0.0 }
 0x2e2   : > { %v3215_v60 = vmax.f32 %v2935_v15, 0.0 }
 0x2e3   : > { %v3216_v0 = vmax.f32 %v2937_v59, 0.0 }
 0x2e4   : > { %v3329_v2 = vpack.c.bf16 %v3215_v60, %v3213_v55 }
 0x2e5   : > { %v2940_v19 = vpop.f32.mrb[220].mxu1  ;;  %v3330_v49 = vpack.c.bf16 %v3216_v0, %v3214_v63 }
 0x2e6   : > { %v2941_v11 = vadd.f32 %v2940_v19, %v13617_v10  ;;  %v2942_v12 = vpop.f32.mrb[221].mxu1 }
 0x2e7   : > { %v2943_v29 = vadd.f32 %v2942_v12, %v13621_v25  ;;  %v2944_v14 = vpop.f32.mrb[222].mxu1  ;;  %3679 = vmatprep.mubr.bf16.mxu0 %v3330_v49 }
 0x2e8   : > { %v2945_v16 = vadd.f32 %v2944_v14, %v13617_v10  ;;  %v2946_v17 = vpop.f32.mrb[223].mxu1  ;;  %3680 = vmatmul.mubr.bf16.gmra.mrb[216].mxu0 %v3329_v2  ;;  %v3217_v24 = vmax.f32 %v2941_v11, 0.0 }
 0x2e9   : > { %v2947_v26 = vadd.f32 %v2946_v17, %v13621_v25  ;;  %v3218_v56 = vmax.f32 %v2943_v29, 0.0 }
 0x2ea   : > { %v3219_v30 = vmax.f32 %v2945_v16, 0.0 }
 0x2eb   : > { %v3220_v31 = vmax.f32 %v2947_v26, 0.0 }
 0x2ec   : > { %v3331_v37 = vpack.c.bf16 %v3219_v30, %v3217_v24  ;;  %v11990_v24 = vld [vmem:[%s17259_s3 + $0x3f0] ss:$8 sps:$4 sm:$0xff]   ;;  %v11992_v30 = vld [vmem:[%s17259_s3 + $0x3f4] ss:$8 sps:$4 sm:$0xff]  }
 0x2ed   : > { %v2950_v40 = vpop.f32.mrb[224].mxu1  ;;  %v3332_v34 = vpack.c.bf16 %v3220_v31, %v3218_v56  ;;  %4368 = vmatprep.subr.bf16.mxu1 %v11992_v30 }
 0x2ee   : > { %v2951_v21 = vadd.f32 %v2950_v40, %v13617_v10  ;;  %v2952_v45 = vpop.f32.mrb[225].mxu1  ;;  %4369 = vmatpush1.bf16.msra.mxu1 %v11990_v24 }
 0x2ef   : > { %v2953_v33 = vadd.f32 %v2952_v45, %v13621_v25  ;;  %v2954_v7 = vpop.f32.mrb[226].mxu1  ;;  %3689 = vmatprep.mubr.bf16.mxu0 %v3332_v34 }
 0x2f0   : > { %v2955_v44 = vadd.f32 %v2954_v7, %v13617_v10  ;;  %v2956_v1 = vpop.f32.mrb[227].mxu1  ;;  %3690 = vmatmul.mubr.bf16.gmra.mrb[220].mxu0 %v3331_v37  ;;  %v3221_v38 = vmax.f32 %v2951_v21, 0.0 }
 0x2f1   : > { %v2957_v43 = vadd.f32 %v2956_v1, %v13621_v25  ;;  %v3222_v9 = vmax.f32 %v2953_v33, 0.0 }
 0x2f2   : > { %v3223_v13 = vmax.f32 %v2955_v44, 0.0 }
 0x2f3   : > { %v3224_v51 = vmax.f32 %v2957_v43, 0.0 }
 0x2f4   : > { %v3333_v46 = vpack.c.bf16 %v3223_v13, %v3221_v38 }
 0x2f5   : > { %v2960_v20 = vpop.f32.mrb[228].mxu1  ;;  %v3334_v27 = vpack.c.bf16 %v3224_v51, %v3222_v9 }
 0x2f6   : > { %v2961_v62 = vadd.f32 %v2960_v20, %v13617_v10  ;;  %v2962_v36 = vpop.f32.mrb[229].mxu1 }
 0x2f7   : > { %v2963_v47 = vadd.f32 %v2962_v36, %v13621_v25  ;;  %v2964_v4 = vpop.f32.mrb[230].mxu1  ;;  %3699 = vmatprep.mubr.bf16.mxu0 %v3334_v27 }
 0x2f8   : > { %v2965_v28 = vadd.f32 %v2964_v4, %v13617_v10  ;;  %v2966_v32 = vpop.f32.mrb[231].mxu1  ;;  %3700 = vmatmul.mubr.bf16.gmra.mrb[224].mxu0 %v3333_v46  ;;  %v3225_v35 = vmax.f32 %v2961_v62, 0.0 }
 0x2f9   : > { %v2967_v6 = vadd.f32 %v2966_v32, %v13621_v25  ;;  %v3226_v39 = vmax.f32 %v2963_v47, 0.0 }
 0x2fa   : > { %v3227_v61 = vmax.f32 %v2965_v28, 0.0 }
 0x2fb   : > { %v3228_v42 = vmax.f32 %v2967_v6, 0.0 }
 0x2fc   : > { %v3335_v41 = vpack.c.bf16 %v3227_v61, %v3225_v35 }
 0x2fd   : > { %v2970_v57 = vpop.f32.mrb[232].mxu1  ;;  %v3336_v53 = vpack.c.bf16 %v3228_v42, %v3226_v39  ;;  %v11995_v42 = vld [vmem:[%s17259_s3 + $0x404] ss:$8 sps:$4 sm:$0xff]  }
 0x2fe   : > { %v2971_v54 = vadd.f32 %v2970_v57, %v13617_v10  ;;  %v2972_v15 = vpop.f32.mrb[233].mxu1  ;;  %5076 = vmatprep.subr.bf16.mxu1 %v11995_v42 }
 0x2ff   : > { %v2973_v58 = vadd.f32 %v2972_v15, %v13621_v25  ;;  %v2974_v59 = vpop.f32.mrb[234].mxu1  ;;  %3709 = vmatprep.mubr.bf16.mxu0 %v3336_v53 }
 0x300   : > { %v2975_v55 = vadd.f32 %v2974_v59, %v13617_v10  ;;  %v2976_v60 = vpop.f32.mrb[235].mxu1  ;;  %3710 = vmatmul.mubr.bf16.gmra.mrb[228].mxu0 %v3335_v41  ;;  %v3229_v0 = vmax.f32 %v2971_v54, 0.0 }
 0x301   : > { %v2977_v63 = vadd.f32 %v2976_v60, %v13621_v25  ;;  %v3230_v19 = vmax.f32 %v2973_v58, 0.0 }
 0x302   : > { %v3231_v2 = vmax.f32 %v2975_v55, 0.0 }
 0x303   : > { %v3232_v49 = vmax.f32 %v2977_v63, 0.0 }
 0x304   : > { %v3337_v11 = vpack.c.bf16 %v3231_v2, %v3229_v0 }
 0x305   : > { %v2980_v12 = vpop.f32.mrb[236].mxu1  ;;  %v3338_v29 = vpack.c.bf16 %v3232_v49, %v3230_v19 }
 0x306   : > { %v2981_v14 = vadd.f32 %v2980_v12, %v13617_v10  ;;  %v2982_v16 = vpop.f32.mrb[237].mxu1 }
 0x307   : > { %v2983_v17 = vadd.f32 %v2982_v16, %v13621_v25  ;;  %v2984_v18 = vpop.f32.mrb[238].mxu1  ;;  %3719 = vmatprep.mubr.bf16.mxu0 %v3338_v29 }
 0x308   : > { %v2985_v22 = vadd.f32 %v2984_v18, %v13617_v10  ;;  %v2986_v26 = vpop.f32.mrb[239].mxu1  ;;  %3720 = vmatmul.mubr.bf16.gmra.mrb[232].mxu0 %v3337_v11  ;;  %v3233_v31 = vmax.f32 %v2981_v14, 0.0 }
 0x309   : > { %v2987_v56 = vadd.f32 %v2986_v26, %v13621_v25  ;;  %v3234_v40 = vmax.f32 %v2983_v17, 0.0 }
 0x30a   : > { %v3235_v37 = vmax.f32 %v2985_v22, 0.0 }
 0x30b   : > { %v3236_v34 = vmax.f32 %v2987_v56, 0.0 }
 0x30c   : > { %v3339_v21 = vpack.c.bf16 %v3235_v37, %v3233_v31 }
 0x30d   : > { %v2990_v45 = vpop.f32.mrb[240].mxu1  ;;  %v3340_v33 = vpack.c.bf16 %v3236_v34, %v3234_v40 }
 0x30e   : > { %v2991_v7 = vadd.f32 %v2990_v45, %v13617_v10  ;;  %v2992_v44 = vpop.f32.mrb[241].mxu1 }
 0x30f   : > { %v2993_v1 = vadd.f32 %v2992_v44, %v13621_v25  ;;  %v2994_v43 = vpop.f32.mrb[242].mxu1  ;;  %3729 = vmatprep.mubr.bf16.mxu0 %v3340_v33 }
 0x310   : > { %v2995_v38 = vadd.f32 %v2994_v43, %v13617_v10  ;;  %v2996_v13 = vpop.f32.mrb[243].mxu1  ;;  %3730 = vmatmul.mubr.bf16.gmra.mrb[236].mxu0 %v3339_v21  ;;  %v3237_v51 = vmax.f32 %v2991_v7, 0.0 }
 0x311   : > { %v2997_v9 = vadd.f32 %v2996_v13, %v13621_v25  ;;  %v3238_v20 = vmax.f32 %v2993_v1, 0.0 }
 0x312   : > { %v3239_v46 = vmax.f32 %v2995_v38, 0.0 }
 0x313   : > { %v3240_v27 = vmax.f32 %v2997_v9, 0.0 }
 0x314   : > { %v3341_v62 = vpack.c.bf16 %v3239_v46, %v3237_v51 }
 0x315   : > { %v3000_v36 = vpop.f32.mrb[244].mxu1  ;;  %v3342_v47 = vpack.c.bf16 %v3240_v27, %v3238_v20 }
 0x316   : > { %v3001_v4 = vadd.f32 %v3000_v36, %v13617_v10  ;;  %v3002_v28 = vpop.f32.mrb[245].mxu1 }
 0x317   : > { %v3003_v32 = vadd.f32 %v3002_v28, %v13621_v25  ;;  %v3004_v8 = vpop.f32.mrb[246].mxu1  ;;  %3739 = vmatprep.mubr.bf16.mxu0 %v3342_v47 }
 0x318   : > { %v3005_v23 = vadd.f32 %v3004_v8, %v13617_v10  ;;  %v3006_v6 = vpop.f32.mrb[247].mxu1  ;;  %3740 = vmatmul.mubr.bf16.gmra.mrb[240].mxu0 %v3341_v62  ;;  %v3241_v61 = vmax.f32 %v3001_v4, 0.0 }
 0x319   : > { %v3007_v35 = vadd.f32 %v3006_v6, %v13621_v25  ;;  %v3242_v41 = vmax.f32 %v3003_v32, 0.0 }
 0x31a   : > { %v3243_v39 = vmax.f32 %v3005_v23, 0.0 }
 0x31b   : > { %v3244_v57 = vmax.f32 %v3007_v35, 0.0 }
 0x31c   : > { %v3343_v53 = vpack.c.bf16 %v3243_v39, %v3241_v61 }
 0x31d   : > { %v3010_v54 = vpop.f32.mrb[248].mxu1  ;;  %v3344_v15 = vpack.c.bf16 %v3244_v57, %v3242_v41 }
 0x31e   : > { %v3011_v58 = vadd.f32 %v3010_v54, %v13617_v10  ;;  %v3012_v59 = vpop.f32.mrb[249].mxu1 }
 0x31f   : > { %v3013_v55 = vadd.f32 %v3012_v59, %v13621_v25  ;;  %v3014_v60 = vpop.f32.mrb[250].mxu1  ;;  %3749 = vmatprep.mubr.bf16.mxu0 %v3344_v15 }
 0x320   : > { %v3015_v63 = vadd.f32 %v3014_v60, %v13617_v10  ;;  %v3016_v0 = vpop.f32.mrb[251].mxu1  ;;  %3750 = vmatmul.mubr.bf16.gmra.mrb[244].mxu0 %v3343_v53  ;;  %v3245_v19 = vmax.f32 %v3011_v58, 0.0 }
 0x321   : > { %v3017_v2 = vadd.f32 %v3016_v0, %v13621_v25  ;;  %v3246_v11 = vmax.f32 %v3013_v55, 0.0 }
 0x322   : > { %v3247_v49 = vmax.f32 %v3015_v63, 0.0 }
 0x323   : > { %v3248_v12 = vmax.f32 %v3017_v2, 0.0 }
 0x324   : > { %v3345_v29 = vpack.c.bf16 %v3247_v49, %v3245_v19 }
 0x325   : > { %v3020_v14 = vpop.f32.mrb[252].mxu1  ;;  %v3346_v16 = vpack.c.bf16 %v3248_v12, %v3246_v11 }
 0x326   : > { %v3021_v17 = vadd.f32 %v3020_v14, %v13617_v10  ;;  %v3022_v18 = vpop.f32.mrb[253].mxu1 }
 0x327   : > { %v3023_v22 = vadd.f32 %v3022_v18, %v13621_v25  ;;  %v3024_v26 = vpop.f32.mrb[254].mxu1  ;;  %3759 = vmatprep.mubr.bf16.mxu0 %v3346_v16 }
 0x328   : > { %v3025_v24 = vadd.f32 %v3024_v26, %v13617_v10  ;;  %v3026_v30 = vpop.f32.mrb[255].mxu1  ;;  %3760 = vmatmul.mubr.bf16.gmra.mrb[248].mxu0 %v3345_v29  ;;  %v3249_v31 = vmax.f32 %v3021_v17, 0.0 }
 0x329   : > { %v3027_v56 = vadd.f32 %v3026_v30, %v13621_v25  ;;  %v3250_v40 = vmax.f32 %v3023_v22, 0.0 }
 0x32a   : > { %v3251_v37 = vmax.f32 %v3025_v24, 0.0 }
 0x32b   : > { %v3252_v34 = vmax.f32 %v3027_v56, 0.0 }
 0x32c   : > { %v3347_v21 = vpack.c.bf16 %v3251_v37, %v3249_v31 }
 0x32d   : > { %v3030_v45 = vpop.f32.mrb[0].mxu1  ;;  %v3348_v33 = vpack.c.bf16 %v3252_v34, %v3250_v40 }
 0x32e   : > { %v3031_v7 = vadd.f32 %v3030_v45, %v13617_v10  ;;  %v3032_v44 = vpop.f32.mrb[1].mxu1 }
 0x32f   : > { %v3033_v1 = vadd.f32 %v3032_v44, %v13621_v25  ;;  %v3034_v43 = vpop.f32.mrb[2].mxu1  ;;  %3769 = vmatprep.mubr.bf16.mxu0 %v3348_v33 }
 0x330   : > { %v3035_v38 = vadd.f32 %v3034_v43, %v13617_v10  ;;  %v3036_v13 = vpop.f32.mrb[3].mxu1  ;;  %3770 = vmatmul.mubr.bf16.gmra.mrb[252].mxu0 %v3347_v21  ;;  %v3253_v51 = vmax.f32 %v3031_v7, 0.0 }
 0x331   : > { %v3037_v9 = vadd.f32 %v3036_v13, %v13621_v25  ;;  %v3254_v20 = vmax.f32 %v3033_v1, 0.0 }
 0x332   : > { %v3255_v46 = vmax.f32 %v3035_v38, 0.0 }
 0x333   : > { %v3256_v27 = vmax.f32 %v3037_v9, 0.0 }
 0x334   : > { %v3349_v62 = vpack.c.bf16 %v3255_v46, %v3253_v51 }
 0x335   : > { %v3040_v36 = vpop.f32.mrb[4].mxu1  ;;  %v3350_v47 = vpack.c.bf16 %v3256_v27, %v3254_v20 }
 0x336   : > { %v3041_v4 = vadd.f32 %v3040_v36, %v13617_v10  ;;  %v3042_v28 = vpop.f32.mrb[5].mxu1 }
 0x337   : > { %v3043_v32 = vadd.f32 %v3042_v28, %v13621_v25  ;;  %v3044_v8 = vpop.f32.mrb[6].mxu1  ;;  %3779 = vmatprep.mubr.bf16.mxu0 %v3350_v47 }
 0x338   : > { %v3045_v23 = vadd.f32 %v3044_v8, %v13617_v10  ;;  %v3046_v6 = vpop.f32.mrb[7].mxu1  ;;  %3780 = vmatmul.mubr.bf16.gmra.mrb[0].mxu0 %v3349_v62  ;;  %v3257_v61 = vmax.f32 %v3041_v4, 0.0 }
 0x339   : > { %v3047_v35 = vadd.f32 %v3046_v6, %v13621_v25  ;;  %v3258_v42 = vmax.f32 %v3043_v32, 0.0 }
 0x33a   : > { %v3259_v39 = vmax.f32 %v3045_v23, 0.0 }
 0x33b   : > { %v3260_v41 = vmax.f32 %v3047_v35, 0.0 }
 0x33c   : > { %v3351_v57 = vpack.c.bf16 %v3259_v39, %v3257_v61 }
 0x33d   : > { %v3050_v53 = vpop.f32.mrb[8].mxu1  ;;  %v3352_v54 = vpack.c.bf16 %v3260_v41, %v3258_v42 }
 0x33e   : > { %v3051_v15 = vadd.f32 %v3050_v53, %v13617_v10  ;;  %v3052_v58 = vpop.f32.mrb[9].mxu1 }
 0x33f   : > { %v3053_v59 = vadd.f32 %v3052_v58, %v13621_v25  ;;  %v3054_v55 = vpop.f32.mrb[10].mxu1  ;;  %3789 = vmatprep.mubr.bf16.mxu0 %v3352_v54 }
 0x340   : > { %v3055_v60 = vadd.f32 %v3054_v55, %v13617_v10  ;;  %v3056_v63 = vpop.f32.mrb[11].mxu1  ;;  %3790 = vmatmul.mubr.bf16.gmra.mrb[4].mxu0 %v3351_v57  ;;  %v3261_v2 = vmax.f32 %v3051_v15, 0.0 }
 0x341   : > { %v3057_v0 = vadd.f32 %v3056_v63, %v13621_v25  ;;  %v3262_v49 = vmax.f32 %v3053_v59, 0.0 }
 0x342   : > { %v3263_v19 = vmax.f32 %v3055_v60, 0.0 }
 0x343   : > { %v3264_v11 = vmax.f32 %v3057_v0, 0.0 }
 0x344   : > { %v3353_v12 = vpack.c.bf16 %v3263_v19, %v3261_v2 }
 0x345   : > { %v3060_v29 = vpop.f32.mrb[12].mxu1  ;;  %v3354_v14 = vpack.c.bf16 %v3264_v11, %v3262_v49 }
 0x346   : > { %v3061_v16 = vadd.f32 %v3060_v29, %v13617_v10  ;;  %v3062_v17 = vpop.f32.mrb[13].mxu1 }
 0x347   : > { %v3063_v18 = vadd.f32 %v3062_v17, %v13621_v25  ;;  %v3064_v22 = vpop.f32.mrb[14].mxu1  ;;  %3799 = vmatprep.mubr.bf16.mxu0 %v3354_v14 }
 0x348   : > { %v3065_v26 = vadd.f32 %v3064_v22, %v13617_v10  ;;  %v3066_v24 = vpop.f32.mrb[15].mxu1  ;;  %3800 = vmatmul.mubr.bf16.gmra.mrb[8].mxu0 %v3353_v12  ;;  %v3265_v56 = vmax.f32 %v3061_v16, 0.0 }
 0x349   : > { %v3067_v30 = vadd.f32 %v3066_v24, %v13621_v25  ;;  %v3266_v37 = vmax.f32 %v3063_v18, 0.0 }
 0x34a   : > { %v3267_v31 = vmax.f32 %v3065_v26, 0.0 }
 0x34b   : > { %v3268_v40 = vmax.f32 %v3067_v30, 0.0 }
 0x34c   : > { %v3355_v34 = vpack.c.bf16 %v3267_v31, %v3265_v56 }
 0x34d   : > { %v3070_v21 = vpop.f32.mrb[16].mxu1  ;;  %v3356_v45 = vpack.c.bf16 %v3268_v40, %v3266_v37 }
 0x34e   : > { %v3071_v33 = vadd.f32 %v3070_v21, %v13617_v10  ;;  %v3072_v7 = vpop.f32.mrb[17].mxu1 }
 0x34f   : > { %v3073_v44 = vadd.f32 %v3072_v7, %v13621_v25  ;;  %v3074_v1 = vpop.f32.mrb[18].mxu1  ;;  %3809 = vmatprep.mubr.bf16.mxu0 %v3356_v45 }
 0x350   : > { %v3075_v43 = vadd.f32 %v3074_v1, %v13617_v10  ;;  %v3076_v38 = vpop.f32.mrb[19].mxu1  ;;  %3810 = vmatmul.mubr.bf16.gmra.mrb[12].mxu0 %v3355_v34  ;;  %v3269_v9 = vmax.f32 %v3071_v33, 0.0 }
 0x351   : > { %v3077_v13 = vadd.f32 %v3076_v38, %v13621_v25  ;;  %v3270_v46 = vmax.f32 %v3073_v44, 0.0 }
 0x352   : > { %v3271_v51 = vmax.f32 %v3075_v43, 0.0 }
 0x353   : > { %v3272_v20 = vmax.f32 %v3077_v13, 0.0 }
 0x354   : > { %v3357_v27 = vpack.c.bf16 %v3271_v51, %v3269_v9 }
 0x355   : > { %v3080_v62 = vpop.f32.mrb[20].mxu1  ;;  %v3358_v36 = vpack.c.bf16 %v3272_v20, %v3270_v46 }
 0x356   : > { %v3081_v47 = vadd.f32 %v3080_v62, %v13617_v10  ;;  %v3082_v4 = vpop.f32.mrb[21].mxu1 }
 0x357   : > { %v3083_v28 = vadd.f32 %v3082_v4, %v13621_v25  ;;  %v3084_v32 = vpop.f32.mrb[22].mxu1  ;;  %3819 = vmatprep.mubr.bf16.mxu0 %v3358_v36 }
 0x358   : > { %v3085_v8 = vadd.f32 %v3084_v32, %v13617_v10  ;;  %v3086_v23 = vpop.f32.mrb[23].mxu1  ;;  %3820 = vmatmul.mubr.bf16.gmra.mrb[16].mxu0 %v3357_v27  ;;  %v3273_v35 = vmax.f32 %v3081_v47, 0.0 }
 0x359   : > { %v3087_v6 = vadd.f32 %v3086_v23, %v13621_v25  ;;  %v3274_v39 = vmax.f32 %v3083_v28, 0.0 }
 0x35a   : > { %v3275_v61 = vmax.f32 %v3085_v8, 0.0 }
 0x35b   : > { %v3276_v42 = vmax.f32 %v3087_v6, 0.0 }
 0x35c   : > { %v3359_v41 = vpack.c.bf16 %v3275_v61, %v3273_v35 }
 0x35d   : > { %v3090_v57 = vpop.f32.mrb[24].mxu1  ;;  %v3360_v53 = vpack.c.bf16 %v3276_v42, %v3274_v39 }
 0x35e   : > { %v3091_v54 = vadd.f32 %v3090_v57, %v13617_v10  ;;  %v3092_v15 = vpop.f32.mrb[25].mxu1 }
 0x35f   : > { %v3093_v58 = vadd.f32 %v3092_v15, %v13621_v25  ;;  %v3094_v59 = vpop.f32.mrb[26].mxu1  ;;  %3829 = vmatprep.mubr.bf16.mxu0 %v3360_v53 }
 0x360   : > { %v3095_v55 = vadd.f32 %v3094_v59, %v13617_v10  ;;  %v3096_v60 = vpop.f32.mrb[27].mxu1  ;;  %3830 = vmatmul.mubr.bf16.gmra.mrb[20].mxu0 %v3359_v41  ;;  %v3277_v0 = vmax.f32 %v3091_v54, 0.0 }
 0x361   : > { %v3097_v63 = vadd.f32 %v3096_v60, %v13621_v25  ;;  %v3278_v19 = vmax.f32 %v3093_v58, 0.0 }
 0x362   : > { %v3279_v2 = vmax.f32 %v3095_v55, 0.0 }
 0x363   : > { %v3280_v49 = vmax.f32 %v3097_v63, 0.0 }
 0x364   : > { %v3361_v11 = vpack.c.bf16 %v3279_v2, %v3277_v0 }
 0x365   : > { %v3100_v12 = vpop.f32.mrb[28].mxu1  ;;  %v3362_v29 = vpack.c.bf16 %v3280_v49, %v3278_v19 }
 0x366   : > { %v3101_v14 = vadd.f32 %v3100_v12, %v13617_v10  ;;  %v3102_v16 = vpop.f32.mrb[29].mxu1 }
 0x367   : > { %v3103_v17 = vadd.f32 %v3102_v16, %v13621_v25  ;;  %v3104_v18 = vpop.f32.mrb[30].mxu1  ;;  %3839 = vmatprep.mubr.bf16.mxu0 %v3362_v29  ;;  %v10845_v29 = vld [vmem:[%s17260_s4 + $0x3] ss:$8 sm:$0x3] }
 0x368   : > { %v3105_v22 = vadd.f32 %v3104_v18, %v13617_v10  ;;  %v3106_v26 = vpop.f32.mrb[31].mxu1  ;;  %3840 = vmatmul.mubr.bf16.gmra.mrb[24].mxu0 %v3361_v11  ;;  %v3281_v30 = vmax.f32 %v3101_v14, 0.0 }
 0x369   : > { %v3107_v24 = vadd.f32 %v3106_v26, %v13621_v25  ;;  %v3282_v31 = vmax.f32 %v3103_v17, 0.0 }
 0x36a   : > { %v3283_v56 = vmax.f32 %v3105_v22, 0.0 }
 0x36b   : > { %v3284_v37 = vmax.f32 %v3107_v24, 0.0  ;;  %v13793_v24 = vrot.slane %v10845_v29, %v12992_v50 }
 0x36c   : > { %v3363_v40 = vpack.c.bf16 %v3283_v56, %v3281_v30  ;;  %v13797_v56 = vrot.slane %v10845_v29, %v12998_v52 }
 0x36d   : > { %v3110_v34 = vpop.f32.mrb[32].mxu1  ;;  %v3364_v21 = vpack.c.bf16 %v3284_v37, %v3282_v31 }
 0x36e   : > { %v3111_v45 = vadd.f32 %v3110_v34, %v13617_v10  ;;  %v3112_v33 = vpop.f32.mrb[33].mxu1 }
 0x36f   : > { %v3113_v7 = vadd.f32 %v3112_v33, %v13621_v25  ;;  %v3114_v44 = vpop.f32.mrb[34].mxu1  ;;  %3849 = vmatprep.mubr.bf16.mxu0 %v3364_v21 }
 0x370   : > { %v3115_v1 = vadd.f32 %v3114_v44, %v13617_v10  ;;  %v3116_v43 = vpop.f32.mrb[35].mxu1  ;;  %3850 = vmatmul.mubr.bf16.gmra.mrb[28].mxu0 %v3363_v40  ;;  %v3285_v13 = vmax.f32 %v3111_v45, 0.0 }
 0x371   : > { %v3117_v38 = vadd.f32 %v3116_v43, %v13621_v25  ;;  %v3286_v51 = vmax.f32 %v3113_v7, 0.0 }
 0x372   : > { %v3287_v9 = vmax.f32 %v3115_v1, 0.0 }
 0x373   : > { %v3288_v46 = vmax.f32 %v3117_v38, 0.0 }
 0x374   : > { %v3365_v20 = vpack.c.bf16 %v3287_v9, %v3285_v13 }
 0x375   : > { %v3120_v27 = vpop.f32.mrb[36].mxu1  ;;  %v3366_v62 = vpack.c.bf16 %v3288_v46, %v3286_v51 }
 0x376   : > { %v3121_v36 = vadd.f32 %v3120_v27, %v13617_v10  ;;  %v3122_v47 = vpop.f32.mrb[37].mxu1 }
 0x377   : > { %v3123_v4 = vadd.f32 %v3122_v47, %v13621_v25  ;;  %v3124_v28 = vpop.f32.mrb[38].mxu1  ;;  %3859 = vmatprep.mubr.bf16.mxu0 %v3366_v62 }
 0x378   : > { %v3125_v32 = vadd.f32 %v3124_v28, %v13617_v10  ;;  %v3126_v8 = vpop.f32.mrb[39].mxu1  ;;  %3860 = vmatmul.mubr.bf16.gmra.mrb[32].mxu0 %v3365_v20  ;;  %v3289_v6 = vmax.f32 %v3121_v36, 0.0 }
 0x379   : > { %v3127_v23 = vadd.f32 %v3126_v8, %v13621_v25  ;;  %v3290_v61 = vmax.f32 %v3123_v4, 0.0 }
 0x37a   : > { %v3291_v35 = vmax.f32 %v3125_v32, 0.0 }
 0x37b   : > { %v3292_v39 = vmax.f32 %v3127_v23, 0.0 }
 0x37c   : > { %v3367_v42 = vpack.c.bf16 %v3291_v35, %v3289_v6 }
 0x37d   : > { %v3130_v41 = vpop.f32.mrb[40].mxu1  ;;  %v3368_v57 = vpack.c.bf16 %v3292_v39, %v3290_v61 }
 0x37e   : > { %v3131_v53 = vadd.f32 %v3130_v41, %v13617_v10  ;;  %v3132_v54 = vpop.f32.mrb[41].mxu1 }
 0x37f   : > { %v3133_v15 = vadd.f32 %v3132_v54, %v13621_v25  ;;  %v3134_v58 = vpop.f32.mrb[42].mxu1  ;;  %3869 = vmatprep.mubr.bf16.mxu0 %v3368_v57 }
 0x380   : > { %v3135_v59 = vadd.f32 %v3134_v58, %v13617_v10  ;;  %v3136_v55 = vpop.f32.mrb[43].mxu1  ;;  %3870 = vmatmul.mubr.bf16.gmra.mrb[36].mxu0 %v3367_v42  ;;  %v3293_v63 = vmax.f32 %v3131_v53, 0.0  ;;  %v11993_v53 = vld [vmem:[%s17259_s3 + $0x400] ss:$8 sps:$4 sm:$0xff]  }
 0x381   : > { %v3137_v60 = vadd.f32 %v3136_v55, %v13621_v25  ;;  %v3294_v2 = vmax.f32 %v3133_v15, 0.0 }
 0x382   : > { %v3295_v0 = vmax.f32 %v3135_v59, 0.0  ;;  %v11998_v59 = vld [vmem:[%s17259_s3 + $0x414] ss:$8 sps:$4 sm:$0xff]  }
 0x383   : > { %v3296_v19 = vmax.f32 %v3137_v60, 0.0 }
 0x384   : > { %v3369_v49 = vpack.c.bf16 %v3295_v0, %v3293_v63 }
 0x385   : > { %v3140_v11 = vpop.f32.mrb[44].mxu1  ;;  %v3370_v12 = vpack.c.bf16 %v3296_v19, %v3294_v2 }
 0x386   : > { %v3141_v14 = vadd.f32 %v3140_v11, %v13617_v10  ;;  %v3142_v16 = vpop.f32.mrb[45].mxu1 }
 0x387   : > { %v3143_v17 = vadd.f32 %v3142_v16, %v13621_v25  ;;  %v3144_v18 = vpop.f32.mrb[46].mxu1  ;;  %3879 = vmatprep.mubr.bf16.mxu0 %v3370_v12  ;;  %v11996_v16 = vld [vmem:[%s17259_s3 + $0x410] ss:$8 sps:$4 sm:$0xff]  }
 0x388   : > { %v3145_v22 = vadd.f32 %v3144_v18, %v13617_v10  ;;  %v3146_v26 = vpop.f32.mrb[47].mxu1  ;;  %3880 = vmatmul.mubr.bf16.gmra.mrb[40].mxu0 %v3369_v49  ;;  %v3297_v31 = vmax.f32 %v3141_v14, 0.0 }
 0x389   : > { %v3147_v30 = vadd.f32 %v3146_v26, %v13621_v25  ;;  %v3298_v40 = vmax.f32 %v3143_v17, 0.0 }
 0x38a   : > { %v3299_v37 = vmax.f32 %v3145_v22, 0.0 }
 0x38b   : > { %v3300_v34 = vmax.f32 %v3147_v30, 0.0  ;;  %v3621_v21 = vpop.f32.mrb[192].mxu0  ;;  %v12001_v30 = vld [vmem:[%s17259_s3 + $0x424] ss:$8 sps:$4 sm:$0xff]  }
 0x38c   : > { %v3371_v45 = vpack.c.bf16 %v3299_v37, %v3297_v31  ;;  %v3622_v33 = vadd.f32 %v3621_v21, %v13793_v24  ;;  %v3623_v7 = vpop.f32.mrb[193].mxu0 }
 0x38d   : > { %v3624_v44 = vadd.f32 %v3623_v7, %v13797_v56  ;;  %v3150_v1 = vpop.f32.mrb[48].mxu1  ;;  %v3625_v43 = vpop.f32.mrb[194].mxu0  ;;  %v3372_v38 = vpack.c.bf16 %v3300_v34, %v3298_v40 }
 0x38e   : > { %v3151_v13 = vadd.f32 %v3150_v1, %v13617_v10  ;;  %v3626_v9 = vadd.f32 %v3625_v43, %v13793_v24  ;;  %v3152_v51 = vpop.f32.mrb[49].mxu1  ;;  %v3627_v46 = vpop.f32.mrb[195].mxu0  ;;  %v3940_v36 = vmax.f32 %v3622_v33, 0.0  ;;  %v11999_v43 = vld [vmem:[%s17259_s3 + $0x420] ss:$8 sps:$4 sm:$0xff]  }
 0x38f   : > { %v3153_v20 = vadd.f32 %v3152_v51, %v13621_v25  ;;  %v3628_v27 = vadd.f32 %v3627_v46, %v13797_v56  ;;  %v3154_v62 = vpop.f32.mrb[50].mxu1  ;;  %3889 = vmatprep.mubr.bf16.mxu0 %v3372_v38  ;;  %v3941_v32 = vmax.f32 %v3624_v44, 0.0  ;;  %v12004_v51 = vld [vmem:[%s17259_s3 + $0x434] ss:$8 sps:$4 sm:$0xff]  }
 0x390   : > { %v3942_v47 = vmax.f32 %v3626_v9, 0.0  ;;  %v3155_v4 = vadd.f32 %v3154_v62, %v13617_v10  ;;  %v3156_v28 = vpop.f32.mrb[51].mxu1  ;;  %3890 = vmatmul.mubr.bf16.gmra.mrb[44].mxu0 %v3371_v45  ;;  %v3301_v6 = vmax.f32 %v3151_v13, 0.0 }
 0x391   : > { %v3943_v8 = vmax.f32 %v3628_v27, 0.0  ;;  %v3157_v23 = vadd.f32 %v3156_v28, %v13621_v25  ;;  %v3302_v39 = vmax.f32 %v3153_v20, 0.0 }
 0x392   : > { %v4068_v35 = vpack.c.bf16 %v3942_v47, %v3940_v36  ;;  %v3303_v61 = vmax.f32 %v3155_v4, 0.0 }
 0x393   : > { %v3304_v42 = vmax.f32 %v3157_v23, 0.0  ;;  %v3631_v41 = vpop.f32.mrb[196].mxu0  ;;  %v4069_v57 = vpack.c.bf16 %v3943_v8, %v3941_v32 }
 0x394   : > { %v3373_v54 = vpack.c.bf16 %v3303_v61, %v3301_v6  ;;  %v3632_v15 = vadd.f32 %v3631_v41, %v13793_v24  ;;  %v3633_v58 = vpop.f32.mrb[197].mxu0  ;;  %v12002_v6 = vld [vmem:[%s17259_s3 + $0x430] ss:$8 sps:$4 sm:$0xff]   ;;  %v12007_v41 = vld [vmem:[%s17259_s3 + $0x444] ss:$8 sps:$4 sm:$0xff]  }
 0x395   : > { %v3634_v55 = vadd.f32 %v3633_v58, %v13797_v56  ;;  %v3160_v60 = vpop.f32.mrb[52].mxu1  ;;  %v3635_v63 = vpop.f32.mrb[198].mxu0  ;;  %4370 = vmatprep.mubr.bf16.mxu1 %v4069_v57  ;;  %v3374_v0 = vpack.c.bf16 %v3304_v42, %v3302_v39 }
 0x396   : > { %v3161_v2 = vadd.f32 %v3160_v60, %v13617_v10  ;;  %v3636_v19 = vadd.f32 %v3635_v63, %v13793_v24  ;;  %v3162_v49 = vpop.f32.mrb[53].mxu1  ;;  %v3637_v11 = vpop.f32.mrb[199].mxu0  ;;  %4371 = vmatmul.mubr.bf16.vlgmr.msra.gmra.mrb[192].mxu1 %v4068_v35  ;;  %v3944_v17 = vmax.f32 %v3632_v15, 0.0 }
 0x397   : > { %v3163_v12 = vadd.f32 %v3162_v49, %v13621_v25  ;;  %v3638_v29 = vadd.f32 %v3637_v11, %v13797_v56  ;;  %5077 = vmatpush1.bf16.msra.mxu1 %v11993_v53  ;;  %v3164_v14 = vpop.f32.mrb[54].mxu1  ;;  %3899 = vmatprep.mubr.bf16.mxu0 %v3374_v0  ;;  %v3945_v31 = vmax.f32 %v3634_v55, 0.0 }
 0x398   : > { %v3946_v18 = vmax.f32 %v3636_v19, 0.0  ;;  %v3165_v22 = vadd.f32 %v3164_v14, %v13617_v10  ;;  %v3166_v26 = vpop.f32.mrb[55].mxu1  ;;  %3900 = vmatmul.mubr.bf16.gmra.mrb[48].mxu0 %v3373_v54  ;;  %5078 = vmatprep.subr.bf16.mxu1 %v11998_v59  ;;  %v3305_v34 = vmax.f32 %v3161_v2, 0.0  ;;  %v12005_v2 = vld [vmem:[%s17259_s3 + $0x440] ss:$8 sps:$4 sm:$0xff]  }
 0x399   : > { %v3947_v37 = vmax.f32 %v3638_v29, 0.0  ;;  %v3167_v40 = vadd.f32 %v3166_v26, %v13621_v25  ;;  %v3306_v33 = vmax.f32 %v3163_v12, 0.0  ;;  %v12010_v12 = vld [vmem:[%s17259_s3 + $0x454] ss:$8 sps:$4 sm:$0xff]  }
 0x39a   : > { %v4070_v21 = vpack.c.bf16 %v3946_v18, %v3944_v17  ;;  %v3307_v45 = vmax.f32 %v3165_v22, 0.0 }
 0x39b   : > { %v3308_v7 = vmax.f32 %v3167_v40, 0.0  ;;  %v3641_v44 = vpop.f32.mrb[200].mxu0  ;;  %v4071_v1 = vpack.c.bf16 %v3947_v37, %v3945_v31  ;;  %5079 = vmatpush1.bf16.msra.mxu1 %v11996_v16 }
 0x39c   : > { %v3375_v38 = vpack.c.bf16 %v3307_v45, %v3305_v34  ;;  %v3642_v13 = vadd.f32 %v3641_v44, %v13793_v24  ;;  %v3643_v9 = vpop.f32.mrb[201].mxu0  ;;  %5080 = vmatprep.subr.bf16.mxu1 %v12001_v30  ;;  %v12008_v34 = vld [vmem:[%s17259_s3 + $0x450] ss:$8 sps:$4 sm:$0xff]   ;;  %v12013_v44 = vld [vmem:[%s17259_s3 + $0x464] ss:$8 sps:$4 sm:$0xff]  }
 0x39d   : > { %v3644_v46 = vadd.f32 %v3643_v9, %v13797_v56  ;;  %v3170_v20 = vpop.f32.mrb[56].mxu1  ;;  %v3645_v27 = vpop.f32.mrb[202].mxu0  ;;  %4380 = vmatprep.mubr.bf16.mxu1 %v4071_v1  ;;  %v3376_v62 = vpack.c.bf16 %v3308_v7, %v3306_v33 }
 0x39e   : > { %v3171_v36 = vadd.f32 %v3170_v20, %v13617_v10  ;;  %v3646_v47 = vadd.f32 %v3645_v27, %v13793_v24  ;;  %v3172_v4 = vpop.f32.mrb[57].mxu1  ;;  %v3647_v28 = vpop.f32.mrb[203].mxu0  ;;  %4381 = vmatmul.mubr.bf16.gmra.mrb[196].mxu1 %v4070_v21  ;;  %v3948_v35 = vmax.f32 %v3642_v13, 0.0 }
 0x39f   : > { %v3173_v32 = vadd.f32 %v3172_v4, %v13621_v25  ;;  %v3648_v8 = vadd.f32 %v3647_v28, %v13797_v56  ;;  %v3174_v23 = vpop.f32.mrb[58].mxu1  ;;  %3909 = vmatprep.mubr.bf16.mxu0 %v3376_v62  ;;  %5081 = vmatpush1.bf16.msra.mxu1 %v11999_v43  ;;  %v3949_v57 = vmax.f32 %v3644_v46, 0.0 }
 0x3a0   : > { %v3950_v61 = vmax.f32 %v3646_v47, 0.0  ;;  %v3175_v39 = vadd.f32 %v3174_v23, %v13617_v10  ;;  %v3176_v42 = vpop.f32.mrb[59].mxu1  ;;  %3910 = vmatmul.mubr.bf16.gmra.mrb[52].mxu0 %v3375_v38  ;;  %5082 = vmatprep.subr.bf16.mxu1 %v12004_v51  ;;  %v3309_v15 = vmax.f32 %v3171_v36, 0.0 }
 0x3a1   : > { %v3951_v53 = vmax.f32 %v3648_v8, 0.0  ;;  %v3177_v54 = vadd.f32 %v3176_v42, %v13621_v25  ;;  %v3310_v55 = vmax.f32 %v3173_v32, 0.0 }
 0x3a2   : > { %v4072_v58 = vpack.c.bf16 %v3950_v61, %v3948_v35  ;;  %v3311_v59 = vmax.f32 %v3175_v39, 0.0  ;;  %v12014_v61 = vld [vmem:[%s17259_s3 + $0x470] ss:$8 sps:$4 sm:$0xff]  }
 0x3a3   : > { %v3312_v60 = vmax.f32 %v3177_v54, 0.0  ;;  %v3651_v63 = vpop.f32.mrb[204].mxu0  ;;  %v4073_v0 = vpack.c.bf16 %v3951_v53, %v3949_v57  ;;  %5083 = vmatpush1.bf16.msra.mxu1 %v12002_v6 }
 0x3a4   : > { %v3377_v19 = vpack.c.bf16 %v3311_v59, %v3309_v15  ;;  %v3652_v49 = vadd.f32 %v3651_v63, %v13793_v24  ;;  %v3653_v11 = vpop.f32.mrb[205].mxu0  ;;  %5084 = vmatprep.subr.bf16.mxu1 %v12007_v41  ;;  %v12019_v41 = vld [vmem:[%s17259_s3 + $0x484] ss:$8 sps:$4 sm:$0xff]   ;;  %v12017_v59 = vld [vmem:[%s17259_s3 + $0x480] ss:$8 sps:$4 sm:$0xff]  }
 0x3a5   : > { %v3654_v29 = vadd.f32 %v3653_v11, %v13797_v56  ;;  %v3180_v14 = vpop.f32.mrb[60].mxu1  ;;  %v3655_v16 = vpop.f32.mrb[206].mxu0  ;;  %4390 = vmatprep.mubr.bf16.mxu1 %v4073_v0  ;;  %v3378_v17 = vpack.c.bf16 %v3312_v60, %v3310_v55  ;;  %v12022_v63 = vld [vmem:[%s17259_s3 + $0x494] ss:$8 sps:$4 sm:$0xff]  }
 0x3a6   : > { %v3181_v18 = vadd.f32 %v3180_v14, %v13617_v10  ;;  %v3656_v22 = vadd.f32 %v3655_v16, %v13793_v24  ;;  %v3182_v26 = vpop.f32.mrb[61].mxu1  ;;  %v3657_v30 = vpop.f32.mrb[207].mxu0  ;;  %4391 = vmatmul.mubr.bf16.gmra.mrb[200].mxu1 %v4072_v58  ;;  %v3952_v21 = vmax.f32 %v3652_v49, 0.0 }
 0x3a7   : > { %v3183_v31 = vadd.f32 %v3182_v26, %v13621_v25  ;;  %v3658_v37 = vadd.f32 %v3657_v30, %v13797_v56  ;;  %v3184_v40 = vpop.f32.mrb[62].mxu1  ;;  %3919 = vmatprep.mubr.bf16.mxu0 %v3378_v17  ;;  %5085 = vmatpush1.bf16.msra.mxu1 %v12005_v2  ;;  %v3953_v1 = vmax.f32 %v3654_v29, 0.0 }
 0x3a8   : > { %v3954_v45 = vmax.f32 %v3656_v22, 0.0  ;;  %v3185_v33 = vadd.f32 %v3184_v40, %v13617_v10  ;;  %v3186_v7 = vpop.f32.mrb[63].mxu1  ;;  %3920 = vmatmul.mubr.bf16.gmra.mrb[56].mxu0 %v3377_v19  ;;  %5086 = vmatprep.subr.bf16.mxu1 %v12010_v12  ;;  %v3313_v13 = vmax.f32 %v3181_v18, 0.0  ;;  %v12011_v10 = vld [vmem:[%s17259_s3 + $0x460] ss:$8 sps:$4 sm:$0xff]  }
 0x3a9   : > { %v3955_v43 = vmax.f32 %v3658_v37, 0.0  ;;  %v3187_v38 = vadd.f32 %v3186_v7, %v13621_v25  ;;  %v3314_v46 = vmax.f32 %v3183_v31, 0.0  ;;  %v12016_v25 = vld [vmem:[%s17259_s3 + $0x474] ss:$8 sps:$4 sm:$0xff]   ;;  %v12020_v12 = vld [vmem:[%s17259_s3 + $0x490] ss:$8 sps:$4 sm:$0xff]  }
 0x3aa   : > { %v4074_v9 = vpack.c.bf16 %v3954_v45, %v3952_v21  ;;  %v3315_v51 = vmax.f32 %v3185_v33, 0.0  ;;  %v12025_v22 = vld [vmem:[%s17259_s3 + $0x4a4] ss:$8 sps:$4 sm:$0xff]   ;;  %v12023_v31 = vld [vmem:[%s17259_s3 + $0x4a0] ss:$8 sps:$4 sm:$0xff]  }
 0x3ab   : > { %v3316_v20 = vmax.f32 %v3187_v38, 0.0  ;;  %v3661_v27 = vpop.f32.mrb[208].mxu0  ;;  %v4075_v62 = vpack.c.bf16 %v3955_v43, %v3953_v1  ;;  %5087 = vmatpush1.bf16.msra.mxu1 %v12008_v34 }
 0x3ac   : > { %v3379_v36 = vpack.c.bf16 %v3315_v51, %v3313_v13  ;;  %v3662_v47 = vadd.f32 %v3661_v27, %v13793_v24  ;;  %v3663_v4 = vpop.f32.mrb[209].mxu0  ;;  %5088 = vmatprep.subr.bf16.mxu1 %v12013_v44 }
 0x3ad   : > { %v3664_v28 = vadd.f32 %v3663_v4, %v13797_v56  ;;  %v3665_v32 = vpop.f32.mrb[210].mxu0  ;;  %4400 = vmatprep.mubr.bf16.mxu1 %v4075_v62  ;;  %v3380_v8 = vpack.c.bf16 %v3316_v20, %v3314_v46 }
 0x3ae   : > { %v3666_v23 = vadd.f32 %v3665_v32, %v13793_v24  ;;  %v3667_v6 = vpop.f32.mrb[211].mxu0  ;;  %4401 = vmatmul.mubr.bf16.gmra.mrb[204].mxu1 %v4074_v9  ;;  %v3956_v39 = vmax.f32 %v3662_v47, 0.0 }
 0x3af   : > { %v3668_v35 = vadd.f32 %v3667_v6, %v13797_v56  ;;  %3929 = vmatprep.mubr.bf16.mxu0 %v3380_v8  ;;  %5089 = vmatpush1.bf16.msra.mxu1 %v12011_v10  ;;  %v3957_v57 = vmax.f32 %v3664_v28, 0.0  ;;  %v12028_v6 = vld [vmem:[%s17259_s3 + $0x4b4] ss:$8 sps:$4 sm:$0xff]  }
 0x3b0   : > { %v3958_v42 = vmax.f32 %v3666_v23, 0.0  ;;  %3930 = vmatmul.mubr.bf16.gmra.mrb[60].mxu0 %v3379_v36  ;;  %5090 = vmatprep.subr.bf16.mxu1 %v12016_v25  ;;  %v12026_v23 = vld [vmem:[%s17259_s3 + $0x4b0] ss:$8 sps:$4 sm:$0xff]  }
 0x3b1   : > { %v3959_v53 = vmax.f32 %v3668_v35, 0.0 }
 0x3b2   : > { %v4076_v54 = vpack.c.bf16 %v3958_v42, %v3956_v39 }
 0x3b3   : > { %v3671_v15 = vpop.f32.mrb[212].mxu0  ;;  %v4077_v58 = vpack.c.bf16 %v3959_v53, %v3957_v57  ;;  %5091 = vmatpush1.bf16.msra.mxu1 %v12014_v61 }
 0x3b4   : > { %v3672_v55 = vadd.f32 %v3671_v15, %v13793_v24  ;;  %v3673_v60 = vpop.f32.mrb[213].mxu0  ;;  %5092 = vmatprep.subr.bf16.mxu1 %v12019_v41 }
 0x3b5   : > { %v3674_v0 = vadd.f32 %v3673_v60, %v13797_v56  ;;  %v3675_v2 = vpop.f32.mrb[214].mxu0  ;;  %4410 = vmatprep.mubr.bf16.mxu1 %v4077_v58 }
 0x3b6   : > { %v3676_v19 = vadd.f32 %v3675_v2, %v13793_v24  ;;  %v3677_v49 = vpop.f32.mrb[215].mxu0  ;;  %4411 = vmatmul.mubr.bf16.gmra.mrb[208].mxu1 %v4076_v54  ;;  %v3960_v29 = vmax.f32 %v3672_v55, 0.0 }
 0x3b7   : > { %v3678_v11 = vadd.f32 %v3677_v49, %v13797_v56  ;;  %5093 = vmatpush1.bf16.msra.mxu1 %v12017_v59  ;;  %v3961_v16 = vmax.f32 %v3674_v0, 0.0 }
 0x3b8   : > { %v3962_v14 = vmax.f32 %v3676_v19, 0.0  ;;  %5094 = vmatprep.subr.bf16.mxu1 %v12022_v63 }
 0x3b9   : > { %v3963_v17 = vmax.f32 %v3678_v11, 0.0 }
 0x3ba   : > { %v4078_v18 = vpack.c.bf16 %v3962_v14, %v3960_v29 }
 0x3bb   : > { %v3681_v26 = vpop.f32.mrb[216].mxu0  ;;  %v4079_v30 = vpack.c.bf16 %v3963_v17, %v3961_v16  ;;  %5095 = vmatpush1.bf16.msra.mxu1 %v12020_v12 }
 0x3bc   : > { %v3682_v37 = vadd.f32 %v3681_v26, %v13793_v24  ;;  %v3683_v40 = vpop.f32.mrb[217].mxu0  ;;  %5096 = vmatprep.subr.bf16.mxu1 %v12025_v22 }
 0x3bd   : > { %v3684_v34 = vadd.f32 %v3683_v40, %v13797_v56  ;;  %v3685_v21 = vpop.f32.mrb[218].mxu0  ;;  %4420 = vmatprep.mubr.bf16.mxu1 %v4079_v30 }
 0x3be   : > { %v3686_v45 = vadd.f32 %v3685_v21, %v13793_v24  ;;  %v3687_v33 = vpop.f32.mrb[219].mxu0  ;;  %4421 = vmatmul.mubr.bf16.gmra.mrb[212].mxu1 %v4078_v18  ;;  %v3964_v44 = vmax.f32 %v3682_v37, 0.0  ;;  %v12031_v37 = vld [vmem:[%s17259_s3 + $0x4c4] ss:$8 sps:$4 sm:$0xff]  }
 0x3bf   : > { %v3688_v7 = vadd.f32 %v3687_v33, %v13797_v56  ;;  %5097 = vmatpush1.bf16.msra.mxu1 %v12023_v31  ;;  %v3965_v43 = vmax.f32 %v3684_v34, 0.0  ;;  %v12029_v31 = vld [vmem:[%s17259_s3 + $0x4c0] ss:$8 sps:$4 sm:$0xff]  }
 0x3c0   : > { %v3966_v1 = vmax.f32 %v3686_v45, 0.0  ;;  %5098 = vmatprep.subr.bf16.mxu1 %v12028_v6 }
 0x3c1   : > { %v3967_v38 = vmax.f32 %v3688_v7, 0.0 }
 0x3c2   : > { %v4080_v13 = vpack.c.bf16 %v3966_v1, %v3964_v44 }
 0x3c3   : > { %v3691_v9 = vpop.f32.mrb[220].mxu0  ;;  %v4081_v51 = vpack.c.bf16 %v3967_v38, %v3965_v43  ;;  %5099 = vmatpush1.bf16.msra.mxu1 %v12026_v23 }
 0x3c4   : > { %v3692_v46 = vadd.f32 %v3691_v9, %v13793_v24  ;;  %v3693_v20 = vpop.f32.mrb[221].mxu0  ;;  %5100 = vmatprep.subr.bf16.mxu1 %v12031_v37 }
 0x3c5   : > { %v3694_v27 = vadd.f32 %v3693_v20, %v13797_v56  ;;  %v3695_v62 = vpop.f32.mrb[222].mxu0  ;;  %4430 = vmatprep.mubr.bf16.mxu1 %v4081_v51 }
 0x3c6   : > { %v3696_v10 = vadd.f32 %v3695_v62, %v13793_v24  ;;  %v3697_v36 = vpop.f32.mrb[223].mxu0  ;;  %4431 = vmatmul.mubr.bf16.gmra.mrb[216].mxu1 %v4080_v13  ;;  %v3968_v4 = vmax.f32 %v3692_v46, 0.0 }
 0x3c7   : > { %v3698_v47 = vadd.f32 %v3697_v36, %v13797_v56  ;;  %v3969_v28 = vmax.f32 %v3694_v27, 0.0  ;;  %5101 = vmatpush1.bf16.msra.mxu1 %v12029_v31 }
 0x3c8   : > { %v3970_v25 = vmax.f32 %v3696_v10, 0.0 }
 0x3c9   : > { %v3971_v32 = vmax.f32 %v3698_v47, 0.0 }
 0x3ca   : > { %v4082_v8 = vpack.c.bf16 %v3970_v25, %v3968_v4 }
 0x3cb   : > { %v3701_v35 = vpop.f32.mrb[224].mxu0  ;;  %v4083_v61 = vpack.c.bf16 %v3971_v32, %v3969_v28 }
 0x3cc   : > { %v3702_v39 = vadd.f32 %v3701_v35, %v13793_v24  ;;  %v3703_v42 = vpop.f32.mrb[225].mxu0 }
 0x3cd   : > { %v3704_v41 = vadd.f32 %v3703_v42, %v13797_v56  ;;  %v3705_v57 = vpop.f32.mrb[226].mxu0  ;;  %4440 = vmatprep.mubr.bf16.mxu1 %v4083_v61  ;;  %v12032_v61 = vld [vmem:[%s17259_s3 + $0x4d0] ss:$8 sps:$4 sm:$0xff]  }
 0x3ce   : > { %v3706_v53 = vadd.f32 %v3705_v57, %v13793_v24  ;;  %v3707_v54 = vpop.f32.mrb[227].mxu0  ;;  %4441 = vmatmul.mubr.bf16.gmra.mrb[220].mxu1 %v4082_v8  ;;  %v3972_v58 = vmax.f32 %v3702_v39, 0.0  ;;  %v12034_v39 = vld [vmem:[%s17259_s3 + $0x4d4] ss:$8 sps:$4 sm:$0xff]  }
 0x3cf   : > { %v3708_v15 = vadd.f32 %v3707_v54, %v13797_v56  ;;  %v3973_v55 = vmax.f32 %v3704_v41, 0.0  ;;  %5102 = vmatprep.subr.bf16.mxu1 %v12034_v39 }
 0x3d0   : > { %v3974_v59 = vmax.f32 %v3706_v53, 0.0  ;;  %5103 = vmatpush1.bf16.msra.mxu1 %v12032_v61  ;;  %v12043_v61 = vld [vmem:[%s17259_s3 + $0x514] ss:$8 sps:$4 sm:$0xff]  }
 0x3d1   : > { %v3975_v60 = vmax.f32 %v3708_v15, 0.0 }
 0x3d2   : > { %v4084_v63 = vpack.c.bf16 %v3974_v59, %v3972_v58 }
 0x3d3   : > { %v3711_v0 = vpop.f32.mrb[228].mxu0  ;;  %v4085_v2 = vpack.c.bf16 %v3975_v60, %v3973_v55 }
 0x3d4   : > { %v3712_v19 = vadd.f32 %v3711_v0, %v13793_v24  ;;  %v3713_v49 = vpop.f32.mrb[229].mxu0 }
 0x3d5   : > { %v3714_v11 = vadd.f32 %v3713_v49, %v13797_v56  ;;  %v3715_v12 = vpop.f32.mrb[230].mxu0  ;;  %4450 = vmatprep.mubr.bf16.mxu1 %v4085_v2 }
 0x3d6   : > { %v3716_v29 = vadd.f32 %v3715_v12, %v13793_v24  ;;  %v3717_v14 = vpop.f32.mrb[231].mxu0  ;;  %4451 = vmatmul.mubr.bf16.gmra.mrb[224].mxu1 %v4084_v63  ;;  %v3976_v17 = vmax.f32 %v3712_v19, 0.0 }
 0x3d7   : > { %v3718_v16 = vadd.f32 %v3717_v14, %v13797_v56  ;;  %v3977_v22 = vmax.f32 %v3714_v11, 0.0 }
 0x3d8   : > { %v3978_v18 = vmax.f32 %v3716_v29, 0.0 }
 0x3d9   : > { %v3979_v26 = vmax.f32 %v3718_v16, 0.0 }
 0x3da   : > { %v4086_v30 = vpack.c.bf16 %v3978_v18, %v3976_v17 }
 0x3db   : > { %v3721_v40 = vpop.f32.mrb[232].mxu0  ;;  %v4087_v34 = vpack.c.bf16 %v3979_v26, %v3977_v22  ;;  %v12035_v22 = vld [vmem:[%s17259_s3 + $0x500] ss:$8 sps:$4 sm:$0xff]   ;;  %v12037_v26 = vld [vmem:[%s17259_s3 + $0x504] ss:$8 sps:$4 sm:$0xff]  }
 0x3dc   : > { %v3722_v21 = vadd.f32 %v3721_v40, %v13793_v24  ;;  %v3723_v45 = vpop.f32.mrb[233].mxu0  ;;  %5968 = vmatprep.subr.bf16.mxu0 %v12037_v26 }
 0x3dd   : > { %v3724_v33 = vadd.f32 %v3723_v45, %v13797_v56  ;;  %v3725_v7 = vpop.f32.mrb[234].mxu0  ;;  %4460 = vmatprep.mubr.bf16.mxu1 %v4087_v34  ;;  %5969 = vmatpush1.bf16.msra.mxu0 %v12035_v22  ;;  %v12038_v45 = vld [vmem:[%s17259_s3 + $0x4e0] ss:$8 sps:$4 sm:$0xff]  }
 0x3de   : > { %v3726_v44 = vadd.f32 %v3725_v7, %v13793_v24  ;;  %v3727_v1 = vpop.f32.mrb[235].mxu0  ;;  %4461 = vmatmul.mubr.bf16.gmra.mrb[228].mxu1 %v4086_v30  ;;  %v3980_v38 = vmax.f32 %v3722_v21, 0.0  ;;  %5970 = vmatprep.subr.bf16.mxu0 %v12043_v61 }
 0x3df   : > { %v3728_v43 = vadd.f32 %v3727_v1, %v13797_v56  ;;  %v3981_v9 = vmax.f32 %v3724_v33, 0.0  ;;  %v12040_v33 = vld [vmem:[%s17259_s3 + $0x4e4] ss:$8 sps:$4 sm:$0xff]  }
 0x3e0   : > { %v3982_v13 = vmax.f32 %v3726_v44, 0.0  ;;  %5104 = vmatprep.subr.bf16.mxu1 %v12040_v33 }
 0x3e1   : > { %v3983_v51 = vmax.f32 %v3728_v43, 0.0  ;;  %5105 = vmatpush1.bf16.msra.mxu1 %v12038_v45  ;;  %v12049_v45 = vld [vmem:[%s17259_s3 + $0x524] ss:$8 sps:$4 sm:$0xff]  }
 0x3e2   : > { %v4088_v46 = vpack.c.bf16 %v3982_v13, %v3980_v38 }
 0x3e3   : > { %v3731_v20 = vpop.f32.mrb[236].mxu0  ;;  %v4089_v27 = vpack.c.bf16 %v3983_v51, %v3981_v9 }
 0x3e4   : > { %v3732_v62 = vadd.f32 %v3731_v20, %v13793_v24  ;;  %v3733_v10 = vpop.f32.mrb[237].mxu0 }
 0x3e5   : > { %v3734_v36 = vadd.f32 %v3733_v10, %v13797_v56  ;;  %v3735_v47 = vpop.f32.mrb[238].mxu0  ;;  %4470 = vmatprep.mubr.bf16.mxu1 %v4089_v27 }
 0x3e6   : > { %v3736_v4 = vadd.f32 %v3735_v47, %v13793_v24  ;;  %v3737_v25 = vpop.f32.mrb[239].mxu0  ;;  %4471 = vmatmul.mubr.bf16.gmra.mrb[232].mxu1 %v4088_v46  ;;  %v3984_v32 = vmax.f32 %v3732_v62, 0.0 }
 0x3e7   : > { %v3738_v28 = vadd.f32 %v3737_v25, %v13797_v56  ;;  %v3985_v23 = vmax.f32 %v3734_v36, 0.0 }
 0x3e8   : > { %v3986_v8 = vmax.f32 %v3736_v4, 0.0 }
 0x3e9   : > { %v3987_v6 = vmax.f32 %v3738_v28, 0.0 }
 0x3ea   : > { %v4090_v35 = vpack.c.bf16 %v3986_v8, %v3984_v32 }
 0x3eb   : > { %v3741_v42 = vpop.f32.mrb[240].mxu0  ;;  %v4091_v41 = vpack.c.bf16 %v3987_v6, %v3985_v23 }
 0x3ec   : > { %v3742_v57 = vadd.f32 %v3741_v42, %v13793_v24  ;;  %v3743_v53 = vpop.f32.mrb[241].mxu0 }
 0x3ed   : > { %v3744_v54 = vadd.f32 %v3743_v53, %v13797_v56  ;;  %v3745_v15 = vpop.f32.mrb[242].mxu0  ;;  %4480 = vmatprep.mubr.bf16.mxu1 %v4091_v41 }
 0x3ee   : > { %v3746_v58 = vadd.f32 %v3745_v15, %v13793_v24  ;;  %v3747_v59 = vpop.f32.mrb[243].mxu0  ;;  %4481 = vmatmul.mubr.bf16.gmra.mrb[236].mxu1 %v4090_v35  ;;  %v3988_v60 = vmax.f32 %v3742_v57, 0.0  ;;  %v12041_v35 = vld [vmem:[%s17259_s3 + $0x510] ss:$8 sps:$4 sm:$0xff]  }
 0x3ef   : > { %v3748_v55 = vadd.f32 %v3747_v59, %v13797_v56  ;;  %v3989_v0 = vmax.f32 %v3744_v54, 0.0  ;;  %5971 = vmatpush1.bf16.msra.mxu0 %v12041_v35  ;;  %v12044_v15 = vld [vmem:[%s17259_s3 + $0x4f0] ss:$8 sps:$4 sm:$0xff]  }
 0x3f0   : > { %v3990_v63 = vmax.f32 %v3746_v58, 0.0  ;;  %v12046_v58 = vld [vmem:[%s17259_s3 + $0x4f4] ss:$8 sps:$4 sm:$0xff]   ;;  %5972 = vmatprep.subr.bf16.mxu0 %v12049_v45 }
 0x3f1   : > { %v3991_v2 = vmax.f32 %v3748_v55, 0.0  ;;  %5106 = vmatprep.subr.bf16.mxu1 %v12046_v58 }
 0x3f2   : > { %v4092_v19 = vpack.c.bf16 %v3990_v63, %v3988_v60  ;;  %5107 = vmatpush1.bf16.msra.mxu1 %v12044_v15 }
 0x3f3   : > { %v3751_v49 = vpop.f32.mrb[244].mxu0  ;;  %v4093_v11 = vpack.c.bf16 %v3991_v2, %v3989_v0 }
 0x3f4   : > { %v3752_v12 = vadd.f32 %v3751_v49, %v13793_v24  ;;  %v3753_v29 = vpop.f32.mrb[245].mxu0 }
 0x3f5   : > { %v3754_v14 = vadd.f32 %v3753_v29, %v13797_v56  ;;  %v3755_v16 = vpop.f32.mrb[246].mxu0  ;;  %4490 = vmatprep.mubr.bf16.mxu1 %v4093_v11 }
 0x3f6   : > { %v3756_v17 = vadd.f32 %v3755_v16, %v13793_v24  ;;  %v3757_v18 = vpop.f32.mrb[247].mxu0  ;;  %4491 = vmatmul.mubr.bf16.gmra.mrb[240].mxu1 %v4092_v19  ;;  %v3992_v31 = vmax.f32 %v3752_v12, 0.0 }
 0x3f7   : > { %v3758_v30 = vadd.f32 %v3757_v18, %v13797_v56  ;;  %v3993_v40 = vmax.f32 %v3754_v14, 0.0 }
 0x3f8   : > { %v3994_v37 = vmax.f32 %v3756_v17, 0.0 }
 0x3f9   : > { %v3995_v34 = vmax.f32 %v3758_v30, 0.0 }
 0x3fa   : > { %v4094_v21 = vpack.c.bf16 %v3994_v37, %v3992_v31 }
 0x3fb   : > { %v3761_v7 = vpop.f32.mrb[248].mxu0  ;;  %v4095_v44 = vpack.c.bf16 %v3995_v34, %v3993_v40 }
 0x3fc   : > { %v3762_v1 = vadd.f32 %v3761_v7, %v13793_v24  ;;  %v3763_v43 = vpop.f32.mrb[249].mxu0 }
 0x3fd   : > { %v3764_v38 = vadd.f32 %v3763_v43, %v13797_v56  ;;  %v3765_v13 = vpop.f32.mrb[250].mxu0  ;;  %4500 = vmatprep.mubr.bf16.mxu1 %v4095_v44 }
 0x3fe   : > { %v3766_v9 = vadd.f32 %v3765_v13, %v13793_v24  ;;  %v3767_v51 = vpop.f32.mrb[251].mxu0  ;;  %4501 = vmatmul.mubr.bf16.gmra.mrb[244].mxu1 %v4094_v21  ;;  %v3996_v20 = vmax.f32 %v3762_v1, 0.0  ;;  %v12047_v21 = vld [vmem:[%s17259_s3 + $0x520] ss:$8 sps:$4 sm:$0xff]  }
 0x3ff   : > { %v3768_v46 = vadd.f32 %v3767_v51, %v13797_v56  ;;  %v3997_v62 = vmax.f32 %v3764_v38, 0.0  ;;  %5973 = vmatpush1.bf16.msra.mxu0 %v12047_v21 }
 0x400   : > { %v3998_v27 = vmax.f32 %v3766_v9, 0.0 }
 0x401   : > { %v3999_v10 = vmax.f32 %v3768_v46, 0.0 }
 0x402   : > { %v4096_v36 = vpack.c.bf16 %v3998_v27, %v3996_v20 }
 0x403   : > { %v3771_v47 = vpop.f32.mrb[252].mxu0  ;;  %v4097_v4 = vpack.c.bf16 %v3999_v10, %v3997_v62 }
 0x404   : > { %v3772_v25 = vadd.f32 %v3771_v47, %v13793_v24  ;;  %v3773_v28 = vpop.f32.mrb[253].mxu0 }
 0x405   : > { %v3774_v32 = vadd.f32 %v3773_v28, %v13797_v56  ;;  %v3775_v8 = vpop.f32.mrb[254].mxu0  ;;  %4510 = vmatprep.mubr.bf16.mxu1 %v4097_v4 }
 0x406   : > { %v3776_v23 = vadd.f32 %v3775_v8, %v13793_v24  ;;  %v3777_v6 = vpop.f32.mrb[255].mxu0  ;;  %4511 = vmatmul.mubr.bf16.gmra.mrb[248].mxu1 %v4096_v36  ;;  %v4000_v42 = vmax.f32 %v3772_v25, 0.0 }
 0x407   : > { %v3778_v39 = vadd.f32 %v3777_v6, %v13797_v56  ;;  %v4001_v57 = vmax.f32 %v3774_v32, 0.0 }
 0x408   : > { %v4002_v41 = vmax.f32 %v3776_v23, 0.0 }
 0x409   : > { %v4003_v53 = vmax.f32 %v3778_v39, 0.0 }
 0x40a   : > { %v4098_v54 = vpack.c.bf16 %v4002_v41, %v4000_v42 }
 0x40b   : > { %v3781_v59 = vpop.f32.mrb[0].mxu0  ;;  %v4099_v55 = vpack.c.bf16 %v4003_v53, %v4001_v57  ;;  %v12050_v57 = vld [vmem:[%s17259_s3 + $0x530] ss:$8 sps:$4 sm:$0xff]   ;;  %v12052_v53 = vld [vmem:[%s17259_s3 + $0x534] ss:$8 sps:$4 sm:$0xff]  }
 0x40c   : > { %v3782_v60 = vadd.f32 %v3781_v59, %v13793_v24  ;;  %v3783_v63 = vpop.f32.mrb[1].mxu0  ;;  %5974 = vmatprep.subr.bf16.mxu0 %v12052_v53 }
 0x40d   : > { %v3784_v0 = vadd.f32 %v3783_v63, %v13797_v56  ;;  %v3785_v2 = vpop.f32.mrb[2].mxu0  ;;  %4520 = vmatprep.mubr.bf16.mxu1 %v4099_v55  ;;  %5975 = vmatpush1.bf16.msra.mxu0 %v12050_v57 }
 0x40e   : > { %v3786_v19 = vadd.f32 %v3785_v2, %v13793_v24  ;;  %v3787_v49 = vpop.f32.mrb[3].mxu0  ;;  %4521 = vmatmul.mubr.bf16.gmra.mrb[252].mxu1 %v4098_v54  ;;  %v4004_v12 = vmax.f32 %v3782_v60, 0.0 }
 0x40f   : > { %v3788_v11 = vadd.f32 %v3787_v49, %v13797_v56  ;;  %v4005_v14 = vmax.f32 %v3784_v0, 0.0 }
 0x410   : > { %v4006_v29 = vmax.f32 %v3786_v19, 0.0 }
 0x411   : > { %v4007_v16 = vmax.f32 %v3788_v11, 0.0 }
 0x412   : > { %v4100_v17 = vpack.c.bf16 %v4006_v29, %v4004_v12 }
 0x413   : > { %v3791_v18 = vpop.f32.mrb[4].mxu0  ;;  %v4101_v22 = vpack.c.bf16 %v4007_v16, %v4005_v14 }
 0x414   : > { %v3792_v26 = vadd.f32 %v3791_v18, %v13793_v24  ;;  %v3793_v30 = vpop.f32.mrb[5].mxu0 }
 0x415   : > { %v3794_v31 = vadd.f32 %v3793_v30, %v13797_v56  ;;  %v3795_v37 = vpop.f32.mrb[6].mxu0  ;;  %4530 = vmatprep.mubr.bf16.mxu1 %v4101_v22 }
 0x416   : > { %v3796_v40 = vadd.f32 %v3795_v37, %v13793_v24  ;;  %v3797_v34 = vpop.f32.mrb[7].mxu0  ;;  %4531 = vmatmul.mubr.bf16.gmra.mrb[0].mxu1 %v4100_v17  ;;  %v4008_v7 = vmax.f32 %v3792_v26, 0.0 }
 0x417   : > { %v3798_v33 = vadd.f32 %v3797_v34, %v13797_v56  ;;  %v4009_v1 = vmax.f32 %v3794_v31, 0.0 }
 0x418   : > { %v4010_v44 = vmax.f32 %v3796_v40, 0.0 }
 0x419   : > { %v4011_v43 = vmax.f32 %v3798_v33, 0.0 }
 0x41a   : > { %v4102_v38 = vpack.c.bf16 %v4010_v44, %v4008_v7  ;;  %v12053_v7 = vld [vmem:[%s17259_s3 + $0x540] ss:$8 sps:$4 sm:$0xff]   ;;  %v12055_v44 = vld [vmem:[%s17259_s3 + $0x544] ss:$8 sps:$4 sm:$0xff]  }
 0x41b   : > { %v3801_v13 = vpop.f32.mrb[8].mxu0  ;;  %v4103_v9 = vpack.c.bf16 %v4011_v43, %v4009_v1  ;;  %5976 = vmatprep.subr.bf16.mxu0 %v12055_v44 }
 0x41c   : > { %v3802_v51 = vadd.f32 %v3801_v13, %v13793_v24  ;;  %v3803_v46 = vpop.f32.mrb[9].mxu0  ;;  %5977 = vmatpush1.bf16.msra.mxu0 %v12053_v7 }
 0x41d   : > { %v3804_v20 = vadd.f32 %v3803_v46, %v13797_v56  ;;  %v3805_v27 = vpop.f32.mrb[10].mxu0  ;;  %4540 = vmatprep.mubr.bf16.mxu1 %v4103_v9 }
 0x41e   : > { %v3806_v62 = vadd.f32 %v3805_v27, %v13793_v24  ;;  %v3807_v10 = vpop.f32.mrb[11].mxu0  ;;  %4541 = vmatmul.mubr.bf16.gmra.mrb[4].mxu1 %v4102_v38  ;;  %v4012_v47 = vmax.f32 %v3802_v51, 0.0 }
 0x41f   : > { %v3808_v36 = vadd.f32 %v3807_v10, %v13797_v56  ;;  %v4013_v25 = vmax.f32 %v3804_v20, 0.0 }
 0x420   : > { %v4014_v4 = vmax.f32 %v3806_v62, 0.0 }
 0x421   : > { %v4015_v28 = vmax.f32 %v3808_v36, 0.0 }
 0x422   : > { %v4104_v32 = vpack.c.bf16 %v4014_v4, %v4012_v47 }
 0x423   : > { %v3811_v8 = vpop.f32.mrb[12].mxu0  ;;  %v4105_v23 = vpack.c.bf16 %v4015_v28, %v4013_v25 }
 0x424   : > { %v3812_v6 = vadd.f32 %v3811_v8, %v13793_v24  ;;  %v3813_v35 = vpop.f32.mrb[13].mxu0 }
 0x425   : > { %v3814_v61 = vadd.f32 %v3813_v35, %v13797_v56  ;;  %v3815_v39 = vpop.f32.mrb[14].mxu0  ;;  %4550 = vmatprep.mubr.bf16.mxu1 %v4105_v23 }
 0x426   : > { %v3816_v42 = vadd.f32 %v3815_v39, %v13793_v24  ;;  %v3817_v41 = vpop.f32.mrb[15].mxu0  ;;  %4551 = vmatmul.mubr.bf16.gmra.mrb[8].mxu1 %v4104_v32  ;;  %v4016_v15 = vmax.f32 %v3812_v6, 0.0 }
 0x427   : > { %v3818_v54 = vadd.f32 %v3817_v41, %v13797_v56  ;;  %v4017_v59 = vmax.f32 %v3814_v61, 0.0 }
 0x428   : > { %v4018_v58 = vmax.f32 %v3816_v42, 0.0 }
 0x429   : > { %v4019_v55 = vmax.f32 %v3818_v54, 0.0 }
 0x42a   : > { %v4106_v60 = vpack.c.bf16 %v4018_v58, %v4016_v15  ;;  %v12056_v15 = vld [vmem:[%s17259_s3 + $0x550] ss:$8 sps:$4 sm:$0xff]   ;;  %v12058_v58 = vld [vmem:[%s17259_s3 + $0x554] ss:$8 sps:$4 sm:$0xff]  }
 0x42b   : > { %v3821_v63 = vpop.f32.mrb[16].mxu0  ;;  %v4107_v0 = vpack.c.bf16 %v4019_v55, %v4017_v59  ;;  %5978 = vmatprep.subr.bf16.mxu0 %v12058_v58 }
 0x42c   : > { %v3822_v2 = vadd.f32 %v3821_v63, %v13793_v24  ;;  %v3823_v19 = vpop.f32.mrb[17].mxu0  ;;  %5979 = vmatpush1.bf16.msra.mxu0 %v12056_v15 }
 0x42d   : > { %v3824_v49 = vadd.f32 %v3823_v19, %v13797_v56  ;;  %v3825_v11 = vpop.f32.mrb[18].mxu0  ;;  %4560 = vmatprep.mubr.bf16.mxu1 %v4107_v0 }
 0x42e   : > { %v3826_v12 = vadd.f32 %v3825_v11, %v13793_v24  ;;  %v3827_v29 = vpop.f32.mrb[19].mxu0  ;;  %4561 = vmatmul.mubr.bf16.gmra.mrb[12].mxu1 %v4106_v60  ;;  %v4020_v16 = vmax.f32 %v3822_v2, 0.0 }
 0x42f   : > { %v3828_v14 = vadd.f32 %v3827_v29, %v13797_v56  ;;  %v4021_v18 = vmax.f32 %v3824_v49, 0.0 }
 0x430   : > { %v4022_v17 = vmax.f32 %v3826_v12, 0.0 }
 0x431   : > { %v4023_v22 = vmax.f32 %v3828_v14, 0.0 }
 0x432   : > { %v4108_v26 = vpack.c.bf16 %v4022_v17, %v4020_v16 }
 0x433   : > { %v3831_v30 = vpop.f32.mrb[20].mxu0  ;;  %v4109_v31 = vpack.c.bf16 %v4023_v22, %v4021_v18 }
 0x434   : > { %v3832_v37 = vadd.f32 %v3831_v30, %v13793_v24  ;;  %v3833_v40 = vpop.f32.mrb[21].mxu0 }
 0x435   : > { %v3834_v34 = vadd.f32 %v3833_v40, %v13797_v56  ;;  %v3835_v21 = vpop.f32.mrb[22].mxu0  ;;  %4570 = vmatprep.mubr.bf16.mxu1 %v4109_v31 }
 0x436   : > { %v3836_v45 = vadd.f32 %v3835_v21, %v13793_v24  ;;  %v3837_v33 = vpop.f32.mrb[23].mxu0  ;;  %4571 = vmatmul.mubr.bf16.gmra.mrb[16].mxu1 %v4108_v26  ;;  %v4024_v43 = vmax.f32 %v3832_v37, 0.0 }
 0x437   : > { %v3838_v1 = vadd.f32 %v3837_v33, %v13797_v56  ;;  %v4025_v13 = vmax.f32 %v3834_v34, 0.0 }
 0x438   : > { %v4026_v38 = vmax.f32 %v3836_v45, 0.0 }
 0x439   : > { %v4027_v9 = vmax.f32 %v3838_v1, 0.0 }
 0x43a   : > { %v4110_v51 = vpack.c.bf16 %v4026_v38, %v4024_v43  ;;  %v12059_v43 = vld [vmem:[%s17259_s3 + $0x560] ss:$8 sps:$4 sm:$0xff]   ;;  %v12061_v38 = vld [vmem:[%s17259_s3 + $0x564] ss:$8 sps:$4 sm:$0xff]  }
 0x43b   : > { %v3841_v46 = vpop.f32.mrb[24].mxu0  ;;  %v4111_v20 = vpack.c.bf16 %v4027_v9, %v4025_v13  ;;  %5980 = vmatprep.subr.bf16.mxu0 %v12061_v38 }
 0x43c   : > { %v3842_v27 = vadd.f32 %v3841_v46, %v13793_v24  ;;  %v3843_v62 = vpop.f32.mrb[25].mxu0  ;;  %5981 = vmatpush1.bf16.msra.mxu0 %v12059_v43 }
 0x43d   : > { %v3844_v10 = vadd.f32 %v3843_v62, %v13797_v56  ;;  %v3845_v36 = vpop.f32.mrb[26].mxu0  ;;  %4580 = vmatprep.mubr.bf16.mxu1 %v4111_v20 }
 0x43e   : > { %v3846_v47 = vadd.f32 %v3845_v36, %v13793_v24  ;;  %v3847_v4 = vpop.f32.mrb[27].mxu0  ;;  %4581 = vmatmul.mubr.bf16.gmra.mrb[20].mxu1 %v4110_v51  ;;  %v4028_v28 = vmax.f32 %v3842_v27, 0.0 }
 0x43f   : > { %v3848_v25 = vadd.f32 %v3847_v4, %v13797_v56  ;;  %v4029_v8 = vmax.f32 %v3844_v10, 0.0 }
 0x440   : > { %v4030_v32 = vmax.f32 %v3846_v47, 0.0 }
 0x441   : > { %v4031_v23 = vmax.f32 %v3848_v25, 0.0 }
 0x442   : > { %v4112_v6 = vpack.c.bf16 %v4030_v32, %v4028_v28 }
 0x443   : > { %v3851_v35 = vpop.f32.mrb[28].mxu0  ;;  %v4113_v61 = vpack.c.bf16 %v4031_v23, %v4029_v8 }
 0x444   : > { %v3852_v39 = vadd.f32 %v3851_v35, %v13793_v24  ;;  %v3853_v42 = vpop.f32.mrb[29].mxu0 }
 0x445   : > { %v3854_v41 = vadd.f32 %v3853_v42, %v13797_v56  ;;  %v3855_v57 = vpop.f32.mrb[30].mxu0  ;;  %4590 = vmatprep.mubr.bf16.mxu1 %v4113_v61 }
 0x446   : > { %v3856_v53 = vadd.f32 %v3855_v57, %v13793_v24  ;;  %v3857_v54 = vpop.f32.mrb[31].mxu0  ;;  %4591 = vmatmul.mubr.bf16.gmra.mrb[24].mxu1 %v4112_v6  ;;  %v4032_v55 = vmax.f32 %v3852_v39, 0.0  ;;  %v10910_v57 = vld [vmem:[%s17260_s4 + $0x4] ss:$8 sm:$0x3] }
 0x447   : > { %v3858_v59 = vadd.f32 %v3857_v54, %v13797_v56  ;;  %v4033_v63 = vmax.f32 %v3854_v41, 0.0 }
 0x448   : > { %v4034_v60 = vmax.f32 %v3856_v53, 0.0 }
 0x449   : > { %v4035_v0 = vmax.f32 %v3858_v59, 0.0 }
 0x44a   : > { %v4114_v2 = vpack.c.bf16 %v4034_v60, %v4032_v55  ;;  %v14065_v60 = vrot.slane %v10910_v57, %v12992_v50 }
 0x44b   : > { %v3861_v19 = vpop.f32.mrb[32].mxu0  ;;  %v4115_v49 = vpack.c.bf16 %v4035_v0, %v4033_v63  ;;  %v12062_v63 = vld [vmem:[%s17259_s3 + $0x570] ss:$8 sps:$4 sm:$0xff]   ;;  %v12064_v0 = vld [vmem:[%s17259_s3 + $0x574] ss:$8 sps:$4 sm:$0xff]  }
 0x44c   : > { %v3862_v11 = vadd.f32 %v3861_v19, %v13793_v24  ;;  %v3863_v12 = vpop.f32.mrb[33].mxu0  ;;  %v14075_v19 = vrot.slane %v10910_v57, %v12998_v52  ;;  %5982 = vmatprep.subr.bf16.mxu0 %v12064_v0 }
 0x44d   : > { %v3864_v29 = vadd.f32 %v3863_v12, %v13797_v56  ;;  %v3865_v14 = vpop.f32.mrb[34].mxu0  ;;  %4600 = vmatprep.mubr.bf16.mxu1 %v4115_v49  ;;  %5983 = vmatpush1.bf16.msra.mxu0 %v12062_v63 }
 0x44e   : > { %v3866_v16 = vadd.f32 %v3865_v14, %v13793_v24  ;;  %v3867_v17 = vpop.f32.mrb[35].mxu0  ;;  %4601 = vmatmul.mubr.bf16.gmra.mrb[28].mxu1 %v4114_v2  ;;  %v4036_v22 = vmax.f32 %v3862_v11, 0.0 }
 0x44f   : > { %v3868_v18 = vadd.f32 %v3867_v17, %v13797_v56  ;;  %v4037_v30 = vmax.f32 %v3864_v29, 0.0 }
 0x450   : > { %v4038_v26 = vmax.f32 %v3866_v16, 0.0 }
 0x451   : > { %v4039_v31 = vmax.f32 %v3868_v18, 0.0 }
 0x452   : > { %v4116_v37 = vpack.c.bf16 %v4038_v26, %v4036_v22 }
 0x453   : > { %v3871_v40 = vpop.f32.mrb[36].mxu0  ;;  %v4117_v34 = vpack.c.bf16 %v4039_v31, %v4037_v30 }
 0x454   : > { %v3872_v21 = vadd.f32 %v3871_v40, %v13793_v24  ;;  %v3873_v45 = vpop.f32.mrb[37].mxu0 }
 0x455   : > { %v3874_v33 = vadd.f32 %v3873_v45, %v13797_v56  ;;  %v3875_v7 = vpop.f32.mrb[38].mxu0  ;;  %4610 = vmatprep.mubr.bf16.mxu1 %v4117_v34 }
 0x456   : > { %v3876_v44 = vadd.f32 %v3875_v7, %v13793_v24  ;;  %v3877_v1 = vpop.f32.mrb[39].mxu0  ;;  %4611 = vmatmul.mubr.bf16.gmra.mrb[32].mxu1 %v4116_v37  ;;  %v4040_v9 = vmax.f32 %v3872_v21, 0.0 }
 0x457   : > { %v3878_v13 = vadd.f32 %v3877_v1, %v13797_v56  ;;  %v4041_v46 = vmax.f32 %v3874_v33, 0.0 }
 0x458   : > { %v4042_v51 = vmax.f32 %v3876_v44, 0.0 }
 0x459   : > { %v4043_v20 = vmax.f32 %v3878_v13, 0.0 }
 0x45a   : > { %v4118_v27 = vpack.c.bf16 %v4042_v51, %v4040_v9 }
 0x45b   : > { %v3881_v62 = vpop.f32.mrb[40].mxu0  ;;  %v4119_v10 = vpack.c.bf16 %v4043_v20, %v4041_v46 }
 0x45c   : > { %v3882_v36 = vadd.f32 %v3881_v62, %v13793_v24  ;;  %v3883_v47 = vpop.f32.mrb[41].mxu0 }
 0x45d   : > { %v3884_v4 = vadd.f32 %v3883_v47, %v13797_v56  ;;  %v3885_v25 = vpop.f32.mrb[42].mxu0  ;;  %4620 = vmatprep.mubr.bf16.mxu1 %v4119_v10 }
 0x45e   : > { %v3886_v28 = vadd.f32 %v3885_v25, %v13793_v24  ;;  %v3887_v32 = vpop.f32.mrb[43].mxu0  ;;  %4621 = vmatmul.mubr.bf16.gmra.mrb[36].mxu1 %v4118_v27  ;;  %v4044_v23 = vmax.f32 %v3882_v36, 0.0 }
 0x45f   : > { %v3888_v8 = vadd.f32 %v3887_v32, %v13797_v56  ;;  %v4045_v35 = vmax.f32 %v3884_v4, 0.0 }
 0x460   : > { %v4046_v6 = vmax.f32 %v3886_v28, 0.0 }
 0x461   : > { %v4047_v61 = vmax.f32 %v3888_v8, 0.0 }
 0x462   : > { %v4120_v39 = vpack.c.bf16 %v4046_v6, %v4044_v23 }
 0x463   : > { %v3891_v42 = vpop.f32.mrb[44].mxu0  ;;  %v4121_v41 = vpack.c.bf16 %v4047_v61, %v4045_v35 }
 0x464   : > { %v3892_v53 = vadd.f32 %v3891_v42, %v13793_v24  ;;  %v3893_v54 = vpop.f32.mrb[45].mxu0 }
 0x465   : > { %v3894_v15 = vadd.f32 %v3893_v54, %v13797_v56  ;;  %v3895_v58 = vpop.f32.mrb[46].mxu0  ;;  %4630 = vmatprep.mubr.bf16.mxu1 %v4121_v41 }
 0x466   : > { %v3896_v59 = vadd.f32 %v3895_v58, %v13793_v24  ;;  %v3897_v55 = vpop.f32.mrb[47].mxu0  ;;  %4631 = vmatmul.mubr.bf16.gmra.mrb[40].mxu1 %v4120_v39  ;;  %v4048_v49 = vmax.f32 %v3892_v53, 0.0 }
 0x467   : > { %v3898_v2 = vadd.f32 %v3897_v55, %v13797_v56  ;;  %v4049_v12 = vmax.f32 %v3894_v15, 0.0  ;;  %v12065_v55 = vld [vmem:[%s17259_s3 + $0x580] ss:$8 sps:$4 sm:$0xff]  }
 0x468   : > { %v4050_v11 = vmax.f32 %v3896_v59, 0.0 }
 0x469   : > { %v4051_v29 = vmax.f32 %v3898_v2, 0.0  ;;  %v4372_v14 = vpop.f32.mrb[192].mxu1 }
 0x46a   : > { %v4122_v16 = vpack.c.bf16 %v4050_v11, %v4048_v49  ;;  %v4373_v17 = vadd.f32 %v4372_v14, %v14065_v60  ;;  %v4374_v18 = vpop.f32.mrb[193].mxu1  ;;  %v12067_v49 = vld [vmem:[%s17259_s3 + $0x584] ss:$8 sps:$4 sm:$0xff]  }
 0x46b   : > { %v4375_v22 = vadd.f32 %v4374_v18, %v14075_v19  ;;  %v3901_v26 = vpop.f32.mrb[48].mxu0  ;;  %v4376_v30 = vpop.f32.mrb[194].mxu1  ;;  %v4123_v31 = vpack.c.bf16 %v4051_v29, %v4049_v12  ;;  %5984 = vmatprep.subr.bf16.mxu0 %v12067_v49 }
 0x46c   : > { %v3902_v37 = vadd.f32 %v3901_v26, %v13793_v24  ;;  %v4377_v40 = vadd.f32 %v4376_v30, %v14065_v60  ;;  %v3903_v34 = vpop.f32.mrb[49].mxu0  ;;  %v4378_v21 = vpop.f32.mrb[195].mxu1  ;;  %v4691_v44 = vmax.f32 %v4373_v17, 0.0  ;;  %5985 = vmatpush1.bf16.msra.mxu0 %v12065_v55 }
 0x46d   : > { %v3904_v45 = vadd.f32 %v3903_v34, %v13797_v56  ;;  %v4379_v33 = vadd.f32 %v4378_v21, %v14075_v19  ;;  %v3905_v7 = vpop.f32.mrb[50].mxu0  ;;  %4640 = vmatprep.mubr.bf16.mxu1 %v4123_v31  ;;  %v4692_v13 = vmax.f32 %v4375_v22, 0.0 }
 0x46e   : > { %v4693_v1 = vmax.f32 %v4377_v40, 0.0  ;;  %v3906_v43 = vadd.f32 %v3905_v7, %v13793_v24  ;;  %v3907_v38 = vpop.f32.mrb[51].mxu0  ;;  %4641 = vmatmul.mubr.bf16.gmra.mrb[44].mxu1 %v4122_v16  ;;  %v4052_v46 = vmax.f32 %v3902_v37, 0.0 }
 0x46f   : > { %v4694_v9 = vmax.f32 %v4379_v33, 0.0  ;;  %v3908_v51 = vadd.f32 %v3907_v38, %v13797_v56  ;;  %v4053_v62 = vmax.f32 %v3904_v45, 0.0 }
 0x470   : > { %v14085_v20 = vpack.c.bf16 %v4693_v1, %v4691_v44  ;;  %v4054_v27 = vmax.f32 %v3906_v43, 0.0 }
 0x471   : > { %v4055_v10 = vmax.f32 %v3908_v51, 0.0  ;;  %v4382_v36 = vpop.f32.mrb[196].mxu1  ;;  %v14087_v47 = vpack.c.bf16 %v4694_v9, %v4692_v13 }
 0x472   : > { %v4124_v4 = vpack.c.bf16 %v4054_v27, %v4052_v46  ;;  %v4383_v25 = vadd.f32 %v4382_v36, %v14065_v60  ;;  %v4384_v28 = vpop.f32.mrb[197].mxu1 }
 0x473   : > { %v4385_v32 = vadd.f32 %v4384_v28, %v14075_v19  ;;  %v3911_v8 = vpop.f32.mrb[52].mxu0  ;;  %v4386_v23 = vpop.f32.mrb[198].mxu1  ;;  %v4125_v6 = vpack.c.bf16 %v4055_v10, %v4053_v62 }
 0x474   : > { %v3912_v35 = vadd.f32 %v3911_v8, %v13793_v24  ;;  %v4387_v61 = vadd.f32 %v4386_v23, %v14065_v60  ;;  %v3913_v39 = vpop.f32.mrb[53].mxu0  ;;  %v4388_v42 = vpop.f32.mrb[199].mxu1  ;;  %v4695_v54 = vmax.f32 %v4383_v25, 0.0 }
 0x475   : > { %v3914_v41 = vadd.f32 %v3913_v39, %v13797_v56  ;;  %v4389_v57 = vadd.f32 %v4388_v42, %v14075_v19  ;;  %v3915_v53 = vpop.f32.mrb[54].mxu0  ;;  %4650 = vmatprep.mubr.bf16.mxu1 %v4125_v6  ;;  %v4696_v63 = vmax.f32 %v4385_v32, 0.0 }
 0x476   : > { %v4697_v15 = vmax.f32 %v4387_v61, 0.0  ;;  %v3916_v58 = vadd.f32 %v3915_v53, %v13793_v24  ;;  %v3917_v59 = vpop.f32.mrb[55].mxu0  ;;  %4651 = vmatmul.mubr.bf16.gmra.mrb[48].mxu1 %v4124_v4  ;;  %v4056_v11 = vmax.f32 %v3912_v35, 0.0 }
 0x477   : > { %v4698_v0 = vmax.f32 %v4389_v57, 0.0  ;;  %v3918_v2 = vadd.f32 %v3917_v59, %v13797_v56  ;;  %v4057_v14 = vmax.f32 %v3914_v41, 0.0 }
 0x478   : > { %v4058_v12 = vmax.f32 %v3916_v58, 0.0  ;;  %v14103_v29 = vpack.c.bf16 %v4697_v15, %v4695_v54 }
 0x479   : > { %v4059_v16 = vmax.f32 %v3918_v2, 0.0  ;;  %v4392_v17 = vpop.f32.mrb[200].mxu1  ;;  %v14105_v18 = vpack.c.bf16 %v4698_v0, %v4696_v63 }
 0x47a   : > { %v4126_v22 = vpack.c.bf16 %v4058_v12, %v4056_v11  ;;  %v4393_v26 = vadd.f32 %v4392_v17, %v14065_v60  ;;  %v4394_v30 = vpop.f32.mrb[201].mxu1  ;;  %v12068_v11 = vld [vmem:[%s17259_s3 + $0x590] ss:$8 sps:$4 sm:$0xff]   ;;  %v12070_v17 = vld [vmem:[%s17259_s3 + $0x594] ss:$8 sps:$4 sm:$0xff]  }
 0x47b   : > { %v4395_v31 = vadd.f32 %v4394_v30, %v14075_v19  ;;  %v3921_v37 = vpop.f32.mrb[56].mxu0  ;;  %v4396_v40 = vpop.f32.mrb[202].mxu1  ;;  %v4127_v34 = vpack.c.bf16 %v4059_v16, %v4057_v14  ;;  %5986 = vmatprep.subr.bf16.mxu0 %v12070_v17 }
 0x47c   : > { %v3922_v21 = vadd.f32 %v3921_v37, %v13793_v24  ;;  %v4397_v45 = vadd.f32 %v4396_v40, %v14065_v60  ;;  %v3923_v33 = vpop.f32.mrb[57].mxu0  ;;  %v4398_v7 = vpop.f32.mrb[203].mxu1  ;;  %v4699_v38 = vmax.f32 %v4393_v26, 0.0  ;;  %5987 = vmatpush1.bf16.msra.mxu0 %v12068_v11 }
 0x47d   : > { %v3924_v44 = vadd.f32 %v3923_v33, %v13797_v56  ;;  %v4399_v1 = vadd.f32 %v4398_v7, %v14075_v19  ;;  %v3925_v43 = vpop.f32.mrb[58].mxu0  ;;  %4660 = vmatprep.mubr.bf16.mxu1 %v4127_v34  ;;  %v4700_v46 = vmax.f32 %v4395_v31, 0.0 }
 0x47e   : > { %v4701_v13 = vmax.f32 %v4397_v45, 0.0  ;;  %v3926_v9 = vadd.f32 %v3925_v43, %v13793_v24  ;;  %v3927_v51 = vpop.f32.mrb[59].mxu0  ;;  %4661 = vmatmul.mubr.bf16.gmra.mrb[52].mxu1 %v4126_v22  ;;  %v4060_v10 = vmax.f32 %v3922_v21, 0.0 }
 0x47f   : > { %v4702_v27 = vmax.f32 %v4399_v1, 0.0  ;;  %v3928_v62 = vadd.f32 %v3927_v51, %v13797_v56  ;;  %v4061_v25 = vmax.f32 %v3924_v44, 0.0 }
 0x480   : > { %v4062_v36 = vmax.f32 %v3926_v9, 0.0  ;;  %v14115_v4 = vpack.c.bf16 %v4701_v13, %v4699_v38 }
 0x481   : > { %v4063_v28 = vmax.f32 %v3928_v62, 0.0  ;;  %v4402_v32 = vpop.f32.mrb[204].mxu1  ;;  %v14117_v8 = vpack.c.bf16 %v4702_v27, %v4700_v46 }
 0x482   : > { %v4128_v23 = vpack.c.bf16 %v4062_v36, %v4060_v10  ;;  %v4403_v6 = vadd.f32 %v4402_v32, %v14065_v60  ;;  %v4404_v35 = vpop.f32.mrb[205].mxu1 }
 0x483   : > { %v4405_v61 = vadd.f32 %v4404_v35, %v14075_v19  ;;  %v3931_v39 = vpop.f32.mrb[60].mxu0  ;;  %v4406_v42 = vpop.f32.mrb[206].mxu1  ;;  %v4129_v41 = vpack.c.bf16 %v4063_v28, %v4061_v25 }
 0x484   : > { %v3932_v57 = vadd.f32 %v3931_v39, %v13793_v24  ;;  %v4407_v53 = vadd.f32 %v4406_v42, %v14065_v60  ;;  %v3933_v54 = vpop.f32.mrb[61].mxu0  ;;  %v4408_v15 = vpop.f32.mrb[207].mxu1  ;;  %v4703_v63 = vmax.f32 %v4403_v6, 0.0  ;;  %v12073_v39 = vld [vmem:[%s17259_s3 + $0x5a4] ss:$8 sps:$4 sm:$0xff]  }
 0x485   : > { %v3934_v58 = vadd.f32 %v3933_v54, %v13797_v56  ;;  %v4409_v59 = vadd.f32 %v4408_v15, %v14075_v19  ;;  %v3935_v55 = vpop.f32.mrb[62].mxu0  ;;  %4670 = vmatprep.mubr.bf16.mxu1 %v4129_v41  ;;  %v4704_v12 = vmax.f32 %v4405_v61, 0.0  ;;  %5988 = vmatprep.subr.bf16.mxu0 %v12073_v39 }
 0x486   : > { %v4705_v0 = vmax.f32 %v4407_v53, 0.0  ;;  %v3936_v2 = vadd.f32 %v3935_v55, %v13793_v24  ;;  %v3937_v49 = vpop.f32.mrb[63].mxu0  ;;  %4671 = vmatmul.mubr.bf16.gmra.mrb[56].mxu1 %v4128_v23  ;;  %v4064_v22 = vmax.f32 %v3932_v57, 0.0 }
 0x487   : > { %v4706_v14 = vmax.f32 %v4409_v59, 0.0  ;;  %v3938_v16 = vadd.f32 %v3937_v49, %v13797_v56  ;;  %v4065_v31 = vmax.f32 %v3934_v58, 0.0 }
 0x488   : > { %v4066_v26 = vmax.f32 %v3936_v2, 0.0  ;;  %v14133_v30 = vpack.c.bf16 %v4705_v0, %v4703_v63 }
 0x489   : > { %v4067_v24 = vmax.f32 %v3938_v16, 0.0  ;;  %v4412_v37 = vpop.f32.mrb[208].mxu1  ;;  %v14135_v40 = vpack.c.bf16 %v4706_v14, %v4704_v12 }
 0x48a   : > { %v4130_v34 = vpack.c.bf16 %v4066_v26, %v4064_v22  ;;  %v4413_v21 = vadd.f32 %v4412_v37, %v14065_v60  ;;  %v4414_v45 = vpop.f32.mrb[209].mxu1 }
 0x48b   : > { %v4415_v56 = vadd.f32 %v4414_v45, %v14075_v19  ;;  %v4416_v33 = vpop.f32.mrb[210].mxu1  ;;  %v4131_v7 = vpack.c.bf16 %v4067_v24, %v4065_v31  ;;  %v12076_v45 = vld [vmem:[%s17259_s3 + $0x5b4] ss:$8 sps:$4 sm:$0xff]  }
 0x48c   : > { %v4417_v44 = vadd.f32 %v4416_v33, %v14065_v60  ;;  %v4418_v1 = vpop.f32.mrb[211].mxu1  ;;  %v4707_v38 = vmax.f32 %v4413_v21, 0.0 }
 0x48d   : > { %v4419_v43 = vadd.f32 %v4418_v1, %v14075_v19  ;;  %4680 = vmatprep.mubr.bf16.mxu1 %v4131_v7  ;;  %v4708_v9 = vmax.f32 %v4415_v56, 0.0 }
 0x48e   : > { %v4709_v13 = vmax.f32 %v4417_v44, 0.0  ;;  %4681 = vmatmul.mubr.bf16.gmra.mrb[60].mxu1 %v4130_v34 }
 0x48f   : > { %v4710_v51 = vmax.f32 %v4419_v43, 0.0  ;;  %5108 = vmatprep.mubr.bf16.mxu1 %v14087_v47  ;;  %v12071_v47 = vld [vmem:[%s17259_s3 + $0x5a0] ss:$8 sps:$4 sm:$0xff]  }
 0x490   : > { %v14142_v46 = vpack.c.bf16 %v4709_v13, %v4707_v38  ;;  %5989 = vmatpush1.bf16.msra.mxu0 %v12071_v47 }
 0x491   : > { %v4422_v27 = vpop.f32.mrb[212].mxu1  ;;  %v14144_v62 = vpack.c.bf16 %v4710_v51, %v4708_v9  ;;  %5990 = vmatprep.subr.bf16.mxu0 %v12076_v45 }
 0x492   : > { %v4423_v10 = vadd.f32 %v4422_v27, %v14065_v60  ;;  %v4424_v36 = vpop.f32.mrb[213].mxu1 }
 0x493   : > { %v4425_v25 = vadd.f32 %v4424_v36, %v14075_v19  ;;  %v4426_v28 = vpop.f32.mrb[214].mxu1 }
 0x494   : > { %v4427_v32 = vadd.f32 %v4426_v28, %v14065_v60  ;;  %v4428_v23 = vpop.f32.mrb[215].mxu1  ;;  %v4711_v35 = vmax.f32 %v4423_v10, 0.0 }
 0x495   : > { %v4429_v6 = vadd.f32 %v4428_v23, %v14075_v19  ;;  %v4712_v42 = vmax.f32 %v4425_v25, 0.0 }
 0x496   : > { %v4713_v61 = vmax.f32 %v4427_v32, 0.0  ;;  %5109 = vmatmul.mubr.bf16.vlgmr.msra.gmra.mrb[64].mxu1 %v14085_v20 }
 0x497   : > { %v4714_v41 = vmax.f32 %v4429_v6, 0.0  ;;  %5118 = vmatprep.mubr.bf16.mxu1 %v14105_v18 }
 0x498   : > { %v14158_v57 = vpack.c.bf16 %v4713_v61, %v4711_v35 }
 0x499   : > { %v4432_v53 = vpop.f32.mrb[216].mxu1  ;;  %v14160_v54 = vpack.c.bf16 %v4714_v41, %v4712_v42 }
 0x49a   : > { %v4433_v20 = vadd.f32 %v4432_v53, %v14065_v60  ;;  %v4434_v15 = vpop.f32.mrb[217].mxu1 }
 0x49b   : > { %v4435_v58 = vadd.f32 %v4434_v15, %v14075_v19  ;;  %v4436_v59 = vpop.f32.mrb[218].mxu1 }
 0x49c   : > { %v4437_v55 = vadd.f32 %v4436_v59, %v14065_v60  ;;  %v4438_v63 = vpop.f32.mrb[219].mxu1  ;;  %v4715_v2 = vmax.f32 %v4433_v20, 0.0  ;;  %v12079_v20 = vld [vmem:[%s17259_s3 + $0x5c4] ss:$8 sps:$4 sm:$0xff]  }
 0x49d   : > { %v4439_v0 = vadd.f32 %v4438_v63, %v14075_v19  ;;  %v4716_v49 = vmax.f32 %v4435_v58, 0.0 }
 0x49e   : > { %v4717_v18 = vmax.f32 %v4437_v55, 0.0  ;;  %5119 = vmatmul.mubr.bf16.gmra.mrb[68].mxu1 %v14103_v29 }
 0x49f   : > { %v4718_v11 = vmax.f32 %v4439_v0, 0.0  ;;  %5128 = vmatprep.mubr.bf16.mxu1 %v14117_v8  ;;  %v12074_v8 = vld [vmem:[%s17259_s3 + $0x5b0] ss:$8 sps:$4 sm:$0xff]  }
 0x4a0   : > { %v14168_v12 = vpack.c.bf16 %v4717_v18, %v4715_v2  ;;  %5991 = vmatpush1.bf16.msra.mxu0 %v12074_v8 }
 0x4a1   : > { %v4442_v14 = vpop.f32.mrb[220].mxu1  ;;  %v14170_v16 = vpack.c.bf16 %v4718_v11, %v4716_v49  ;;  %5992 = vmatprep.subr.bf16.mxu0 %v12079_v20 }
 0x4a2   : > { %v4443_v17 = vadd.f32 %v4442_v14, %v14065_v60  ;;  %v4444_v22 = vpop.f32.mrb[221].mxu1 }
 0x4a3   : > { %v4445_v26 = vadd.f32 %v4444_v22, %v14075_v19  ;;  %v4446_v31 = vpop.f32.mrb[222].mxu1 }
 0x4a4   : > { %v4447_v24 = vadd.f32 %v4446_v31, %v14065_v60  ;;  %v4448_v37 = vpop.f32.mrb[223].mxu1  ;;  %v4719_v34 = vmax.f32 %v4443_v17, 0.0 }
 0x4a5   : > { %v4449_v29 = vadd.f32 %v4448_v37, %v14075_v19  ;;  %v4720_v56 = vmax.f32 %v4445_v26, 0.0 }
 0x4a6   : > { %v4721_v21 = vmax.f32 %v4447_v24, 0.0  ;;  %5129 = vmatmul.mubr.bf16.gmra.mrb[72].mxu1 %v14115_v4 }
 0x4a7   : > { %v4722_v33 = vmax.f32 %v4449_v29, 0.0  ;;  %5138 = vmatprep.mubr.bf16.mxu1 %v14135_v40 }
 0x4a8   : > { %v14184_v7 = vpack.c.bf16 %v4721_v21, %v4719_v34 }
 0x4a9   : > { %v4452_v44 = vpop.f32.mrb[224].mxu1  ;;  %v14186_v1 = vpack.c.bf16 %v4722_v33, %v4720_v56 }
 0x4aa   : > { %v4453_v4 = vadd.f32 %v4452_v44, %v14065_v60  ;;  %v4454_v43 = vpop.f32.mrb[225].mxu1 }
 0x4ab   : > { %v4455_v38 = vadd.f32 %v4454_v43, %v14075_v19  ;;  %v4456_v13 = vpop.f32.mrb[226].mxu1 }
 0x4ac   : > { %v4457_v9 = vadd.f32 %v4456_v13, %v14065_v60  ;;  %v4458_v51 = vpop.f32.mrb[227].mxu1  ;;  %v4723_v10 = vmax.f32 %v4453_v4, 0.0  ;;  %v12082_v4 = vld [vmem:[%s17259_s3 + $0x5d4] ss:$8 sps:$4 sm:$0xff]  }
 0x4ad   : > { %v4459_v27 = vadd.f32 %v4458_v51, %v14075_v19  ;;  %v4724_v36 = vmax.f32 %v4455_v38, 0.0 }
 0x4ae   : > { %v4725_v40 = vmax.f32 %v4457_v9, 0.0  ;;  %5139 = vmatmul.mubr.bf16.gmra.mrb[76].mxu1 %v14133_v30 }
 0x4af   : > { %v4726_v25 = vmax.f32 %v4459_v27, 0.0  ;;  %5148 = vmatprep.mubr.bf16.mxu1 %v14144_v62  ;;  %v12077_v62 = vld [vmem:[%s17259_s3 + $0x5c0] ss:$8 sps:$4 sm:$0xff]  }
 0x4b0   : > { %v14194_v28 = vpack.c.bf16 %v4725_v40, %v4723_v10  ;;  %5993 = vmatpush1.bf16.msra.mxu0 %v12077_v62 }
 0x4b1   : > { %v4462_v32 = vpop.f32.mrb[228].mxu1  ;;  %v14196_v23 = vpack.c.bf16 %v4726_v25, %v4724_v36  ;;  %5994 = vmatprep.subr.bf16.mxu0 %v12082_v4 }
 0x4b2   : > { %v4463_v6 = vadd.f32 %v4462_v32, %v14065_v60  ;;  %v4464_v35 = vpop.f32.mrb[229].mxu1 }
 0x4b3   : > { %v4465_v61 = vadd.f32 %v4464_v35, %v14075_v19  ;;  %v4466_v47 = vpop.f32.mrb[230].mxu1 }
 0x4b4   : > { %v4467_v39 = vadd.f32 %v4466_v47, %v14065_v60  ;;  %v4468_v42 = vpop.f32.mrb[231].mxu1  ;;  %v4727_v41 = vmax.f32 %v4463_v6, 0.0 }
 0x4b5   : > { %v4469_v30 = vadd.f32 %v4468_v42, %v14075_v19  ;;  %v4728_v15 = vmax.f32 %v4465_v61, 0.0 }
 0x4b6   : > { %v4729_v53 = vmax.f32 %v4467_v39, 0.0  ;;  %5149 = vmatmul.mubr.bf16.gmra.mrb[80].mxu1 %v14142_v46 }
 0x4b7   : > { %v4730_v58 = vmax.f32 %v4469_v30, 0.0  ;;  %5158 = vmatprep.mubr.bf16.mxu1 %v14160_v54 }
 0x4b8   : > { %v14210_v59 = vpack.c.bf16 %v4729_v53, %v4727_v41 }
 0x4b9   : > { %v4472_v55 = vpop.f32.mrb[232].mxu1  ;;  %v14212_v63 = vpack.c.bf16 %v4730_v58, %v4728_v15 }
 0x4ba   : > { %v4473_v46 = vadd.f32 %v4472_v55, %v14065_v60  ;;  %v4474_v0 = vpop.f32.mrb[233].mxu1 }
 0x4bb   : > { %v4475_v2 = vadd.f32 %v4474_v0, %v14075_v19  ;;  %v4476_v18 = vpop.f32.mrb[234].mxu1 }
 0x4bc   : > { %v4477_v49 = vadd.f32 %v4476_v18, %v14065_v60  ;;  %v4478_v11 = vpop.f32.mrb[235].mxu1  ;;  %v4731_v17 = vmax.f32 %v4473_v46, 0.0  ;;  %v12085_v46 = vld [vmem:[%s17259_s3 + $0x5e4] ss:$8 sps:$4 sm:$0xff]  }
 0x4bd   : > { %v4479_v14 = vadd.f32 %v4478_v11, %v14075_v19  ;;  %v4732_v22 = vmax.f32 %v4475_v2, 0.0 }
 0x4be   : > { %v4733_v54 = vmax.f32 %v4477_v49, 0.0  ;;  %5159 = vmatmul.mubr.bf16.gmra.mrb[84].mxu1 %v14158_v57 }
 0x4bf   : > { %v4734_v26 = vmax.f32 %v4479_v14, 0.0  ;;  %5168 = vmatprep.mubr.bf16.mxu1 %v14170_v16  ;;  %v12080_v16 = vld [vmem:[%s17259_s3 + $0x5d0] ss:$8 sps:$4 sm:$0xff]  }
 0x4c0   : > { %v14220_v31 = vpack.c.bf16 %v4733_v54, %v4731_v17  ;;  %5995 = vmatpush1.bf16.msra.mxu0 %v12080_v16 }
 0x4c1   : > { %v4482_v24 = vpop.f32.mrb[236].mxu1  ;;  %v14222_v37 = vpack.c.bf16 %v4734_v26, %v4732_v22  ;;  %5996 = vmatprep.subr.bf16.mxu0 %v12085_v46 }
 0x4c2   : > { %v4483_v29 = vadd.f32 %v4482_v24, %v14065_v60  ;;  %v4484_v34 = vpop.f32.mrb[237].mxu1 }
 0x4c3   : > { %v4485_v21 = vadd.f32 %v4484_v34, %v14075_v19  ;;  %v4486_v8 = vpop.f32.mrb[238].mxu1 }
 0x4c4   : > { %v4487_v45 = vadd.f32 %v4486_v8, %v14065_v60  ;;  %v4488_v56 = vpop.f32.mrb[239].mxu1  ;;  %v4735_v33 = vmax.f32 %v4483_v29, 0.0 }
 0x4c5   : > { %v4489_v57 = vadd.f32 %v4488_v56, %v14075_v19  ;;  %v4736_v43 = vmax.f32 %v4485_v21, 0.0 }
 0x4c6   : > { %v4737_v44 = vmax.f32 %v4487_v45, 0.0  ;;  %5169 = vmatmul.mubr.bf16.gmra.mrb[88].mxu1 %v14168_v12 }
 0x4c7   : > { %v4738_v38 = vmax.f32 %v4489_v57, 0.0  ;;  %5178 = vmatprep.mubr.bf16.mxu1 %v14186_v1 }
 0x4c8   : > { %v14236_v13 = vpack.c.bf16 %v4737_v44, %v4735_v33 }
 0x4c9   : > { %v4492_v9 = vpop.f32.mrb[240].mxu1  ;;  %v14238_v51 = vpack.c.bf16 %v4738_v38, %v4736_v43 }
 0x4ca   : > { %v4493_v12 = vadd.f32 %v4492_v9, %v14065_v60  ;;  %v4494_v27 = vpop.f32.mrb[241].mxu1 }
 0x4cb   : > { %v4495_v10 = vadd.f32 %v4494_v27, %v14075_v19  ;;  %v4496_v40 = vpop.f32.mrb[242].mxu1 }
 0x4cc   : > { %v4497_v36 = vadd.f32 %v4496_v40, %v14065_v60  ;;  %v4498_v25 = vpop.f32.mrb[243].mxu1  ;;  %v4739_v6 = vmax.f32 %v4493_v12, 0.0  ;;  %v12088_v12 = vld [vmem:[%s17259_s3 + $0x5f4] ss:$8 sps:$4 sm:$0xff]  }
 0x4cd   : > { %v4499_v32 = vadd.f32 %v4498_v25, %v14075_v19  ;;  %v4740_v35 = vmax.f32 %v4495_v10, 0.0 }
 0x4ce   : > { %v4741_v1 = vmax.f32 %v4497_v36, 0.0  ;;  %5179 = vmatmul.mubr.bf16.gmra.mrb[92].mxu1 %v14184_v7 }
 0x4cf   : > { %v4742_v61 = vmax.f32 %v4499_v32, 0.0  ;;  %5188 = vmatprep.mubr.bf16.mxu1 %v14196_v23  ;;  %v12083_v23 = vld [vmem:[%s17259_s3 + $0x5e0] ss:$8 sps:$4 sm:$0xff]  }
 0x4d0   : > { %v14246_v47 = vpack.c.bf16 %v4741_v1, %v4739_v6  ;;  %5997 = vmatpush1.bf16.msra.mxu0 %v12083_v23 }
 0x4d1   : > { %v4502_v39 = vpop.f32.mrb[244].mxu1  ;;  %v14248_v42 = vpack.c.bf16 %v4742_v61, %v4740_v35  ;;  %5998 = vmatprep.subr.bf16.mxu0 %v12088_v12 }
 0x4d2   : > { %v4503_v30 = vadd.f32 %v4502_v39, %v14065_v60  ;;  %v4504_v41 = vpop.f32.mrb[245].mxu1 }
 0x4d3   : > { %v4505_v53 = vadd.f32 %v4504_v41, %v14075_v19  ;;  %v4506_v62 = vpop.f32.mrb[246].mxu1 }
 0x4d4   : > { %v4507_v20 = vadd.f32 %v4506_v62, %v14065_v60  ;;  %v4508_v15 = vpop.f32.mrb[247].mxu1  ;;  %v4743_v58 = vmax.f32 %v4503_v30, 0.0 }
 0x4d5   : > { %v4509_v7 = vadd.f32 %v4508_v15, %v14075_v19  ;;  %v4744_v0 = vmax.f32 %v4505_v53, 0.0 }
 0x4d6   : > { %v4745_v55 = vmax.f32 %v4507_v20, 0.0  ;;  %5189 = vmatmul.mubr.bf16.gmra.mrb[96].mxu1 %v14194_v28 }
 0x4d7   : > { %v4746_v2 = vmax.f32 %v4509_v7, 0.0  ;;  %5198 = vmatprep.mubr.bf16.mxu1 %v14212_v63 }
 0x4d8   : > { %v14262_v18 = vpack.c.bf16 %v4745_v55, %v4743_v58 }
 0x4d9   : > { %v4512_v49 = vpop.f32.mrb[248].mxu1  ;;  %v14264_v11 = vpack.c.bf16 %v4746_v2, %v4744_v0 }
 0x4da   : > { %v4513_v28 = vadd.f32 %v4512_v49, %v14065_v60  ;;  %v4514_v14 = vpop.f32.mrb[249].mxu1 }
 0x4db   : > { %v4515_v17 = vadd.f32 %v4514_v14, %v14075_v19  ;;  %v4516_v54 = vpop.f32.mrb[250].mxu1 }
 0x4dc   : > { %v4517_v22 = vadd.f32 %v4516_v54, %v14065_v60  ;;  %v4518_v26 = vpop.f32.mrb[251].mxu1  ;;  %v4747_v29 = vmax.f32 %v4513_v28, 0.0 }
 0x4dd   : > { %v4519_v24 = vadd.f32 %v4518_v26, %v14075_v19  ;;  %v4748_v34 = vmax.f32 %v4515_v17, 0.0  ;;  %v12091_v17 = vld [vmem:[%s17259_s3 + $0x604] ss:$8 sps:$4 sm:$0xff]  }
 0x4de   : > { %v4749_v63 = vmax.f32 %v4517_v22, 0.0  ;;  %5199 = vmatmul.mubr.bf16.gmra.mrb[100].mxu1 %v14210_v59 }
 0x4df   : > { %v4750_v21 = vmax.f32 %v4519_v24, 0.0  ;;  %5208 = vmatprep.mubr.bf16.mxu1 %v14222_v37  ;;  %v12086_v37 = vld [vmem:[%s17259_s3 + $0x5f0] ss:$8 sps:$4 sm:$0xff]  }
 0x4e0   : > { %v14272_v8 = vpack.c.bf16 %v4749_v63, %v4747_v29  ;;  %5999 = vmatpush1.bf16.msra.mxu0 %v12086_v37 }
 0x4e1   : > { %v4522_v45 = vpop.f32.mrb[252].mxu1  ;;  %v14274_v56 = vpack.c.bf16 %v4750_v21, %v4748_v34  ;;  %6719 = vmatprep.subr.bf16.mxu0 %v12091_v17 }
 0x4e2   : > { %v4523_v57 = vadd.f32 %v4522_v45, %v14065_v60  ;;  %v4524_v33 = vpop.f32.mrb[253].mxu1 }
 0x4e3   : > { %v4525_v44 = vadd.f32 %v4524_v33, %v14075_v19  ;;  %v4526_v16 = vpop.f32.mrb[254].mxu1 }
 0x4e4   : > { %v4527_v4 = vadd.f32 %v4526_v16, %v14065_v60  ;;  %v4528_v43 = vpop.f32.mrb[255].mxu1  ;;  %v4751_v38 = vmax.f32 %v4523_v57, 0.0 }
 0x4e5   : > { %v4529_v59 = vadd.f32 %v4528_v43, %v14075_v19  ;;  %v4752_v27 = vmax.f32 %v4525_v44, 0.0 }
 0x4e6   : > { %v4753_v9 = vmax.f32 %v4527_v4, 0.0  ;;  %5209 = vmatmul.mubr.bf16.gmra.mrb[104].mxu1 %v14220_v31 }
 0x4e7   : > { %v4754_v10 = vmax.f32 %v4529_v59, 0.0  ;;  %5218 = vmatprep.mubr.bf16.mxu1 %v14238_v51 }
 0x4e8   : > { %v14288_v40 = vpack.c.bf16 %v4753_v9, %v4751_v38 }
 0x4e9   : > { %v4532_v36 = vpop.f32.mrb[0].mxu1  ;;  %v14290_v25 = vpack.c.bf16 %v4754_v10, %v4752_v27 }
 0x4ea   : > { %v4533_v31 = vadd.f32 %v4532_v36, %v14065_v60  ;;  %v4534_v32 = vpop.f32.mrb[1].mxu1 }
 0x4eb   : > { %v4535_v6 = vadd.f32 %v4534_v32, %v14075_v19  ;;  %v4536_v1 = vpop.f32.mrb[2].mxu1 }
 0x4ec   : > { %v4537_v35 = vadd.f32 %v4536_v1, %v14065_v60  ;;  %v4538_v61 = vpop.f32.mrb[3].mxu1  ;;  %v4755_v30 = vmax.f32 %v4533_v31, 0.0 }
 0x4ed   : > { %v4539_v39 = vadd.f32 %v4538_v61, %v14075_v19  ;;  %v4756_v41 = vmax.f32 %v4535_v6, 0.0 }
 0x4ee   : > { %v4757_v51 = vmax.f32 %v4537_v35, 0.0  ;;  %5219 = vmatmul.mubr.bf16.gmra.mrb[108].mxu1 %v14236_v13 }
 0x4ef   : > { %v4758_v53 = vmax.f32 %v4539_v39, 0.0  ;;  %5228 = vmatprep.mubr.bf16.mxu1 %v14248_v42 }
 0x4f0   : > { %v14298_v62 = vpack.c.bf16 %v4757_v51, %v4755_v30 }
 0x4f1   : > { %v4542_v20 = vpop.f32.mrb[4].mxu1  ;;  %v4852_v15 = vpack.c.bf16 %v4758_v53, %v4756_v41 }
 0x4f2   : > { %v4543_v7 = vadd.f32 %v4542_v20, %v14065_v60  ;;  %v4544_v58 = vpop.f32.mrb[5].mxu1 }
 0x4f3   : > { %v4545_v55 = vadd.f32 %v4544_v58, %v14075_v19  ;;  %v4546_v23 = vpop.f32.mrb[6].mxu1 }
 0x4f4   : > { %v4547_v46 = vadd.f32 %v4546_v23, %v14065_v60  ;;  %v4548_v0 = vpop.f32.mrb[7].mxu1  ;;  %v4759_v13 = vmax.f32 %v4543_v7, 0.0 }
 0x4f5   : > { %v4549_v2 = vadd.f32 %v4548_v0, %v14075_v19  ;;  %v4760_v42 = vmax.f32 %v4545_v55, 0.0 }
 0x4f6   : > { %v4761_v49 = vmax.f32 %v4547_v46, 0.0  ;;  %5229 = vmatmul.mubr.bf16.gmra.mrb[112].mxu1 %v14246_v47 }
 0x4f7   : > { %v4762_v28 = vmax.f32 %v4549_v2, 0.0  ;;  %5238 = vmatprep.mubr.bf16.mxu1 %v14264_v11 }
 0x4f8   : > { %v14306_v14 = vpack.c.bf16 %v4761_v49, %v4759_v13 }
 0x4f9   : > { %v4552_v54 = vpop.f32.mrb[8].mxu1  ;;  %v4854_v22 = vpack.c.bf16 %v4762_v28, %v4760_v42 }
 0x4fa   : > { %v4553_v26 = vadd.f32 %v4552_v54, %v14065_v60  ;;  %v4554_v24 = vpop.f32.mrb[9].mxu1 }
 0x4fb   : > { %v4555_v29 = vadd.f32 %v4554_v24, %v14075_v19  ;;  %v4556_v63 = vpop.f32.mrb[10].mxu1 }
 0x4fc   : > { %v4557_v47 = vadd.f32 %v4556_v63, %v14065_v60  ;;  %v4558_v34 = vpop.f32.mrb[11].mxu1  ;;  %v4763_v21 = vmax.f32 %v4553_v26, 0.0 }
 0x4fd   : > { %v4559_v11 = vadd.f32 %v4558_v34, %v14075_v19  ;;  %v4764_v57 = vmax.f32 %v4555_v29, 0.0 }
 0x4fe   : > { %v4765_v45 = vmax.f32 %v4557_v47, 0.0  ;;  %5239 = vmatmul.mubr.bf16.gmra.mrb[116].mxu1 %v14262_v18 }
 0x4ff   : > { %v4766_v33 = vmax.f32 %v4559_v11, 0.0  ;;  %5248 = vmatprep.mubr.bf16.mxu1 %v14274_v56 }
 0x500   : > { %v14317_v44 = vpack.c.bf16 %v4765_v45, %v4763_v21 }
 0x501   : > { %v4562_v16 = vpop.f32.mrb[12].mxu1  ;;  %v4856_v4 = vpack.c.bf16 %v4766_v33, %v4764_v57 }
 0x502   : > { %v4563_v43 = vadd.f32 %v4562_v16, %v14065_v60  ;;  %v4564_v59 = vpop.f32.mrb[13].mxu1 }
 0x503   : > { %v4565_v38 = vadd.f32 %v4564_v59, %v14075_v19  ;;  %v4566_v9 = vpop.f32.mrb[14].mxu1 }
 0x504   : > { %v4567_v37 = vadd.f32 %v4566_v9, %v14065_v60  ;;  %v4568_v12 = vpop.f32.mrb[15].mxu1  ;;  %v4767_v18 = vmax.f32 %v4563_v43, 0.0 }
 0x505   : > { %v4569_v27 = vadd.f32 %v4568_v12, %v14075_v19  ;;  %v4768_v56 = vmax.f32 %v4565_v38, 0.0 }
 0x506   : > { %v4769_v10 = vmax.f32 %v4567_v37, 0.0  ;;  %5249 = vmatmul.mubr.bf16.gmra.mrb[120].mxu1 %v14272_v8 }
 0x507   : > { %v4770_v36 = vmax.f32 %v4569_v27, 0.0  ;;  %5258 = vmatprep.mubr.bf16.mxu1 %v14290_v25 }
 0x508   : > { %v14325_v31 = vpack.c.bf16 %v4769_v10, %v4767_v18 }
 0x509   : > { %v4572_v32 = vpop.f32.mrb[16].mxu1  ;;  %v4858_v6 = vpack.c.bf16 %v4770_v36, %v4768_v56 }
 0x50a   : > { %v4573_v1 = vadd.f32 %v4572_v32, %v14065_v60  ;;  %v4574_v35 = vpop.f32.mrb[17].mxu1 }
 0x50b   : > { %v4575_v61 = vadd.f32 %v4574_v35, %v14075_v19  ;;  %v4576_v39 = vpop.f32.mrb[18].mxu1 }
 0x50c   : > { %v4577_v30 = vadd.f32 %v4576_v39, %v14065_v60  ;;  %v4578_v51 = vpop.f32.mrb[19].mxu1  ;;  %v4771_v8 = vmax.f32 %v4573_v1, 0.0 }
 0x50d   : > { %v4579_v41 = vadd.f32 %v4578_v51, %v14075_v19  ;;  %v4772_v25 = vmax.f32 %v4575_v61, 0.0 }
 0x50e   : > { %v4773_v53 = vmax.f32 %v4577_v30, 0.0  ;;  %5259 = vmatmul.mubr.bf16.gmra.mrb[124].mxu1 %v14288_v40 }
 0x50f   : > { %v4774_v20 = vmax.f32 %v4579_v41, 0.0  ;;  %5268 = vmatprep.mubr.bf16.mxu1 %v4852_v15 }
 0x510   : > { %v14332_v7 = vpack.c.bf16 %v4773_v53, %v4771_v8 }
 0x511   : > { %v4582_v58 = vpop.f32.mrb[20].mxu1  ;;  %v4860_v55 = vpack.c.bf16 %v4774_v20, %v4772_v25 }
 0x512   : > { %v4583_v23 = vadd.f32 %v4582_v58, %v14065_v60  ;;  %v4584_v46 = vpop.f32.mrb[21].mxu1 }
 0x513   : > { %v4585_v0 = vadd.f32 %v4584_v46, %v14075_v19  ;;  %v4586_v2 = vpop.f32.mrb[22].mxu1 }
 0x514   : > { %v4587_v13 = vadd.f32 %v4586_v2, %v14065_v60  ;;  %v4588_v49 = vpop.f32.mrb[23].mxu1  ;;  %v4775_v28 = vmax.f32 %v4583_v23, 0.0 }
 0x515   : > { %v4589_v42 = vadd.f32 %v4588_v49, %v14075_v19  ;;  %v4776_v15 = vmax.f32 %v4585_v0, 0.0 }
 0x516   : > { %v4777_v40 = vmax.f32 %v4587_v13, 0.0  ;;  %5269 = vmatmul.mubr.bf16.gmra.mrb[128].mxu1 %v14298_v62 }
 0x517   : > { %v4778_v17 = vmax.f32 %v4589_v42, 0.0  ;;  %5278 = vmatprep.mubr.bf16.mxu1 %v4854_v22 }
 0x518   : > { %v14339_v54 = vpack.c.bf16 %v4777_v40, %v4775_v28 }
 0x519   : > { %v4592_v26 = vpop.f32.mrb[24].mxu1  ;;  %v4862_v24 = vpack.c.bf16 %v4778_v17, %v4776_v15 }
 0x51a   : > { %v4593_v29 = vadd.f32 %v4592_v26, %v14065_v60  ;;  %v4594_v63 = vpop.f32.mrb[25].mxu1 }
 0x51b   : > { %v4595_v47 = vadd.f32 %v4594_v63, %v14075_v19  ;;  %v4596_v34 = vpop.f32.mrb[26].mxu1 }
 0x51c   : > { %v4597_v11 = vadd.f32 %v4596_v34, %v14065_v60  ;;  %v4598_v21 = vpop.f32.mrb[27].mxu1  ;;  %v4779_v57 = vmax.f32 %v4593_v29, 0.0 }
 0x51d   : > { %v4599_v45 = vadd.f32 %v4598_v21, %v14075_v19  ;;  %v4780_v22 = vmax.f32 %v4595_v47, 0.0 }
 0x51e   : > { %v4781_v62 = vmax.f32 %v4597_v11, 0.0  ;;  %5279 = vmatmul.mubr.bf16.gmra.mrb[132].mxu1 %v14306_v14 }
 0x51f   : > { %v4782_v33 = vmax.f32 %v4599_v45, 0.0  ;;  %5288 = vmatprep.mubr.bf16.mxu1 %v4856_v4 }
 0x520   : > { %v14346_v16 = vpack.c.bf16 %v4781_v62, %v4779_v57 }
 0x521   : > { %v4602_v43 = vpop.f32.mrb[28].mxu1  ;;  %v4864_v59 = vpack.c.bf16 %v4782_v33, %v4780_v22 }
 0x522   : > { %v4603_v38 = vadd.f32 %v4602_v43, %v14065_v60  ;;  %v4604_v9 = vpop.f32.mrb[29].mxu1 }
 0x523   : > { %v4605_v37 = vadd.f32 %v4604_v9, %v14075_v19  ;;  %v4606_v12 = vpop.f32.mrb[30].mxu1 }
 0x524   : > { %v4607_v27 = vadd.f32 %v4606_v12, %v14065_v60  ;;  %v4608_v18 = vpop.f32.mrb[31].mxu1  ;;  %v4783_v56 = vmax.f32 %v4603_v38, 0.0 }
 0x525   : > { %v4609_v10 = vadd.f32 %v4608_v18, %v14075_v19  ;;  %v4784_v4 = vmax.f32 %v4605_v37, 0.0 }
 0x526   : > { %v4785_v14 = vmax.f32 %v4607_v27, 0.0  ;;  %5289 = vmatmul.mubr.bf16.gmra.mrb[136].mxu1 %v14317_v44 }
 0x527   : > { %v4786_v36 = vmax.f32 %v4609_v10, 0.0  ;;  %5298 = vmatprep.mubr.bf16.mxu1 %v4858_v6 }
 0x528   : > { %v14353_v32 = vpack.c.bf16 %v4785_v14, %v4783_v56 }
 0x529   : > { %v4612_v1 = vpop.f32.mrb[32].mxu1  ;;  %v4866_v35 = vpack.c.bf16 %v4786_v36, %v4784_v4 }
 0x52a   : > { %v4613_v61 = vadd.f32 %v4612_v1, %v14065_v60  ;;  %v4614_v39 = vpop.f32.mrb[33].mxu1 }
 0x52b   : > { %v4615_v30 = vadd.f32 %v4614_v39, %v14075_v19  ;;  %v4616_v51 = vpop.f32.mrb[34].mxu1 }
 0x52c   : > { %v4617_v41 = vadd.f32 %v4616_v51, %v14065_v60  ;;  %v4618_v8 = vpop.f32.mrb[35].mxu1  ;;  %v4787_v25 = vmax.f32 %v4613_v61, 0.0 }
 0x52d   : > { %v4619_v53 = vadd.f32 %v4618_v8, %v14075_v19  ;;  %v4788_v6 = vmax.f32 %v4615_v30, 0.0 }
 0x52e   : > { %v4789_v44 = vmax.f32 %v4617_v41, 0.0  ;;  %5299 = vmatmul.mubr.bf16.gmra.mrb[140].mxu1 %v14325_v31 }
 0x52f   : > { %v4790_v20 = vmax.f32 %v4619_v53, 0.0  ;;  %5308 = vmatprep.mubr.bf16.mxu1 %v4860_v55 }
 0x530   : > { %v14360_v58 = vpack.c.bf16 %v4789_v44, %v4787_v25 }
 0x531   : > { %v4622_v23 = vpop.f32.mrb[36].mxu1  ;;  %v4868_v46 = vpack.c.bf16 %v4790_v20, %v4788_v6 }
 0x532   : > { %v4623_v0 = vadd.f32 %v4622_v23, %v14065_v60  ;;  %v4624_v2 = vpop.f32.mrb[37].mxu1 }
 0x533   : > { %v4625_v13 = vadd.f32 %v4624_v2, %v14075_v19  ;;  %v4626_v49 = vpop.f32.mrb[38].mxu1 }
 0x534   : > { %v4627_v42 = vadd.f32 %v4626_v49, %v14065_v60  ;;  %v4628_v28 = vpop.f32.mrb[39].mxu1  ;;  %v4791_v15 = vmax.f32 %v4623_v0, 0.0 }
 0x535   : > { %v4629_v40 = vadd.f32 %v4628_v28, %v14075_v19  ;;  %v4792_v55 = vmax.f32 %v4625_v13, 0.0 }
 0x536   : > { %v4793_v31 = vmax.f32 %v4627_v42, 0.0  ;;  %5309 = vmatmul.mubr.bf16.gmra.mrb[144].mxu1 %v14332_v7 }
 0x537   : > { %v4794_v17 = vmax.f32 %v4629_v40, 0.0  ;;  %5318 = vmatprep.mubr.bf16.mxu1 %v4862_v24 }
 0x538   : > { %v14367_v26 = vpack.c.bf16 %v4793_v31, %v4791_v15 }
 0x539   : > { %v4632_v29 = vpop.f32.mrb[40].mxu1  ;;  %v4870_v63 = vpack.c.bf16 %v4794_v17, %v4792_v55 }
 0x53a   : > { %v4633_v47 = vadd.f32 %v4632_v29, %v14065_v60  ;;  %v4634_v34 = vpop.f32.mrb[41].mxu1 }
 0x53b   : > { %v4635_v11 = vadd.f32 %v4634_v34, %v14075_v19  ;;  %v4636_v21 = vpop.f32.mrb[42].mxu1 }
 0x53c   : > { %v4637_v45 = vadd.f32 %v4636_v21, %v14065_v60  ;;  %v4638_v57 = vpop.f32.mrb[43].mxu1  ;;  %v4795_v22 = vmax.f32 %v4633_v47, 0.0 }
 0x53d   : > { %v4639_v62 = vadd.f32 %v4638_v57, %v14075_v19  ;;  %v4796_v24 = vmax.f32 %v4635_v11, 0.0 }
 0x53e   : > { %v4797_v7 = vmax.f32 %v4637_v45, 0.0  ;;  %5319 = vmatmul.mubr.bf16.gmra.mrb[148].mxu1 %v14339_v54 }
 0x53f   : > { %v4798_v33 = vmax.f32 %v4639_v62, 0.0  ;;  %5328 = vmatprep.mubr.bf16.mxu1 %v4864_v59 }
 0x540   : > { %v14374_v43 = vpack.c.bf16 %v4797_v7, %v4795_v22 }
 0x541   : > { %v4642_v38 = vpop.f32.mrb[44].mxu1  ;;  %v4872_v9 = vpack.c.bf16 %v4798_v33, %v4796_v24 }
 0x542   : > { %v4643_v37 = vadd.f32 %v4642_v38, %v14065_v60  ;;  %v4644_v12 = vpop.f32.mrb[45].mxu1 }
 0x543   : > { %v4645_v27 = vadd.f32 %v4644_v12, %v14075_v19  ;;  %v4646_v18 = vpop.f32.mrb[46].mxu1 }
 0x544   : > { %v4647_v10 = vadd.f32 %v4646_v18, %v14065_v60  ;;  %v4648_v56 = vpop.f32.mrb[47].mxu1  ;;  %v4799_v4 = vmax.f32 %v4643_v37, 0.0 }
 0x545   : > { %v4649_v14 = vadd.f32 %v4648_v56, %v14075_v19  ;;  %v4800_v59 = vmax.f32 %v4645_v27, 0.0 }
 0x546   : > { %v4801_v54 = vmax.f32 %v4647_v10, 0.0  ;;  %5329 = vmatmul.mubr.bf16.gmra.mrb[152].mxu1 %v14346_v16 }
 0x547   : > { %v4802_v36 = vmax.f32 %v4649_v14, 0.0  ;;  %5338 = vmatprep.mubr.bf16.mxu1 %v4866_v35  ;;  %v11007_v14 = vld [vmem:[%s17260_s4 + $0x5] ss:$8 sm:$0x3] }
 0x548   : > { %v14381_v1 = vpack.c.bf16 %v4801_v54, %v4799_v4 }
 0x549   : > { %v4652_v61 = vpop.f32.mrb[48].mxu1  ;;  %v4874_v39 = vpack.c.bf16 %v4802_v36, %v4800_v59  ;;  %v14419_v36 = vrot.slane %v11007_v14, %v12992_v50 }
 0x54a   : > { %v4653_v30 = vadd.f32 %v4652_v61, %v14065_v60  ;;  %v4654_v51 = vpop.f32.mrb[49].mxu1 }
 0x54b   : > { %v4655_v41 = vadd.f32 %v4654_v51, %v14075_v19  ;;  %v4656_v8 = vpop.f32.mrb[50].mxu1  ;;  %v14422_v51 = vrot.slane %v11007_v14, %v12998_v52 }
 0x54c   : > { %v4657_v53 = vadd.f32 %v4656_v8, %v14065_v60  ;;  %v4658_v25 = vpop.f32.mrb[51].mxu1  ;;  %v4803_v6 = vmax.f32 %v4653_v30, 0.0 }
 0x54d   : > { %v4659_v44 = vadd.f32 %v4658_v25, %v14075_v19  ;;  %v4804_v35 = vmax.f32 %v4655_v41, 0.0 }
 0x54e   : > { %v4805_v16 = vmax.f32 %v4657_v53, 0.0  ;;  %5339 = vmatmul.mubr.bf16.gmra.mrb[156].mxu1 %v14353_v32 }
 0x54f   : > { %v4806_v20 = vmax.f32 %v4659_v44, 0.0  ;;  %5348 = vmatprep.mubr.bf16.mxu1 %v4868_v46 }
 0x550   : > { %v14388_v23 = vpack.c.bf16 %v4805_v16, %v4803_v6 }
 0x551   : > { %v4662_v0 = vpop.f32.mrb[52].mxu1  ;;  %v14390_v2 = vpack.c.bf16 %v4806_v20, %v4804_v35 }
 0x552   : > { %v4663_v13 = vadd.f32 %v4662_v0, %v14065_v60  ;;  %v4664_v49 = vpop.f32.mrb[53].mxu1 }
 0x553   : > { %v4665_v42 = vadd.f32 %v4664_v49, %v14075_v19  ;;  %v4666_v28 = vpop.f32.mrb[54].mxu1 }
 0x554   : > { %v4667_v40 = vadd.f32 %v4666_v28, %v14065_v60  ;;  %v4668_v15 = vpop.f32.mrb[55].mxu1  ;;  %v4807_v32 = vmax.f32 %v4663_v13, 0.0  ;;  %v12089_v28 = vld [vmem:[%s17259_s3 + $0x600] ss:$8 sps:$4 sm:$0xff]  }
 0x555   : > { %v4669_v31 = vadd.f32 %v4668_v15, %v14075_v19  ;;  %v4808_v46 = vmax.f32 %v4665_v42, 0.0 }
 0x556   : > { %v4809_v55 = vmax.f32 %v4667_v40, 0.0  ;;  %5349 = vmatmul.mubr.bf16.gmra.mrb[160].mxu1 %v14360_v58 }
 0x557   : > { %v4810_v17 = vmax.f32 %v4669_v31, 0.0  ;;  %5358 = vmatprep.mubr.bf16.mxu1 %v4870_v63  ;;  %v12094_v31 = vld [vmem:[%s17259_s3 + $0x614] ss:$8 sps:$4 sm:$0xff]  }
 0x558   : > { %v14397_v29 = vpack.c.bf16 %v4809_v55, %v4807_v32 }
 0x559   : > { %v4672_v47 = vpop.f32.mrb[56].mxu1  ;;  %v14399_v34 = vpack.c.bf16 %v4810_v17, %v4808_v46  ;;  %v12092_v17 = vld [vmem:[%s17259_s3 + $0x610] ss:$8 sps:$4 sm:$0xff]  }
 0x55a   : > { %v4673_v11 = vadd.f32 %v4672_v47, %v14065_v60  ;;  %v4674_v21 = vpop.f32.mrb[57].mxu1 }
 0x55b   : > { %v4675_v45 = vadd.f32 %v4674_v21, %v14075_v19  ;;  %v4676_v57 = vpop.f32.mrb[58].mxu1  ;;  %v12097_v21 = vld [vmem:[%s17259_s3 + $0x624] ss:$8 sps:$4 sm:$0xff]  }
 0x55c   : > { %v4677_v62 = vadd.f32 %v4676_v57, %v14065_v60  ;;  %v4678_v22 = vpop.f32.mrb[59].mxu1  ;;  %v4811_v58 = vmax.f32 %v4673_v11, 0.0 }
 0x55d   : > { %v4679_v7 = vadd.f32 %v4678_v22, %v14075_v19  ;;  %v4812_v63 = vmax.f32 %v4675_v45, 0.0 }
 0x55e   : > { %v4813_v24 = vmax.f32 %v4677_v62, 0.0  ;;  %5359 = vmatmul.mubr.bf16.gmra.mrb[164].mxu1 %v14367_v26 }
 0x55f   : > { %v4814_v33 = vmax.f32 %v4679_v7, 0.0  ;;  %5368 = vmatprep.mubr.bf16.mxu1 %v4872_v9 }
 0x560   : > { %v14406_v38 = vpack.c.bf16 %v4813_v24, %v4811_v58  ;;  %v12095_v58 = vld [vmem:[%s17259_s3 + $0x620] ss:$8 sps:$4 sm:$0xff]  }
 0x561   : > { %v4682_v37 = vpop.f32.mrb[60].mxu1  ;;  %v14408_v12 = vpack.c.bf16 %v4814_v33, %v4812_v63  ;;  %v12100_v63 = vld [vmem:[%s17259_s3 + $0x634] ss:$8 sps:$4 sm:$0xff]  }
 0x562   : > { %v4683_v27 = vadd.f32 %v4682_v37, %v14065_v60  ;;  %v4684_v18 = vpop.f32.mrb[61].mxu1 }
 0x563   : > { %v4685_v10 = vadd.f32 %v4684_v18, %v14075_v19  ;;  %v4686_v56 = vpop.f32.mrb[62].mxu1 }
 0x564   : > { %v4687_v26 = vadd.f32 %v4686_v56, %v14065_v60  ;;  %v4688_v4 = vpop.f32.mrb[63].mxu1  ;;  %v4815_v54 = vmax.f32 %v4683_v27, 0.0 }
 0x565   : > { %v4689_v9 = vadd.f32 %v4688_v4, %v14075_v19  ;;  %v4816_v61 = vmax.f32 %v4685_v10, 0.0  ;;  %v12098_v10 = vld [vmem:[%s17259_s3 + $0x630] ss:$8 sps:$4 sm:$0xff]  }
 0x566   : > { %v4817_v59 = vmax.f32 %v4687_v26, 0.0  ;;  %5369 = vmatmul.mubr.bf16.gmra.mrb[168].mxu1 %v14374_v43  ;;  %v12103_v26 = vld [vmem:[%s17259_s3 + $0x644] ss:$8 sps:$4 sm:$0xff]  }
 0x567   : > { %v4818_v30 = vmax.f32 %v4689_v9, 0.0  ;;  %5378 = vmatprep.mubr.bf16.mxu1 %v4874_v39 }
 0x568   : > { %v14424_v41 = vpack.c.bf16 %v4817_v59, %v4815_v54 }
 0x569   : > { %v5110_v8 = vpop.f32.mrb[64].mxu1  ;;  %v14426_v60 = vpack.c.bf16 %v4818_v30, %v4816_v61  ;;  %v12101_v30 = vld [vmem:[%s17259_s3 + $0x640] ss:$8 sps:$4 sm:$0xff]  }
 0x56a   : > { %v5442_v19 = vadd.f32 %v14419_v36, %v5110_v8  ;;  %v5112_v53 = vpop.f32.mrb[65].mxu1 }
 0x56b   : > { %v5443_v25 = vadd.f32 %v14422_v51, %v5112_v53  ;;  %v5114_v43 = vpop.f32.mrb[66].mxu1 }
 0x56c   : > { %v5444_v44 = vadd.f32 %v14419_v36, %v5114_v43  ;;  %v5116_v6 = vpop.f32.mrb[67].mxu1  ;;  %v5570_v39 = vmax.f32 %v5442_v19, 0.0  ;;  %v12106_v19 = vld [vmem:[%s17259_s3 + $0x654] ss:$8 sps:$4 sm:$0xff]  }
 0x56d   : > { %v5445_v16 = vadd.f32 %v14422_v51, %v5116_v6  ;;  %v5571_v20 = vmax.f32 %v5443_v25, 0.0  ;;  %v12104_v6 = vld [vmem:[%s17259_s3 + $0x650] ss:$8 sps:$4 sm:$0xff]  }
 0x56e   : > { %v5572_v35 = vmax.f32 %v5444_v44, 0.0  ;;  %5379 = vmatmul.mubr.bf16.gmra.mrb[172].mxu1 %v14381_v1 }
 0x56f   : > { %v5573_v0 = vmax.f32 %v5445_v16, 0.0  ;;  %5388 = vmatprep.mubr.bf16.mxu1 %v14390_v2 }
 0x570   : > { %v5698_v13 = vpack.c.bf16 %v5572_v35, %v5570_v39  ;;  %v12109_v35 = vld [vmem:[%s17259_s3 + $0x664] ss:$8 sps:$4 sm:$0xff]  }
 0x571   : > { %v5120_v49 = vpop.f32.mrb[68].mxu1  ;;  %v5699_v42 = vpack.c.bf16 %v5573_v0, %v5571_v20 }
 0x572   : > { %v5446_v40 = vadd.f32 %v14419_v36, %v5120_v49  ;;  %v5122_v15 = vpop.f32.mrb[69].mxu1 }
 0x573   : > { %v5447_v1 = vadd.f32 %v14422_v51, %v5122_v15  ;;  %v5124_v32 = vpop.f32.mrb[70].mxu1  ;;  %6000 = vmatprep.mubr.bf16.mxu0 %v5699_v42  ;;  %v12112_v15 = vld [vmem:[%s17259_s3 + $0x674] ss:$8 sps:$4 sm:$0xff]  }
 0x574   : > { %v5448_v2 = vadd.f32 %v14419_v36, %v5124_v32  ;;  %v5126_v55 = vpop.f32.mrb[71].mxu1  ;;  %6001 = vmatmul.mubr.bf16.vlgmr.msra.gmra.mrb[64].mxu0 %v5698_v13  ;;  %v5574_v47 = vmax.f32 %v5446_v40, 0.0 }
 0x575   : > { %v5449_v46 = vadd.f32 %v14422_v51, %v5126_v55  ;;  %6720 = vmatpush1.bf16.msra.mxu0 %v12089_v28  ;;  %v5575_v45 = vmax.f32 %v5447_v1, 0.0  ;;  %v12107_v28 = vld [vmem:[%s17259_s3 + $0x660] ss:$8 sps:$4 sm:$0xff]   ;;  %v12110_v55 = vld [vmem:[%s17259_s3 + $0x670] ss:$8 sps:$4 sm:$0xff]  }
 0x576   : > { %v5576_v11 = vmax.f32 %v5448_v2, 0.0  ;;  %5389 = vmatmul.mubr.bf16.gmra.mrb[176].mxu1 %v14388_v23  ;;  %6721 = vmatprep.subr.bf16.mxu0 %v12094_v31 }
 0x577   : > { %v5577_v57 = vmax.f32 %v5449_v46, 0.0  ;;  %5398 = vmatprep.mubr.bf16.mxu1 %v14399_v34 }
 0x578   : > { %v5700_v62 = vpack.c.bf16 %v5576_v11, %v5574_v47  ;;  %v12115_v47 = vld [vmem:[%s17259_s3 + $0x684] ss:$8 sps:$4 sm:$0xff]  }
 0x579   : > { %v5130_v22 = vpop.f32.mrb[72].mxu1  ;;  %v5701_v7 = vpack.c.bf16 %v5577_v57, %v5575_v45  ;;  %6722 = vmatpush1.bf16.msra.mxu0 %v12092_v17 }
 0x57a   : > { %v5450_v24 = vadd.f32 %v14419_v36, %v5130_v22  ;;  %v5132_v23 = vpop.f32.mrb[73].mxu1  ;;  %6723 = vmatprep.subr.bf16.mxu0 %v12097_v21  ;;  %v12113_v22 = vld [vmem:[%s17259_s3 + $0x680] ss:$8 sps:$4 sm:$0xff]  }
 0x57b   : > { %v5451_v33 = vadd.f32 %v14422_v51, %v5132_v23  ;;  %v5134_v37 = vpop.f32.mrb[74].mxu1  ;;  %6010 = vmatprep.mubr.bf16.mxu0 %v5701_v7 }
 0x57c   : > { %v5452_v34 = vadd.f32 %v14419_v36, %v5134_v37  ;;  %v5136_v27 = vpop.f32.mrb[75].mxu1  ;;  %6011 = vmatmul.mubr.bf16.gmra.mrb[68].mxu0 %v5700_v62  ;;  %v5578_v56 = vmax.f32 %v5450_v24, 0.0 }
 0x57d   : > { %v5453_v18 = vadd.f32 %v14422_v51, %v5136_v27  ;;  %6724 = vmatpush1.bf16.msra.mxu0 %v12095_v58  ;;  %v5579_v4 = vmax.f32 %v5451_v33, 0.0 }
 0x57e   : > { %v5580_v14 = vmax.f32 %v5452_v34, 0.0  ;;  %5399 = vmatmul.mubr.bf16.gmra.mrb[180].mxu1 %v14397_v29  ;;  %6725 = vmatprep.subr.bf16.mxu0 %v12100_v63  ;;  %v12116_v34 = vld [vmem:[%s17259_s3 + $0x690] ss:$8 sps:$4 sm:$0xff]  }
 0x57f   : > { %v5581_v9 = vmax.f32 %v5453_v18, 0.0  ;;  %5408 = vmatprep.mubr.bf16.mxu1 %v14408_v12 }
 0x580   : > { %v5702_v54 = vpack.c.bf16 %v5580_v14, %v5578_v56 }
 0x581   : > { %v5140_v59 = vpop.f32.mrb[76].mxu1  ;;  %v5703_v61 = vpack.c.bf16 %v5581_v9, %v5579_v4  ;;  %6726 = vmatpush1.bf16.msra.mxu0 %v12098_v10 }
 0x582   : > { %v5454_v8 = vadd.f32 %v14419_v36, %v5140_v59  ;;  %v5142_v29 = vpop.f32.mrb[77].mxu1  ;;  %6727 = vmatprep.subr.bf16.mxu0 %v12103_v26  ;;  %v12121_v26 = vld [vmem:[%s17259_s3 + $0x6a4] ss:$8 sps:$4 sm:$0xff]  }
 0x583   : > { %v5455_v53 = vadd.f32 %v14422_v51, %v5142_v29  ;;  %v5144_v25 = vpop.f32.mrb[78].mxu1  ;;  %6020 = vmatprep.mubr.bf16.mxu0 %v5703_v61 }
 0x584   : > { %v5456_v12 = vadd.f32 %v14419_v36, %v5144_v25  ;;  %v5146_v43 = vpop.f32.mrb[79].mxu1  ;;  %6021 = vmatmul.mubr.bf16.gmra.mrb[72].mxu0 %v5702_v54  ;;  %v5582_v16 = vmax.f32 %v5454_v8, 0.0  ;;  %v12119_v54 = vld [vmem:[%s17259_s3 + $0x6a0] ss:$8 sps:$4 sm:$0xff]  }
 0x585   : > { %v5457_v44 = vadd.f32 %v14422_v51, %v5146_v43  ;;  %6728 = vmatpush1.bf16.msra.mxu0 %v12101_v30  ;;  %v5583_v20 = vmax.f32 %v5455_v53, 0.0 }
 0x586   : > { %v5584_v39 = vmax.f32 %v5456_v12, 0.0  ;;  %5409 = vmatmul.mubr.bf16.gmra.mrb[184].mxu1 %v14406_v38  ;;  %6729 = vmatprep.subr.bf16.mxu0 %v12106_v19 }
 0x587   : > { %v5585_v0 = vmax.f32 %v5457_v44, 0.0  ;;  %5418 = vmatprep.mubr.bf16.mxu1 %v14426_v60 }
 0x588   : > { %v5704_v13 = vpack.c.bf16 %v5584_v39, %v5582_v16 }
 0x589   : > { %v5150_v49 = vpop.f32.mrb[80].mxu1  ;;  %v5705_v42 = vpack.c.bf16 %v5585_v0, %v5583_v20  ;;  %6730 = vmatpush1.bf16.msra.mxu0 %v12104_v6 }
 0x58a   : > { %v5458_v40 = vadd.f32 %v14419_v36, %v5150_v49  ;;  %v5152_v38 = vpop.f32.mrb[81].mxu1  ;;  %6731 = vmatprep.subr.bf16.mxu0 %v12109_v35 }
 0x58b   : > { %v5459_v31 = vadd.f32 %v14422_v51, %v5152_v38  ;;  %v5154_v1 = vpop.f32.mrb[82].mxu1  ;;  %6030 = vmatprep.mubr.bf16.mxu0 %v5705_v42 }
 0x58c   : > { %v5460_v60 = vadd.f32 %v14419_v36, %v5154_v1  ;;  %v5156_v32 = vpop.f32.mrb[83].mxu1  ;;  %6031 = vmatmul.mubr.bf16.gmra.mrb[76].mxu0 %v5704_v13  ;;  %v5586_v46 = vmax.f32 %v5458_v40, 0.0 }
 0x58d   : > { %v5461_v2 = vadd.f32 %v14422_v51, %v5156_v32  ;;  %6732 = vmatpush1.bf16.msra.mxu0 %v12107_v28  ;;  %v5587_v11 = vmax.f32 %v5459_v31, 0.0  ;;  %v12124_v32 = vld [vmem:[%s17259_s3 + $0x6b4] ss:$8 sps:$4 sm:$0xff]  }
 0x58e   : > { %v5588_v17 = vmax.f32 %v5460_v60, 0.0  ;;  %5419 = vmatmul.mubr.bf16.gmra.mrb[188].mxu1 %v14424_v41  ;;  %6733 = vmatprep.subr.bf16.mxu0 %v12112_v15  ;;  %v12118_v41 = vld [vmem:[%s17259_s3 + $0x694] ss:$8 sps:$4 sm:$0xff]   ;;  %v12122_v60 = vld [vmem:[%s17259_s3 + $0x6b0] ss:$8 sps:$4 sm:$0xff]  }
 0x58f   : > { %v5589_v21 = vmax.f32 %v5461_v2, 0.0 }
 0x590   : > { %v5706_v45 = vpack.c.bf16 %v5588_v17, %v5586_v46 }
 0x591   : > { %v5160_v57 = vpop.f32.mrb[84].mxu1  ;;  %v5707_v62 = vpack.c.bf16 %v5589_v21, %v5587_v11  ;;  %6734 = vmatpush1.bf16.msra.mxu0 %v12110_v55 }
 0x592   : > { %v5462_v7 = vadd.f32 %v14419_v36, %v5160_v57  ;;  %v5162_v58 = vpop.f32.mrb[85].mxu1  ;;  %6735 = vmatprep.subr.bf16.mxu0 %v12115_v47 }
 0x593   : > { %v5463_v24 = vadd.f32 %v14422_v51, %v5162_v58  ;;  %v5164_v23 = vpop.f32.mrb[86].mxu1  ;;  %6040 = vmatprep.mubr.bf16.mxu0 %v5707_v62 }
 0x594   : > { %v5464_v63 = vadd.f32 %v14419_v36, %v5164_v23  ;;  %v5166_v33 = vpop.f32.mrb[87].mxu1  ;;  %6041 = vmatmul.mubr.bf16.gmra.mrb[80].mxu0 %v5706_v45  ;;  %v5590_v27 = vmax.f32 %v5462_v7, 0.0 }
 0x595   : > { %v5465_v37 = vadd.f32 %v14422_v51, %v5166_v33  ;;  %6736 = vmatpush1.bf16.msra.mxu0 %v12113_v22  ;;  %v5591_v10 = vmax.f32 %v5463_v24, 0.0 }
 0x596   : > { %v5592_v18 = vmax.f32 %v5464_v63, 0.0  ;;  %6737 = vmatprep.subr.bf16.mxu0 %v12118_v41 }
 0x597   : > { %v5593_v56 = vmax.f32 %v5465_v37, 0.0 }
 0x598   : > { %v5708_v14 = vpack.c.bf16 %v5592_v18, %v5590_v27 }
 0x599   : > { %v5170_v4 = vpop.f32.mrb[88].mxu1  ;;  %v5709_v9 = vpack.c.bf16 %v5593_v56, %v5591_v10  ;;  %6738 = vmatpush1.bf16.msra.mxu0 %v12116_v34 }
 0x59a   : > { %v5466_v59 = vadd.f32 %v14419_v36, %v5170_v4  ;;  %v5172_v61 = vpop.f32.mrb[89].mxu1  ;;  %6739 = vmatprep.subr.bf16.mxu0 %v12121_v26 }
 0x59b   : > { %v5467_v30 = vadd.f32 %v14422_v51, %v5172_v61  ;;  %v5174_v8 = vpop.f32.mrb[90].mxu1  ;;  %6050 = vmatprep.mubr.bf16.mxu0 %v5709_v9 }
 0x59c   : > { %v5468_v29 = vadd.f32 %v14419_v36, %v5174_v8  ;;  %v5176_v19 = vpop.f32.mrb[91].mxu1  ;;  %6051 = vmatmul.mubr.bf16.gmra.mrb[84].mxu0 %v5708_v14  ;;  %v5594_v25 = vmax.f32 %v5466_v59, 0.0  ;;  %v12127_v59 = vld [vmem:[%s17259_s3 + $0x6c4] ss:$8 sps:$4 sm:$0xff]  }
 0x59d   : > { %v5469_v53 = vadd.f32 %v14422_v51, %v5176_v19  ;;  %6740 = vmatpush1.bf16.msra.mxu0 %v12119_v54  ;;  %v5595_v43 = vmax.f32 %v5467_v30, 0.0  ;;  %v12125_v54 = vld [vmem:[%s17259_s3 + $0x6c0] ss:$8 sps:$4 sm:$0xff]  }
 0x59e   : > { %v5596_v12 = vmax.f32 %v5468_v29, 0.0  ;;  %6741 = vmatprep.subr.bf16.mxu0 %v12124_v32 }
 0x59f   : > { %v5597_v44 = vmax.f32 %v5469_v53, 0.0 }
 0x5a0   : > { %v5710_v6 = vpack.c.bf16 %v5596_v12, %v5594_v25 }
 0x5a1   : > { %v5180_v16 = vpop.f32.mrb[92].mxu1  ;;  %v5711_v39 = vpack.c.bf16 %v5597_v44, %v5595_v43  ;;  %6742 = vmatpush1.bf16.msra.mxu0 %v12122_v60 }
 0x5a2   : > { %v5470_v35 = vadd.f32 %v14419_v36, %v5180_v16  ;;  %v5182_v20 = vpop.f32.mrb[93].mxu1  ;;  %6743 = vmatprep.subr.bf16.mxu0 %v12127_v59  ;;  %v12133_v59 = vld [vmem:[%s17259_s3 + $0x704] ss:$8 sps:$4 sm:$0xff]  }
 0x5a3   : > { %v5471_v0 = vadd.f32 %v14422_v51, %v5182_v20  ;;  %v5184_v13 = vpop.f32.mrb[94].mxu1  ;;  %6060 = vmatprep.mubr.bf16.mxu0 %v5711_v39  ;;  %7470 = vmatprep.subr.bf16.mxu1 %v12133_v59 }
 0x5a4   : > { %v5472_v49 = vadd.f32 %v14419_v36, %v5184_v13  ;;  %v5186_v42 = vpop.f32.mrb[95].mxu1  ;;  %6061 = vmatmul.mubr.bf16.gmra.mrb[88].mxu0 %v5710_v6  ;;  %v5598_v40 = vmax.f32 %v5470_v35, 0.0 }
 0x5a5   : > { %v5473_v28 = vadd.f32 %v14422_v51, %v5186_v42  ;;  %v5599_v15 = vmax.f32 %v5471_v0, 0.0  ;;  %6744 = vmatpush1.bf16.msra.mxu0 %v12125_v54  ;;  %v12131_v54 = vld [vmem:[%s17259_s3 + $0x700] ss:$8 sps:$4 sm:$0xff]  }
 0x5a6   : > { %v5600_v38 = vmax.f32 %v5472_v49, 0.0  ;;  %7471 = vmatpush1.bf16.msra.mxu1 %v12131_v54 }
 0x5a7   : > { %v5601_v31 = vmax.f32 %v5473_v28, 0.0 }
 0x5a8   : > { %v5712_v1 = vpack.c.bf16 %v5600_v38, %v5598_v40 }
 0x5a9   : > { %v5190_v2 = vpop.f32.mrb[96].mxu1  ;;  %v5713_v55 = vpack.c.bf16 %v5601_v31, %v5599_v15 }
 0x5aa   : > { %v5474_v46 = vadd.f32 %v14419_v36, %v5190_v2  ;;  %v5192_v17 = vpop.f32.mrb[97].mxu1 }
 0x5ab   : > { %v5475_v47 = vadd.f32 %v14422_v51, %v5192_v17  ;;  %v5194_v11 = vpop.f32.mrb[98].mxu1  ;;  %6070 = vmatprep.mubr.bf16.mxu0 %v5713_v55  ;;  %v12128_v55 = vld [vmem:[%s17259_s3 + $0x6d0] ss:$8 sps:$4 sm:$0xff]  }
 0x5ac   : > { %v5476_v21 = vadd.f32 %v14419_v36, %v5194_v11  ;;  %v5196_v45 = vpop.f32.mrb[99].mxu1  ;;  %6071 = vmatmul.mubr.bf16.gmra.mrb[92].mxu0 %v5712_v1  ;;  %v5602_v62 = vmax.f32 %v5474_v46, 0.0  ;;  %v12130_v46 = vld [vmem:[%s17259_s3 + $0x6d4] ss:$8 sps:$4 sm:$0xff]  }
 0x5ad   : > { %v5477_v57 = vadd.f32 %v14422_v51, %v5196_v45  ;;  %v5603_v7 = vmax.f32 %v5475_v47, 0.0  ;;  %6745 = vmatprep.subr.bf16.mxu0 %v12130_v46 }
 0x5ae   : > { %v5604_v22 = vmax.f32 %v5476_v21, 0.0  ;;  %6746 = vmatpush1.bf16.msra.mxu0 %v12128_v55 }
 0x5af   : > { %v5605_v58 = vmax.f32 %v5477_v57, 0.0 }
 0x5b0   : > { %v5714_v41 = vpack.c.bf16 %v5604_v22, %v5602_v62 }
 0x5b1   : > { %v5200_v24 = vpop.f32.mrb[100].mxu1  ;;  %v5715_v23 = vpack.c.bf16 %v5605_v58, %v5603_v7 }
 0x5b2   : > { %v5478_v63 = vadd.f32 %v14419_v36, %v5200_v24  ;;  %v5202_v33 = vpop.f32.mrb[101].mxu1 }
 0x5b3   : > { %v5479_v37 = vadd.f32 %v14422_v51, %v5202_v33  ;;  %v5204_v34 = vpop.f32.mrb[102].mxu1  ;;  %6080 = vmatprep.mubr.bf16.mxu0 %v5715_v23 }
 0x5b4   : > { %v5480_v27 = vadd.f32 %v14419_v36, %v5204_v34  ;;  %v5206_v18 = vpop.f32.mrb[103].mxu1  ;;  %6081 = vmatmul.mubr.bf16.gmra.mrb[96].mxu0 %v5714_v41  ;;  %v5606_v56 = vmax.f32 %v5478_v63, 0.0 }
 0x5b5   : > { %v5481_v10 = vadd.f32 %v14422_v51, %v5206_v18  ;;  %v5607_v26 = vmax.f32 %v5479_v37, 0.0 }
 0x5b6   : > { %v5608_v14 = vmax.f32 %v5480_v27, 0.0 }
 0x5b7   : > { %v5609_v4 = vmax.f32 %v5481_v10, 0.0 }
 0x5b8   : > { %v5716_v9 = vpack.c.bf16 %v5608_v14, %v5606_v56 }
 0x5b9   : > { %v5210_v61 = vpop.f32.mrb[104].mxu1  ;;  %v5717_v30 = vpack.c.bf16 %v5609_v4, %v5607_v26 }
 0x5ba   : > { %v5482_v8 = vadd.f32 %v14419_v36, %v5210_v61  ;;  %v5212_v29 = vpop.f32.mrb[105].mxu1 }
 0x5bb   : > { %v5483_v19 = vadd.f32 %v14422_v51, %v5212_v29  ;;  %v5214_v53 = vpop.f32.mrb[106].mxu1  ;;  %6090 = vmatprep.mubr.bf16.mxu0 %v5717_v30  ;;  %v12134_v29 = vld [vmem:[%s17259_s3 + $0x6e0] ss:$8 sps:$4 sm:$0xff]  }
 0x5bc   : > { %v5484_v25 = vadd.f32 %v14419_v36, %v5214_v53  ;;  %v5216_v12 = vpop.f32.mrb[107].mxu1  ;;  %6091 = vmatmul.mubr.bf16.gmra.mrb[100].mxu0 %v5716_v9  ;;  %v5610_v44 = vmax.f32 %v5482_v8, 0.0 }
 0x5bd   : > { %v5485_v43 = vadd.f32 %v14422_v51, %v5216_v12  ;;  %v5611_v16 = vmax.f32 %v5483_v19, 0.0  ;;  %v12136_v19 = vld [vmem:[%s17259_s3 + $0x6e4] ss:$8 sps:$4 sm:$0xff]  }
 0x5be   : > { %v5612_v6 = vmax.f32 %v5484_v25, 0.0  ;;  %6747 = vmatprep.subr.bf16.mxu0 %v12136_v19 }
 0x5bf   : > { %v5613_v39 = vmax.f32 %v5485_v43, 0.0  ;;  %6748 = vmatpush1.bf16.msra.mxu0 %v12134_v29 }
 0x5c0   : > { %v5718_v35 = vpack.c.bf16 %v5612_v6, %v5610_v44 }
 0x5c1   : > { %v5220_v20 = vpop.f32.mrb[108].mxu1  ;;  %v5719_v0 = vpack.c.bf16 %v5613_v39, %v5611_v16 }
 0x5c2   : > { %v5486_v13 = vadd.f32 %v14419_v36, %v5220_v20  ;;  %v5222_v49 = vpop.f32.mrb[109].mxu1 }
 0x5c3   : > { %v5487_v42 = vadd.f32 %v14422_v51, %v5222_v49  ;;  %v5224_v28 = vpop.f32.mrb[110].mxu1  ;;  %6100 = vmatprep.mubr.bf16.mxu0 %v5719_v0 }
 0x5c4   : > { %v5488_v40 = vadd.f32 %v14419_v36, %v5224_v28  ;;  %v5226_v38 = vpop.f32.mrb[111].mxu1  ;;  %6101 = vmatmul.mubr.bf16.gmra.mrb[104].mxu0 %v5718_v35  ;;  %v5614_v31 = vmax.f32 %v5486_v13, 0.0 }
 0x5c5   : > { %v5489_v15 = vadd.f32 %v14422_v51, %v5226_v38  ;;  %v5615_v60 = vmax.f32 %v5487_v42, 0.0 }
 0x5c6   : > { %v5616_v1 = vmax.f32 %v5488_v40, 0.0 }
 0x5c7   : > { %v5617_v32 = vmax.f32 %v5489_v15, 0.0 }
 0x5c8   : > { %v5720_v2 = vpack.c.bf16 %v5616_v1, %v5614_v31 }
 0x5c9   : > { %v5230_v17 = vpop.f32.mrb[112].mxu1  ;;  %v5721_v47 = vpack.c.bf16 %v5617_v32, %v5615_v60 }
 0x5ca   : > { %v5490_v11 = vadd.f32 %v14419_v36, %v5230_v17  ;;  %v5232_v21 = vpop.f32.mrb[113].mxu1  ;;  %v12137_v17 = vld [vmem:[%s17259_s3 + $0x710] ss:$8 sps:$4 sm:$0xff]  }
 0x5cb   : > { %v5491_v45 = vadd.f32 %v14422_v51, %v5232_v21  ;;  %v5234_v57 = vpop.f32.mrb[114].mxu1  ;;  %6110 = vmatprep.mubr.bf16.mxu0 %v5721_v47  ;;  %v12139_v47 = vld [vmem:[%s17259_s3 + $0x714] ss:$8 sps:$4 sm:$0xff]  }
 0x5cc   : > { %v5492_v62 = vadd.f32 %v14419_v36, %v5234_v57  ;;  %v5236_v22 = vpop.f32.mrb[115].mxu1  ;;  %6111 = vmatmul.mubr.bf16.gmra.mrb[108].mxu0 %v5720_v2  ;;  %v5618_v58 = vmax.f32 %v5490_v11, 0.0  ;;  %7472 = vmatprep.subr.bf16.mxu1 %v12139_v47  ;;  %v12140_v57 = vld [vmem:[%s17259_s3 + $0x6f0] ss:$8 sps:$4 sm:$0xff]  }
 0x5cd   : > { %v5493_v7 = vadd.f32 %v14422_v51, %v5236_v22  ;;  %v5619_v24 = vmax.f32 %v5491_v45, 0.0  ;;  %7473 = vmatpush1.bf16.msra.mxu1 %v12137_v17 }
 0x5ce   : > { %v5620_v41 = vmax.f32 %v5492_v62, 0.0  ;;  %v12142_v62 = vld [vmem:[%s17259_s3 + $0x6f4] ss:$8 sps:$4 sm:$0xff]  }
 0x5cf   : > { %v5621_v23 = vmax.f32 %v5493_v7, 0.0  ;;  %6749 = vmatprep.subr.bf16.mxu0 %v12142_v62  ;;  %v12148_v62 = vld [vmem:[%s17259_s3 + $0x734] ss:$8 sps:$4 sm:$0xff]  }
 0x5d0   : > { %v5722_v63 = vpack.c.bf16 %v5620_v41, %v5618_v58  ;;  %6750 = vmatpush1.bf16.msra.mxu0 %v12140_v57  ;;  %v12146_v57 = vld [vmem:[%s17259_s3 + $0x730] ss:$8 sps:$4 sm:$0xff]  }
 0x5d1   : > { %v5240_v33 = vpop.f32.mrb[116].mxu1  ;;  %v5723_v37 = vpack.c.bf16 %v5621_v23, %v5619_v24 }
 0x5d2   : > { %v5494_v34 = vadd.f32 %v14419_v36, %v5240_v33  ;;  %v5242_v27 = vpop.f32.mrb[117].mxu1 }
 0x5d3   : > { %v5495_v18 = vadd.f32 %v14422_v51, %v5242_v27  ;;  %v5244_v10 = vpop.f32.mrb[118].mxu1  ;;  %6120 = vmatprep.mubr.bf16.mxu0 %v5723_v37 }
 0x5d4   : > { %v5496_v56 = vadd.f32 %v14419_v36, %v5244_v10  ;;  %v5246_v14 = vpop.f32.mrb[119].mxu1  ;;  %6121 = vmatmul.mubr.bf16.gmra.mrb[112].mxu0 %v5722_v63  ;;  %v5622_v4 = vmax.f32 %v5494_v34, 0.0 }
 0x5d5   : > { %v5497_v26 = vadd.f32 %v14422_v51, %v5246_v14  ;;  %v5623_v61 = vmax.f32 %v5495_v18, 0.0 }
 0x5d6   : > { %v5624_v9 = vmax.f32 %v5496_v56, 0.0 }
 0x5d7   : > { %v5625_v30 = vmax.f32 %v5497_v26, 0.0 }
 0x5d8   : > { %v5724_v8 = vpack.c.bf16 %v5624_v9, %v5622_v4 }
 0x5d9   : > { %v5250_v53 = vpop.f32.mrb[120].mxu1  ;;  %v5725_v25 = vpack.c.bf16 %v5625_v30, %v5623_v61 }
 0x5da   : > { %v5498_v12 = vadd.f32 %v14419_v36, %v5250_v53  ;;  %v5252_v43 = vpop.f32.mrb[121].mxu1  ;;  %v12143_v53 = vld [vmem:[%s17259_s3 + $0x720] ss:$8 sps:$4 sm:$0xff]  }
 0x5db   : > { %v5499_v44 = vadd.f32 %v14422_v51, %v5252_v43  ;;  %v5254_v6 = vpop.f32.mrb[122].mxu1  ;;  %6130 = vmatprep.mubr.bf16.mxu0 %v5725_v25  ;;  %v12145_v25 = vld [vmem:[%s17259_s3 + $0x724] ss:$8 sps:$4 sm:$0xff]  }
 0x5dc   : > { %v5500_v16 = vadd.f32 %v14419_v36, %v5254_v6  ;;  %v5256_v39 = vpop.f32.mrb[123].mxu1  ;;  %6131 = vmatmul.mubr.bf16.gmra.mrb[116].mxu0 %v5724_v8  ;;  %v5626_v20 = vmax.f32 %v5498_v12, 0.0  ;;  %7474 = vmatprep.subr.bf16.mxu1 %v12145_v25 }
 0x5dd   : > { %v5501_v35 = vadd.f32 %v14422_v51, %v5256_v39  ;;  %v5627_v13 = vmax.f32 %v5499_v44, 0.0  ;;  %7475 = vmatpush1.bf16.msra.mxu1 %v12143_v53 }
 0x5de   : > { %v5628_v0 = vmax.f32 %v5500_v16, 0.0  ;;  %7476 = vmatprep.subr.bf16.mxu1 %v12148_v62 }
 0x5df   : > { %v5629_v49 = vmax.f32 %v5501_v35, 0.0 }
 0x5e0   : > { %v5726_v42 = vpack.c.bf16 %v5628_v0, %v5626_v20 }
 0x5e1   : > { %v5260_v28 = vpop.f32.mrb[124].mxu1  ;;  %v5727_v40 = vpack.c.bf16 %v5629_v49, %v5627_v13  ;;  %7477 = vmatpush1.bf16.msra.mxu1 %v12146_v57 }
 0x5e2   : > { %v5502_v38 = vadd.f32 %v14419_v36, %v5260_v28  ;;  %v5262_v15 = vpop.f32.mrb[125].mxu1 }
 0x5e3   : > { %v5503_v31 = vadd.f32 %v14422_v51, %v5262_v15  ;;  %v5264_v1 = vpop.f32.mrb[126].mxu1  ;;  %6140 = vmatprep.mubr.bf16.mxu0 %v5727_v40 }
 0x5e4   : > { %v5504_v60 = vadd.f32 %v14419_v36, %v5264_v1  ;;  %v5266_v32 = vpop.f32.mrb[127].mxu1  ;;  %6141 = vmatmul.mubr.bf16.gmra.mrb[120].mxu0 %v5726_v42  ;;  %v5630_v55 = vmax.f32 %v5502_v38, 0.0 }
 0x5e5   : > { %v5505_v2 = vadd.f32 %v14422_v51, %v5266_v32  ;;  %v5631_v11 = vmax.f32 %v5503_v31, 0.0 }
 0x5e6   : > { %v5632_v46 = vmax.f32 %v5504_v60, 0.0 }
 0x5e7   : > { %v5633_v21 = vmax.f32 %v5505_v2, 0.0 }
 0x5e8   : > { %v5728_v45 = vpack.c.bf16 %v5632_v46, %v5630_v55 }
 0x5e9   : > { %v5270_v22 = vpop.f32.mrb[128].mxu1  ;;  %v5729_v7 = vpack.c.bf16 %v5633_v21, %v5631_v11 }
 0x5ea   : > { %v5506_v58 = vadd.f32 %v14419_v36, %v5270_v22  ;;  %v5272_v41 = vpop.f32.mrb[129].mxu1 }
 0x5eb   : > { %v5507_v24 = vadd.f32 %v14422_v51, %v5272_v41  ;;  %v5274_v23 = vpop.f32.mrb[130].mxu1  ;;  %6150 = vmatprep.mubr.bf16.mxu0 %v5729_v7 }
 0x5ec   : > { %v5508_v63 = vadd.f32 %v14419_v36, %v5274_v23  ;;  %v5276_v33 = vpop.f32.mrb[131].mxu1  ;;  %6151 = vmatmul.mubr.bf16.gmra.mrb[124].mxu0 %v5728_v45  ;;  %v5634_v34 = vmax.f32 %v5506_v58, 0.0 }
 0x5ed   : > { %v5509_v37 = vadd.f32 %v14422_v51, %v5276_v33  ;;  %v5635_v18 = vmax.f32 %v5507_v24, 0.0 }
 0x5ee   : > { %v5636_v27 = vmax.f32 %v5508_v63, 0.0 }
 0x5ef   : > { %v5637_v10 = vmax.f32 %v5509_v37, 0.0 }
 0x5f0   : > { %v5730_v56 = vpack.c.bf16 %v5636_v27, %v5634_v34 }
 0x5f1   : > { %v5280_v14 = vpop.f32.mrb[132].mxu1  ;;  %v5731_v26 = vpack.c.bf16 %v5637_v10, %v5635_v18 }
 0x5f2   : > { %v5510_v4 = vadd.f32 %v14419_v36, %v5280_v14  ;;  %v5282_v9 = vpop.f32.mrb[133].mxu1 }
 0x5f3   : > { %v5511_v54 = vadd.f32 %v14422_v51, %v5282_v9  ;;  %v5284_v59 = vpop.f32.mrb[134].mxu1  ;;  %6160 = vmatprep.mubr.bf16.mxu0 %v5731_v26 }
 0x5f4   : > { %v5512_v61 = vadd.f32 %v14419_v36, %v5284_v59  ;;  %v5286_v30 = vpop.f32.mrb[135].mxu1  ;;  %6161 = vmatmul.mubr.bf16.gmra.mrb[128].mxu0 %v5730_v56  ;;  %v5638_v29 = vmax.f32 %v5510_v4, 0.0 }
 0x5f5   : > { %v5513_v8 = vadd.f32 %v14422_v51, %v5286_v30  ;;  %v5639_v12 = vmax.f32 %v5511_v54, 0.0 }
 0x5f6   : > { %v5640_v19 = vmax.f32 %v5512_v61, 0.0 }
 0x5f7   : > { %v5641_v43 = vmax.f32 %v5513_v8, 0.0 }
 0x5f8   : > { %v5732_v44 = vpack.c.bf16 %v5640_v19, %v5638_v29 }
 0x5f9   : > { %v5290_v6 = vpop.f32.mrb[136].mxu1  ;;  %v5733_v16 = vpack.c.bf16 %v5641_v43, %v5639_v12  ;;  %v12149_v43 = vld [vmem:[%s17259_s3 + $0x740] ss:$8 sps:$4 sm:$0xff]  }
 0x5fa   : > { %v5514_v39 = vadd.f32 %v14419_v36, %v5290_v6  ;;  %v5292_v35 = vpop.f32.mrb[137].mxu1 }
 0x5fb   : > { %v5515_v20 = vadd.f32 %v14422_v51, %v5292_v35  ;;  %v5294_v0 = vpop.f32.mrb[138].mxu1  ;;  %6170 = vmatprep.mubr.bf16.mxu0 %v5733_v16 }
 0x5fc   : > { %v5516_v13 = vadd.f32 %v14419_v36, %v5294_v0  ;;  %v5296_v49 = vpop.f32.mrb[139].mxu1  ;;  %6171 = vmatmul.mubr.bf16.gmra.mrb[132].mxu0 %v5732_v44  ;;  %v5642_v28 = vmax.f32 %v5514_v39, 0.0  ;;  %v12151_v44 = vld [vmem:[%s17259_s3 + $0x744] ss:$8 sps:$4 sm:$0xff]  }
 0x5fd   : > { %v5517_v42 = vadd.f32 %v14422_v51, %v5296_v49  ;;  %v5643_v38 = vmax.f32 %v5515_v20, 0.0  ;;  %7478 = vmatprep.subr.bf16.mxu1 %v12151_v44 }
 0x5fe   : > { %v5644_v40 = vmax.f32 %v5516_v13, 0.0  ;;  %7479 = vmatpush1.bf16.msra.mxu1 %v12149_v43 }
 0x5ff   : > { %v5645_v15 = vmax.f32 %v5517_v42, 0.0 }
 0x600   : > { %v5734_v31 = vpack.c.bf16 %v5644_v40, %v5642_v28 }
 0x601   : > { %v5300_v1 = vpop.f32.mrb[140].mxu1  ;;  %v5735_v60 = vpack.c.bf16 %v5645_v15, %v5643_v38 }
 0x602   : > { %v5518_v32 = vadd.f32 %v14419_v36, %v5300_v1  ;;  %v5302_v2 = vpop.f32.mrb[141].mxu1 }
 0x603   : > { %v5519_v55 = vadd.f32 %v14422_v51, %v5302_v2  ;;  %v5304_v46 = vpop.f32.mrb[142].mxu1  ;;  %6180 = vmatprep.mubr.bf16.mxu0 %v5735_v60 }
 0x604   : > { %v5520_v17 = vadd.f32 %v14419_v36, %v5304_v46  ;;  %v5306_v47 = vpop.f32.mrb[143].mxu1  ;;  %6181 = vmatmul.mubr.bf16.gmra.mrb[136].mxu0 %v5734_v31  ;;  %v5646_v21 = vmax.f32 %v5518_v32, 0.0 }
 0x605   : > { %v5521_v11 = vadd.f32 %v14422_v51, %v5306_v47  ;;  %v5647_v22 = vmax.f32 %v5519_v55, 0.0 }
 0x606   : > { %v5648_v45 = vmax.f32 %v5520_v17, 0.0 }
 0x607   : > { %v5649_v7 = vmax.f32 %v5521_v11, 0.0 }
 0x608   : > { %v5736_v58 = vpack.c.bf16 %v5648_v45, %v5646_v21 }
 0x609   : > { %v5310_v41 = vpop.f32.mrb[144].mxu1  ;;  %v5737_v24 = vpack.c.bf16 %v5649_v7, %v5647_v22  ;;  %v12152_v7 = vld [vmem:[%s17259_s3 + $0x750] ss:$8 sps:$4 sm:$0xff]  }
 0x60a   : > { %v5522_v23 = vadd.f32 %v14419_v36, %v5310_v41  ;;  %v5312_v63 = vpop.f32.mrb[145].mxu1 }
 0x60b   : > { %v5523_v33 = vadd.f32 %v14422_v51, %v5312_v63  ;;  %v5314_v37 = vpop.f32.mrb[146].mxu1  ;;  %6190 = vmatprep.mubr.bf16.mxu0 %v5737_v24 }
 0x60c   : > { %v5524_v34 = vadd.f32 %v14419_v36, %v5314_v37  ;;  %v5316_v27 = vpop.f32.mrb[147].mxu1  ;;  %6191 = vmatmul.mubr.bf16.gmra.mrb[140].mxu0 %v5736_v58  ;;  %v5650_v10 = vmax.f32 %v5522_v23, 0.0  ;;  %v12154_v58 = vld [vmem:[%s17259_s3 + $0x754] ss:$8 sps:$4 sm:$0xff]  }
 0x60d   : > { %v5525_v18 = vadd.f32 %v14422_v51, %v5316_v27  ;;  %v5651_v14 = vmax.f32 %v5523_v33, 0.0  ;;  %7480 = vmatprep.subr.bf16.mxu1 %v12154_v58 }
 0x60e   : > { %v5652_v56 = vmax.f32 %v5524_v34, 0.0  ;;  %7481 = vmatpush1.bf16.msra.mxu1 %v12152_v7 }
 0x60f   : > { %v5653_v26 = vmax.f32 %v5525_v18, 0.0 }
 0x610   : > { %v5738_v4 = vpack.c.bf16 %v5652_v56, %v5650_v10 }
 0x611   : > { %v5320_v9 = vpop.f32.mrb[148].mxu1  ;;  %v5739_v54 = vpack.c.bf16 %v5653_v26, %v5651_v14 }
 0x612   : > { %v5526_v59 = vadd.f32 %v14419_v36, %v5320_v9  ;;  %v5322_v61 = vpop.f32.mrb[149].mxu1 }
 0x613   : > { %v5527_v30 = vadd.f32 %v14422_v51, %v5322_v61  ;;  %v5324_v8 = vpop.f32.mrb[150].mxu1  ;;  %6200 = vmatprep.mubr.bf16.mxu0 %v5739_v54 }
 0x614   : > { %v5528_v29 = vadd.f32 %v14419_v36, %v5324_v8  ;;  %v5326_v19 = vpop.f32.mrb[151].mxu1  ;;  %6201 = vmatmul.mubr.bf16.gmra.mrb[144].mxu0 %v5738_v4  ;;  %v5654_v25 = vmax.f32 %v5526_v59, 0.0 }
 0x615   : > { %v5529_v53 = vadd.f32 %v14422_v51, %v5326_v19  ;;  %v5655_v6 = vmax.f32 %v5527_v30, 0.0 }
 0x616   : > { %v5656_v12 = vmax.f32 %v5528_v29, 0.0 }
 0x617   : > { %v5657_v16 = vmax.f32 %v5529_v53, 0.0 }
 0x618   : > { %v5740_v39 = vpack.c.bf16 %v5656_v12, %v5654_v25 }
 0x619   : > { %v5330_v35 = vpop.f32.mrb[152].mxu1  ;;  %v5741_v20 = vpack.c.bf16 %v5657_v16, %v5655_v6  ;;  %v12155_v16 = vld [vmem:[%s17259_s3 + $0x760] ss:$8 sps:$4 sm:$0xff]  }
 0x61a   : > { %v5530_v0 = vadd.f32 %v14419_v36, %v5330_v35  ;;  %v5332_v13 = vpop.f32.mrb[153].mxu1 }
 0x61b   : > { %v5531_v49 = vadd.f32 %v14422_v51, %v5332_v13  ;;  %v5334_v42 = vpop.f32.mrb[154].mxu1  ;;  %6210 = vmatprep.mubr.bf16.mxu0 %v5741_v20 }
 0x61c   : > { %v5532_v28 = vadd.f32 %v14419_v36, %v5334_v42  ;;  %v5336_v40 = vpop.f32.mrb[155].mxu1  ;;  %6211 = vmatmul.mubr.bf16.gmra.mrb[148].mxu0 %v5740_v39  ;;  %v5658_v15 = vmax.f32 %v5530_v0, 0.0  ;;  %v12157_v39 = vld [vmem:[%s17259_s3 + $0x764] ss:$8 sps:$4 sm:$0xff]  }
 0x61d   : > { %v5533_v38 = vadd.f32 %v14422_v51, %v5336_v40  ;;  %v5659_v1 = vmax.f32 %v5531_v49, 0.0  ;;  %7482 = vmatprep.subr.bf16.mxu1 %v12157_v39 }
 0x61e   : > { %v5660_v31 = vmax.f32 %v5532_v28, 0.0  ;;  %7483 = vmatpush1.bf16.msra.mxu1 %v12155_v16 }
 0x61f   : > { %v5661_v60 = vmax.f32 %v5533_v38, 0.0 }
 0x620   : > { %v5742_v32 = vpack.c.bf16 %v5660_v31, %v5658_v15 }
 0x621   : > { %v5340_v2 = vpop.f32.mrb[156].mxu1  ;;  %v5743_v55 = vpack.c.bf16 %v5661_v60, %v5659_v1 }
 0x622   : > { %v5534_v46 = vadd.f32 %v14419_v36, %v5340_v2  ;;  %v5342_v17 = vpop.f32.mrb[157].mxu1 }
 0x623   : > { %v5535_v47 = vadd.f32 %v14422_v51, %v5342_v17  ;;  %v5344_v11 = vpop.f32.mrb[158].mxu1  ;;  %6220 = vmatprep.mubr.bf16.mxu0 %v5743_v55 }
 0x624   : > { %v5536_v21 = vadd.f32 %v14419_v36, %v5344_v11  ;;  %v5346_v45 = vpop.f32.mrb[159].mxu1  ;;  %6221 = vmatmul.mubr.bf16.gmra.mrb[152].mxu0 %v5742_v32  ;;  %v5662_v62 = vmax.f32 %v5534_v46, 0.0  ;;  %v11040_v11 = vld [vmem:[%s17260_s4 + $0x6] ss:$8 sm:$0x3] }
 0x625   : > { %v5537_v57 = vadd.f32 %v14422_v51, %v5346_v45  ;;  %v5663_v41 = vmax.f32 %v5535_v47, 0.0  ;;  %v14687_v58 = vrot.slane %v11040_v11, %v12992_v50 }
 0x626   : > { %v5664_v22 = vmax.f32 %v5536_v21, 0.0 }
 0x627   : > { %v5665_v24 = vmax.f32 %v5537_v57, 0.0 }
 0x628   : > { %v5744_v23 = vpack.c.bf16 %v5664_v22, %v5662_v62 }
 0x629   : > { %v5350_v63 = vpop.f32.mrb[160].mxu1  ;;  %v5745_v33 = vpack.c.bf16 %v5665_v24, %v5663_v41  ;;  %v14691_v24 = vrot.slane %v11040_v11, %v12998_v52 }
 0x62a   : > { %v5538_v37 = vadd.f32 %v14419_v36, %v5350_v63  ;;  %v5352_v34 = vpop.f32.mrb[161].mxu1 }
 0x62b   : > { %v5539_v27 = vadd.f32 %v14422_v51, %v5352_v34  ;;  %v5354_v18 = vpop.f32.mrb[162].mxu1  ;;  %6230 = vmatprep.mubr.bf16.mxu0 %v5745_v33  ;;  %v12158_v33 = vld [vmem:[%s17259_s3 + $0x770] ss:$8 sps:$4 sm:$0xff]  }
 0x62c   : > { %v5540_v10 = vadd.f32 %v14419_v36, %v5354_v18  ;;  %v5356_v56 = vpop.f32.mrb[163].mxu1  ;;  %6231 = vmatmul.mubr.bf16.gmra.mrb[156].mxu0 %v5744_v23  ;;  %v5666_v26 = vmax.f32 %v5538_v37, 0.0  ;;  %v12160_v37 = vld [vmem:[%s17259_s3 + $0x774] ss:$8 sps:$4 sm:$0xff]  }
 0x62d   : > { %v5541_v14 = vadd.f32 %v14422_v51, %v5356_v56  ;;  %v5667_v9 = vmax.f32 %v5539_v27, 0.0  ;;  %7484 = vmatprep.subr.bf16.mxu1 %v12160_v37 }
 0x62e   : > { %v5668_v4 = vmax.f32 %v5540_v10, 0.0  ;;  %7485 = vmatpush1.bf16.msra.mxu1 %v12158_v33 }
 0x62f   : > { %v5669_v54 = vmax.f32 %v5541_v14, 0.0 }
 0x630   : > { %v5746_v59 = vpack.c.bf16 %v5668_v4, %v5666_v26 }
 0x631   : > { %v5360_v61 = vpop.f32.mrb[164].mxu1  ;;  %v5747_v30 = vpack.c.bf16 %v5669_v54, %v5667_v9 }
 0x632   : > { %v5542_v8 = vadd.f32 %v14419_v36, %v5360_v61  ;;  %v5362_v29 = vpop.f32.mrb[165].mxu1 }
 0x633   : > { %v5543_v19 = vadd.f32 %v14422_v51, %v5362_v29  ;;  %v5364_v53 = vpop.f32.mrb[166].mxu1  ;;  %6240 = vmatprep.mubr.bf16.mxu0 %v5747_v30 }
 0x634   : > { %v5544_v25 = vadd.f32 %v14419_v36, %v5364_v53  ;;  %v5366_v12 = vpop.f32.mrb[167].mxu1  ;;  %6241 = vmatmul.mubr.bf16.gmra.mrb[160].mxu0 %v5746_v59  ;;  %v5670_v44 = vmax.f32 %v5542_v8, 0.0 }
 0x635   : > { %v5545_v43 = vadd.f32 %v14422_v51, %v5366_v12  ;;  %v5671_v35 = vmax.f32 %v5543_v19, 0.0 }
 0x636   : > { %v5672_v6 = vmax.f32 %v5544_v25, 0.0 }
 0x637   : > { %v5673_v20 = vmax.f32 %v5545_v43, 0.0 }
 0x638   : > { %v5748_v0 = vpack.c.bf16 %v5672_v6, %v5670_v44 }
 0x639   : > { %v5370_v13 = vpop.f32.mrb[168].mxu1  ;;  %v5749_v49 = vpack.c.bf16 %v5673_v20, %v5671_v35 }
 0x63a   : > { %v5546_v42 = vadd.f32 %v14419_v36, %v5370_v13  ;;  %v5372_v28 = vpop.f32.mrb[169].mxu1 }
 0x63b   : > { %v5547_v40 = vadd.f32 %v14422_v51, %v5372_v28  ;;  %v5374_v38 = vpop.f32.mrb[170].mxu1  ;;  %6250 = vmatprep.mubr.bf16.mxu0 %v5749_v49 }
 0x63c   : > { %v5548_v15 = vadd.f32 %v14419_v36, %v5374_v38  ;;  %v5376_v31 = vpop.f32.mrb[171].mxu1  ;;  %6251 = vmatmul.mubr.bf16.gmra.mrb[164].mxu0 %v5748_v0  ;;  %v5674_v60 = vmax.f32 %v5546_v42, 0.0 }
 0x63d   : > { %v5549_v1 = vadd.f32 %v14422_v51, %v5376_v31  ;;  %v5675_v2 = vmax.f32 %v5547_v40, 0.0 }
 0x63e   : > { %v5676_v32 = vmax.f32 %v5548_v15, 0.0 }
 0x63f   : > { %v5677_v55 = vmax.f32 %v5549_v1, 0.0 }
 0x640   : > { %v5750_v46 = vpack.c.bf16 %v5676_v32, %v5674_v60 }
 0x641   : > { %v5380_v17 = vpop.f32.mrb[172].mxu1  ;;  %v5751_v47 = vpack.c.bf16 %v5677_v55, %v5675_v2 }
 0x642   : > { %v5550_v21 = vadd.f32 %v14419_v36, %v5380_v17  ;;  %v5382_v45 = vpop.f32.mrb[173].mxu1 }
 0x643   : > { %v5551_v57 = vadd.f32 %v14422_v51, %v5382_v45  ;;  %v5384_v62 = vpop.f32.mrb[174].mxu1  ;;  %6260 = vmatprep.mubr.bf16.mxu0 %v5751_v47 }
 0x644   : > { %v5552_v22 = vadd.f32 %v14419_v36, %v5384_v62  ;;  %v5386_v7 = vpop.f32.mrb[175].mxu1  ;;  %6261 = vmatmul.mubr.bf16.gmra.mrb[168].mxu0 %v5750_v46  ;;  %v5678_v23 = vmax.f32 %v5550_v21, 0.0 }
 0x645   : > { %v5553_v41 = vadd.f32 %v14422_v51, %v5386_v7  ;;  %v5679_v34 = vmax.f32 %v5551_v57, 0.0 }
 0x646   : > { %v5680_v63 = vmax.f32 %v5552_v22, 0.0 }
 0x647   : > { %v5681_v27 = vmax.f32 %v5553_v41, 0.0  ;;  %v6002_v18 = vpop.f32.mrb[64].mxu0 }
 0x648   : > { %v5752_v10 = vpack.c.bf16 %v5680_v63, %v5678_v23  ;;  %v6003_v56 = vadd.f32 %v6002_v18, %v14687_v58  ;;  %v6004_v14 = vpop.f32.mrb[65].mxu0 }
 0x649   : > { %v6005_v26 = vadd.f32 %v6004_v14, %v14691_v24  ;;  %v5390_v4 = vpop.f32.mrb[176].mxu1  ;;  %v6006_v9 = vpop.f32.mrb[66].mxu0  ;;  %v5753_v54 = vpack.c.bf16 %v5681_v27, %v5679_v34  ;;  %v12161_v34 = vld [vmem:[%s17259_s3 + $0x780] ss:$8 sps:$4 sm:$0xff]   ;;  %v12163_v27 = vld [vmem:[%s17259_s3 + $0x784] ss:$8 sps:$4 sm:$0xff]  }
 0x64a   : > { %v5554_v59 = vadd.f32 %v14419_v36, %v5390_v4  ;;  %v6007_v61 = vadd.f32 %v6006_v9, %v14687_v58  ;;  %v5392_v30 = vpop.f32.mrb[177].mxu1  ;;  %v6008_v8 = vpop.f32.mrb[67].mxu0  ;;  %v6321_v25 = vmax.f32 %v6003_v56, 0.0  ;;  %7486 = vmatprep.subr.bf16.mxu1 %v12163_v27 }
 0x64b   : > { %v5555_v29 = vadd.f32 %v14422_v51, %v5392_v30  ;;  %v6009_v19 = vadd.f32 %v6008_v8, %v14691_v24  ;;  %v5394_v53 = vpop.f32.mrb[178].mxu1  ;;  %6270 = vmatprep.mubr.bf16.mxu0 %v5753_v54  ;;  %v6322_v6 = vmax.f32 %v6005_v26, 0.0  ;;  %7487 = vmatpush1.bf16.msra.mxu1 %v12161_v34 }
 0x64c   : > { %v6323_v12 = vmax.f32 %v6007_v61, 0.0  ;;  %v5556_v43 = vadd.f32 %v14419_v36, %v5394_v53  ;;  %v5396_v44 = vpop.f32.mrb[179].mxu1  ;;  %6271 = vmatmul.mubr.bf16.gmra.mrb[172].mxu0 %v5752_v10  ;;  %v5682_v35 = vmax.f32 %v5554_v59, 0.0 }
 0x64d   : > { %v6324_v16 = vmax.f32 %v6009_v19, 0.0  ;;  %v5557_v39 = vadd.f32 %v14422_v51, %v5396_v44  ;;  %v5683_v13 = vmax.f32 %v5555_v29, 0.0 }
 0x64e   : > { %v14707_v20 = vpack.c.bf16 %v6323_v12, %v6321_v25  ;;  %v5684_v0 = vmax.f32 %v5556_v43, 0.0 }
 0x64f   : > { %v5685_v49 = vmax.f32 %v5557_v39, 0.0  ;;  %v6012_v42 = vpop.f32.mrb[68].mxu0  ;;  %v14709_v28 = vpack.c.bf16 %v6324_v16, %v6322_v6 }
 0x650   : > { %v5754_v40 = vpack.c.bf16 %v5684_v0, %v5682_v35  ;;  %v6013_v38 = vadd.f32 %v6012_v42, %v14687_v58  ;;  %v6014_v15 = vpop.f32.mrb[69].mxu0 }
 0x651   : > { %v6015_v31 = vadd.f32 %v6014_v15, %v14691_v24  ;;  %v5400_v1 = vpop.f32.mrb[180].mxu1  ;;  %v6016_v60 = vpop.f32.mrb[70].mxu0  ;;  %v5755_v32 = vpack.c.bf16 %v5685_v49, %v5683_v13 }
 0x652   : > { %v5558_v2 = vadd.f32 %v14419_v36, %v5400_v1  ;;  %v6017_v55 = vadd.f32 %v6016_v60, %v14687_v58  ;;  %v5402_v46 = vpop.f32.mrb[181].mxu1  ;;  %v6018_v17 = vpop.f32.mrb[71].mxu0  ;;  %v6325_v45 = vmax.f32 %v6013_v38, 0.0 }
 0x653   : > { %v5559_v47 = vadd.f32 %v14422_v51, %v5402_v46  ;;  %v6019_v11 = vadd.f32 %v6018_v17, %v14691_v24  ;;  %v5404_v21 = vpop.f32.mrb[182].mxu1  ;;  %6280 = vmatprep.mubr.bf16.mxu0 %v5755_v32  ;;  %v6326_v7 = vmax.f32 %v6015_v31, 0.0 }
 0x654   : > { %v6327_v57 = vmax.f32 %v6017_v55, 0.0  ;;  %v5560_v62 = vadd.f32 %v14419_v36, %v5404_v21  ;;  %v5406_v22 = vpop.f32.mrb[183].mxu1  ;;  %6281 = vmatmul.mubr.bf16.gmra.mrb[176].mxu0 %v5754_v40  ;;  %v5686_v63 = vmax.f32 %v5558_v2, 0.0 }
 0x655   : > { %v6328_v41 = vmax.f32 %v6019_v11, 0.0  ;;  %v5561_v23 = vadd.f32 %v14422_v51, %v5406_v22  ;;  %v5687_v18 = vmax.f32 %v5559_v47, 0.0 }
 0x656   : > { %v14719_v33 = vpack.c.bf16 %v6327_v57, %v6325_v45  ;;  %v5688_v37 = vmax.f32 %v5560_v62, 0.0 }
 0x657   : > { %v5689_v10 = vmax.f32 %v5561_v23, 0.0  ;;  %v6022_v56 = vpop.f32.mrb[72].mxu0  ;;  %v14727_v14 = vpack.c.bf16 %v6328_v41, %v6326_v7 }
 0x658   : > { %v5756_v26 = vpack.c.bf16 %v5688_v37, %v5686_v63  ;;  %v6023_v4 = vadd.f32 %v6022_v56, %v14687_v58  ;;  %v6024_v9 = vpop.f32.mrb[73].mxu0 }
 0x659   : > { %v6025_v54 = vadd.f32 %v6024_v9, %v14691_v24  ;;  %v5410_v59 = vpop.f32.mrb[184].mxu1  ;;  %v6026_v61 = vpop.f32.mrb[74].mxu0  ;;  %v5757_v30 = vpack.c.bf16 %v5689_v10, %v5687_v18  ;;  %v12166_v9 = vld [vmem:[%s17259_s3 + $0x794] ss:$8 sps:$4 sm:$0xff]  }
 0x65a   : > { %v5562_v8 = vadd.f32 %v14419_v36, %v5410_v59  ;;  %v6027_v29 = vadd.f32 %v6026_v61, %v14687_v58  ;;  %v5412_v19 = vpop.f32.mrb[185].mxu1  ;;  %v6028_v53 = vpop.f32.mrb[75].mxu0  ;;  %v6329_v44 = vmax.f32 %v6023_v4, 0.0  ;;  %v12164_v4 = vld [vmem:[%s17259_s3 + $0x790] ss:$8 sps:$4 sm:$0xff]   ;;  %7488 = vmatprep.subr.bf16.mxu1 %v12166_v9 }
 0x65b   : > { %v5563_v25 = vadd.f32 %v14422_v51, %v5412_v19  ;;  %v6029_v12 = vadd.f32 %v6028_v53, %v14691_v24  ;;  %v5414_v43 = vpop.f32.mrb[186].mxu1  ;;  %6290 = vmatprep.mubr.bf16.mxu0 %v5757_v30  ;;  %v6330_v35 = vmax.f32 %v6025_v54, 0.0  ;;  %7489 = vmatpush1.bf16.msra.mxu1 %v12164_v4 }
 0x65c   : > { %v6331_v6 = vmax.f32 %v6027_v29, 0.0  ;;  %v5564_v16 = vadd.f32 %v14419_v36, %v5414_v43  ;;  %v5416_v39 = vpop.f32.mrb[187].mxu1  ;;  %6291 = vmatmul.mubr.bf16.gmra.mrb[180].mxu0 %v5756_v26  ;;  %v5690_v49 = vmax.f32 %v5562_v8, 0.0 }
 0x65d   : > { %v6332_v0 = vmax.f32 %v6029_v12, 0.0  ;;  %v5565_v13 = vadd.f32 %v14422_v51, %v5416_v39  ;;  %v5691_v38 = vmax.f32 %v5563_v25, 0.0 }
 0x65e   : > { %v14737_v42 = vpack.c.bf16 %v6331_v6, %v6329_v44  ;;  %v5692_v40 = vmax.f32 %v5564_v16, 0.0 }
 0x65f   : > { %v5693_v15 = vmax.f32 %v5565_v13, 0.0  ;;  %v6032_v31 = vpop.f32.mrb[76].mxu0  ;;  %v14739_v1 = vpack.c.bf16 %v6332_v0, %v6330_v35 }
 0x660   : > { %v5758_v60 = vpack.c.bf16 %v5692_v40, %v5690_v49  ;;  %v6033_v32 = vadd.f32 %v6032_v31, %v14687_v58  ;;  %v6034_v2 = vpop.f32.mrb[77].mxu0 }
 0x661   : > { %v6035_v55 = vadd.f32 %v6034_v2, %v14691_v24  ;;  %v5420_v46 = vpop.f32.mrb[188].mxu1  ;;  %v6036_v17 = vpop.f32.mrb[78].mxu0  ;;  %v5759_v47 = vpack.c.bf16 %v5693_v15, %v5691_v38 }
 0x662   : > { %v5566_v11 = vadd.f32 %v14419_v36, %v5420_v46  ;;  %v6037_v21 = vadd.f32 %v6036_v17, %v14687_v58  ;;  %v5422_v45 = vpop.f32.mrb[189].mxu1  ;;  %v6038_v57 = vpop.f32.mrb[79].mxu0  ;;  %v6333_v41 = vmax.f32 %v6033_v32, 0.0 }
 0x663   : > { %v5567_v62 = vadd.f32 %v14422_v51, %v5422_v45  ;;  %v6039_v22 = vadd.f32 %v6038_v57, %v14691_v24  ;;  %v5424_v7 = vpop.f32.mrb[190].mxu1  ;;  %6300 = vmatprep.mubr.bf16.mxu0 %v5759_v47  ;;  %v6334_v34 = vmax.f32 %v6035_v55, 0.0  ;;  %v12167_v47 = vld [vmem:[%s17259_s3 + $0x7a0] ss:$8 sps:$4 sm:$0xff]  }
 0x664   : > { %v6335_v23 = vmax.f32 %v6037_v21, 0.0  ;;  %v5568_v63 = vadd.f32 %v14419_v36, %v5424_v7  ;;  %v5426_v37 = vpop.f32.mrb[191].mxu1  ;;  %6301 = vmatmul.mubr.bf16.gmra.mrb[184].mxu0 %v5758_v60  ;;  %v5694_v10 = vmax.f32 %v5566_v11, 0.0  ;;  %v12169_v11 = vld [vmem:[%s17259_s3 + $0x7a4] ss:$8 sps:$4 sm:$0xff]  }
 0x665   : > { %v6336_v27 = vmax.f32 %v6039_v22, 0.0  ;;  %v5569_v18 = vadd.f32 %v14422_v51, %v5426_v37  ;;  %v5695_v54 = vmax.f32 %v5567_v62, 0.0  ;;  %7490 = vmatprep.subr.bf16.mxu1 %v12169_v11 }
 0x666   : > { %v14749_v56 = vpack.c.bf16 %v6335_v23, %v6333_v41  ;;  %v5696_v26 = vmax.f32 %v5568_v63, 0.0  ;;  %7491 = vmatpush1.bf16.msra.mxu1 %v12167_v47 }
 0x667   : > { %v5697_v36 = vmax.f32 %v5569_v18, 0.0  ;;  %v6042_v59 = vpop.f32.mrb[80].mxu0  ;;  %v14757_v61 = vpack.c.bf16 %v6336_v27, %v6334_v34 }
 0x668   : > { %v5760_v30 = vpack.c.bf16 %v5696_v26, %v5694_v10  ;;  %v6043_v51 = vadd.f32 %v6042_v59, %v14687_v58  ;;  %v6044_v8 = vpop.f32.mrb[81].mxu0 }
 0x669   : > { %v6045_v29 = vadd.f32 %v6044_v8, %v14691_v24  ;;  %v6046_v19 = vpop.f32.mrb[82].mxu0  ;;  %v5761_v53 = vpack.c.bf16 %v5697_v36, %v5695_v54 }
 0x66a   : > { %v6047_v25 = vadd.f32 %v6046_v19, %v14687_v58  ;;  %v6048_v12 = vpop.f32.mrb[83].mxu0  ;;  %v6337_v44 = vmax.f32 %v6043_v51, 0.0  ;;  %v12170_v19 = vld [vmem:[%s17259_s3 + $0x7b0] ss:$8 sps:$4 sm:$0xff]  }
 0x66b   : > { %v6049_v43 = vadd.f32 %v6048_v12, %v14691_v24  ;;  %6310 = vmatprep.mubr.bf16.mxu0 %v5761_v53  ;;  %v6338_v16 = vmax.f32 %v6045_v29, 0.0  ;;  %v12172_v53 = vld [vmem:[%s17259_s3 + $0x7b4] ss:$8 sps:$4 sm:$0xff]  }
 0x66c   : > { %v6339_v6 = vmax.f32 %v6047_v25, 0.0  ;;  %6311 = vmatmul.mubr.bf16.gmra.mrb[188].mxu0 %v5760_v30  ;;  %7492 = vmatprep.subr.bf16.mxu1 %v12172_v53 }
 0x66d   : > { %v6340_v39 = vmax.f32 %v6049_v43, 0.0  ;;  %6751 = vmatprep.mubr.bf16.mxu0 %v14709_v28  ;;  %7493 = vmatpush1.bf16.msra.mxu1 %v12170_v19 }
 0x66e   : > { %v14764_v35 = vpack.c.bf16 %v6339_v6, %v6337_v44 }
 0x66f   : > { %v6052_v0 = vpop.f32.mrb[84].mxu0  ;;  %v14766_v13 = vpack.c.bf16 %v6340_v39, %v6338_v16 }
 0x670   : > { %v6053_v49 = vadd.f32 %v6052_v0, %v14687_v58  ;;  %v6054_v40 = vpop.f32.mrb[85].mxu0 }
 0x671   : > { %v6055_v38 = vadd.f32 %v6054_v40, %v14691_v24  ;;  %v6056_v15 = vpop.f32.mrb[86].mxu0 }
 0x672   : > { %v6057_v31 = vadd.f32 %v6056_v15, %v14687_v58  ;;  %v6058_v60 = vpop.f32.mrb[87].mxu0  ;;  %v6341_v2 = vmax.f32 %v6053_v49, 0.0 }
 0x673   : > { %v6059_v32 = vadd.f32 %v6058_v60, %v14691_v24  ;;  %v6342_v28 = vmax.f32 %v6055_v38, 0.0 }
 0x674   : > { %v6343_v55 = vmax.f32 %v6057_v31, 0.0  ;;  %6752 = vmatmul.mubr.bf16.vlgmr.msra.gmra.mrb[192].mxu0 %v14707_v20 }
 0x675   : > { %v6344_v46 = vmax.f32 %v6059_v32, 0.0  ;;  %6761 = vmatprep.mubr.bf16.mxu0 %v14727_v14 }
 0x676   : > { %v14774_v17 = vpack.c.bf16 %v6343_v55, %v6341_v2 }
 0x677   : > { %v6062_v21 = vpop.f32.mrb[88].mxu0  ;;  %v14782_v45 = vpack.c.bf16 %v6344_v46, %v6342_v28 }
 0x678   : > { %v6063_v57 = vadd.f32 %v6062_v21, %v14687_v58  ;;  %v6064_v20 = vpop.f32.mrb[89].mxu0 }
 0x679   : > { %v6065_v62 = vadd.f32 %v6064_v20, %v14691_v24  ;;  %v6066_v14 = vpop.f32.mrb[90].mxu0 }
 0x67a   : > { %v6067_v22 = vadd.f32 %v6066_v14, %v14687_v58  ;;  %v6068_v7 = vpop.f32.mrb[91].mxu0  ;;  %v6345_v23 = vmax.f32 %v6063_v57, 0.0  ;;  %v12175_v14 = vld [vmem:[%s17259_s3 + $0x7c4] ss:$8 sps:$4 sm:$0xff]  }
 0x67b   : > { %v6069_v41 = vadd.f32 %v6068_v7, %v14691_v24  ;;  %v6346_v37 = vmax.f32 %v6065_v62, 0.0  ;;  %v12173_v62 = vld [vmem:[%s17259_s3 + $0x7c0] ss:$8 sps:$4 sm:$0xff]   ;;  %7494 = vmatprep.subr.bf16.mxu1 %v12175_v14 }
 0x67c   : > { %v6347_v63 = vmax.f32 %v6067_v22, 0.0  ;;  %6762 = vmatmul.mubr.bf16.gmra.mrb[196].mxu0 %v14719_v33  ;;  %7495 = vmatpush1.bf16.msra.mxu1 %v12173_v62 }
 0x67d   : > { %v6348_v34 = vmax.f32 %v6069_v41, 0.0  ;;  %6771 = vmatprep.mubr.bf16.mxu0 %v14739_v1 }
 0x67e   : > { %v14790_v27 = vpack.c.bf16 %v6347_v63, %v6345_v23 }
 0x67f   : > { %v6072_v18 = vpop.f32.mrb[92].mxu0  ;;  %v14792_v10 = vpack.c.bf16 %v6348_v34, %v6346_v37 }
 0x680   : > { %v6073_v26 = vadd.f32 %v6072_v18, %v14687_v58  ;;  %v6074_v4 = vpop.f32.mrb[93].mxu0 }
 0x681   : > { %v6075_v9 = vadd.f32 %v6074_v4, %v14691_v24  ;;  %v6076_v54 = vpop.f32.mrb[94].mxu0 }
 0x682   : > { %v6077_v36 = vadd.f32 %v6076_v54, %v14687_v58  ;;  %v6078_v59 = vpop.f32.mrb[95].mxu0  ;;  %v6349_v30 = vmax.f32 %v6073_v26, 0.0 }
 0x683   : > { %v6079_v33 = vadd.f32 %v6078_v59, %v14691_v24  ;;  %v6350_v1 = vmax.f32 %v6075_v9, 0.0 }
 0x684   : > { %v6351_v51 = vmax.f32 %v6077_v36, 0.0  ;;  %6772 = vmatmul.mubr.bf16.gmra.mrb[200].mxu0 %v14737_v42 }
 0x685   : > { %v6352_v8 = vmax.f32 %v6079_v33, 0.0  ;;  %6781 = vmatprep.mubr.bf16.mxu0 %v14757_v61 }
 0x686   : > { %v14800_v29 = vpack.c.bf16 %v6351_v51, %v6349_v30 }
 0x687   : > { %v6082_v25 = vpop.f32.mrb[96].mxu0  ;;  %v14808_v12 = vpack.c.bf16 %v6352_v8, %v6350_v1 }
 0x688   : > { %v6083_v43 = vadd.f32 %v6082_v25, %v14687_v58  ;;  %v6084_v42 = vpop.f32.mrb[97].mxu0 }
 0x689   : > { %v6085_v44 = vadd.f32 %v6084_v42, %v14691_v24  ;;  %v6086_v61 = vpop.f32.mrb[98].mxu0 }
 0x68a   : > { %v6087_v6 = vadd.f32 %v6086_v61, %v14687_v58  ;;  %v6088_v16 = vpop.f32.mrb[99].mxu0  ;;  %v6353_v0 = vmax.f32 %v6083_v43, 0.0  ;;  %v12178_v61 = vld [vmem:[%s17259_s3 + $0x7d4] ss:$8 sps:$4 sm:$0xff]  }
 0x68b   : > { %v6089_v39 = vadd.f32 %v6088_v16, %v14691_v24  ;;  %v6354_v40 = vmax.f32 %v6085_v44, 0.0  ;;  %v12176_v44 = vld [vmem:[%s17259_s3 + $0x7d0] ss:$8 sps:$4 sm:$0xff]   ;;  %7496 = vmatprep.subr.bf16.mxu1 %v12178_v61 }
 0x68c   : > { %v6355_v49 = vmax.f32 %v6087_v6, 0.0  ;;  %6782 = vmatmul.mubr.bf16.gmra.mrb[204].mxu0 %v14749_v56  ;;  %7497 = vmatpush1.bf16.msra.mxu1 %v12176_v44 }
 0x68d   : > { %v6356_v38 = vmax.f32 %v6089_v39, 0.0  ;;  %6791 = vmatprep.mubr.bf16.mxu0 %v14766_v13 }
 0x68e   : > { %v14816_v15 = vpack.c.bf16 %v6355_v49, %v6353_v0 }
 0x68f   : > { %v6092_v31 = vpop.f32.mrb[100].mxu0  ;;  %v14818_v60 = vpack.c.bf16 %v6356_v38, %v6354_v40 }
 0x690   : > { %v6093_v32 = vadd.f32 %v6092_v31, %v14687_v58  ;;  %v6094_v2 = vpop.f32.mrb[101].mxu0 }
 0x691   : > { %v6095_v55 = vadd.f32 %v6094_v2, %v14691_v24  ;;  %v6096_v28 = vpop.f32.mrb[102].mxu0 }
 0x692   : > { %v6097_v46 = vadd.f32 %v6096_v28, %v14687_v58  ;;  %v6098_v47 = vpop.f32.mrb[103].mxu0  ;;  %v6357_v11 = vmax.f32 %v6093_v32, 0.0 }
 0x693   : > { %v6099_v56 = vadd.f32 %v6098_v47, %v14691_v24  ;;  %v6358_v13 = vmax.f32 %v6095_v55, 0.0 }
 0x694   : > { %v6359_v21 = vmax.f32 %v6097_v46, 0.0  ;;  %6792 = vmatmul.mubr.bf16.gmra.mrb[208].mxu0 %v14764_v35 }
 0x695   : > { %v6360_v57 = vmax.f32 %v6099_v56, 0.0  ;;  %6801 = vmatprep.mubr.bf16.mxu0 %v14782_v45 }
 0x696   : > { %v14826_v20 = vpack.c.bf16 %v6359_v21, %v6357_v11 }
 0x697   : > { %v6102_v22 = vpop.f32.mrb[104].mxu0  ;;  %v14834_v7 = vpack.c.bf16 %v6360_v57, %v6358_v13 }
 0x698   : > { %v6103_v41 = vadd.f32 %v6102_v22, %v14687_v58  ;;  %v6104_v35 = vpop.f32.mrb[105].mxu0 }
 0x699   : > { %v6105_v23 = vadd.f32 %v6104_v35, %v14691_v24  ;;  %v6106_v45 = vpop.f32.mrb[106].mxu0 }
 0x69a   : > { %v6107_v63 = vadd.f32 %v6106_v45, %v14687_v58  ;;  %v6108_v37 = vpop.f32.mrb[107].mxu0  ;;  %v6361_v18 = vmax.f32 %v6103_v41, 0.0  ;;  %v12181_v45 = vld [vmem:[%s17259_s3 + $0x7e4] ss:$8 sps:$4 sm:$0xff]  }
 0x69b   : > { %v6109_v34 = vadd.f32 %v6108_v37, %v14691_v24  ;;  %v6362_v4 = vmax.f32 %v6105_v23, 0.0  ;;  %v12179_v23 = vld [vmem:[%s17259_s3 + $0x7e0] ss:$8 sps:$4 sm:$0xff]   ;;  %7498 = vmatprep.subr.bf16.mxu1 %v12181_v45 }
 0x69c   : > { %v6363_v26 = vmax.f32 %v6107_v63, 0.0  ;;  %6802 = vmatmul.mubr.bf16.gmra.mrb[212].mxu0 %v14774_v17  ;;  %7499 = vmatpush1.bf16.msra.mxu1 %v12179_v23 }
 0x69d   : > { %v6364_v9 = vmax.f32 %v6109_v34, 0.0  ;;  %6811 = vmatprep.mubr.bf16.mxu0 %v14792_v10 }
 0x69e   : > { %v14842_v54 = vpack.c.bf16 %v6363_v26, %v6361_v18 }
 0x69f   : > { %v6112_v36 = vpop.f32.mrb[108].mxu0  ;;  %v14844_v59 = vpack.c.bf16 %v6364_v9, %v6362_v4 }
 0x6a0   : > { %v6113_v33 = vadd.f32 %v6112_v36, %v14687_v58  ;;  %v6114_v30 = vpop.f32.mrb[109].mxu0 }
 0x6a1   : > { %v6115_v51 = vadd.f32 %v6114_v30, %v14691_v24  ;;  %v6116_v1 = vpop.f32.mrb[110].mxu0 }
 0x6a2   : > { %v6117_v8 = vadd.f32 %v6116_v1, %v14687_v58  ;;  %v6118_v19 = vpop.f32.mrb[111].mxu0  ;;  %v6365_v53 = vmax.f32 %v6113_v33, 0.0 }
 0x6a3   : > { %v6119_v17 = vadd.f32 %v6118_v19, %v14691_v24  ;;  %v6366_v10 = vmax.f32 %v6115_v51, 0.0 }
 0x6a4   : > { %v6367_v25 = vmax.f32 %v6117_v8, 0.0  ;;  %6812 = vmatmul.mubr.bf16.gmra.mrb[216].mxu0 %v14790_v27 }
 0x6a5   : > { %v6368_v43 = vmax.f32 %v6119_v17, 0.0  ;;  %6821 = vmatprep.mubr.bf16.mxu0 %v14808_v12 }
 0x6a6   : > { %v14852_v42 = vpack.c.bf16 %v6367_v25, %v6365_v53 }
 0x6a7   : > { %v6122_v6 = vpop.f32.mrb[112].mxu0  ;;  %v14860_v16 = vpack.c.bf16 %v6368_v43, %v6366_v10 }
 0x6a8   : > { %v6123_v39 = vadd.f32 %v6122_v6, %v14687_v58  ;;  %v6124_v27 = vpop.f32.mrb[113].mxu0 }
 0x6a9   : > { %v6125_v0 = vadd.f32 %v6124_v27, %v14691_v24  ;;  %v6126_v12 = vpop.f32.mrb[114].mxu0 }
 0x6aa   : > { %v6127_v49 = vadd.f32 %v6126_v12, %v14687_v58  ;;  %v6128_v40 = vpop.f32.mrb[115].mxu0  ;;  %v6369_v31 = vmax.f32 %v6123_v39, 0.0  ;;  %v12184_v12 = vld [vmem:[%s17259_s3 + $0x7f4] ss:$8 sps:$4 sm:$0xff]  }
 0x6ab   : > { %v6129_v38 = vadd.f32 %v6128_v40, %v14691_v24  ;;  %v6370_v2 = vmax.f32 %v6125_v0, 0.0  ;;  %v12182_v0 = vld [vmem:[%s17259_s3 + $0x7f0] ss:$8 sps:$4 sm:$0xff]   ;;  %7500 = vmatprep.subr.bf16.mxu1 %v12184_v12 }
 0x6ac   : > { %v6371_v32 = vmax.f32 %v6127_v49, 0.0  ;;  %6822 = vmatmul.mubr.bf16.gmra.mrb[220].mxu0 %v14800_v29  ;;  %7501 = vmatpush1.bf16.msra.mxu1 %v12182_v0 }
 0x6ad   : > { %v6372_v55 = vmax.f32 %v6129_v38, 0.0  ;;  %6831 = vmatprep.mubr.bf16.mxu0 %v14818_v60  ;;  %8647 = vmatprep.subr.bf16.mxu1 %v17269_v5 }
 0x6ae   : > { %v14868_v28 = vpack.c.bf16 %v6371_v32, %v6369_v31 }
 0x6af   : > { %v6132_v46 = vpop.f32.mrb[116].mxu0  ;;  %v14870_v47 = vpack.c.bf16 %v6372_v55, %v6370_v2 }
 0x6b0   : > { %v6133_v56 = vadd.f32 %v6132_v46, %v14687_v58  ;;  %v6134_v11 = vpop.f32.mrb[117].mxu0 }
 0x6b1   : > { %v6135_v21 = vadd.f32 %v6134_v11, %v14691_v24  ;;  %v6136_v13 = vpop.f32.mrb[118].mxu0 }
 0x6b2   : > { %v6137_v57 = vadd.f32 %v6136_v13, %v14687_v58  ;;  %v6138_v62 = vpop.f32.mrb[119].mxu0  ;;  %v6373_v14 = vmax.f32 %v6133_v56, 0.0 }
 0x6b3   : > { %v6139_v29 = vadd.f32 %v6138_v62, %v14691_v24  ;;  %v6374_v60 = vmax.f32 %v6135_v21, 0.0 }
 0x6b4   : > { %v6375_v22 = vmax.f32 %v6137_v57, 0.0  ;;  %6832 = vmatmul.mubr.bf16.gmra.mrb[224].mxu0 %v14816_v15 }
 0x6b5   : > { %v6376_v41 = vmax.f32 %v6139_v29, 0.0  ;;  %6841 = vmatprep.mubr.bf16.mxu0 %v14834_v7 }
 0x6b6   : > { %v14878_v35 = vpack.c.bf16 %v6375_v22, %v6373_v14 }
 0x6b7   : > { %v6142_v63 = vpop.f32.mrb[120].mxu0  ;;  %v14886_v37 = vpack.c.bf16 %v6376_v41, %v6374_v60 }
 0x6b8   : > { %v6143_v34 = vadd.f32 %v6142_v63, %v14687_v58  ;;  %v6144_v15 = vpop.f32.mrb[121].mxu0 }
 0x6b9   : > { %v6145_v18 = vadd.f32 %v6144_v15, %v14691_v24  ;;  %v6146_v7 = vpop.f32.mrb[122].mxu0 }
 0x6ba   : > { %v6147_v26 = vadd.f32 %v6146_v7, %v14687_v58  ;;  %v6148_v4 = vpop.f32.mrb[123].mxu0  ;;  %v6377_v36 = vmax.f32 %v6143_v34, 0.0 }
 0x6bb   : > { %v6149_v9 = vadd.f32 %v6148_v4, %v14691_v24  ;;  %v6378_v30 = vmax.f32 %v6145_v18, 0.0 }
 0x6bc   : > { %v6379_v33 = vmax.f32 %v6147_v26, 0.0  ;;  %6842 = vmatmul.mubr.bf16.gmra.mrb[228].mxu0 %v14826_v20 }
 0x6bd   : > { %v6380_v51 = vmax.f32 %v6149_v9, 0.0  ;;  %6851 = vmatprep.mubr.bf16.mxu0 %v14844_v59 }
 0x6be   : > { %v14894_v1 = vpack.c.bf16 %v6379_v33, %v6377_v36 }
 0x6bf   : > { %v6152_v8 = vpop.f32.mrb[124].mxu0  ;;  %v14896_v19 = vpack.c.bf16 %v6380_v51, %v6378_v30 }
 0x6c0   : > { %v6153_v17 = vadd.f32 %v6152_v8, %v14687_v58  ;;  %v6154_v53 = vpop.f32.mrb[125].mxu0 }
 0x6c1   : > { %v6155_v25 = vadd.f32 %v6154_v53, %v14691_v24  ;;  %v6156_v10 = vpop.f32.mrb[126].mxu0 }
 0x6c2   : > { %v6157_v43 = vadd.f32 %v6156_v10, %v14687_v58  ;;  %v6158_v44 = vpop.f32.mrb[127].mxu0  ;;  %v6381_v61 = vmax.f32 %v6153_v17, 0.0 }
 0x6c3   : > { %v6159_v20 = vadd.f32 %v6158_v44, %v14691_v24  ;;  %v6382_v59 = vmax.f32 %v6155_v25, 0.0 }
 0x6c4   : > { %v6383_v6 = vmax.f32 %v6157_v43, 0.0  ;;  %6852 = vmatmul.mubr.bf16.gmra.mrb[232].mxu0 %v14842_v54 }
 0x6c5   : > { %v6384_v39 = vmax.f32 %v6159_v20, 0.0  ;;  %6861 = vmatprep.mubr.bf16.mxu0 %v14860_v16 }
 0x6c6   : > { %v14904_v27 = vpack.c.bf16 %v6383_v6, %v6381_v61 }
 0x6c7   : > { %v6162_v49 = vpop.f32.mrb[128].mxu0  ;;  %v14912_v40 = vpack.c.bf16 %v6384_v39, %v6382_v59 }
 0x6c8   : > { %v6163_v38 = vadd.f32 %v6162_v49, %v14687_v58  ;;  %v6164_v54 = vpop.f32.mrb[129].mxu0 }
 0x6c9   : > { %v6165_v31 = vadd.f32 %v6164_v54, %v14691_v24  ;;  %v6166_v16 = vpop.f32.mrb[130].mxu0 }
 0x6ca   : > { %v6167_v32 = vadd.f32 %v6166_v16, %v14687_v58  ;;  %v6168_v2 = vpop.f32.mrb[131].mxu0  ;;  %v6385_v46 = vmax.f32 %v6163_v38, 0.0 }
 0x6cb   : > { %v6169_v55 = vadd.f32 %v6168_v2, %v14691_v24  ;;  %v6386_v11 = vmax.f32 %v6165_v31, 0.0 }
 0x6cc   : > { %v6387_v56 = vmax.f32 %v6167_v32, 0.0  ;;  %6862 = vmatmul.mubr.bf16.gmra.mrb[236].mxu0 %v14852_v42 }
 0x6cd   : > { %v6388_v21 = vmax.f32 %v6169_v55, 0.0  ;;  %6871 = vmatprep.mubr.bf16.mxu0 %v14870_v47 }
 0x6ce   : > { %v14921_v13 = vpack.c.bf16 %v6387_v56, %v6385_v46 }
 0x6cf   : > { %v6172_v57 = vpop.f32.mrb[132].mxu0  ;;  %v6482_v62 = vpack.c.bf16 %v6388_v21, %v6386_v11 }
 0x6d0   : > { %v6173_v29 = vadd.f32 %v6172_v57, %v14687_v58  ;;  %v6174_v14 = vpop.f32.mrb[133].mxu0 }
 0x6d1   : > { %v6175_v22 = vadd.f32 %v6174_v14, %v14691_v24  ;;  %v6176_v60 = vpop.f32.mrb[134].mxu0 }
 0x6d2   : > { %v6177_v41 = vadd.f32 %v6176_v60, %v14687_v58  ;;  %v6178_v23 = vpop.f32.mrb[135].mxu0  ;;  %v6389_v42 = vmax.f32 %v6173_v29, 0.0 }
 0x6d3   : > { %v6179_v45 = vadd.f32 %v6178_v23, %v14691_v24  ;;  %v6390_v47 = vmax.f32 %v6175_v22, 0.0 }
 0x6d4   : > { %v6391_v63 = vmax.f32 %v6177_v41, 0.0  ;;  %6872 = vmatmul.mubr.bf16.gmra.mrb[240].mxu0 %v14868_v28 }
 0x6d5   : > { %v6392_v34 = vmax.f32 %v6179_v45, 0.0  ;;  %6881 = vmatprep.mubr.bf16.mxu0 %v14886_v37 }
 0x6d6   : > { %v14929_v15 = vpack.c.bf16 %v6391_v63, %v6389_v42 }
 0x6d7   : > { %v6182_v18 = vpop.f32.mrb[136].mxu0  ;;  %v6484_v7 = vpack.c.bf16 %v6392_v34, %v6390_v47 }
 0x6d8   : > { %v6183_v26 = vadd.f32 %v6182_v18, %v14687_v58  ;;  %v6184_v4 = vpop.f32.mrb[137].mxu0 }
 0x6d9   : > { %v6185_v9 = vadd.f32 %v6184_v4, %v14691_v24  ;;  %v6186_v36 = vpop.f32.mrb[138].mxu0 }
 0x6da   : > { %v6187_v33 = vadd.f32 %v6186_v36, %v14687_v58  ;;  %v6188_v30 = vpop.f32.mrb[139].mxu0  ;;  %v6393_v28 = vmax.f32 %v6183_v26, 0.0 }
 0x6db   : > { %v6189_v51 = vadd.f32 %v6188_v30, %v14691_v24  ;;  %v6394_v37 = vmax.f32 %v6185_v9, 0.0 }
 0x6dc   : > { %v6395_v8 = vmax.f32 %v6187_v33, 0.0  ;;  %6882 = vmatmul.mubr.bf16.gmra.mrb[244].mxu0 %v14878_v35 }
 0x6dd   : > { %v6396_v17 = vmax.f32 %v6189_v51, 0.0  ;;  %6891 = vmatprep.mubr.bf16.mxu0 %v14896_v19 }
 0x6de   : > { %v14937_v53 = vpack.c.bf16 %v6395_v8, %v6393_v28 }
 0x6df   : > { %v6192_v25 = vpop.f32.mrb[140].mxu0  ;;  %v6486_v10 = vpack.c.bf16 %v6396_v17, %v6394_v37 }
 0x6e0   : > { %v6193_v43 = vadd.f32 %v6192_v25, %v14687_v58  ;;  %v6194_v44 = vpop.f32.mrb[141].mxu0 }
 0x6e1   : > { %v6195_v20 = vadd.f32 %v6194_v44, %v14691_v24  ;;  %v6196_v61 = vpop.f32.mrb[142].mxu0 }
 0x6e2   : > { %v6197_v6 = vadd.f32 %v6196_v61, %v14687_v58  ;;  %v6198_v59 = vpop.f32.mrb[143].mxu0  ;;  %v6397_v35 = vmax.f32 %v6193_v43, 0.0 }
 0x6e3   : > { %v6199_v39 = vadd.f32 %v6198_v59, %v14691_v24  ;;  %v6398_v19 = vmax.f32 %v6195_v20, 0.0 }
 0x6e4   : > { %v6399_v0 = vmax.f32 %v6197_v6, 0.0  ;;  %6892 = vmatmul.mubr.bf16.gmra.mrb[248].mxu0 %v14894_v1 }
 0x6e5   : > { %v6400_v12 = vmax.f32 %v6199_v39, 0.0  ;;  %6901 = vmatprep.mubr.bf16.mxu0 %v14912_v40 }
 0x6e6   : > { %v14945_v49 = vpack.c.bf16 %v6399_v0, %v6397_v35 }
 0x6e7   : > { %v6202_v38 = vpop.f32.mrb[144].mxu0  ;;  %v6488_v54 = vpack.c.bf16 %v6400_v12, %v6398_v19 }
 0x6e8   : > { %v6203_v31 = vadd.f32 %v6202_v38, %v14687_v58  ;;  %v6204_v16 = vpop.f32.mrb[145].mxu0 }
 0x6e9   : > { %v6205_v32 = vadd.f32 %v6204_v16, %v14691_v24  ;;  %v6206_v2 = vpop.f32.mrb[146].mxu0 }
 0x6ea   : > { %v6207_v55 = vadd.f32 %v6206_v2, %v14687_v58  ;;  %v6208_v46 = vpop.f32.mrb[147].mxu0  ;;  %v6401_v1 = vmax.f32 %v6203_v31, 0.0 }
 0x6eb   : > { %v6209_v56 = vadd.f32 %v6208_v46, %v14691_v24  ;;  %v6402_v40 = vmax.f32 %v6205_v32, 0.0 }
 0x6ec   : > { %v6403_v11 = vmax.f32 %v6207_v55, 0.0  ;;  %6902 = vmatmul.mubr.bf16.gmra.mrb[252].mxu0 %v14904_v27 }
 0x6ed   : > { %v6404_v21 = vmax.f32 %v6209_v56, 0.0  ;;  %6911 = vmatprep.mubr.bf16.mxu0 %v6482_v62 }
 0x6ee   : > { %v14952_v57 = vpack.c.bf16 %v6403_v11, %v6401_v1 }
 0x6ef   : > { %v6212_v29 = vpop.f32.mrb[148].mxu0  ;;  %v6490_v14 = vpack.c.bf16 %v6404_v21, %v6402_v40 }
 0x6f0   : > { %v6213_v22 = vadd.f32 %v6212_v29, %v14687_v58  ;;  %v6214_v60 = vpop.f32.mrb[149].mxu0 }
 0x6f1   : > { %v6215_v41 = vadd.f32 %v6214_v60, %v14691_v24  ;;  %v6216_v23 = vpop.f32.mrb[150].mxu0 }
 0x6f2   : > { %v6217_v45 = vadd.f32 %v6216_v23, %v14687_v58  ;;  %v6218_v42 = vpop.f32.mrb[151].mxu0  ;;  %v6405_v47 = vmax.f32 %v6213_v22, 0.0 }
 0x6f3   : > { %v6219_v63 = vadd.f32 %v6218_v42, %v14691_v24  ;;  %v6406_v62 = vmax.f32 %v6215_v41, 0.0 }
 0x6f4   : > { %v6407_v27 = vmax.f32 %v6217_v45, 0.0  ;;  %6912 = vmatmul.mubr.bf16.gmra.mrb[0].mxu0 %v14921_v13 }
 0x6f5   : > { %v6408_v34 = vmax.f32 %v6219_v63, 0.0  ;;  %6921 = vmatprep.mubr.bf16.mxu0 %v6484_v7 }
 0x6f6   : > { %v14959_v18 = vpack.c.bf16 %v6407_v27, %v6405_v47 }
 0x6f7   : > { %v6222_v26 = vpop.f32.mrb[152].mxu0  ;;  %v6492_v4 = vpack.c.bf16 %v6408_v34, %v6406_v62 }
 0x6f8   : > { %v6223_v9 = vadd.f32 %v6222_v26, %v14687_v58  ;;  %v6224_v36 = vpop.f32.mrb[153].mxu0 }
 0x6f9   : > { %v6225_v33 = vadd.f32 %v6224_v36, %v14691_v24  ;;  %v6226_v30 = vpop.f32.mrb[154].mxu0 }
 0x6fa   : > { %v6227_v51 = vadd.f32 %v6226_v30, %v14687_v58  ;;  %v6228_v28 = vpop.f32.mrb[155].mxu0  ;;  %v6409_v37 = vmax.f32 %v6223_v9, 0.0 }
 0x6fb   : > { %v6229_v8 = vadd.f32 %v6228_v28, %v14691_v24  ;;  %v6410_v7 = vmax.f32 %v6225_v33, 0.0 }
 0x6fc   : > { %v6411_v13 = vmax.f32 %v6227_v51, 0.0  ;;  %6922 = vmatmul.mubr.bf16.gmra.mrb[4].mxu0 %v14929_v15 }
 0x6fd   : > { %v6412_v17 = vmax.f32 %v6229_v8, 0.0  ;;  %6931 = vmatprep.mubr.bf16.mxu0 %v6486_v10 }
 0x6fe   : > { %v14966_v25 = vpack.c.bf16 %v6411_v13, %v6409_v37 }
 0x6ff   : > { %v6232_v43 = vpop.f32.mrb[156].mxu0  ;;  %v6494_v44 = vpack.c.bf16 %v6412_v17, %v6410_v7 }
 0x700   : > { %v6233_v20 = vadd.f32 %v6232_v43, %v14687_v58  ;;  %v6234_v61 = vpop.f32.mrb[157].mxu0 }
 0x701   : > { %v6235_v6 = vadd.f32 %v6234_v61, %v14691_v24  ;;  %v6236_v59 = vpop.f32.mrb[158].mxu0 }
 0x702   : > { %v6237_v39 = vadd.f32 %v6236_v59, %v14687_v58  ;;  %v6238_v35 = vpop.f32.mrb[159].mxu0  ;;  %v6413_v19 = vmax.f32 %v6233_v20, 0.0 }
 0x703   : > { %v6239_v0 = vadd.f32 %v6238_v35, %v14691_v24  ;;  %v6414_v10 = vmax.f32 %v6235_v6, 0.0 }
 0x704   : > { %v6415_v15 = vmax.f32 %v6237_v39, 0.0  ;;  %6932 = vmatmul.mubr.bf16.gmra.mrb[8].mxu0 %v14937_v53 }
 0x705   : > { %v6416_v12 = vmax.f32 %v6239_v0, 0.0  ;;  %6941 = vmatprep.mubr.bf16.mxu0 %v6488_v54 }
 0x706   : > { %v14973_v38 = vpack.c.bf16 %v6415_v15, %v6413_v19 }
 0x707   : > { %v6242_v31 = vpop.f32.mrb[160].mxu0  ;;  %v6496_v16 = vpack.c.bf16 %v6416_v12, %v6414_v10 }
 0x708   : > { %v6243_v32 = vadd.f32 %v6242_v31, %v14687_v58  ;;  %v6244_v2 = vpop.f32.mrb[161].mxu0 }
 0x709   : > { %v6245_v55 = vadd.f32 %v6244_v2, %v14691_v24  ;;  %v6246_v46 = vpop.f32.mrb[162].mxu0 }
 0x70a   : > { %v6247_v56 = vadd.f32 %v6246_v46, %v14687_v58  ;;  %v6248_v1 = vpop.f32.mrb[163].mxu0  ;;  %v6417_v40 = vmax.f32 %v6243_v32, 0.0 }
 0x70b   : > { %v6249_v11 = vadd.f32 %v6248_v1, %v14691_v24  ;;  %v6418_v54 = vmax.f32 %v6245_v55, 0.0 }
 0x70c   : > { %v6419_v53 = vmax.f32 %v6247_v56, 0.0  ;;  %6942 = vmatmul.mubr.bf16.gmra.mrb[12].mxu0 %v14945_v49 }
 0x70d   : > { %v6420_v21 = vmax.f32 %v6249_v11, 0.0  ;;  %6951 = vmatprep.mubr.bf16.mxu0 %v6490_v14 }
 0x70e   : > { %v14980_v29 = vpack.c.bf16 %v6419_v53, %v6417_v40 }
 0x70f   : > { %v6252_v22 = vpop.f32.mrb[164].mxu0  ;;  %v6498_v60 = vpack.c.bf16 %v6420_v21, %v6418_v54 }
 0x710   : > { %v6253_v41 = vadd.f32 %v6252_v22, %v14687_v58  ;;  %v6254_v23 = vpop.f32.mrb[165].mxu0 }
 0x711   : > { %v6255_v45 = vadd.f32 %v6254_v23, %v14691_v24  ;;  %v6256_v42 = vpop.f32.mrb[166].mxu0 }
 0x712   : > { %v6257_v63 = vadd.f32 %v6256_v42, %v14687_v58  ;;  %v6258_v47 = vpop.f32.mrb[167].mxu0  ;;  %v6421_v62 = vmax.f32 %v6253_v41, 0.0 }
 0x713   : > { %v6259_v27 = vadd.f32 %v6258_v47, %v14691_v24  ;;  %v6422_v14 = vmax.f32 %v6255_v45, 0.0 }
 0x714   : > { %v6423_v49 = vmax.f32 %v6257_v63, 0.0  ;;  %6952 = vmatmul.mubr.bf16.gmra.mrb[16].mxu0 %v14952_v57 }
 0x715   : > { %v6424_v34 = vmax.f32 %v6259_v27, 0.0  ;;  %6961 = vmatprep.mubr.bf16.mxu0 %v6492_v4 }
 0x716   : > { %v14987_v26 = vpack.c.bf16 %v6423_v49, %v6421_v62 }
 0x717   : > { %v6262_v9 = vpop.f32.mrb[168].mxu0  ;;  %v6500_v36 = vpack.c.bf16 %v6424_v34, %v6422_v14 }
 0x718   : > { %v6263_v33 = vadd.f32 %v6262_v9, %v14687_v58  ;;  %v6264_v30 = vpop.f32.mrb[169].mxu0 }
 0x719   : > { %v6265_v51 = vadd.f32 %v6264_v30, %v14691_v24  ;;  %v6266_v28 = vpop.f32.mrb[170].mxu0 }
 0x71a   : > { %v6267_v8 = vadd.f32 %v6266_v28, %v14687_v58  ;;  %v6268_v37 = vpop.f32.mrb[171].mxu0  ;;  %v6425_v7 = vmax.f32 %v6263_v33, 0.0 }
 0x71b   : > { %v6269_v13 = vadd.f32 %v6268_v37, %v14691_v24  ;;  %v6426_v4 = vmax.f32 %v6265_v51, 0.0 }
 0x71c   : > { %v6427_v57 = vmax.f32 %v6267_v8, 0.0  ;;  %6962 = vmatmul.mubr.bf16.gmra.mrb[20].mxu0 %v14959_v18 }
 0x71d   : > { %v6428_v17 = vmax.f32 %v6269_v13, 0.0  ;;  %6971 = vmatprep.mubr.bf16.mxu0 %v6494_v44 }
 0x71e   : > { %v14994_v43 = vpack.c.bf16 %v6427_v57, %v6425_v7 }
 0x71f   : > { %v6272_v20 = vpop.f32.mrb[172].mxu0  ;;  %v6502_v61 = vpack.c.bf16 %v6428_v17, %v6426_v4 }
 0x720   : > { %v6273_v6 = vadd.f32 %v6272_v20, %v14687_v58  ;;  %v6274_v59 = vpop.f32.mrb[173].mxu0 }
 0x721   : > { %v6275_v39 = vadd.f32 %v6274_v59, %v14691_v24  ;;  %v6276_v35 = vpop.f32.mrb[174].mxu0 }
 0x722   : > { %v6277_v0 = vadd.f32 %v6276_v35, %v14687_v58  ;;  %v6278_v19 = vpop.f32.mrb[175].mxu0  ;;  %v6429_v10 = vmax.f32 %v6273_v6, 0.0 }
 0x723   : > { %v6279_v15 = vadd.f32 %v6278_v19, %v14691_v24  ;;  %v6430_v44 = vmax.f32 %v6275_v39, 0.0 }
 0x724   : > { %v6431_v18 = vmax.f32 %v6277_v0, 0.0  ;;  %6972 = vmatmul.mubr.bf16.gmra.mrb[24].mxu0 %v14966_v25 }
 0x725   : > { %v6432_v12 = vmax.f32 %v6279_v15, 0.0  ;;  %6981 = vmatprep.mubr.bf16.mxu0 %v6496_v16  ;;  %v11105_v15 = vld [vmem:[%s17260_s4 + $0x7] ss:$8 sm:$0x3] }
 0x726   : > { %v15001_v31 = vpack.c.bf16 %v6431_v18, %v6429_v10 }
 0x727   : > { %v6282_v32 = vpop.f32.mrb[176].mxu0  ;;  %v6504_v2 = vpack.c.bf16 %v6432_v12, %v6430_v44  ;;  %v15039_v12 = vrot.slane %v11105_v15, %v12992_v50 }
 0x728   : > { %v6283_v55 = vadd.f32 %v6282_v32, %v14687_v58  ;;  %v6284_v46 = vpop.f32.mrb[177].mxu0 }
 0x729   : > { %v6285_v56 = vadd.f32 %v6284_v46, %v14691_v24  ;;  %v6286_v1 = vpop.f32.mrb[178].mxu0  ;;  %v15042_v46 = vrot.slane %v11105_v15, %v12998_v52 }
 0x72a   : > { %v6287_v11 = vadd.f32 %v6286_v1, %v14687_v58  ;;  %v6288_v40 = vpop.f32.mrb[179].mxu0  ;;  %v6433_v54 = vmax.f32 %v6283_v55, 0.0 }
 0x72b   : > { %v6289_v53 = vadd.f32 %v6288_v40, %v14691_v24  ;;  %v6434_v16 = vmax.f32 %v6285_v56, 0.0 }
 0x72c   : > { %v6435_v25 = vmax.f32 %v6287_v11, 0.0  ;;  %6982 = vmatmul.mubr.bf16.gmra.mrb[28].mxu0 %v14973_v38 }
 0x72d   : > { %v6436_v21 = vmax.f32 %v6289_v53, 0.0  ;;  %6991 = vmatprep.mubr.bf16.mxu0 %v6498_v60 }
 0x72e   : > { %v15008_v22 = vpack.c.bf16 %v6435_v25, %v6433_v54 }
 0x72f   : > { %v6292_v41 = vpop.f32.mrb[180].mxu0  ;;  %v15010_v23 = vpack.c.bf16 %v6436_v21, %v6434_v16 }
 0x730   : > { %v6293_v45 = vadd.f32 %v6292_v41, %v14687_v58  ;;  %v6294_v42 = vpop.f32.mrb[181].mxu0 }
 0x731   : > { %v6295_v63 = vadd.f32 %v6294_v42, %v14691_v24  ;;  %v6296_v47 = vpop.f32.mrb[182].mxu0 }
 0x732   : > { %v6297_v27 = vadd.f32 %v6296_v47, %v14687_v58  ;;  %v6298_v62 = vpop.f32.mrb[183].mxu0  ;;  %v6437_v38 = vmax.f32 %v6293_v45, 0.0  ;;  %v12185_v47 = vld [vmem:[%s17261_s5] sm:$0xff]  }
 0x733   : > { %v6299_v49 = vadd.f32 %v6298_v62, %v14691_v24  ;;  %v6438_v60 = vmax.f32 %v6295_v63, 0.0 }
 0x734   : > { %v6439_v14 = vmax.f32 %v6297_v27, 0.0  ;;  %6992 = vmatmul.mubr.bf16.gmra.mrb[32].mxu0 %v14980_v29 }
 0x735   : > { %v6440_v34 = vmax.f32 %v6299_v49, 0.0  ;;  %7001 = vmatprep.mubr.bf16.mxu0 %v6500_v36 }
 0x736   : > { %v15017_v9 = vpack.c.bf16 %v6439_v14, %v6437_v38  ;;  %v12193_v14 = vld [vmem:[%s17262_s6] sm:$0xff]  }
 0x737   : > { %v6302_v33 = vpop.f32.mrb[184].mxu0  ;;  %v15019_v30 = vpack.c.bf16 %v6440_v34, %v6438_v60  ;;  %v12186_v34 = vld [vmem:[%s17261_s5 + $0x8] sm:$0xff]   ;;  %11451 = vmatprep.subr.bf16.mxu0 %v12193_v14 }
 0x738   : > { %v6303_v51 = vadd.f32 %v6302_v33, %v14687_v58  ;;  %v6304_v28 = vpop.f32.mrb[185].mxu0  ;;  %11452 = vmatpush3.bf16.msra.mxu0 %v12193_v14 }
 0x739   : > { %v6305_v8 = vadd.f32 %v6304_v28, %v14691_v24  ;;  %v6306_v37 = vpop.f32.mrb[186].mxu0 }
 0x73a   : > { %v6307_v13 = vadd.f32 %v6306_v37, %v14687_v58  ;;  %v6308_v7 = vpop.f32.mrb[187].mxu0  ;;  %v6441_v29 = vmax.f32 %v6303_v51, 0.0 }
 0x73b   : > { %v6309_v57 = vadd.f32 %v6308_v7, %v14691_v24  ;;  %v6442_v36 = vmax.f32 %v6305_v8, 0.0 }
 0x73c   : > { %v6443_v4 = vmax.f32 %v6307_v13, 0.0  ;;  %7002 = vmatmul.mubr.bf16.gmra.mrb[36].mxu0 %v14987_v26 }
 0x73d   : > { %v6444_v17 = vmax.f32 %v6309_v57, 0.0  ;;  %7011 = vmatprep.mubr.bf16.mxu0 %v6502_v61  ;;  %v12187_v57 = vld [vmem:[%s17261_s5 + $0x10] sm:$0xff]  }
 0x73e   : > { %v15026_v20 = vpack.c.bf16 %v6443_v4, %v6441_v29 }
 0x73f   : > { %v6312_v6 = vpop.f32.mrb[188].mxu0  ;;  %v15028_v59 = vpack.c.bf16 %v6444_v17, %v6442_v36 }
 0x740   : > { %v6313_v39 = vadd.f32 %v6312_v6, %v14687_v58  ;;  %v6314_v35 = vpop.f32.mrb[189].mxu0 }
 0x741   : > { %v6315_v0 = vadd.f32 %v6314_v35, %v14691_v24  ;;  %v6316_v19 = vpop.f32.mrb[190].mxu0 }
 0x742   : > { %v6317_v26 = vadd.f32 %v6316_v19, %v14687_v58  ;;  %v6318_v10 = vpop.f32.mrb[191].mxu0  ;;  %v6445_v18 = vmax.f32 %v6313_v39, 0.0  ;;  %v12188_v39 = vld [vmem:[%s17261_s5 + $0x18] sm:$0xff]  }
 0x743   : > { %v6319_v61 = vadd.f32 %v6318_v10, %v14691_v24  ;;  %v6446_v32 = vmax.f32 %v6315_v0, 0.0 }
 0x744   : > { %v6447_v44 = vmax.f32 %v6317_v26, 0.0  ;;  %7012 = vmatmul.mubr.bf16.gmra.mrb[40].mxu0 %v14994_v43 }
 0x745   : > { %v6448_v55 = vmax.f32 %v6319_v61, 0.0  ;;  %7021 = vmatprep.mubr.bf16.mxu0 %v6504_v2 }
 0x746   : > { %v15044_v56 = vpack.c.bf16 %v6447_v44, %v6445_v18  ;;  %v12189_v18 = vld [vmem:[%s17261_s5 + $0x20] sm:$0xff]  }
 0x747   : > { %v6753_v1 = vpop.f32.mrb[192].mxu0  ;;  %v15046_v58 = vpack.c.bf16 %v6448_v55, %v6446_v32 }
 0x748   : > { %v6754_v24 = vadd.f32 %v6753_v1, %v15039_v12  ;;  %v6755_v11 = vpop.f32.mrb[193].mxu0 }
 0x749   : > { %v6756_v40 = vadd.f32 %v6755_v11, %v15042_v46  ;;  %v6757_v43 = vpop.f32.mrb[194].mxu0  ;;  %v12190_v11 = vld [vmem:[%s17261_s5 + $0x28] sm:$0xff]  }
 0x74a   : > { %v6758_v53 = vadd.f32 %v6757_v43, %v15039_v12  ;;  %v6759_v54 = vpop.f32.mrb[195].mxu0  ;;  %v7072_v2 = vmax.f32 %v6754_v24, 0.0 }
 0x74b   : > { %v6760_v25 = vadd.f32 %v6759_v54, %v15042_v46  ;;  %v7073_v21 = vmax.f32 %v6756_v40, 0.0 }
 0x74c   : > { %v7074_v16 = vmax.f32 %v6758_v53, 0.0  ;;  %7022 = vmatmul.mubr.bf16.gmra.mrb[44].mxu0 %v15001_v31 }
 0x74d   : > { %v7075_v41 = vmax.f32 %v6760_v25, 0.0  ;;  %7031 = vmatprep.mubr.bf16.mxu0 %v15010_v23 }
 0x74e   : > { %v15054_v45 = vpack.c.bf16 %v7074_v16, %v7072_v2 }
 0x74f   : > { %v6763_v42 = vpop.f32.mrb[196].mxu0  ;;  %v15056_v63 = vpack.c.bf16 %v7075_v41, %v7073_v21  ;;  %v12191_v21 = vld [vmem:[%s17261_s5 + $0x30] sm:$0xff]  }
 0x750   : > { %17335 = vst [vmem:[#allocation2_spill] sm:$0xff] %v15054_v45  ;;  %v6764_v27 = vadd.f32 %v6763_v42, %v15039_v12  ;;  %v6765_v62 = vpop.f32.mrb[197].mxu0 }
 0x751   : > { %17336 = vst [vmem:[#allocation3_spill] sm:$0xff] %v15056_v63  ;;  %v6766_v49 = vadd.f32 %v6765_v62, %v15042_v46  ;;  %v6767_v38 = vpop.f32.mrb[198].mxu0  ;;  %7502 = vmatprep.mubr.bf16.mxu1 %v15056_v63 }
 0x752   : > { %v6768_v31 = vadd.f32 %v6767_v38, %v15039_v12  ;;  %v6769_v23 = vpop.f32.mrb[199].mxu0  ;;  %7503 = vmatmul.mubr.bf16.vlgmr.msra.gmra.mrb[192].mxu1 %v15054_v45  ;;  %v7076_v33 = vmax.f32 %v6764_v27, 0.0 }
 0x753   : > { %v6770_v60 = vadd.f32 %v6769_v23, %v15042_v46  ;;  %8648 = vmatpush1.bf16.msra.mxu1 %v12185_v47  ;;  %v7077_v28 = vmax.f32 %v6766_v49, 0.0  ;;  %v12192_v49 = vld [vmem:[%s17261_s5 + $0x38] sm:$0xff]  }
 0x754   : > { %v7078_v51 = vmax.f32 %v6768_v31, 0.0  ;;  %7032 = vmatmul.mubr.bf16.gmra.mrb[48].mxu0 %v15008_v22  ;;  %8649 = vmatprep.subr.bf16.mxu1 %v17269_v5 }
 0x755   : > { %v7079_v8 = vmax.f32 %v6770_v60, 0.0  ;;  %7041 = vmatprep.mubr.bf16.mxu0 %v15019_v30 }
 0x756   : > { %v15076_v37 = vpack.c.bf16 %v7078_v51, %v7076_v33  ;;  %v12194_v51 = vld [vmem:[%s17261_s5 + $0x40] sm:$0xff]  }
 0x757   : > { %v6773_v13 = vpop.f32.mrb[200].mxu0  ;;  %v15078_v7 = vpack.c.bf16 %v7079_v8, %v7077_v28  ;;  %8650 = vmatpush1.bf16.msra.mxu1 %v12186_v34 }
 0x758   : > { %17337 = vst [vmem:[#allocation4_spill] sm:$0xff] %v15076_v37  ;;  %v6774_v22 = vadd.f32 %v6773_v13, %v15039_v12  ;;  %v6775_v29 = vpop.f32.mrb[201].mxu0  ;;  %8651 = vmatprep.subr.bf16.mxu1 %v17269_v5 }
 0x759   : > { %17338 = vst [vmem:[#allocation5_spill] sm:$0xff] %v15078_v7  ;;  %v6776_v4 = vadd.f32 %v6775_v29, %v15042_v46  ;;  %v6777_v30 = vpop.f32.mrb[202].mxu0  ;;  %7512 = vmatprep.mubr.bf16.mxu1 %v15078_v7 }
 0x75a   : > { %v6778_v36 = vadd.f32 %v6777_v30, %v15039_v12  ;;  %v6779_v17 = vpop.f32.mrb[203].mxu0  ;;  %7513 = vmatmul.mubr.bf16.gmra.mrb[196].mxu1 %v15076_v37  ;;  %v7080_v35 = vmax.f32 %v6774_v22, 0.0 }
 0x75b   : > { %v6780_v6 = vadd.f32 %v6779_v17, %v15042_v46  ;;  %8652 = vmatpush1.bf16.msra.mxu1 %v12187_v57  ;;  %v7081_v19 = vmax.f32 %v6776_v4, 0.0  ;;  %v12195_v4 = vld [vmem:[%s17261_s5 + $0x48] sm:$0xff]  }
 0x75c   : > { %v7082_v0 = vmax.f32 %v6778_v36, 0.0  ;;  %7042 = vmatmul.mubr.bf16.gmra.mrb[52].mxu0 %v15017_v9  ;;  %8653 = vmatprep.subr.bf16.mxu1 %v17269_v5 }
 0x75d   : > { %v7083_v15 = vmax.f32 %v6780_v6, 0.0  ;;  %7051 = vmatprep.mubr.bf16.mxu0 %v15028_v59 }
 0x75e   : > { %v15096_v26 = vpack.c.bf16 %v7082_v0, %v7080_v35 }
 0x75f   : > { %v6783_v10 = vpop.f32.mrb[204].mxu0  ;;  %v15098_v61 = vpack.c.bf16 %v7083_v15, %v7081_v19  ;;  %8654 = vmatpush1.bf16.msra.mxu1 %v12188_v39  ;;  %v12196_v19 = vld [vmem:[%s17261_s5 + $0x50] sm:$0xff]  }
 0x760   : > { %17339 = vst [vmem:[#allocation6_spill] sm:$0xff] %v15096_v26  ;;  %v6784_v44 = vadd.f32 %v6783_v10, %v15039_v12  ;;  %v6785_v32 = vpop.f32.mrb[205].mxu0  ;;  %8655 = vmatprep.subr.bf16.mxu1 %v17269_v5 }
 0x761   : > { %17340 = vst [vmem:[#allocation7_spill] sm:$0xff] %v15098_v61  ;;  %v6786_v9 = vadd.f32 %v6785_v32, %v15042_v46  ;;  %v6787_v55 = vpop.f32.mrb[206].mxu0  ;;  %7522 = vmatprep.mubr.bf16.mxu1 %v15098_v61 }
 0x762   : > { %v6788_v59 = vadd.f32 %v6787_v55, %v15039_v12  ;;  %v6789_v1 = vpop.f32.mrb[207].mxu0  ;;  %7523 = vmatmul.mubr.bf16.gmra.mrb[200].mxu1 %v15096_v26  ;;  %v7084_v40 = vmax.f32 %v6784_v44, 0.0 }
 0x763   : > { %v6790_v24 = vadd.f32 %v6789_v1, %v15042_v46  ;;  %8656 = vmatpush1.bf16.msra.mxu1 %v12189_v18  ;;  %v7085_v53 = vmax.f32 %v6786_v9, 0.0 }
 0x764   : > { %v7086_v43 = vmax.f32 %v6788_v59, 0.0  ;;  %7052 = vmatmul.mubr.bf16.gmra.mrb[56].mxu0 %v15026_v20  ;;  %8657 = vmatprep.subr.bf16.mxu1 %v17269_v5 }
 0x765   : > { %v7087_v54 = vmax.f32 %v6790_v24, 0.0  ;;  %7061 = vmatprep.mubr.bf16.mxu0 %v15046_v58 }
 0x766   : > { %v15116_v25 = vpack.c.bf16 %v7086_v43, %v7084_v40 }
 0x767   : > { %v6793_v2 = vpop.f32.mrb[208].mxu0  ;;  %v15118_v16 = vpack.c.bf16 %v7087_v54, %v7085_v53  ;;  %8658 = vmatpush1.bf16.msra.mxu1 %v12190_v11 }
 0x768   : > { %17341 = vst [vmem:[#allocation8_spill] sm:$0xff] %v15116_v25  ;;  %v6794_v41 = vadd.f32 %v6793_v2, %v15039_v12  ;;  %v6795_v42 = vpop.f32.mrb[209].mxu0  ;;  %8659 = vmatprep.subr.bf16.mxu1 %v17269_v5 }
 0x769   : > { %17342 = vst [vmem:[#allocation9_spill] sm:$0xff] %v15118_v16  ;;  %v6796_v20 = vadd.f32 %v6795_v42, %v15042_v46  ;;  %v6797_v47 = vpop.f32.mrb[210].mxu0  ;;  %7532 = vmatprep.mubr.bf16.mxu1 %v15118_v16 }
 0x76a   : > { %v6798_v58 = vadd.f32 %v6797_v47, %v15039_v12  ;;  %v6799_v27 = vpop.f32.mrb[211].mxu0  ;;  %7533 = vmatmul.mubr.bf16.gmra.mrb[204].mxu1 %v15116_v25  ;;  %v7088_v38 = vmax.f32 %v6794_v41, 0.0 }
 0x76b   : > { %v6800_v62 = vadd.f32 %v6799_v27, %v15042_v46  ;;  %8660 = vmatpush1.bf16.msra.mxu1 %v12191_v21  ;;  %v7089_v23 = vmax.f32 %v6796_v20, 0.0 }
 0x76c   : > { %v7090_v31 = vmax.f32 %v6798_v58, 0.0  ;;  %7062 = vmatmul.mubr.bf16.gmra.mrb[60].mxu0 %v15044_v56  ;;  %8661 = vmatprep.subr.bf16.mxu1 %v17269_v5 }
 0x76d   : > { %v7091_v14 = vmax.f32 %v6800_v62, 0.0 }
 0x76e   : > { %v15135_v60 = vpack.c.bf16 %v7090_v31, %v7088_v38  ;;  %v12197_v31 = vld [vmem:[%s17261_s5 + $0x58] sm:$0xff]  }
 0x76f   : > { %v6803_v34 = vpop.f32.mrb[212].mxu0  ;;  %v15137_v33 = vpack.c.bf16 %v7091_v14, %v7089_v23  ;;  %8662 = vmatpush1.bf16.msra.mxu1 %v12192_v49 }
 0x770   : > { %17343 = vst [vmem:[#allocation10_spill] sm:$0xff] %v15135_v60  ;;  %v6804_v28 = vadd.f32 %v6803_v34, %v15039_v12  ;;  %v6805_v8 = vpop.f32.mrb[213].mxu0  ;;  %8663 = vmatprep.subr.bf16.mxu1 %v17269_v5 }
 0x771   : > { %17344 = vst [vmem:[#allocation11_spill] sm:$0xff] %v15137_v33  ;;  %v6806_v56 = vadd.f32 %v6805_v8, %v15042_v46  ;;  %v6807_v13 = vpop.f32.mrb[214].mxu0  ;;  %7542 = vmatprep.mubr.bf16.mxu1 %v15137_v33 }
 0x772   : > { %v6808_v57 = vadd.f32 %v6807_v13, %v15039_v12  ;;  %v6809_v22 = vpop.f32.mrb[215].mxu0  ;;  %7543 = vmatmul.mubr.bf16.gmra.mrb[208].mxu1 %v15135_v60  ;;  %v7092_v30 = vmax.f32 %v6804_v28, 0.0 }
 0x773   : > { %v6810_v29 = vadd.f32 %v6809_v22, %v15042_v46  ;;  %8664 = vmatpush1.bf16.msra.mxu1 %v12194_v51  ;;  %v7093_v17 = vmax.f32 %v6806_v56, 0.0 }
 0x774   : > { %v7094_v36 = vmax.f32 %v6808_v57, 0.0  ;;  %8665 = vmatprep.subr.bf16.mxu1 %v17269_v5 }
 0x775   : > { %v7095_v6 = vmax.f32 %v6810_v29, 0.0 }
 0x776   : > { %v15153_v39 = vpack.c.bf16 %v7094_v36, %v7092_v30 }
 0x777   : > { %v6813_v35 = vpop.f32.mrb[216].mxu0  ;;  %v15155_v0 = vpack.c.bf16 %v7095_v6, %v7093_v17  ;;  %8666 = vmatpush1.bf16.msra.mxu1 %v12195_v4 }
 0x778   : > { %17345 = vst [vmem:[#allocation12_spill] sm:$0xff] %v15153_v39  ;;  %v6814_v15 = vadd.f32 %v6813_v35, %v15039_v12  ;;  %v6815_v10 = vpop.f32.mrb[217].mxu0  ;;  %8667 = vmatprep.subr.bf16.mxu1 %v17269_v5 }
 0x779   : > { %17346 = vst [vmem:[#allocation13_spill] sm:$0xff] %v15155_v0  ;;  %v6816_v18 = vadd.f32 %v6815_v10, %v15042_v46  ;;  %v6817_v44 = vpop.f32.mrb[218].mxu0  ;;  %7552 = vmatprep.mubr.bf16.mxu1 %v15155_v0 }
 0x77a   : > { %v6818_v32 = vadd.f32 %v6817_v44, %v15039_v12  ;;  %v6819_v9 = vpop.f32.mrb[219].mxu0  ;;  %7553 = vmatmul.mubr.bf16.gmra.mrb[212].mxu1 %v15153_v39  ;;  %v7096_v59 = vmax.f32 %v6814_v15, 0.0 }
 0x77b   : > { %v6820_v55 = vadd.f32 %v6819_v9, %v15042_v46  ;;  %8668 = vmatpush1.bf16.msra.mxu1 %v12196_v19  ;;  %v7097_v24 = vmax.f32 %v6816_v18, 0.0 }
 0x77c   : > { %v7098_v1 = vmax.f32 %v6818_v32, 0.0  ;;  %8669 = vmatprep.subr.bf16.mxu1 %v17269_v5 }
 0x77d   : > { %v7099_v11 = vmax.f32 %v6820_v55, 0.0 }
 0x77e   : > { %v15168_v40 = vpack.c.bf16 %v7098_v1, %v7096_v59 }
 0x77f   : > { %v6823_v43 = vpop.f32.mrb[220].mxu0  ;;  %v15170_v53 = vpack.c.bf16 %v7099_v11, %v7097_v24  ;;  %8670 = vmatpush1.bf16.msra.mxu1 %v12197_v31  ;;  %v12198_v11 = vld [vmem:[%s17261_s5 + $0x60] sm:$0xff]  }
 0x780   : > { %17347 = vst [vmem:[#allocation14_spill] sm:$0xff] %v15168_v40  ;;  %v6824_v54 = vadd.f32 %v6823_v43, %v15039_v12  ;;  %v6825_v2 = vpop.f32.mrb[221].mxu0  ;;  %8671 = vmatprep.subr.bf16.mxu1 %v17269_v5 }
 0x781   : > { %17348 = vst [vmem:[#allocation15_spill] sm:$0xff] %v15170_v53  ;;  %v6826_v21 = vadd.f32 %v6825_v2, %v15042_v46  ;;  %v6827_v41 = vpop.f32.mrb[222].mxu0  ;;  %7562 = vmatprep.mubr.bf16.mxu1 %v15170_v53 }
 0x782   : > { %v6828_v42 = vadd.f32 %v6827_v41, %v15039_v12  ;;  %v6829_v20 = vpop.f32.mrb[223].mxu0  ;;  %7563 = vmatmul.mubr.bf16.gmra.mrb[216].mxu1 %v15168_v40  ;;  %v7100_v58 = vmax.f32 %v6824_v54, 0.0 }
 0x783   : > { %v6830_v47 = vadd.f32 %v6829_v20, %v15042_v46  ;;  %v7101_v62 = vmax.f32 %v6826_v21, 0.0  ;;  %8672 = vmatpush1.bf16.msra.mxu1 %v12198_v11 }
 0x784   : > { %v7102_v27 = vmax.f32 %v6828_v42, 0.0  ;;  %8673 = vmatprep.subr.bf16.mxu1 %v17269_v5 }
 0x785   : > { %v7103_v49 = vmax.f32 %v6830_v47, 0.0 }
 0x786   : > { %v15178_v38 = vpack.c.bf16 %v7102_v27, %v7100_v58 }
 0x787   : > { %v6833_v23 = vpop.f32.mrb[224].mxu0  ;;  %v15183_v14 = vpack.c.bf16 %v7103_v49, %v7101_v62 }
 0x788   : > { %17349 = vst [vmem:[#allocation16_spill] sm:$0xff] %v15178_v38  ;;  %v6834_v34 = vadd.f32 %v6833_v23, %v15039_v12  ;;  %v6835_v51 = vpop.f32.mrb[225].mxu0 }
 0x789   : > { %17350 = vst [vmem:[#allocation17_spill] sm:$0xff] %v15183_v14  ;;  %v6836_v28 = vadd.f32 %v6835_v51, %v15042_v46  ;;  %v6837_v8 = vpop.f32.mrb[226].mxu0  ;;  %7572 = vmatprep.mubr.bf16.mxu1 %v15183_v14 }
 0x78a   : > { %v6838_v56 = vadd.f32 %v6837_v8, %v15039_v12  ;;  %v6839_v13 = vpop.f32.mrb[227].mxu0  ;;  %7573 = vmatmul.mubr.bf16.gmra.mrb[220].mxu1 %v15178_v38  ;;  %v7104_v22 = vmax.f32 %v6834_v34, 0.0 }
 0x78b   : > { %v6840_v57 = vadd.f32 %v6839_v13, %v15042_v46  ;;  %v7105_v4 = vmax.f32 %v6836_v28, 0.0 }
 0x78c   : > { %v7106_v29 = vmax.f32 %v6838_v56, 0.0 }
 0x78d   : > { %v7107_v30 = vmax.f32 %v6840_v57, 0.0 }
 0x78e   : > { %v15192_v36 = vpack.c.bf16 %v7106_v29, %v7104_v22 }
 0x78f   : > { %v6843_v17 = vpop.f32.mrb[228].mxu0  ;;  %v15194_v6 = vpack.c.bf16 %v7107_v30, %v7105_v4 }
 0x790   : > { %17351 = vst [vmem:[#allocation18_spill] sm:$0xff] %v15192_v36  ;;  %v6844_v35 = vadd.f32 %v6843_v17, %v15039_v12  ;;  %v6845_v19 = vpop.f32.mrb[229].mxu0 }
 0x791   : > { %17352 = vst [vmem:[#allocation19_spill] sm:$0xff] %v15194_v6  ;;  %v6846_v15 = vadd.f32 %v6845_v19, %v15042_v46  ;;  %v6847_v10 = vpop.f32.mrb[230].mxu0  ;;  %7582 = vmatprep.mubr.bf16.mxu1 %v15194_v6 }
 0x792   : > { %v6848_v18 = vadd.f32 %v6847_v10, %v15039_v12  ;;  %v6849_v44 = vpop.f32.mrb[231].mxu0  ;;  %7583 = vmatmul.mubr.bf16.gmra.mrb[224].mxu1 %v15192_v36  ;;  %v7108_v9 = vmax.f32 %v6844_v35, 0.0 }
 0x793   : > { %v6850_v32 = vadd.f32 %v6849_v44, %v15042_v46  ;;  %v7109_v59 = vmax.f32 %v6846_v15, 0.0  ;;  %v12199_v15 = vld [vmem:[%s17261_s5 + $0x68] sm:$0xff]  }
 0x794   : > { %v7110_v55 = vmax.f32 %v6848_v18, 0.0  ;;  %8674 = vmatpush1.bf16.msra.mxu1 %v12199_v15 }
 0x795   : > { %v7111_v1 = vmax.f32 %v6850_v32, 0.0  ;;  %8675 = vmatprep.subr.bf16.mxu1 %v17269_v5 }
 0x796   : > { %v15202_v24 = vpack.c.bf16 %v7110_v55, %v7108_v9 }
 0x797   : > { %v6853_v43 = vpop.f32.mrb[232].mxu0  ;;  %v15207_v54 = vpack.c.bf16 %v7111_v1, %v7109_v59 }
 0x798   : > { %17353 = vst [vmem:[#allocation20_spill] sm:$0xff] %v15202_v24  ;;  %v6854_v2 = vadd.f32 %v6853_v43, %v15039_v12  ;;  %v6855_v21 = vpop.f32.mrb[233].mxu0 }
 0x799   : > { %17354 = vst [vmem:[#allocation21_spill] sm:$0xff] %v15207_v54  ;;  %v6856_v41 = vadd.f32 %v6855_v21, %v15042_v46  ;;  %v6857_v42 = vpop.f32.mrb[234].mxu0  ;;  %7592 = vmatprep.mubr.bf16.mxu1 %v15207_v54 }
 0x79a   : > { %v6858_v20 = vadd.f32 %v6857_v42, %v15039_v12  ;;  %v6859_v47 = vpop.f32.mrb[235].mxu0  ;;  %7593 = vmatmul.mubr.bf16.gmra.mrb[228].mxu1 %v15202_v24  ;;  %v7112_v27 = vmax.f32 %v6854_v2, 0.0 }
 0x79b   : > { %v6860_v58 = vadd.f32 %v6859_v47, %v15042_v46  ;;  %v7113_v49 = vmax.f32 %v6856_v41, 0.0 }
 0x79c   : > { %v7114_v62 = vmax.f32 %v6858_v20, 0.0 }
 0x79d   : > { %v7115_v31 = vmax.f32 %v6860_v58, 0.0 }
 0x79e   : > { %v15216_v23 = vpack.c.bf16 %v7114_v62, %v7112_v27 }
 0x79f   : > { %v6863_v34 = vpop.f32.mrb[236].mxu0  ;;  %v15218_v51 = vpack.c.bf16 %v7115_v31, %v7113_v49 }
 0x7a0   : > { %17355 = vst [vmem:[#allocation22_spill] sm:$0xff] %v15216_v23  ;;  %v6864_v28 = vadd.f32 %v6863_v34, %v15039_v12  ;;  %v6865_v8 = vpop.f32.mrb[237].mxu0 }
 0x7a1   : > { %17356 = vst [vmem:[#allocation23_spill] sm:$0xff] %v15218_v51  ;;  %v6866_v56 = vadd.f32 %v6865_v8, %v15042_v46  ;;  %v6867_v13 = vpop.f32.mrb[238].mxu0  ;;  %7602 = vmatprep.mubr.bf16.mxu1 %v15218_v51 }
 0x7a2   : > { %v6868_v57 = vadd.f32 %v6867_v13, %v15039_v12  ;;  %v6869_v22 = vpop.f32.mrb[239].mxu0  ;;  %7603 = vmatmul.mubr.bf16.gmra.mrb[232].mxu1 %v15216_v23  ;;  %v7116_v4 = vmax.f32 %v6864_v28, 0.0 }
 0x7a3   : > { %v6870_v29 = vadd.f32 %v6869_v22, %v15042_v46  ;;  %v7117_v17 = vmax.f32 %v6866_v56, 0.0 }
 0x7a4   : > { %v7118_v30 = vmax.f32 %v6868_v57, 0.0 }
 0x7a5   : > { %v7119_v35 = vmax.f32 %v6870_v29, 0.0  ;;  %v12200_v29 = vld [vmem:[%s17261_s5 + $0x70] sm:$0xff]  }
 0x7a6   : > { %v15226_v19 = vpack.c.bf16 %v7118_v30, %v7116_v4  ;;  %8676 = vmatpush1.bf16.msra.mxu1 %v12200_v29 }
 0x7a7   : > { %v6873_v10 = vpop.f32.mrb[240].mxu0  ;;  %v15231_v18 = vpack.c.bf16 %v7119_v35, %v7117_v17  ;;  %8677 = vmatprep.subr.bf16.mxu1 %v17269_v5 }
 0x7a8   : > { %17357 = vst [vmem:[#allocation24_spill] sm:$0xff] %v15226_v19  ;;  %v6874_v44 = vadd.f32 %v6873_v10, %v15039_v12  ;;  %v6875_v32 = vpop.f32.mrb[241].mxu0 }
 0x7a9   : > { %17358 = vst [vmem:[#allocation25_spill] sm:$0xff] %v15231_v18  ;;  %v6876_v9 = vadd.f32 %v6875_v32, %v15042_v46  ;;  %v6877_v55 = vpop.f32.mrb[242].mxu0  ;;  %7612 = vmatprep.mubr.bf16.mxu1 %v15231_v18 }
 0x7aa   : > { %v6878_v59 = vadd.f32 %v6877_v55, %v15039_v12  ;;  %v6879_v1 = vpop.f32.mrb[243].mxu0  ;;  %7613 = vmatmul.mubr.bf16.gmra.mrb[236].mxu1 %v15226_v19  ;;  %v7120_v43 = vmax.f32 %v6874_v44, 0.0 }
 0x7ab   : > { %v6880_v11 = vadd.f32 %v6879_v1, %v15042_v46  ;;  %v7121_v21 = vmax.f32 %v6876_v9, 0.0 }
 0x7ac   : > { %v7122_v2 = vmax.f32 %v6878_v59, 0.0 }
 0x7ad   : > { %v7123_v41 = vmax.f32 %v6880_v11, 0.0 }
 0x7ae   : > { %v15240_v42 = vpack.c.bf16 %v7122_v2, %v7120_v43 }
 0x7af   : > { %v6883_v20 = vpop.f32.mrb[244].mxu0  ;;  %v15242_v47 = vpack.c.bf16 %v7123_v41, %v7121_v21 }
 0x7b0   : > { %17359 = vst [vmem:[#allocation26_spill] sm:$0xff] %v15240_v42  ;;  %v6884_v58 = vadd.f32 %v6883_v20, %v15039_v12  ;;  %v6885_v27 = vpop.f32.mrb[245].mxu0 }
 0x7b1   : > { %17360 = vst [vmem:[#allocation27_spill] sm:$0xff] %v15242_v47  ;;  %v6886_v62 = vadd.f32 %v6885_v27, %v15042_v46  ;;  %v6887_v49 = vpop.f32.mrb[246].mxu0  ;;  %7622 = vmatprep.mubr.bf16.mxu1 %v15242_v47 }
 0x7b2   : > { %v6888_v31 = vadd.f32 %v6887_v49, %v15039_v12  ;;  %v6889_v34 = vpop.f32.mrb[247].mxu0  ;;  %7623 = vmatmul.mubr.bf16.gmra.mrb[240].mxu1 %v15240_v42  ;;  %v7124_v8 = vmax.f32 %v6884_v58, 0.0 }
 0x7b3   : > { %v6890_v28 = vadd.f32 %v6889_v34, %v15042_v46  ;;  %v7125_v13 = vmax.f32 %v6886_v62, 0.0 }
 0x7b4   : > { %v7126_v56 = vmax.f32 %v6888_v31, 0.0 }
 0x7b5   : > { %v7127_v57 = vmax.f32 %v6890_v28, 0.0 }
 0x7b6   : > { %v15250_v22 = vpack.c.bf16 %v7126_v56, %v7124_v8 }
 0x7b7   : > { %v6893_v4 = vpop.f32.mrb[248].mxu0  ;;  %v15255_v30 = vpack.c.bf16 %v7127_v57, %v7125_v13  ;;  %v12201_v57 = vld [vmem:[%s17261_s5 + $0x78] sm:$0xff]  }
 0x7b8   : > { %17361 = vst [vmem:[#allocation28_spill] sm:$0xff] %v15250_v22  ;;  %v6894_v17 = vadd.f32 %v6893_v4, %v15039_v12  ;;  %v6895_v35 = vpop.f32.mrb[249].mxu0  ;;  %8678 = vmatpush1.bf16.msra.mxu1 %v12201_v57 }
 0x7b9   : > { %17362 = vst [vmem:[#allocation29_spill] sm:$0xff] %v15255_v30  ;;  %v6896_v15 = vadd.f32 %v6895_v35, %v15042_v46  ;;  %v6897_v10 = vpop.f32.mrb[250].mxu0  ;;  %7632 = vmatprep.mubr.bf16.mxu1 %v15255_v30 }
 0x7ba   : > { %v6898_v44 = vadd.f32 %v6897_v10, %v15039_v12  ;;  %v6899_v32 = vpop.f32.mrb[251].mxu0  ;;  %7633 = vmatmul.mubr.bf16.gmra.mrb[244].mxu1 %v15250_v22  ;;  %v7128_v55 = vmax.f32 %v6894_v17, 0.0 }
 0x7bb   : > { %v6900_v9 = vadd.f32 %v6899_v32, %v15042_v46  ;;  %v7129_v1 = vmax.f32 %v6896_v15, 0.0  ;;  %v8257_v32 = vsel %vm8255_vm3, 4294967295, %v12544_v3 }
 0x7bc   : > { %v7130_v59 = vmax.f32 %v6898_v44, 0.0  ;;  %v12202_v44 = vld [vmem:[%s17262_s6 + $0x8] sm:$0x3f]  }
 0x7bd   : > { %v7131_v11 = vmax.f32 %v6900_v9, 0.0 }
 0x7be   : > { %v15264_v43 = vpack.c.bf16 %v7130_v59, %v7128_v55  ;;  %v8258_v59 = vsel %vm8256_vm4, %v8257_v32, 0 }
 0x7bf   : > { %v6903_v2 = vpop.f32.mrb[252].mxu0  ;;  %v15266_v21 = vpack.c.bf16 %v7131_v11, %v7129_v1  ;;  %v8260_v11 = vand.u32 %v12202_v44, %v8258_v59 }
 0x7c0   : > { %17363 = vst [vmem:[#allocation30_spill] sm:$0xff] %v15264_v43  ;;  %v6904_v41 = vadd.f32 %v6903_v2, %v15039_v12  ;;  %v6905_v20 = vpop.f32.mrb[253].mxu0 }
 0x7c1   : > { %17364 = vst [vmem:[#allocation31_spill] sm:$0xff] %v15266_v21  ;;  %v6906_v58 = vadd.f32 %v6905_v20, %v15042_v46  ;;  %v6907_v27 = vpop.f32.mrb[254].mxu0  ;;  %7642 = vmatprep.mubr.bf16.mxu1 %v15266_v21  ;;  %11453 = vmatprep.subr.bf16.mxu0 %v8260_v11 }
 0x7c2   : > { %v6908_v62 = vadd.f32 %v6907_v27, %v15039_v12  ;;  %v6909_v49 = vpop.f32.mrb[255].mxu0  ;;  %7643 = vmatmul.mubr.bf16.gmra.mrb[248].mxu1 %v15264_v43  ;;  %v7132_v34 = vmax.f32 %v6904_v41, 0.0  ;;  %11454 = vmatpush3.bf16.msra.mxu0 %v8260_v11  ;;  %v12203_v27 = vld [vmem:[%s15296_s23] sm:$0xff]   ;;  %v12218_v43 = vld [vmem:[%s15296_s23 + $0x78] sm:$0xff]  }
 0x7c3   : > { %v6910_v31 = vadd.f32 %v6909_v49, %v15042_v46  ;;  %v7133_v8 = vmax.f32 %v6906_v58, 0.0  ;;  %11455 = vmatprep.mubr.msk.bf16.mxu0 %vm8158_vm5, %v12203_v27 }
 0x7c4   : > { %v7134_v28 = vmax.f32 %v6908_v62, 0.0 }
 0x7c5   : > { %v7135_v56 = vmax.f32 %v6910_v31, 0.0 }
 0x7c6   : > { %v15274_v13 = vpack.c.bf16 %v7134_v28, %v7132_v34  ;;  %v12204_v28 = vld [vmem:[%s15296_s23 + $0x8] sm:$0xff]  }
 0x7c7   : > { %v6913_v29 = vpop.f32.mrb[0].mxu0  ;;  %v15279_v4 = vpack.c.bf16 %v7135_v56, %v7133_v8  ;;  %11456 = vmatmul.mubr.msk.bf16.vlgmr.msra.gmra.mrb[64].mxu0 %vm8158_vm5, %v12204_v28 }
 0x7c8   : > { %17365 = vst [vmem:[#allocation32_spill] sm:$0xff] %v15274_v13  ;;  %v6914_v17 = vadd.f32 %v6913_v29, %v15039_v12  ;;  %v6915_v35 = vpop.f32.mrb[1].mxu0 }
 0x7c9   : > { %17366 = vst [vmem:[#allocation33_spill] sm:$0xff] %v15279_v4  ;;  %v6916_v15 = vadd.f32 %v6915_v35, %v15042_v46  ;;  %v6917_v10 = vpop.f32.mrb[2].mxu0  ;;  %7652 = vmatprep.mubr.bf16.mxu1 %v15279_v4 }
 0x7ca   : > { %v6918_v9 = vadd.f32 %v6917_v10, %v15039_v12  ;;  %v6919_v55 = vpop.f32.mrb[3].mxu0  ;;  %7653 = vmatmul.mubr.bf16.gmra.mrb[252].mxu1 %v15274_v13  ;;  %v7136_v2 = vmax.f32 %v6914_v17, 0.0 }
 0x7cb   : > { %v6920_v1 = vadd.f32 %v6919_v55, %v15042_v46  ;;  %v7137_v20 = vmax.f32 %v6916_v15, 0.0 }
 0x7cc   : > { %v7138_v41 = vmax.f32 %v6918_v9, 0.0 }
 0x7cd   : > { %v7139_v58 = vmax.f32 %v6920_v1, 0.0 }
 0x7ce   : > { %v15298_v3 = vpack.c.bf16 %v7138_v41, %v7136_v2 }
 0x7cf   : > { %v6923_v62 = vpop.f32.mrb[4].mxu0  ;;  %v15301_v49 = vpack.c.bf16 %v7139_v58, %v7137_v20 }
 0x7d0   : > { %17367 = vst [vmem:[#allocation34_spill] sm:$0xff] %v15298_v3  ;;  %v6924_v31 = vadd.f32 %v6923_v62, %v15039_v12  ;;  %v6925_v34 = vpop.f32.mrb[5].mxu0 }
 0x7d1   : > { %17368 = vst [vmem:[#allocation35_spill] sm:$0xff] %v15301_v49  ;;  %v6926_v8 = vadd.f32 %v6925_v34, %v15042_v46  ;;  %v6927_v56 = vpop.f32.mrb[6].mxu0  ;;  %7662 = vmatprep.mubr.bf16.mxu1 %v15301_v49 }
 0x7d2   : > { %v6928_v57 = vadd.f32 %v6927_v56, %v15039_v12  ;;  %v6929_v29 = vpop.f32.mrb[7].mxu0  ;;  %7663 = vmatmul.mubr.bf16.gmra.mrb[0].mxu1 %v15298_v3  ;;  %v7140_v35 = vmax.f32 %v6924_v31, 0.0 }
 0x7d3   : > { %v6930_v17 = vadd.f32 %v6929_v29, %v15042_v46  ;;  %v7141_v10 = vmax.f32 %v6926_v8, 0.0  ;;  %v12205_v8 = vld [vmem:[%s15296_s23 + $0x10] sm:$0xff]   ;;  %v12206_v29 = vld [vmem:[%s15296_s23 + $0x18] sm:$0xff]  }
 0x7d4   : > { %v7142_v15 = vmax.f32 %v6928_v57, 0.0  ;;  %11459 = vmatprep.mubr.msk.bf16.mxu0 %vm8158_vm5, %v12205_v8 }
 0x7d5   : > { %v7143_v44 = vmax.f32 %v6930_v17, 0.0  ;;  %11460 = vmatmul.mubr.msk.bf16.gmra.mrb[68].mxu0 %vm8158_vm5, %v12206_v29 }
 0x7d6   : > { %v15312_v32 = vpack.c.bf16 %v7142_v15, %v7140_v35 }
 0x7d7   : > { %v6933_v9 = vpop.f32.mrb[8].mxu0  ;;  %v15314_v55 = vpack.c.bf16 %v7143_v44, %v7141_v10 }
 0x7d8   : > { %17369 = vst [vmem:[#allocation36_spill] sm:$0xff] %v15312_v32  ;;  %v6934_v59 = vadd.f32 %v6933_v9, %v15039_v12  ;;  %v6935_v1 = vpop.f32.mrb[9].mxu0 }
 0x7d9   : > { %17370 = vst [vmem:[#allocation37_spill] sm:$0xff] %v15314_v55  ;;  %v6936_v11 = vadd.f32 %v6935_v1, %v15042_v46  ;;  %v6937_v2 = vpop.f32.mrb[10].mxu0  ;;  %7672 = vmatprep.mubr.bf16.mxu1 %v15314_v55 }
 0x7da   : > { %v6938_v41 = vadd.f32 %v6937_v2, %v15039_v12  ;;  %v6939_v20 = vpop.f32.mrb[11].mxu0  ;;  %7673 = vmatmul.mubr.bf16.gmra.mrb[4].mxu1 %v15312_v32  ;;  %v7144_v27 = vmax.f32 %v6934_v59, 0.0 }
 0x7db   : > { %v6940_v58 = vadd.f32 %v6939_v20, %v15042_v46  ;;  %v7145_v31 = vmax.f32 %v6936_v11, 0.0 }
 0x7dc   : > { %v7146_v62 = vmax.f32 %v6938_v41, 0.0 }
 0x7dd   : > { %v7147_v34 = vmax.f32 %v6940_v58, 0.0 }
 0x7de   : > { %v15322_v28 = vpack.c.bf16 %v7146_v62, %v7144_v27 }
 0x7df   : > { %v6943_v56 = vpop.f32.mrb[12].mxu0  ;;  %v15325_v57 = vpack.c.bf16 %v7147_v34, %v7145_v31 }
 0x7e0   : > { %17371 = vst [vmem:[#allocation38_spill] sm:$0xff] %v15322_v28  ;;  %v6944_v17 = vadd.f32 %v6943_v56, %v15039_v12  ;;  %v6945_v35 = vpop.f32.mrb[13].mxu0 }
 0x7e1   : > { %17372 = vst [vmem:[#allocation39_spill] sm:$0xff] %v15325_v57  ;;  %v6946_v15 = vadd.f32 %v6945_v35, %v15042_v46  ;;  %v6947_v10 = vpop.f32.mrb[14].mxu0  ;;  %7682 = vmatprep.mubr.bf16.mxu1 %v15325_v57 }
 0x7e2   : > { %v6948_v44 = vadd.f32 %v6947_v10, %v15039_v12  ;;  %v6949_v9 = vpop.f32.mrb[15].mxu0  ;;  %7683 = vmatmul.mubr.bf16.gmra.mrb[8].mxu1 %v15322_v28  ;;  %v7148_v1 = vmax.f32 %v6944_v17, 0.0  ;;  %v12216_v28 = vld [vmem:[%s15296_s23 + $0x68] sm:$0xff]  }
 0x7e3   : > { %v6950_v59 = vadd.f32 %v6949_v9, %v15042_v46  ;;  %v7149_v2 = vmax.f32 %v6946_v15, 0.0 }
 0x7e4   : > { %v7150_v11 = vmax.f32 %v6948_v44, 0.0 }
 0x7e5   : > { %v7151_v41 = vmax.f32 %v6950_v59, 0.0  ;;  %v12207_v59 = vld [vmem:[%s15296_s23 + $0x20] sm:$0xff]  }
 0x7e6   : > { %v15336_v20 = vpack.c.bf16 %v7150_v11, %v7148_v1  ;;  %11463 = vmatprep.mubr.msk.bf16.mxu0 %vm8158_vm5, %v12207_v59 }
 0x7e7   : > { %v6953_v58 = vpop.f32.mrb[16].mxu0  ;;  %v15338_v27 = vpack.c.bf16 %v7151_v41, %v7149_v2  ;;  %v12208_v2 = vld [vmem:[%s15296_s23 + $0x28] sm:$0xff]  }
 0x7e8   : > { %17373 = vst [vmem:[#allocation40_spill] sm:$0xff] %v15336_v20  ;;  %v6954_v62 = vadd.f32 %v6953_v58, %v15039_v12  ;;  %v6955_v31 = vpop.f32.mrb[17].mxu0  ;;  %11464 = vmatmul.mubr.msk.bf16.gmra.mrb[72].mxu0 %vm8158_vm5, %v12208_v2 }
 0x7e9   : > { %17374 = vst [vmem:[#allocation41_spill] sm:$0xff] %v15338_v27  ;;  %v6956_v34 = vadd.f32 %v6955_v31, %v15042_v46  ;;  %v6957_v8 = vpop.f32.mrb[18].mxu0  ;;  %7692 = vmatprep.mubr.bf16.mxu1 %v15338_v27 }
 0x7ea   : > { %v6958_v56 = vadd.f32 %v6957_v8, %v15039_v12  ;;  %v6959_v29 = vpop.f32.mrb[19].mxu0  ;;  %7693 = vmatmul.mubr.bf16.gmra.mrb[12].mxu1 %v15336_v20  ;;  %v7152_v35 = vmax.f32 %v6954_v62, 0.0 }
 0x7eb   : > { %v6960_v17 = vadd.f32 %v6959_v29, %v15042_v46  ;;  %v7153_v10 = vmax.f32 %v6956_v34, 0.0 }
 0x7ec   : > { %v7154_v15 = vmax.f32 %v6958_v56, 0.0 }
 0x7ed   : > { %v7155_v44 = vmax.f32 %v6960_v17, 0.0 }
 0x7ee   : > { %v15346_v9 = vpack.c.bf16 %v7154_v15, %v7152_v35 }
 0x7ef   : > { %v6963_v1 = vpop.f32.mrb[20].mxu0  ;;  %v15349_v11 = vpack.c.bf16 %v7155_v44, %v7153_v10 }
 0x7f0   : > { %17375 = vst [vmem:[#allocation42_spill] sm:$0xff] %v15346_v9  ;;  %v6964_v41 = vadd.f32 %v6963_v1, %v15039_v12  ;;  %v6965_v58 = vpop.f32.mrb[21].mxu0 }
 0x7f1   : > { %17376 = vst [vmem:[#allocation43_spill] sm:$0xff] %v15349_v11  ;;  %v6966_v31 = vadd.f32 %v6965_v58, %v15042_v46  ;;  %v6967_v8 = vpop.f32.mrb[22].mxu0  ;;  %7702 = vmatprep.mubr.bf16.mxu1 %v15349_v11 }
 0x7f2   : > { %v6968_v62 = vadd.f32 %v6967_v8, %v15039_v12  ;;  %v6969_v34 = vpop.f32.mrb[23].mxu0  ;;  %7703 = vmatmul.mubr.bf16.gmra.mrb[16].mxu1 %v15346_v9  ;;  %v7156_v29 = vmax.f32 %v6964_v41, 0.0 }
 0x7f3   : > { %v6970_v56 = vadd.f32 %v6969_v34, %v15042_v46  ;;  %v7157_v35 = vmax.f32 %v6966_v31, 0.0 }
 0x7f4   : > { %v7158_v17 = vmax.f32 %v6968_v62, 0.0 }
 0x7f5   : > { %v7159_v15 = vmax.f32 %v6970_v56, 0.0 }
 0x7f6   : > { %v15360_v10 = vpack.c.bf16 %v7158_v17, %v7156_v29 }
 0x7f7   : > { %v6973_v44 = vpop.f32.mrb[24].mxu0  ;;  %v15362_v59 = vpack.c.bf16 %v7159_v15, %v7157_v35  ;;  %v12209_v15 = vld [vmem:[%s15296_s23 + $0x30] sm:$0xff]  }
 0x7f8   : > { %17377 = vst [vmem:[#allocation44_spill] sm:$0xff] %v15360_v10  ;;  %v6974_v1 = vadd.f32 %v6973_v44, %v15039_v12  ;;  %v6975_v2 = vpop.f32.mrb[25].mxu0  ;;  %11467 = vmatprep.mubr.msk.bf16.mxu0 %vm8158_vm5, %v12209_v15 }
 0x7f9   : > { %17378 = vst [vmem:[#allocation45_spill] sm:$0xff] %v15362_v59  ;;  %v6976_v58 = vadd.f32 %v6975_v2, %v15042_v46  ;;  %v6977_v8 = vpop.f32.mrb[26].mxu0  ;;  %7712 = vmatprep.mubr.bf16.mxu1 %v15362_v59  ;;  %v12210_v2 = vld [vmem:[%s15296_s23 + $0x38] sm:$0xff]  }
 0x7fa   : > { %v6978_v41 = vadd.f32 %v6977_v8, %v15039_v12  ;;  %v6979_v62 = vpop.f32.mrb[27].mxu0  ;;  %7713 = vmatmul.mubr.bf16.gmra.mrb[20].mxu1 %v15360_v10  ;;  %v7160_v34 = vmax.f32 %v6974_v1, 0.0  ;;  %11468 = vmatmul.mubr.msk.bf16.gmra.mrb[76].mxu0 %vm8158_vm5, %v12210_v2 }
 0x7fb   : > { %v6980_v31 = vadd.f32 %v6979_v62, %v15042_v46  ;;  %v7161_v29 = vmax.f32 %v6976_v58, 0.0 }
 0x7fc   : > { %v7162_v56 = vmax.f32 %v6978_v41, 0.0 }
 0x7fd   : > { %v7163_v17 = vmax.f32 %v6980_v31, 0.0 }
 0x7fe   : > { %v15370_v35 = vpack.c.bf16 %v7162_v56, %v7160_v34 }
 0x7ff   : > { %v6983_v44 = vpop.f32.mrb[28].mxu0  ;;  %v15373_v48 = vpack.c.bf16 %v7163_v17, %v7161_v29 }
 0x800   : > { %17379 = vst [vmem:[#allocation46_spill] sm:$0xff] %v15370_v35  ;;  %v6984_v5 = vadd.f32 %v6983_v44, %v15039_v12  ;;  %v6985_v59 = vpop.f32.mrb[29].mxu0 }
 0x801   : > { %17380 = vst [vmem:[#allocation47_spill] sm:$0xff] %v15373_v48  ;;  %v6986_v8 = vadd.f32 %v6985_v59, %v15042_v46  ;;  %v6987_v10 = vpop.f32.mrb[30].mxu0  ;;  %7722 = vmatprep.mubr.bf16.mxu1 %v15373_v48 }
 0x802   : > { %v6988_v1 = vadd.f32 %v6987_v10, %v15039_v12  ;;  %v6989_v58 = vpop.f32.mrb[31].mxu0  ;;  %7723 = vmatmul.mubr.bf16.gmra.mrb[24].mxu1 %v15370_v35  ;;  %v7164_v62 = vmax.f32 %v6984_v5, 0.0 }
 0x803   : > { %v6990_v41 = vadd.f32 %v6989_v58, %v15042_v46  ;;  %v7165_v34 = vmax.f32 %v6986_v8, 0.0 }
 0x804   : > { %v7166_v31 = vmax.f32 %v6988_v1, 0.0 }
 0x805   : > { %v7167_v56 = vmax.f32 %v6990_v41, 0.0 }
 0x806   : > { %v15384_v29 = vpack.c.bf16 %v7166_v31, %v7164_v62 }
 0x807   : > { %v6993_v17 = vpop.f32.mrb[32].mxu0  ;;  %v15386_v59 = vpack.c.bf16 %v7167_v56, %v7165_v34  ;;  %v12211_v56 = vld [vmem:[%s15296_s23 + $0x40] sm:$0xff]  }
 0x808   : > { %17381 = vst [vmem:[#allocation48_spill] sm:$0xff] %v15384_v29  ;;  %v6994_v15 = vadd.f32 %v6993_v17, %v15039_v12  ;;  %v6995_v44 = vpop.f32.mrb[33].mxu0  ;;  %11471 = vmatprep.mubr.msk.bf16.mxu0 %vm8158_vm5, %v12211_v56 }
 0x809   : > { %17382 = vst [vmem:[#allocation49_spill] sm:$0xff] %v15386_v59  ;;  %v6996_v10 = vadd.f32 %v6995_v44, %v15042_v46  ;;  %v6997_v2 = vpop.f32.mrb[34].mxu0  ;;  %7732 = vmatprep.mubr.bf16.mxu1 %v15386_v59  ;;  %v12212_v44 = vld [vmem:[%s15296_s23 + $0x48] sm:$0xff]  }
 0x80a   : > { %v6998_v5 = vadd.f32 %v6997_v2, %v15039_v12  ;;  %v6999_v1 = vpop.f32.mrb[35].mxu0  ;;  %7733 = vmatmul.mubr.bf16.gmra.mrb[28].mxu1 %v15384_v29  ;;  %v7168_v58 = vmax.f32 %v6994_v15, 0.0  ;;  %11472 = vmatmul.mubr.msk.bf16.gmra.mrb[80].mxu0 %vm8158_vm5, %v12212_v44 }
 0x80b   : > { %v7000_v8 = vadd.f32 %v6999_v1, %v15042_v46  ;;  %v7169_v62 = vmax.f32 %v6996_v10, 0.0 }
 0x80c   : > { %v7170_v41 = vmax.f32 %v6998_v5, 0.0 }
 0x80d   : > { %v7171_v31 = vmax.f32 %v7000_v8, 0.0 }
 0x80e   : > { %v15394_v34 = vpack.c.bf16 %v7170_v41, %v7168_v58 }
 0x80f   : > { %v7003_v17 = vpop.f32.mrb[36].mxu0  ;;  %v15397_v35 = vpack.c.bf16 %v7171_v31, %v7169_v62 }
 0x810   : > { %17383 = vst [vmem:[#allocation50_spill] sm:$0xff] %v15394_v34  ;;  %v7004_v59 = vadd.f32 %v7003_v17, %v15039_v12  ;;  %v7005_v48 = vpop.f32.mrb[37].mxu0 }
 0x811   : > { %17384 = vst [vmem:[#allocation51_spill] sm:$0xff] %v15397_v35  ;;  %v7006_v2 = vadd.f32 %v7005_v48, %v15042_v46  ;;  %v7007_v29 = vpop.f32.mrb[38].mxu0  ;;  %7742 = vmatprep.mubr.bf16.mxu1 %v15397_v35 }
 0x812   : > { %v7008_v15 = vadd.f32 %v7007_v29, %v15039_v12  ;;  %v7009_v10 = vpop.f32.mrb[39].mxu0  ;;  %7743 = vmatmul.mubr.bf16.gmra.mrb[32].mxu1 %v15394_v34  ;;  %v7172_v1 = vmax.f32 %v7004_v59, 0.0 }
 0x813   : > { %v7010_v5 = vadd.f32 %v7009_v10, %v15042_v46  ;;  %v7173_v58 = vmax.f32 %v7006_v2, 0.0 }
 0x814   : > { %v7174_v8 = vmax.f32 %v7008_v15, 0.0 }
 0x815   : > { %v7175_v41 = vmax.f32 %v7010_v5, 0.0 }
 0x816   : > { %v15408_v62 = vpack.c.bf16 %v7174_v8, %v7172_v1 }
 0x817   : > { %v7013_v31 = vpop.f32.mrb[40].mxu0  ;;  %v15410_v48 = vpack.c.bf16 %v7175_v41, %v7173_v58  ;;  %v12213_v41 = vld [vmem:[%s15296_s23 + $0x50] sm:$0xff]  }
 0x818   : > { %17385 = vst [vmem:[#allocation52_spill] sm:$0xff] %v15408_v62  ;;  %v7014_v56 = vadd.f32 %v7013_v31, %v15039_v12  ;;  %v7015_v17 = vpop.f32.mrb[41].mxu0  ;;  %11475 = vmatprep.mubr.msk.bf16.mxu0 %vm8158_vm5, %v12213_v41 }
 0x819   : > { %17386 = vst [vmem:[#allocation53_spill] sm:$0xff] %v15410_v48  ;;  %v7016_v29 = vadd.f32 %v7015_v17, %v15042_v46  ;;  %v7017_v44 = vpop.f32.mrb[42].mxu0  ;;  %7752 = vmatprep.mubr.bf16.mxu1 %v15410_v48  ;;  %v12214_v17 = vld [vmem:[%s15296_s23 + $0x58] sm:$0xff]  }
 0x81a   : > { %v7018_v59 = vadd.f32 %v7017_v44, %v15039_v12  ;;  %v7019_v15 = vpop.f32.mrb[43].mxu0  ;;  %7753 = vmatmul.mubr.bf16.gmra.mrb[36].mxu1 %v15408_v62  ;;  %v7176_v10 = vmax.f32 %v7014_v56, 0.0  ;;  %v11170_v56 = vld [vmem:[%s17260_s4 + $0x10] ss:$8 sm:$0x3]  ;;  %11476 = vmatmul.mubr.msk.bf16.gmra.mrb[84].mxu0 %vm8158_vm5, %v12214_v17 }
 0x81b   : > { %v7020_v2 = vadd.f32 %v7019_v15, %v15042_v46  ;;  %v7177_v1 = vmax.f32 %v7016_v29, 0.0  ;;  %v15439_v41 = vrot.slane %v11170_v56, %v12998_v52 }
 0x81c   : > { %v7178_v5 = vmax.f32 %v7018_v59, 0.0 }
 0x81d   : > { %v7179_v8 = vmax.f32 %v7020_v2, 0.0 }
 0x81e   : > { %v15418_v58 = vpack.c.bf16 %v7178_v5, %v7176_v10 }
 0x81f   : > { %v7023_v31 = vpop.f32.mrb[44].mxu0  ;;  %v15421_v34 = vpack.c.bf16 %v7179_v8, %v7177_v1 }
 0x820   : > { %17387 = vst [vmem:[#allocation54_spill] sm:$0xff] %v15418_v58  ;;  %v7024_v48 = vadd.f32 %v7023_v31, %v15039_v12  ;;  %v7025_v35 = vpop.f32.mrb[45].mxu0 }
 0x821   : > { %17388 = vst [vmem:[#allocation55_spill] sm:$0xff] %v15421_v34  ;;  %v7026_v44 = vadd.f32 %v7025_v35, %v15042_v46  ;;  %v7027_v62 = vpop.f32.mrb[46].mxu0  ;;  %7762 = vmatprep.mubr.bf16.mxu1 %v15421_v34  ;;  %v15436_v35 = vrot.slane %v11170_v56, %v12992_v50 }
 0x822   : > { %v7028_v29 = vadd.f32 %v7027_v62, %v15039_v12  ;;  %v7029_v59 = vpop.f32.mrb[47].mxu0  ;;  %7763 = vmatmul.mubr.bf16.gmra.mrb[40].mxu1 %v15418_v58  ;;  %v7180_v2 = vmax.f32 %v7024_v48, 0.0 }
 0x823   : > { %v7030_v15 = vadd.f32 %v7029_v59, %v15042_v46  ;;  %v7181_v5 = vmax.f32 %v7026_v44, 0.0 }
 0x824   : > { %v7182_v10 = vmax.f32 %v7028_v29, 0.0 }
 0x825   : > { %v7183_v1 = vmax.f32 %v7030_v15, 0.0  ;;  %v7504_v8 = vpop.f32.mrb[192].mxu1 }
 0x826   : > { %v15441_v31 = vpack.c.bf16 %v7182_v10, %v7180_v2  ;;  %v7506_v17 = vpop.f32.mrb[193].mxu1  ;;  %v15446_v59 = vadd.f32 %v7504_v8, %v15436_v35  ;;  %v12215_v10 = vld [vmem:[%s15296_s23 + $0x60] sm:$0xff]  }
 0x827   : > { %v7033_v62 = vpop.f32.mrb[48].mxu0  ;;  %v7508_v34 = vpop.f32.mrb[194].mxu1  ;;  %v15443_v9 = vpack.c.bf16 %v7183_v1, %v7181_v5  ;;  %v15453_v52 = vadd.f32 %v7506_v17, %v15439_v41  ;;  %11479 = vmatprep.mubr.msk.bf16.mxu0 %vm8158_vm5, %v12215_v10 }
 0x828   : > { %17389 = vst [vmem:[#allocation56_spill] sm:$0xff] %v15441_v31  ;;  %v7034_v48 = vadd.f32 %v7033_v62, %v15039_v12  ;;  %v15450_v50 = vadd.f32 %v7508_v34, %v15436_v35  ;;  %v7035_v44 = vpop.f32.mrb[49].mxu0  ;;  %v7510_v29 = vpop.f32.mrb[195].mxu1  ;;  %11480 = vmatmul.mubr.msk.bf16.gmra.mrb[88].mxu0 %vm8158_vm5, %v12216_v28 }
 0x829   : > { %17390 = vst [vmem:[#allocation57_spill] sm:$0xff] %v15443_v9  ;;  %v7036_v56 = vadd.f32 %v7035_v44, %v15042_v46  ;;  %v15457_v15 = vadd.f32 %v7510_v29, %v15439_v41  ;;  %v7037_v2 = vpop.f32.mrb[50].mxu0  ;;  %7772 = vmatprep.mubr.bf16.mxu1 %v15443_v9 }
 0x82a   : > { %v7038_v34 = vadd.f32 %v7037_v2, %v15039_v12  ;;  %v7039_v5 = vpop.f32.mrb[51].mxu0  ;;  %7773 = vmatmul.mubr.bf16.gmra.mrb[44].mxu1 %v15441_v31  ;;  %v7184_v17 = vmax.f32 %v7034_v48, 0.0 }
 0x82b   : > { %v7040_v8 = vadd.f32 %v7039_v5, %v15042_v46  ;;  %v7185_v44 = vmax.f32 %v7036_v56, 0.0 }
 0x82c   : > { %v7186_v62 = vmax.f32 %v7038_v34, 0.0 }
 0x82d   : > { %v7187_v29 = vmax.f32 %v7040_v8, 0.0  ;;  %v7514_v58 = vpop.f32.mrb[196].mxu1 }
 0x82e   : > { %v15467_v9 = vpack.c.bf16 %v7186_v62, %v7184_v17  ;;  %v7516_v11 = vpop.f32.mrb[197].mxu1  ;;  %v15474_v31 = vadd.f32 %v7514_v58, %v15436_v35 }
 0x82f   : > { %v7043_v20 = vpop.f32.mrb[52].mxu0  ;;  %v7518_v2 = vpop.f32.mrb[198].mxu1  ;;  %v15470_v27 = vpack.c.bf16 %v7187_v29, %v7185_v44  ;;  %v15482_v5 = vadd.f32 %v7516_v11, %v15439_v41 }
 0x830   : > { %17391 = vst [vmem:[#allocation58_spill] sm:$0xff] %v15467_v9  ;;  %v7044_v1 = vadd.f32 %v7043_v20, %v15039_v12  ;;  %v15478_v48 = vadd.f32 %v7518_v2, %v15436_v35  ;;  %v7045_v56 = vpop.f32.mrb[53].mxu0  ;;  %v7520_v34 = vpop.f32.mrb[199].mxu1 }
 0x831   : > { %17392 = vst [vmem:[#allocation59_spill] sm:$0xff] %v15470_v27  ;;  %v7046_v8 = vadd.f32 %v7045_v56, %v15042_v46  ;;  %v15486_v17 = vadd.f32 %v7520_v34, %v15439_v41  ;;  %v7047_v62 = vpop.f32.mrb[54].mxu0  ;;  %7782 = vmatprep.mubr.bf16.mxu1 %v15470_v27 }
 0x832   : > { %v7048_v58 = vadd.f32 %v7047_v62, %v15039_v12  ;;  %v7049_v44 = vpop.f32.mrb[55].mxu0  ;;  %7783 = vmatmul.mubr.bf16.gmra.mrb[48].mxu1 %v15467_v9  ;;  %v7188_v29 = vmax.f32 %v7044_v1, 0.0 }
 0x833   : > { %v7050_v10 = vadd.f32 %v7049_v44, %v15042_v46  ;;  %v7189_v56 = vmax.f32 %v7046_v8, 0.0 }
 0x834   : > { %v7190_v2 = vmax.f32 %v7048_v58, 0.0 }
 0x835   : > { %v7191_v34 = vmax.f32 %v7050_v10, 0.0  ;;  %v7524_v27 = vpop.f32.mrb[200].mxu1 }
 0x836   : > { %v15497_v57 = vpack.c.bf16 %v7190_v2, %v7188_v29  ;;  %v7526_v28 = vpop.f32.mrb[201].mxu1  ;;  %v15502_v62 = vadd.f32 %v7524_v27, %v15436_v35 }
 0x837   : > { %v7053_v32 = vpop.f32.mrb[56].mxu0  ;;  %v7528_v20 = vpop.f32.mrb[202].mxu1  ;;  %v15499_v55 = vpack.c.bf16 %v7191_v34, %v7189_v56  ;;  %v15509_v8 = vadd.f32 %v7526_v28, %v15439_v41 }
 0x838   : > { %17393 = vst [vmem:[#allocation60_spill] sm:$0xff] %v15497_v57  ;;  %v7054_v9 = vadd.f32 %v7053_v32, %v15039_v12  ;;  %v15506_v11 = vadd.f32 %v7528_v20, %v15436_v35  ;;  %v7055_v1 = vpop.f32.mrb[57].mxu0  ;;  %v7530_v58 = vpop.f32.mrb[203].mxu1  ;;  %v12217_v32 = vld [vmem:[%s15296_s23 + $0x70] sm:$0xff]  }
 0x839   : > { %17394 = vst [vmem:[#allocation61_spill] sm:$0xff] %v15499_v55  ;;  %v7056_v44 = vadd.f32 %v7055_v1, %v15042_v46  ;;  %v15513_v10 = vadd.f32 %v7530_v58, %v15439_v41  ;;  %v7057_v29 = vpop.f32.mrb[58].mxu0  ;;  %7792 = vmatprep.mubr.bf16.mxu1 %v15499_v55  ;;  %11483 = vmatprep.mubr.msk.bf16.mxu0 %vm8158_vm5, %v12217_v32 }
 0x83a   : > { %v7058_v27 = vadd.f32 %v7057_v29, %v15039_v12  ;;  %v7059_v20 = vpop.f32.mrb[59].mxu0  ;;  %7793 = vmatmul.mubr.bf16.gmra.mrb[52].mxu1 %v15497_v57  ;;  %v7192_v34 = vmax.f32 %v7054_v9, 0.0  ;;  %11484 = vmatmul.mubr.msk.bf16.gmra.mrb[92].mxu0 %vm8158_vm5, %v12218_v43 }
 0x83b   : > { %v7060_v56 = vadd.f32 %v7059_v20, %v15042_v46  ;;  %v7193_v1 = vmax.f32 %v7056_v44, 0.0 }
 0x83c   : > { %v7194_v28 = vmax.f32 %v7058_v27, 0.0 }
 0x83d   : > { %v7195_v58 = vmax.f32 %v7060_v56, 0.0  ;;  %v7534_v3 = vpop.f32.mrb[204].mxu1 }
 0x83e   : > { %v15523_v55 = vpack.c.bf16 %v7194_v28, %v7192_v34  ;;  %v7536_v49 = vpop.f32.mrb[205].mxu1  ;;  %v15530_v57 = vadd.f32 %v7534_v3, %v15436_v35 }
 0x83f   : > { %v7063_v13 = vpop.f32.mrb[60].mxu0  ;;  %v7538_v29 = vpop.f32.mrb[206].mxu1  ;;  %v15526_v4 = vpack.c.bf16 %v7195_v58, %v7193_v1  ;;  %v15538_v20 = vadd.f32 %v7536_v49, %v15439_v41 }
 0x840   : > { %17395 = vst [vmem:[#allocation62_spill] sm:$0xff] %v15523_v55  ;;  %v7064_v2 = vadd.f32 %v7063_v13, %v15039_v12  ;;  %v15534_v9 = vadd.f32 %v7538_v29, %v15436_v35  ;;  %v7065_v44 = vpop.f32.mrb[61].mxu0  ;;  %v7540_v27 = vpop.f32.mrb[207].mxu1 }
 0x841   : > { %17396 = vst [vmem:[#allocation63_spill] sm:$0xff] %v15526_v4  ;;  %v7066_v56 = vadd.f32 %v7065_v44, %v15042_v46  ;;  %v15542_v34 = vadd.f32 %v7540_v27, %v15439_v41  ;;  %v7067_v28 = vpop.f32.mrb[62].mxu0  ;;  %7802 = vmatprep.mubr.bf16.mxu1 %v15526_v4 }
 0x842   : > { %v7068_v3 = vadd.f32 %v7067_v28, %v15039_v12  ;;  %v7069_v1 = vpop.f32.mrb[63].mxu0  ;;  %7803 = vmatmul.mubr.bf16.gmra.mrb[56].mxu1 %v15523_v55  ;;  %v7196_v58 = vmax.f32 %v7064_v2, 0.0 }
 0x843   : > { %v7070_v32 = vadd.f32 %v7069_v1, %v15042_v46  ;;  %v7197_v44 = vmax.f32 %v7066_v56, 0.0 }
 0x844   : > { %v7198_v29 = vmax.f32 %v7068_v3, 0.0  ;;  %v12222_v3 = vld [vmem:[%s15296_s23 + $0x98] sm:$0xff]  }
 0x845   : > { %v7199_v27 = vmax.f32 %v7070_v32, 0.0  ;;  %v7544_v4 = vpop.f32.mrb[208].mxu1 }
 0x846   : > { %v15553_v21 = vpack.c.bf16 %v7198_v29, %v7196_v58  ;;  %v7546_v43 = vpop.f32.mrb[209].mxu1  ;;  %v15558_v28 = vadd.f32 %v7544_v4, %v15436_v35  ;;  %v17399_v4 = vpack.c.bf16 %v15457_v15, %v15453_v52  ;;  %v12219_v58 = vld [vmem:[%s15296_s23 + $0x80] sm:$0xff]   ;;  %v17400_v15 = vpack.c.bf16 %v15450_v50, %v15446_v59 }
 0x847   : > { %v7548_v13 = vpop.f32.mrb[210].mxu1  ;;  %v15555_v12 = vpack.c.bf16 %v7199_v27, %v7197_v44  ;;  %v7547_v2 = vadd.f32 %v7546_v43, %v15439_v41  ;;  %v12220_v44 = vld [vmem:[%s15296_s23 + $0x88] sm:$0xff]   ;;  %11487 = vmatprep.mubr.msk.bf16.mxu0 %vm8158_vm5, %v12219_v58 }
 0x848   : > { %17397 = vst [vmem:[#allocation64_spill] sm:$0xff] %v15553_v21  ;;  %v15561_v49 = vadd.f32 %v7548_v13, %v15436_v35  ;;  %v7550_v46 = vpop.f32.mrb[211].mxu1  ;;  %11488 = vmatmul.mubr.msk.bf16.gmra.mrb[96].mxu0 %vm8158_vm5, %v12220_v44 }
 0x849   : > { %17398 = vst [vmem:[#allocation65_spill] sm:$0xff] %v15555_v12  ;;  %v7551_v56 = vadd.f32 %v7550_v46, %v15439_v41  ;;  %7812 = vmatprep.mubr.bf16.mxu1 %v15555_v12 }
 0x84a   : > { %7813 = vmatmul.mubr.bf16.gmra.mrb[60].mxu1 %v15553_v21 }
 0x84b   : > { %v7896_v1 = vpack.c.bf16 %v7551_v56, %v7547_v2  ;;  %8679 = vmatprep.mubr.bf16.mxu1 %v17399_v4 }
 0x84d   : > { %v7554_v32 = vpop.f32.mrb[212].mxu1 }
 0x84e   : > { %v7556_v13 = vpop.f32.mrb[213].mxu1  ;;  %v15575_v27 = vadd.f32 %v7554_v32, %v15436_v35  ;;  %v17401_v32 = vpack.c.bf16 %v15486_v17, %v15482_v5  ;;  %v17402_v17 = vpack.c.bf16 %v15478_v48, %v15474_v31 }
 0x84f   : > { %v7558_v29 = vpop.f32.mrb[214].mxu1  ;;  %v7557_v2 = vadd.f32 %v7556_v13, %v15439_v41 }
 0x850   : > { %v15578_v43 = vadd.f32 %v7558_v29, %v15436_v35  ;;  %v7560_v46 = vpop.f32.mrb[215].mxu1 }
 0x851   : > { %v7561_v56 = vadd.f32 %v7560_v46, %v15439_v41 }
 0x852   : > { %8680 = vmatmul.mubr.bf16.vlgmr.msra.gmra.mrb[64].mxu1 %v17400_v15 }
 0x853   : > { %v7898_v4 = vpack.c.bf16 %v7561_v56, %v7557_v2  ;;  %8687 = vmatprep.mubr.bf16.mxu1 %v17401_v32  ;;  %v17403_v56 = vpack.c.bf16 %v15513_v10, %v15509_v8  ;;  %v17404_v10 = vpack.c.bf16 %v15506_v11, %v15502_v62 }
 0x855   : > { %v7564_v58 = vpop.f32.mrb[216].mxu1 }
 0x856   : > { %v7566_v13 = vpop.f32.mrb[217].mxu1  ;;  %v15593_v46 = vadd.f32 %v7564_v58, %v15436_v35  ;;  %v12221_v58 = vld [vmem:[%s15296_s23 + $0x90] sm:$0xff]  }
 0x857   : > { %v7568_v29 = vpop.f32.mrb[218].mxu1  ;;  %v7567_v59 = vadd.f32 %v7566_v13, %v15439_v41  ;;  %11491 = vmatprep.mubr.msk.bf16.mxu0 %vm8158_vm5, %v12221_v58 }
 0x858   : > { %v15596_v44 = vadd.f32 %v7568_v29, %v15436_v35  ;;  %v7570_v52 = vpop.f32.mrb[219].mxu1  ;;  %11492 = vmatmul.mubr.msk.bf16.gmra.mrb[100].mxu0 %vm8158_vm5, %v12222_v3 }
 0x859   : > { %v7571_v50 = vadd.f32 %v7570_v52, %v15439_v41 }
 0x85a   : > { %8688 = vmatmul.mubr.bf16.gmra.mrb[68].mxu1 %v17402_v17 }
 0x85b   : > { %v7900_v2 = vpack.c.bf16 %v7571_v50, %v7567_v59  ;;  %8695 = vmatprep.mubr.bf16.mxu1 %v17403_v56  ;;  %v17405_v50 = vpack.c.bf16 %v15542_v34, %v15538_v20  ;;  %v17406_v34 = vpack.c.bf16 %v15534_v9, %v15530_v57 }
 0x85d   : > { %v7574_v15 = vpop.f32.mrb[220].mxu1 }
 0x85e   : > { %v7576_v32 = vpop.f32.mrb[221].mxu1  ;;  %v15611_v13 = vadd.f32 %v7574_v15, %v15436_v35 }
 0x85f   : > { %v7578_v29 = vpop.f32.mrb[222].mxu1  ;;  %v7577_v31 = vadd.f32 %v7576_v32, %v15439_v41 }
 0x860   : > { %v15614_v52 = vadd.f32 %v7578_v29, %v15436_v35  ;;  %v7580_v5 = vpop.f32.mrb[223].mxu1 }
 0x861   : > { %v7581_v48 = vadd.f32 %v7580_v5, %v15439_v41 }
 0x862   : > { %v7901_v8 = vpack.c.bf16 %v15614_v52, %v15611_v13  ;;  %8696 = vmatmul.mubr.bf16.gmra.mrb[72].mxu1 %v17404_v10 }
 0x863   : > { %v7902_v59 = vpack.c.bf16 %v7581_v48, %v7577_v31  ;;  %8703 = vmatprep.mubr.bf16.mxu1 %v17405_v50  ;;  %v12223_v48 = vld [vmem:[%s15296_s23 + $0xa0] sm:$0xff]   ;;  %v12224_v50 = vld [vmem:[%s15296_s23 + $0xa8] sm:$0xff]  }
 0x864   : > { %11495 = vmatprep.mubr.msk.bf16.mxu0 %vm8158_vm5, %v12223_v48 }
 0x865   : > { %v7584_v17 = vpop.f32.mrb[224].mxu1  ;;  %11496 = vmatmul.mubr.msk.bf16.gmra.mrb[104].mxu0 %vm8158_vm5, %v12224_v50 }
 0x866   : > { %v7586_v56 = vpop.f32.mrb[225].mxu1  ;;  %v15629_v5 = vadd.f32 %v7584_v17, %v15436_v35 }
 0x867   : > { %v7588_v15 = vpop.f32.mrb[226].mxu1  ;;  %v7587_v11 = vadd.f32 %v7586_v56, %v15439_v41 }
 0x868   : > { %v15632_v3 = vadd.f32 %v7588_v15, %v15436_v35  ;;  %v7590_v32 = vpop.f32.mrb[227].mxu1 }
 0x869   : > { %v7591_v62 = vadd.f32 %v7590_v32, %v15439_v41 }
 0x86a   : > { %v7903_v20 = vpack.c.bf16 %v15632_v3, %v15629_v5  ;;  %8704 = vmatmul.mubr.bf16.gmra.mrb[76].mxu1 %v17406_v34 }
 0x86b   : > { %v7904_v58 = vpack.c.bf16 %v7591_v62, %v7587_v11  ;;  %8711 = vmatprep.mubr.bf16.mxu1 %v7896_v1  ;;  %v17407_v1 = vpack.c.bf16 %v15561_v49, %v15558_v28 }
 0x86d   : > { %v7594_v29 = vpop.f32.mrb[228].mxu1 }
 0x86e   : > { %v7596_v31 = vpop.f32.mrb[229].mxu1  ;;  %v15644_v17 = vadd.f32 %v7594_v29, %v15436_v35 }
 0x86f   : > { %v7598_v10 = vpop.f32.mrb[230].mxu1  ;;  %v7597_v32 = vadd.f32 %v7596_v31, %v15439_v41 }
 0x870   : > { %v15647_v56 = vadd.f32 %v7598_v10, %v15436_v35  ;;  %v7600_v15 = vpop.f32.mrb[231].mxu1 }
 0x871   : > { %v7601_v57 = vadd.f32 %v7600_v15, %v15439_v41 }
 0x872   : > { %v7905_v9 = vpack.c.bf16 %v15647_v56, %v15644_v17  ;;  %8712 = vmatmul.mubr.bf16.gmra.mrb[80].mxu1 %v17407_v1  ;;  %v12225_v1 = vld [vmem:[%s15296_s23 + $0xb0] sm:$0xff]  }
 0x873   : > { %v7906_v11 = vpack.c.bf16 %v7601_v57, %v7597_v32  ;;  %8719 = vmatprep.mubr.bf16.mxu1 %v7898_v4  ;;  %v17408_v4 = vpack.c.bf16 %v15578_v43, %v15575_v27  ;;  %11499 = vmatprep.mubr.msk.bf16.mxu0 %vm8158_vm5, %v12225_v1  ;;  %v12233_v17 = vld [vmem:[%s17265_s9 + $0x10] sm:$0xff]  }
 0x875   : > { %v7604_v62 = vpop.f32.mrb[232].mxu1 }
 0x876   : > { %v7606_v34 = vpop.f32.mrb[233].mxu1  ;;  %v15659_v31 = vadd.f32 %v7604_v62, %v15436_v35 }
 0x877   : > { %v7608_v29 = vpop.f32.mrb[234].mxu1  ;;  %v15665_v50 = vadd.f32 %v7606_v34, %v15439_v41  ;;  %v12226_v34 = vld [vmem:[%s15296_s23 + $0xb8] sm:$0xff]  }
 0x878   : > { %v15662_v48 = vadd.f32 %v7608_v29, %v15436_v35  ;;  %v7610_v10 = vpop.f32.mrb[235].mxu1  ;;  %11500 = vmatmul.mubr.msk.bf16.gmra.mrb[108].mxu0 %vm8158_vm5, %v12226_v34 }
 0x879   : > { %v15668_v49 = vadd.f32 %v7610_v10, %v15439_v41 }
 0x87a   : > { %8720 = vmatmul.mubr.bf16.gmra.mrb[84].mxu1 %v17408_v4 }
 0x87b   : > { %v7908_v15 = vpack.c.bf16 %v15668_v49, %v15665_v50  ;;  %8727 = vmatprep.mubr.bf16.mxu1 %v7900_v2  ;;  %v17409_v50 = vpack.c.bf16 %v15596_v44, %v15593_v46 }
 0x87d   : > { %v7614_v32 = vpop.f32.mrb[236].mxu1 }
 0x87e   : > { %v7616_v57 = vpop.f32.mrb[237].mxu1  ;;  %v15680_v29 = vadd.f32 %v7614_v32, %v15436_v35 }
 0x87f   : > { %v7618_v62 = vpop.f32.mrb[238].mxu1  ;;  %v15687_v27 = vadd.f32 %v7616_v57, %v15439_v41 }
 0x880   : > { %v15683_v10 = vadd.f32 %v7618_v62, %v15436_v35  ;;  %v7620_v28 = vpop.f32.mrb[239].mxu1 }
 0x881   : > { %v15690_v43 = vadd.f32 %v7620_v28, %v15439_v41 }
 0x882   : > { %8728 = vmatmul.mubr.bf16.gmra.mrb[88].mxu1 %v17409_v50 }
 0x883   : > { %8735 = vmatprep.mubr.bf16.mxu1 %v7902_v59 }
 0x885   : > { %v7624_v4 = vpop.f32.mrb[240].mxu1 }
 0x886   : > { %v7626_v32 = vpop.f32.mrb[241].mxu1  ;;  %v15701_v28 = vadd.f32 %v7624_v4, %v15436_v35 }
 0x887   : > { %v7628_v57 = vpop.f32.mrb[242].mxu1  ;;  %v15707_v34 = vadd.f32 %v7626_v32, %v15439_v41  ;;  %v12228_v32 = vld [vmem:[%s15296_s23 + $0xc8] sm:$0xff]  }
 0x888   : > { %v15704_v1 = vadd.f32 %v7628_v57, %v15436_v35  ;;  %v7630_v62 = vpop.f32.mrb[243].mxu1  ;;  %v12227_v57 = vld [vmem:[%s15296_s23 + $0xc0] sm:$0xff]  }
 0x889   : > { %v15710_v46 = vadd.f32 %v7630_v62, %v15439_v41  ;;  %11503 = vmatprep.mubr.msk.bf16.mxu0 %vm8158_vm5, %v12227_v57 }
 0x88a   : > { %8736 = vmatmul.mubr.bf16.gmra.mrb[92].mxu1 %v7901_v8  ;;  %11504 = vmatmul.mubr.msk.bf16.gmra.mrb[112].mxu0 %vm8158_vm5, %v12228_v32 }
 0x88b   : > { %8743 = vmatprep.mubr.bf16.mxu1 %v7904_v58 }
 0x88d   : > { %v7634_v50 = vpop.f32.mrb[244].mxu1 }
 0x88e   : > { %v7636_v4 = vpop.f32.mrb[245].mxu1  ;;  %v15722_v49 = vadd.f32 %v7634_v50, %v15436_v35 }
 0x88f   : > { %v7638_v2 = vpop.f32.mrb[246].mxu1  ;;  %v15729_v13 = vadd.f32 %v7636_v4, %v15439_v41 }
 0x890   : > { %v15725_v62 = vadd.f32 %v7638_v2, %v15436_v35  ;;  %v7640_v44 = vpop.f32.mrb[247].mxu1 }
 0x891   : > { %v15732_v52 = vadd.f32 %v7640_v44, %v15439_v41  ;;  %v12229_v44 = vld [vmem:[%s17265_s9] sm:$0xff]  }
 0x892   : > { %8744 = vmatmul.mubr.bf16.gmra.mrb[96].mxu1 %v7903_v20  ;;  %11519 = vmatprep.subr.bf16.mxu0 %v12229_v44  ;;  %v17417_v30 = vpack.c.bf16 %v15725_v62, %v15722_v49 }
 0x893   : > { %8751 = vmatprep.mubr.bf16.mxu1 %v7906_v11  ;;  %11520 = vmatpush3.bf16.msra.mxu0 %v12229_v44  ;;  %v12232_v44 = vld [vmem:[%s15296_s23 + $0xd8] sm:$0xff]  }
 0x895   : > { %v7644_v2 = vpop.f32.mrb[248].mxu1 }
 0x896   : > { %v7646_v50 = vpop.f32.mrb[249].mxu1  ;;  %v15746_v57 = vadd.f32 %v7644_v2, %v15436_v35  ;;  %v12230_v2 = vld [vmem:[%s17265_s9 + $0x8] sm:$0xff]  }
 0x897   : > { %v7648_v4 = vpop.f32.mrb[250].mxu1  ;;  %v15752_v3 = vadd.f32 %v7646_v50, %v15439_v41  ;;  %11521 = vmatprep.subr.bf16.mxu0 %v12230_v2  ;;  %v12231_v50 = vld [vmem:[%s15296_s23 + $0xd0] sm:$0xff]  }
 0x898   : > { %v15749_v32 = vadd.f32 %v7648_v4, %v15436_v35  ;;  %v7650_v5 = vpop.f32.mrb[251].mxu1  ;;  %11522 = vmatpush3.bf16.msra.mxu0 %v12230_v2  ;;  %11507 = vmatprep.mubr.msk.bf16.mxu0 %vm8158_vm5, %v12231_v50  ;;  %v12236_v4 = vld [vmem:[%s15296_s23 + $0xe8] sm:$0xff]  }
 0x899   : > { %v15755_v20 = vadd.f32 %v7650_v5, %v15439_v41  ;;  %11508 = vmatmul.mubr.msk.bf16.gmra.mrb[116].mxu0 %vm8158_vm5, %v12232_v44  ;;  %11523 = vmatprep.subr.bf16.mxu0 %v12233_v17  ;;  %v12234_v44 = vld [vmem:[%s17265_s9 + $0x18] sm:$0xff]  }
 0x89a   : > { %8752 = vmatmul.mubr.bf16.gmra.mrb[100].mxu1 %v7905_v9  ;;  %v15800_v58 = vpop.f32.mrb[64].mxu0  ;;  %v17419_v62 = vpack.c.bf16 %v15749_v32, %v15746_v57 }
 0x89b   : > { %8759 = vmatprep.mubr.bf16.mxu1 %v7908_v15 }
 0x89c   : > { %11524 = vmatpush3.bf16.msra.mxu0 %v12233_v17  ;;  %v12235_v17 = vld [vmem:[%s15296_s23 + $0xe0] sm:$0xff]  }
 0x89d   : > { %v7654_v5 = vpop.f32.mrb[252].mxu1  ;;  %11525 = vmatprep.subr.bf16.mxu0 %v12234_v44  ;;  %11511 = vmatprep.mubr.msk.bf16.mxu0 %vm8158_vm5, %v12235_v17 }
 0x89e   : > { %v7656_v8 = vpop.f32.mrb[253].mxu1  ;;  %v15775_v9 = vadd.f32 %v7654_v5, %v15436_v35  ;;  %v17410_v5 = vpack.c.bf16 %v15662_v48, %v15659_v31  ;;  %v15803_v48 = vpop.f32.mrb[65].mxu0 }
 0x89f   : > { %v7658_v56 = vpop.f32.mrb[254].mxu1  ;;  %v15781_v11 = vadd.f32 %v7656_v8, %v15439_v41  ;;  %v17411_v8 = vpack.c.bf16 %v15690_v43, %v15687_v27  ;;  %v15809_v59 = vpop.f32.mrb[66].mxu0 }
 0x8a0   : > { %v15778_v15 = vadd.f32 %v7658_v56, %v15436_v35  ;;  %v7660_v2 = vpop.f32.mrb[255].mxu1  ;;  %11526 = vmatpush3.bf16.msra.mxu0 %v12234_v44 }
 0x8a1   : > { %v15784_v50 = vadd.f32 %v7660_v2, %v15439_v41  ;;  %11512 = vmatmul.mubr.msk.bf16.gmra.mrb[120].mxu0 %vm8158_vm5, %v12236_v4  ;;  %v12240_v4 = vld [vmem:[%s15296_s23 + $0xf8] sm:$0xff]  }
 0x8a2   : > { %8760 = vmatmul.mubr.bf16.gmra.mrb[104].mxu1 %v17410_v5  ;;  %v12237_v5 = vld [vmem:[%s17265_s9 + $0x20] sm:$0xff]  }
 0x8a3   : > { %8767 = vmatprep.mubr.bf16.mxu1 %v17411_v8  ;;  %v15818_v8 = vpop.f32.mrb[67].mxu0  ;;  %11527 = vmatprep.subr.bf16.mxu0 %v12237_v5 }
 0x8a4   : > { %11528 = vmatpush3.bf16.msra.mxu0 %v12237_v5  ;;  %v12239_v5 = vld [vmem:[%s15296_s23 + $0xf0] sm:$0xff]  }
 0x8a5   : > { %v7664_v2 = vpop.f32.mrb[0].mxu1  ;;  %11515 = vmatprep.mubr.msk.bf16.mxu0 %vm8158_vm5, %v12239_v5 }
 0x8a6   : > { %v7666_v31 = vpop.f32.mrb[1].mxu1  ;;  %v15813_v27 = vadd.f32 %v7664_v2, %v15436_v35  ;;  %v17412_v2 = vpack.c.bf16 %v15683_v10, %v15680_v29  ;;  %v12241_v29 = vld [vmem:[%s17265_s9 + $0x30] sm:$0xff]  }
 0x8a7   : > { %v7668_v56 = vpop.f32.mrb[2].mxu1  ;;  %v15821_v17 = vadd.f32 %v7666_v31, %v15439_v41  ;;  %v17413_v31 = vpack.c.bf16 %v15710_v46, %v15707_v34 }
 0x8a8   : > { %v15816_v43 = vadd.f32 %v7668_v56, %v15436_v35  ;;  %v7670_v44 = vpop.f32.mrb[3].mxu1  ;;  %v12238_v56 = vld [vmem:[%s17265_s9 + $0x28] sm:$0xff]  }
 0x8a9   : > { %v15824_v21 = vadd.f32 %v7670_v44, %v15439_v41  ;;  %11529 = vmatprep.subr.bf16.mxu0 %v12238_v56  ;;  %11516 = vmatmul.mubr.msk.bf16.gmra.mrb[124].mxu0 %vm8158_vm5, %v12240_v4  ;;  %v17414_v4 = vpack.c.bf16 %v15704_v1, %v15701_v28 }
 0x8aa   : > { %8768 = vmatmul.mubr.bf16.gmra.mrb[108].mxu1 %v17412_v2  ;;  %11530 = vmatpush3.bf16.msra.mxu0 %v12238_v56 }
 0x8ab   : > { %8775 = vmatprep.mubr.bf16.mxu1 %v17413_v31  ;;  %11531 = vmatprep.subr.bf16.mxu0 %v12241_v29 }
 0x8ad   : > { %v7674_v44 = vpop.f32.mrb[4].mxu1 }
 0x8ae   : > { %v7676_v55 = vpop.f32.mrb[5].mxu1  ;;  %v15847_v2 = vadd.f32 %v7674_v44, %v15436_v35  ;;  %11532 = vmatpush3.bf16.msra.mxu0 %v12241_v29  ;;  %v12242_v44 = vld [vmem:[%s17265_s9 + $0x38] sm:$0xff]  }
 0x8af   : > { %v7678_v10 = vpop.f32.mrb[6].mxu1  ;;  %v15853_v56 = vadd.f32 %v7676_v55, %v15439_v41  ;;  %v17415_v55 = vpack.c.bf16 %v15732_v52, %v15729_v13  ;;  %11533 = vmatprep.subr.bf16.mxu0 %v12242_v44 }
 0x8b0   : > { %v15850_v34 = vadd.f32 %v7678_v10, %v15436_v35  ;;  %v7680_v46 = vpop.f32.mrb[7].mxu1 }
 0x8b1   : > { %v15856_v31 = vadd.f32 %v7680_v46, %v15439_v41  ;;  %v15871_v46 = vpop.f32.mrb[68].mxu0 }
 0x8b2   : > { %8776 = vmatmul.mubr.bf16.gmra.mrb[112].mxu1 %v17414_v4  ;;  %v15873_v5 = vpop.f32.mrb[69].mxu0  ;;  %11534 = vmatpush3.bf16.msra.mxu0 %v12242_v44  ;;  %v17416_v4 = vmov 0  }
 0x8b3   : > { %v7922_v10 = vpack.c.bf16 %v15856_v31, %v15853_v56  ;;  %8783 = vmatprep.mubr.bf16.mxu1 %v17415_v55  ;;  %v15875_v1 = vpop.f32.mrb[70].mxu0  ;;  %9584 = vmatprep.subr.bf16.mxu0 %v17416_v4 }
 0x8b4   : > { %v15878_v22 = vpop.f32.mrb[71].mxu0 }
 0x8b5   : > { %v7684_v29 = vpop.f32.mrb[8].mxu1 }
 0x8b6   : > { %v7686_v28 = vpop.f32.mrb[9].mxu1  ;;  %v15881_v56 = vadd.f32 %v7684_v29, %v15436_v35  ;;  %v17418_v29 = vpack.c.bf16 %v15755_v20, %v15752_v3 }
 0x8b7   : > { %v7688_v12 = vpop.f32.mrb[10].mxu1  ;;  %v7687_v31 = vadd.f32 %v7686_v28, %v15439_v41 }
 0x8b8   : > { %v15884_v13 = vadd.f32 %v7688_v12, %v15436_v35  ;;  %v7690_v52 = vpop.f32.mrb[11].mxu1 }
 0x8b9   : > { %v7691_v55 = vadd.f32 %v7690_v52, %v15439_v41 }
 0x8ba   : > { %8784 = vmatmul.mubr.bf16.gmra.mrb[116].mxu1 %v17417_v30 }
 0x8bb   : > { %v7924_v42 = vpack.c.bf16 %v7691_v55, %v7687_v31  ;;  %8791 = vmatprep.mubr.bf16.mxu1 %v17418_v29  ;;  %v15912_v20 = vpop.f32.mrb[72].mxu0 }
 0x8bc   : > { %v15914_v31 = vpop.f32.mrb[73].mxu0 }
 0x8bd   : > { %v7694_v47 = vpop.f32.mrb[12].mxu1  ;;  %v15916_v29 = vpop.f32.mrb[74].mxu0 }
 0x8be   : > { %v7696_v12 = vpop.f32.mrb[13].mxu1  ;;  %v15897_v18 = vadd.f32 %v7694_v47, %v15436_v35  ;;  %v17420_v47 = vpack.c.bf16 %v15784_v50, %v15781_v11 }
 0x8bf   : > { %v7698_v19 = vpop.f32.mrb[14].mxu1  ;;  %v7697_v44 = vadd.f32 %v7696_v12, %v15439_v41 }
 0x8c0   : > { %v15900_v28 = vadd.f32 %v7698_v19, %v15436_v35  ;;  %v7700_v52 = vpop.f32.mrb[15].mxu1 }
 0x8c1   : > { %v7701_v49 = vadd.f32 %v7700_v52, %v15439_v41  ;;  %v15918_v52 = vpop.f32.mrb[75].mxu0 }
 0x8c2   : > { %8792 = vmatmul.mubr.bf16.gmra.mrb[120].mxu1 %v17419_v62 }
 0x8c3   : > { %v7926_v3 = vpack.c.bf16 %v7701_v49, %v7697_v44  ;;  %8799 = vmatprep.mubr.bf16.mxu1 %v17420_v47  ;;  %v17421_v49 = vpack.c.bf16 %v15778_v15, %v15775_v9  ;;  %v17422_v47 = vpack.c.bf16 %v15824_v21, %v15821_v17  ;;  %v17423_v21 = vpack.c.bf16 %v15816_v43, %v15813_v27 }
 0x8c5   : > { %v7704_v19 = vpop.f32.mrb[16].mxu1 }
 0x8c6   : > { %v7706_v55 = vpop.f32.mrb[17].mxu1  ;;  %v15921_v30 = vadd.f32 %v7704_v19, %v15436_v35 }
 0x8c7   : > { %v7708_v12 = vpop.f32.mrb[18].mxu1  ;;  %v7707_v11 = vadd.f32 %v7706_v55, %v15439_v41 }
 0x8c8   : > { %v15924_v57 = vadd.f32 %v7708_v12, %v15436_v35  ;;  %v7710_v32 = vpop.f32.mrb[19].mxu1 }
 0x8c9   : > { %v7711_v50 = vadd.f32 %v7710_v32, %v15439_v41 }
 0x8ca   : > { %8800 = vmatmul.mubr.bf16.gmra.mrb[124].mxu1 %v17421_v49 }
 0x8cb   : > { %v7928_v62 = vpack.c.bf16 %v7711_v50, %v7707_v11  ;;  %8807 = vmatprep.mubr.bf16.mxu1 %v17422_v47 }
 0x8cd   : > { %v7714_v19 = vpop.f32.mrb[20].mxu1  ;;  %v15949_v11 = vpop.f32.mrb[76].mxu0 }
 0x8ce   : > { %v7716_v12 = vpop.f32.mrb[21].mxu1  ;;  %v15937_v51 = vadd.f32 %v7714_v19, %v15436_v35  ;;  %v15951_v49 = vpop.f32.mrb[77].mxu0 }
 0x8cf   : > { %v7718_v23 = vpop.f32.mrb[22].mxu1  ;;  %v7717_v44 = vadd.f32 %v7716_v12, %v15439_v41  ;;  %v15953_v47 = vpop.f32.mrb[78].mxu0 }
 0x8d0   : > { %v15940_v55 = vadd.f32 %v7718_v23, %v15436_v35  ;;  %v7720_v32 = vpop.f32.mrb[23].mxu1  ;;  %v15955_v12 = vpop.f32.mrb[79].mxu0 }
 0x8d1   : > { %v7721_v9 = vadd.f32 %v7720_v32, %v15439_v41 }
 0x8d2   : > { %8808 = vmatmul.mubr.bf16.gmra.mrb[128].mxu1 %v17423_v21 }
 0x8d3   : > { %v7930_v17 = vpack.c.bf16 %v7721_v9, %v7717_v44  ;;  %8815 = vmatprep.mubr.bf16.mxu1 %v7922_v10  ;;  %v17424_v9 = vpack.c.bf16 %v15850_v34, %v15847_v2 }
 0x8d5   : > { %v7724_v50 = vpop.f32.mrb[24].mxu1 }
 0x8d6   : > { %v7726_v23 = vpop.f32.mrb[25].mxu1  ;;  %v15958_v32 = vadd.f32 %v7724_v50, %v15436_v35 }
 0x8d7   : > { %v7728_v19 = vpop.f32.mrb[26].mxu1  ;;  %v7727_v43 = vadd.f32 %v7726_v23, %v15439_v41 }
 0x8d8   : > { %v15961_v15 = vadd.f32 %v7728_v19, %v15436_v35  ;;  %v7730_v27 = vpop.f32.mrb[27].mxu1 }
 0x8d9   : > { %v7731_v10 = vadd.f32 %v7730_v27, %v15439_v41 }
 0x8da   : > { %8816 = vmatmul.mubr.bf16.gmra.mrb[132].mxu1 %v17424_v9 }
 0x8db   : > { %v7932_v21 = vpack.c.bf16 %v7731_v10, %v7727_v43  ;;  %8823 = vmatprep.mubr.bf16.mxu1 %v7924_v42  ;;  %v17425_v42 = vpack.c.bf16 %v15884_v13, %v15881_v56 }
 0x8dd   : > { %v7734_v24 = vpop.f32.mrb[28].mxu1  ;;  %v15983_v43 = vpop.f32.mrb[80].mxu0 }
 0x8de   : > { %v7736_v50 = vpop.f32.mrb[29].mxu1  ;;  %v15971_v19 = vadd.f32 %v7734_v24, %v15436_v35  ;;  %v15985_v10 = vpop.f32.mrb[81].mxu0 }
 0x8df   : > { %v7738_v54 = vpop.f32.mrb[30].mxu1  ;;  %v7737_v27 = vadd.f32 %v7736_v50, %v15439_v41  ;;  %v15987_v9 = vpop.f32.mrb[82].mxu0 }
 0x8e0   : > { %v15974_v36 = vadd.f32 %v7738_v54, %v15436_v35  ;;  %v7740_v23 = vpop.f32.mrb[31].mxu1  ;;  %v15989_v6 = vpop.f32.mrb[83].mxu0 }
 0x8e1   : > { %v7741_v44 = vadd.f32 %v7740_v23, %v15439_v41 }
 0x8e2   : > { %8824 = vmatmul.mubr.bf16.gmra.mrb[136].mxu1 %v17425_v42 }
 0x8e3   : > { %v7934_v34 = vpack.c.bf16 %v7741_v44, %v7737_v27  ;;  %8831 = vmatprep.mubr.bf16.mxu1 %v7926_v3  ;;  %v17426_v27 = vpack.c.bf16 %v15900_v28, %v15897_v18  ;;  %v17427_v28 = vpack.c.bf16 %v15924_v57, %v15921_v30 }
 0x8e5   : > { %v7744_v24 = vpop.f32.mrb[32].mxu1 }
 0x8e6   : > { %v7746_v54 = vpop.f32.mrb[33].mxu1  ;;  %v15992_v23 = vadd.f32 %v7744_v24, %v15436_v35 }
 0x8e7   : > { %v7748_v50 = vpop.f32.mrb[34].mxu1  ;;  %v7747_v13 = vadd.f32 %v7746_v54, %v15439_v41 }
 0x8e8   : > { %v15995_v2 = vadd.f32 %v7748_v50, %v15436_v35  ;;  %v7750_v56 = vpop.f32.mrb[35].mxu1 }
 0x8e9   : > { %v7751_v3 = vadd.f32 %v7750_v56, %v15439_v41 }
 0x8ea   : > { %8832 = vmatmul.mubr.bf16.gmra.mrb[140].mxu1 %v17426_v27 }
 0x8eb   : > { %v7936_v42 = vpack.c.bf16 %v7751_v3, %v7747_v13  ;;  %8839 = vmatprep.mubr.bf16.mxu1 %v7928_v62 }
 0x8ed   : > { %v7754_v38 = vpop.f32.mrb[36].mxu1  ;;  %v16017_v13 = vpop.f32.mrb[84].mxu0 }
 0x8ee   : > { %v7756_v24 = vpop.f32.mrb[37].mxu1  ;;  %v16005_v50 = vadd.f32 %v7754_v38, %v15436_v35  ;;  %v16019_v3 = vpop.f32.mrb[85].mxu0 }
 0x8ef   : > { %v7758_v14 = vpop.f32.mrb[38].mxu1  ;;  %v7757_v56 = vadd.f32 %v7756_v24, %v15439_v41  ;;  %v16021_v27 = vpop.f32.mrb[86].mxu0 }
 0x8f0   : > { %v16008_v40 = vadd.f32 %v7758_v14, %v15436_v35  ;;  %v7760_v54 = vpop.f32.mrb[39].mxu1  ;;  %v16023_v53 = vpop.f32.mrb[87].mxu0 }
 0x8f1   : > { %v7761_v44 = vadd.f32 %v7760_v54, %v15439_v41 }
 0x8f2   : > { %8840 = vmatmul.mubr.bf16.gmra.mrb[144].mxu1 %v17427_v28 }
 0x8f3   : > { %v7938_v62 = vpack.c.bf16 %v7761_v44, %v7757_v56  ;;  %8847 = vmatprep.mubr.bf16.mxu1 %v7930_v17  ;;  %v17428_v56 = vpack.c.bf16 %v15940_v55, %v15937_v51  ;;  %v17429_v55 = vpack.c.bf16 %v15961_v15, %v15958_v32 }
 0x8f5   : > { %v7764_v38 = vpop.f32.mrb[40].mxu1 }
 0x8f6   : > { %v7766_v14 = vpop.f32.mrb[41].mxu1  ;;  %v16026_v54 = vadd.f32 %v7764_v38, %v15436_v35 }
 0x8f7   : > { %v7768_v24 = vpop.f32.mrb[42].mxu1  ;;  %v7767_v57 = vadd.f32 %v7766_v14, %v15439_v41 }
 0x8f8   : > { %v16029_v18 = vadd.f32 %v7768_v24, %v15436_v35  ;;  %v7770_v30 = vpop.f32.mrb[43].mxu1 }
 0x8f9   : > { %v7771_v17 = vadd.f32 %v7770_v30, %v15439_v41 }
 0x8fa   : > { %8848 = vmatmul.mubr.bf16.gmra.mrb[148].mxu1 %v17428_v56 }
 0x8fb   : > { %v7940_v28 = vpack.c.bf16 %v7771_v17, %v7767_v57  ;;  %8855 = vmatprep.mubr.bf16.mxu1 %v7932_v21  ;;  %v16051_v57 = vpop.f32.mrb[88].mxu0 }
 0x8fc   : > { %v16053_v17 = vpop.f32.mrb[89].mxu0 }
 0x8fd   : > { %v7774_v39 = vpop.f32.mrb[44].mxu1  ;;  %v16055_v56 = vpop.f32.mrb[90].mxu0 }
 0x8fe   : > { %v7776_v38 = vpop.f32.mrb[45].mxu1  ;;  %v16039_v24 = vadd.f32 %v7774_v39, %v15436_v35  ;;  %v16057_v33 = vpop.f32.mrb[91].mxu0 }
 0x8ff   : > { %v7778_v0 = vpop.f32.mrb[46].mxu1  ;;  %v7777_v30 = vadd.f32 %v7776_v38, %v15439_v41 }
 0x900   : > { %v16042_v60 = vadd.f32 %v7778_v0, %v15436_v35  ;;  %v7780_v14 = vpop.f32.mrb[47].mxu1 }
 0x901   : > { %v7781_v44 = vadd.f32 %v7780_v14, %v15439_v41 }
 0x902   : > { %8856 = vmatmul.mubr.bf16.gmra.mrb[152].mxu1 %v17429_v55 }
 0x903   : > { %v7942_v21 = vpack.c.bf16 %v7781_v44, %v7777_v30  ;;  %8863 = vmatprep.mubr.bf16.mxu1 %v7934_v34  ;;  %v17430_v30 = vpack.c.bf16 %v15974_v36, %v15971_v19  ;;  %v17431_v19 = vpack.c.bf16 %v15995_v2, %v15992_v23 }
 0x905   : > { %v7784_v39 = vpop.f32.mrb[48].mxu1 }
 0x906   : > { %v7786_v0 = vpop.f32.mrb[49].mxu1  ;;  %v16060_v14 = vadd.f32 %v7784_v39, %v15436_v35 }
 0x907   : > { %v7788_v38 = vpop.f32.mrb[50].mxu1  ;;  %v7787_v32 = vadd.f32 %v7786_v0, %v15439_v41 }
 0x908   : > { %v16063_v51 = vadd.f32 %v7788_v38, %v15436_v35  ;;  %v7790_v15 = vpop.f32.mrb[51].mxu1 }
 0x909   : > { %v7791_v34 = vadd.f32 %v7790_v15, %v15439_v41 }
 0x90a   : > { %8864 = vmatmul.mubr.bf16.gmra.mrb[156].mxu1 %v17430_v30 }
 0x90b   : > { %v7944_v55 = vpack.c.bf16 %v7791_v34, %v7787_v32  ;;  %8871 = vmatprep.mubr.bf16.mxu1 %v7936_v42 }
 0x90d   : > { %v7794_v25 = vpop.f32.mrb[52].mxu1  ;;  %v16085_v32 = vpop.f32.mrb[92].mxu0 }
 0x90e   : > { %v7796_v39 = vpop.f32.mrb[53].mxu1  ;;  %v16073_v38 = vadd.f32 %v7794_v25, %v15436_v35  ;;  %v16087_v34 = vpop.f32.mrb[93].mxu0 }
 0x90f   : > { %v7798_v16 = vpop.f32.mrb[54].mxu1  ;;  %v7797_v15 = vadd.f32 %v7796_v39, %v15439_v41  ;;  %v16089_v30 = vpop.f32.mrb[94].mxu0 }
 0x910   : > { %v16076_v26 = vadd.f32 %v7798_v16, %v15436_v35  ;;  %v7800_v0 = vpop.f32.mrb[55].mxu1  ;;  %v16091_v61 = vpop.f32.mrb[95].mxu0 }
 0x911   : > { %v7801_v44 = vadd.f32 %v7800_v0, %v15439_v41 }
 0x912   : > { %8872 = vmatmul.mubr.bf16.gmra.mrb[160].mxu1 %v17431_v19 }
 0x913   : > { %v7946_v42 = vpack.c.bf16 %v7801_v44, %v7797_v15  ;;  %8879 = vmatprep.mubr.bf16.mxu1 %v7938_v62  ;;  %v17432_v15 = vpack.c.bf16 %v16008_v40, %v16005_v50 }
 0x915   : > { %v7804_v25 = vpop.f32.mrb[56].mxu1 }
 0x916   : > { %v7806_v16 = vpop.f32.mrb[57].mxu1  ;;  %v16094_v0 = vadd.f32 %v7804_v25, %v15436_v35 }
 0x917   : > { %v7808_v39 = vpop.f32.mrb[58].mxu1  ;;  %v16100_v23 = vadd.f32 %v7806_v16, %v15439_v41 }
 0x918   : > { %v16097_v36 = vadd.f32 %v7808_v39, %v15436_v35  ;;  %v7810_v2 = vpop.f32.mrb[59].mxu1 }
 0x919   : > { %v16103_v62 = vadd.f32 %v7810_v2, %v15439_v41 }
 0x91a   : > { %8880 = vmatmul.mubr.bf16.gmra.mrb[164].mxu1 %v17432_v15 }
 0x91b   : > { %v7948_v19 = vpack.c.bf16 %v16103_v62, %v16100_v23  ;;  %8887 = vmatprep.mubr.bf16.mxu1 %v7940_v28  ;;  %v17433_v28 = vpack.c.bf16 %v16029_v18, %v16026_v54  ;;  %v16136_v62 = vld [vmem:[%s17263_s7] ss:$0 sm:$0xff]  ;;  %v17436_v23 = vpack.c.bf16 %v16042_v60, %v16039_v24  ;;  %v17437_v60 = vpack.c.bf16 %v16063_v51, %v16060_v14 }
 0x91d   : > { %v7814_v25 = vpop.f32.mrb[60].mxu1 }
 0x91e   : > { %v7816_v39 = vpop.f32.mrb[61].mxu1  ;;  %v16113_v16 = vadd.f32 %v7814_v25, %v15436_v35 }
 0x91f   : > { %v7818_v37 = vpop.f32.mrb[62].mxu1  ;;  %v16119_v44 = vadd.f32 %v7816_v39, %v15439_v41 }
 0x920   : > { %v16116_v2 = vadd.f32 %v7818_v37, %v15436_v35  ;;  %v7820_v7 = vpop.f32.mrb[63].mxu1  ;;  %v16131_v37 = vpop.f32.mrb[96].mxu0 }
 0x921   : > { %v16122_v40 = vadd.f32 %v7820_v7, %v15439_v41  ;;  %17434 = vst [vmem:[#allocation66_spill] sm:$0xff] %v16131_v37  ;;  %v16138_v7 = vpop.f32.mrb[97].mxu0 }
 0x922   : > { %8888 = vmatmul.mubr.bf16.gmra.mrb[168].mxu1 %v17433_v28  ;;  %v16141_v25 = vpop.f32.mrb[98].mxu0 }
 0x923   : > { %8895 = vmatprep.mubr.bf16.mxu1 %v7942_v21  ;;  %17435 = vst [vmem:[#allocation67_spill] sm:$0xff] %v16141_v25  ;;  %v16143_v54 = vpop.f32.mrb[99].mxu0 }
 0x925   : > { %v8681_v35 = vpop.f32.mrb[64].mxu1 }
 0x926   : > { %v8682_v41 = vadd.f32 %v8681_v35, %v15803_v48  ;;  %v8683_v15 = vpop.f32.mrb[65].mxu1 }
 0x927   : > { %v8684_v18 = vpop.f32.mrb[66].mxu1 }
 0x928   : > { %v8943_v21 = vadd.f32 %v16136_v62, %v8682_v41  ;;  %v8685_v39 = vadd.f32 %v8684_v18, %v15818_v8  ;;  %v8686_v28 = vpop.f32.mrb[67].mxu1 }
 0x92a   : > { %v8944_v50 = vadd.f32 %v16136_v62, %v8685_v39  ;;  %8896 = vmatmul.mubr.bf16.gmra.mrb[172].mxu1 %v17436_v23  ;;  %v9007_v45 = vmax.f32 %v8943_v21, 0.0 }
 0x92b   : > { %8903 = vmatprep.mubr.bf16.mxu1 %v7944_v55 }
 0x92c   : > { %v9008_v48 = vmax.f32 %v8944_v50, 0.0  ;;  %v16158_v50 = vpop.f32.mrb[100].mxu0 }
 0x92d   : > { %v8689_v35 = vpop.f32.mrb[68].mxu1 }
 0x92e   : > { %v8690_v15 = vadd.f32 %v15800_v58, %v8689_v35  ;;  %v8691_v63 = vpop.f32.mrb[69].mxu1  ;;  %v9103_v25 = vpack.c.bf16 %v9008_v48, %v9007_v45  ;;  %v16160_v45 = vpop.f32.mrb[101].mxu0 }
 0x92f   : > { %v8692_v37 = vpop.f32.mrb[70].mxu1 }
 0x930   : > { %v8945_v41 = vadd.f32 %v16136_v62, %v8690_v15  ;;  %v8693_v8 = vadd.f32 %v15809_v59, %v8692_v37  ;;  %v8694_v18 = vpop.f32.mrb[71].mxu1  ;;  %11535 = vmatprep.mubr.bf16.mxu0 %v9103_v25  ;;  %v12243_v37 = vld [vmem:[%s17264_s8] sm:$0xff]   ;;  %v16166_v25 = vpop.f32.mrb[102].mxu0 }
 0x931   : > { %v16168_v14 = vpop.f32.mrb[103].mxu0 }
 0x932   : > { %v8946_v39 = vadd.f32 %v16136_v62, %v8693_v8  ;;  %8904 = vmatmul.mubr.bf16.gmra.mrb[176].mxu1 %v17437_v60  ;;  %v9009_v24 = vmax.f32 %v8945_v41, 0.0  ;;  %v12244_v41 = vld [vmem:[%s17264_s8 + $0x8] sm:$0xff]  }
 0x933   : > { %8911 = vmatprep.mubr.bf16.mxu1 %v7946_v42 }
 0x934   : > { %v9010_v55 = vmax.f32 %v8946_v39, 0.0 }
 0x935   : > { %v8697_v63 = vpop.f32.mrb[72].mxu1 }
 0x936   : > { %v9104_v58 = vpack.c.bf16 %v9010_v55, %v9009_v24  ;;  %v8698_v23 = vadd.f32 %v8697_v63, %v15873_v5  ;;  %v8699_v59 = vpop.f32.mrb[73].mxu1  ;;  %v17438_v5 = vpack.c.bf16 %v16076_v26, %v16073_v38  ;;  %v17439_v55 = vpack.c.bf16 %v16097_v36, %v16094_v0  ;;  %v12245_v36 = vld [vmem:[%s17264_s8 + $0x10] sm:$0xff]  }
 0x937   : > { %v8700_v51 = vpop.f32.mrb[74].mxu1 }
 0x938   : > { %v8947_v42 = vadd.f32 %v16136_v62, %v8698_v23  ;;  %v8701_v21 = vadd.f32 %v8700_v51, %v15878_v22  ;;  %v8702_v28 = vpop.f32.mrb[75].mxu1  ;;  %11536 = vmatmul.mubr.bf16.vlgmr.msra.gmra.mrb[128].mxu0 %v9104_v58  ;;  %v16191_v23 = vpop.f32.mrb[104].mxu0 }
 0x939   : > { %9585 = vmatpush1.bf16.msra.mxu0 %v12243_v37  ;;  %v16193_v37 = vpop.f32.mrb[105].mxu0 }
 0x93a   : > { %v8948_v48 = vadd.f32 %v16136_v62, %v8701_v21  ;;  %8912 = vmatmul.mubr.bf16.gmra.mrb[180].mxu1 %v17438_v5  ;;  %9586 = vmatprep.subr.bf16.mxu0 %v17416_v4  ;;  %v9011_v35 = vmax.f32 %v8947_v42, 0.0  ;;  %v16199_v0 = vpop.f32.mrb[106].mxu0 }
 0x93b   : > { %8919 = vmatprep.mubr.bf16.mxu1 %v7948_v19 }
 0x93c   : > { %v9012_v15 = vmax.f32 %v8948_v48, 0.0 }
 0x93d   : > { %v8705_v8 = vpop.f32.mrb[76].mxu1  ;;  %9587 = vmatpush1.bf16.msra.mxu0 %v12244_v41  ;;  %v12246_v41 = vld [vmem:[%s17264_s8 + $0x18] sm:$0xff]  }
 0x93e   : > { %v8706_v22 = vadd.f32 %v15871_v46, %v8705_v8  ;;  %v8707_v18 = vpop.f32.mrb[77].mxu1  ;;  %v9105_v39 = vpack.c.bf16 %v9012_v15, %v9011_v35  ;;  %9588 = vmatprep.subr.bf16.mxu0 %v17416_v4  ;;  %v17440_v46 = vpack.c.bf16 %v16122_v40, %v16119_v44  ;;  %v16201_v44 = vpop.f32.mrb[107].mxu0 }
 0x93f   : > { %v8708_v60 = vpop.f32.mrb[78].mxu1 }
 0x940   : > { %v8949_v26 = vadd.f32 %v16136_v62, %v8706_v22  ;;  %v8709_v38 = vadd.f32 %v15875_v1, %v8708_v60  ;;  %v8710_v19 = vpop.f32.mrb[79].mxu1  ;;  %11539 = vmatprep.mubr.bf16.mxu0 %v9105_v39 }
 0x941   : > { %9589 = vmatpush1.bf16.msra.mxu0 %v12245_v36 }
 0x942   : > { %v8950_v24 = vadd.f32 %v16136_v62, %v8709_v38  ;;  %8920 = vmatmul.mubr.bf16.gmra.mrb[184].mxu1 %v17439_v55  ;;  %v9013_v63 = vmax.f32 %v8949_v26, 0.0  ;;  %9590 = vmatprep.subr.bf16.mxu0 %v17416_v4 }
 0x943   : > { %8927 = vmatprep.mubr.bf16.mxu1 %v17440_v46 }
 0x944   : > { %v9014_v58 = vmax.f32 %v8950_v24, 0.0 }
 0x945   : > { %v8713_v59 = vpop.f32.mrb[80].mxu1  ;;  %9591 = vmatpush1.bf16.msra.mxu0 %v12246_v41 }
 0x946   : > { %v9106_v1 = vpack.c.bf16 %v9014_v58, %v9013_v63  ;;  %v8714_v51 = vadd.f32 %v8713_v59, %v15914_v31  ;;  %v8715_v42 = vpop.f32.mrb[81].mxu1  ;;  %v17441_v31 = vpack.c.bf16 %v16116_v2, %v16113_v16  ;;  %9592 = vmatprep.subr.bf16.mxu0 %v17416_v4  ;;  %v12247_v59 = vld [vmem:[%s17264_s8 + $0x20] sm:$0xff]  }
 0x947   : > { %v8716_v21 = vpop.f32.mrb[82].mxu1 }
 0x948   : > { %v8951_v40 = vadd.f32 %v16136_v62, %v8714_v51  ;;  %v8717_v28 = vadd.f32 %v8716_v21, %v15918_v52  ;;  %v8718_v48 = vpop.f32.mrb[83].mxu1  ;;  %11540 = vmatmul.mubr.bf16.gmra.mrb[132].mxu0 %v9106_v1 }
 0x949   : > { %9593 = vmatpush1.bf16.msra.mxu0 %v12247_v59  ;;  %v12248_v48 = vld [vmem:[%s17264_s8 + $0x28] sm:$0xff]  }
 0x94a   : > { %v8952_v5 = vadd.f32 %v16136_v62, %v8717_v28  ;;  %8928 = vmatmul.mubr.bf16.gmra.mrb[188].mxu1 %v17441_v31  ;;  %v9015_v35 = vmax.f32 %v8951_v40, 0.0  ;;  %9594 = vmatprep.subr.bf16.mxu0 %v17416_v4 }
 0x94b   : > { %v16218_v24 = vpop.f32.mrb[108].mxu0 }
 0x94c   : > { %v9016_v15 = vmax.f32 %v8952_v5, 0.0 }
 0x94d   : > { %v8721_v8 = vpop.f32.mrb[84].mxu1  ;;  %9595 = vmatpush1.bf16.msra.mxu0 %v12248_v48 }
 0x94e   : > { %v8722_v52 = vadd.f32 %v15912_v20, %v8721_v8  ;;  %v8723_v22 = vpop.f32.mrb[85].mxu1  ;;  %v9107_v18 = vpack.c.bf16 %v9016_v15, %v9015_v35  ;;  %v16220_v20 = vpop.f32.mrb[109].mxu0  ;;  %9596 = vmatprep.subr.bf16.mxu0 %v17416_v4 }
 0x94f   : > { %v8724_v39 = vpop.f32.mrb[86].mxu1 }
 0x950   : > { %v8953_v16 = vadd.f32 %v16136_v62, %v8722_v52  ;;  %v8725_v2 = vadd.f32 %v15916_v29, %v8724_v39  ;;  %v8726_v60 = vpop.f32.mrb[87].mxu1  ;;  %11543 = vmatprep.mubr.bf16.mxu0 %v9107_v18  ;;  %v16226_v29 = vpop.f32.mrb[110].mxu0 }
 0x951   : > { %v16228_v51 = vpop.f32.mrb[111].mxu0 }
 0x952   : > { %v8954_v26 = vadd.f32 %v16136_v62, %v8725_v2  ;;  %v9017_v38 = vmax.f32 %v8953_v16, 0.0 }
 0x954   : > { %v9018_v19 = vmax.f32 %v8954_v26, 0.0 }
 0x955   : > { %v8729_v55 = vpop.f32.mrb[88].mxu1 }
 0x956   : > { %v9108_v46 = vpack.c.bf16 %v9018_v19, %v9017_v38  ;;  %v8730_v63 = vadd.f32 %v8729_v55, %v15951_v49  ;;  %v8731_v58 = vpop.f32.mrb[89].mxu1  ;;  %v12249_v19 = vld [vmem:[%s17264_s8 + $0x30] sm:$0xff]  }
 0x957   : > { %v8732_v1 = vpop.f32.mrb[90].mxu1  ;;  %9597 = vmatpush1.bf16.msra.mxu0 %v12249_v19 }
 0x958   : > { %v8955_v42 = vadd.f32 %v16136_v62, %v8730_v63  ;;  %v8733_v36 = vadd.f32 %v8732_v1, %v15955_v12  ;;  %v8734_v21 = vpop.f32.mrb[91].mxu1  ;;  %11544 = vmatmul.mubr.bf16.gmra.mrb[136].mxu0 %v9108_v46  ;;  %9598 = vmatprep.subr.bf16.mxu0 %v17416_v4 }
 0x95a   : > { %v8956_v40 = vadd.f32 %v16136_v62, %v8733_v36  ;;  %v9019_v49 = vmax.f32 %v8955_v42, 0.0  ;;  %v12250_v36 = vld [vmem:[%s17264_s8 + $0x38] sm:$0xff]  }
 0x95b   : > { %9599 = vmatpush1.bf16.msra.mxu0 %v12250_v36 }
 0x95c   : > { %v9020_v28 = vmax.f32 %v8956_v40, 0.0  ;;  %9600 = vmatprep.subr.bf16.mxu0 %v17416_v4 }
 0x95d   : > { %v8737_v5 = vpop.f32.mrb[92].mxu1  ;;  %v16242_v16 = vpop.f32.mrb[112].mxu0 }
 0x95e   : > { %v8738_v31 = vadd.f32 %v15949_v11, %v8737_v5  ;;  %v8739_v35 = vpop.f32.mrb[93].mxu1  ;;  %v9109_v15 = vpack.c.bf16 %v9020_v28, %v9019_v49  ;;  %v16244_v11 = vpop.f32.mrb[113].mxu0 }
 0x95f   : > { %v8740_v12 = vpop.f32.mrb[94].mxu1 }
 0x960   : > { %v8957_v41 = vadd.f32 %v16136_v62, %v8738_v31  ;;  %v8741_v8 = vadd.f32 %v15953_v47, %v8740_v12  ;;  %v8742_v52 = vpop.f32.mrb[95].mxu1  ;;  %11547 = vmatprep.mubr.bf16.mxu0 %v9109_v15  ;;  %v16250_v47 = vpop.f32.mrb[114].mxu0 }
 0x961   : > { %v16252_v46 = vpop.f32.mrb[115].mxu0 }
 0x962   : > { %v8958_v22 = vadd.f32 %v16136_v62, %v8741_v8  ;;  %v9021_v18 = vmax.f32 %v8957_v41, 0.0 }
 0x964   : > { %v9022_v39 = vmax.f32 %v8958_v22, 0.0 }
 0x965   : > { %v8745_v2 = vpop.f32.mrb[96].mxu1 }
 0x966   : > { %v9110_v60 = vpack.c.bf16 %v9022_v39, %v9021_v18  ;;  %v8746_v26 = vadd.f32 %v8745_v2, %v15985_v10  ;;  %v8747_v38 = vpop.f32.mrb[97].mxu1  ;;  %v12251_v39 = vld [vmem:[%s17264_s8 + $0x40] sm:$0xff]  }
 0x967   : > { %v8748_v55 = vpop.f32.mrb[98].mxu1  ;;  %9601 = vmatpush1.bf16.msra.mxu0 %v12251_v39 }
 0x968   : > { %v8959_v63 = vadd.f32 %v16136_v62, %v8746_v26  ;;  %v8749_v58 = vadd.f32 %v8748_v55, %v15989_v6  ;;  %v8750_v59 = vpop.f32.mrb[99].mxu1  ;;  %11548 = vmatmul.mubr.bf16.gmra.mrb[140].mxu0 %v9110_v60  ;;  %9602 = vmatprep.subr.bf16.mxu0 %v17416_v4 }
 0x96a   : > { %v8960_v1 = vadd.f32 %v16136_v62, %v8749_v58  ;;  %v9023_v10 = vmax.f32 %v8959_v63, 0.0  ;;  %v12252_v58 = vld [vmem:[%s17264_s8 + $0x48] sm:$0xff]  }
 0x96b   : > { %9603 = vmatpush1.bf16.msra.mxu0 %v12252_v58 }
 0x96c   : > { %v9024_v42 = vmax.f32 %v8960_v1, 0.0  ;;  %v16266_v41 = vpop.f32.mrb[116].mxu0  ;;  %9604 = vmatprep.subr.bf16.mxu0 %v17416_v4 }
 0x96d   : > { %v8753_v21 = vpop.f32.mrb[100].mxu1 }
 0x96e   : > { %v8754_v40 = vadd.f32 %v15983_v43, %v8753_v21  ;;  %v8755_v49 = vpop.f32.mrb[101].mxu1  ;;  %v9111_v28 = vpack.c.bf16 %v9024_v42, %v9023_v10  ;;  %v16268_v43 = vpop.f32.mrb[117].mxu0 }
 0x96f   : > { %v8756_v6 = vpop.f32.mrb[102].mxu1 }
 0x970   : > { %v8961_v48 = vadd.f32 %v16136_v62, %v8754_v40  ;;  %v8757_v5 = vadd.f32 %v15987_v9, %v8756_v6  ;;  %v8758_v31 = vpop.f32.mrb[103].mxu1  ;;  %11551 = vmatprep.mubr.bf16.mxu0 %v9111_v28  ;;  %v16274_v9 = vpop.f32.mrb[118].mxu0 }
 0x971   : > { %v16276_v60 = vpop.f32.mrb[119].mxu0 }
 0x972   : > { %v8962_v35 = vadd.f32 %v16136_v62, %v8757_v5  ;;  %v9025_v15 = vmax.f32 %v8961_v48, 0.0 }
 0x974   : > { %v9026_v12 = vmax.f32 %v8962_v35, 0.0  ;;  %v16290_v28 = vpop.f32.mrb[120].mxu0 }
 0x975   : > { %v8761_v8 = vpop.f32.mrb[104].mxu1  ;;  %v16292_v5 = vpop.f32.mrb[121].mxu0 }
 0x976   : > { %v9112_v52 = vpack.c.bf16 %v9026_v12, %v9025_v15  ;;  %v8762_v22 = vadd.f32 %v8761_v8, %v16019_v3  ;;  %v8763_v18 = vpop.f32.mrb[105].mxu1  ;;  %v16294_v31 = vpop.f32.mrb[122].mxu0 }
 0x977   : > { %v8764_v2 = vpop.f32.mrb[106].mxu1  ;;  %v16300_v8 = vpop.f32.mrb[123].mxu0 }
 0x978   : > { %v8963_v26 = vadd.f32 %v16136_v62, %v8762_v22  ;;  %v8765_v38 = vadd.f32 %v8764_v2, %v16023_v53  ;;  %v8766_v19 = vpop.f32.mrb[107].mxu1  ;;  %11552 = vmatmul.mubr.bf16.gmra.mrb[144].mxu0 %v9112_v52 }
 0x97a   : > { %v8964_v55 = vadd.f32 %v16136_v62, %v8765_v38  ;;  %v9027_v3 = vmax.f32 %v8963_v26, 0.0 }
 0x97c   : > { %v9028_v63 = vmax.f32 %v8964_v55, 0.0  ;;  %v16302_v22 = vpop.f32.mrb[124].mxu0 }
 0x97d   : > { %v8769_v59 = vpop.f32.mrb[108].mxu1  ;;  %v16306_v26 = vpop.f32.mrb[125].mxu0 }
 0x97e   : > { %v8770_v1 = vadd.f32 %v16017_v13, %v8769_v59  ;;  %v8771_v10 = vpop.f32.mrb[109].mxu1  ;;  %v9113_v42 = vpack.c.bf16 %v9028_v63, %v9027_v3  ;;  %v12254_v63 = vld [vmem:[%s17264_s8 + $0x58] sm:$0xff]  }
 0x97f   : > { %v8772_v53 = vpop.f32.mrb[110].mxu1 }
 0x980   : > { %v8965_v36 = vadd.f32 %v16136_v62, %v8770_v1  ;;  %v8773_v21 = vadd.f32 %v16021_v27, %v8772_v53  ;;  %v8774_v40 = vpop.f32.mrb[111].mxu1  ;;  %11555 = vmatprep.mubr.bf16.mxu0 %v9113_v42  ;;  %v12253_v27 = vld [vmem:[%s17264_s8 + $0x50] sm:$0xff]  }
 0x981   : > { %9605 = vmatpush1.bf16.msra.mxu0 %v12253_v27 }
 0x982   : > { %v8966_v49 = vadd.f32 %v16136_v62, %v8773_v21  ;;  %v9029_v6 = vmax.f32 %v8965_v36, 0.0  ;;  %9606 = vmatprep.subr.bf16.mxu0 %v17416_v4 }
 0x984   : > { %v9030_v48 = vmax.f32 %v8966_v49, 0.0 }
 0x985   : > { %v8777_v13 = vpop.f32.mrb[112].mxu1  ;;  %9607 = vmatpush1.bf16.msra.mxu0 %v12254_v63 }
 0x986   : > { %v9114_v35 = vpack.c.bf16 %v9030_v48, %v9029_v6  ;;  %v8778_v15 = vadd.f32 %v8777_v13, %v16053_v17  ;;  %v8779_v12 = vpop.f32.mrb[113].mxu1  ;;  %v16308_v17 = vpop.f32.mrb[126].mxu0  ;;  %9608 = vmatprep.subr.bf16.mxu0 %v17416_v4 }
 0x987   : > { %v8780_v52 = vpop.f32.mrb[114].mxu1  ;;  %v16312_v19 = vpop.f32.mrb[127].mxu0 }
 0x988   : > { %v8967_v18 = vadd.f32 %v16136_v62, %v8778_v15  ;;  %v8781_v39 = vadd.f32 %v8780_v52, %v16057_v33  ;;  %v8782_v2 = vpop.f32.mrb[115].mxu1  ;;  %11556 = vmatmul.mubr.bf16.gmra.mrb[148].mxu0 %v9114_v35  ;;  %v12255_v35 = vld [vmem:[%s17264_s8 + $0x60] sm:$0xff]  }
 0x989   : > { %9609 = vmatpush1.bf16.msra.mxu0 %v12255_v35 }
 0x98a   : > { %v8968_v38 = vadd.f32 %v16136_v62, %v8781_v39  ;;  %v9031_v55 = vmax.f32 %v8967_v18, 0.0  ;;  %9610 = vmatprep.subr.bf16.mxu0 %v17416_v4 }
 0x98c   : > { %v9032_v3 = vmax.f32 %v8968_v38, 0.0 }
 0x98d   : > { %v8785_v33 = vpop.f32.mrb[116].mxu1 }
 0x98e   : > { %v8786_v58 = vadd.f32 %v16051_v57, %v8785_v33  ;;  %v8787_v59 = vpop.f32.mrb[117].mxu1  ;;  %v9115_v1 = vpack.c.bf16 %v9032_v3, %v9031_v55 }
 0x98f   : > { %v8788_v10 = vpop.f32.mrb[118].mxu1 }
 0x990   : > { %v8969_v42 = vadd.f32 %v16136_v62, %v8786_v58  ;;  %v8789_v53 = vadd.f32 %v16055_v56, %v8788_v10  ;;  %v8790_v36 = vpop.f32.mrb[119].mxu1  ;;  %11559 = vmatprep.mubr.bf16.mxu0 %v9115_v1 }
 0x992   : > { %v8970_v21 = vadd.f32 %v16136_v62, %v8789_v53  ;;  %v9033_v40 = vmax.f32 %v8969_v42, 0.0 }
 0x994   : > { %v9034_v49 = vmax.f32 %v8970_v21, 0.0  ;;  %v12257_v21 = vld [vmem:[%s17264_s8 + $0x70] sm:$0xff]  }
 0x995   : > { %v8793_v6 = vpop.f32.mrb[120].mxu1 }
 0x996   : > { %v9116_v48 = vpack.c.bf16 %v9034_v49, %v9033_v40  ;;  %v8794_v57 = vadd.f32 %v8793_v6, %v16087_v34  ;;  %v8795_v13 = vpop.f32.mrb[121].mxu1  ;;  %v12256_v34 = vld [vmem:[%s17264_s8 + $0x68] sm:$0xff]  }
 0x997   : > { %v8796_v15 = vpop.f32.mrb[122].mxu1  ;;  %9611 = vmatpush1.bf16.msra.mxu0 %v12256_v34 }
 0x998   : > { %v8971_v12 = vadd.f32 %v16136_v62, %v8794_v57  ;;  %v8797_v56 = vadd.f32 %v8796_v15, %v16091_v61  ;;  %v8798_v27 = vpop.f32.mrb[123].mxu1  ;;  %11560 = vmatmul.mubr.bf16.gmra.mrb[152].mxu0 %v9116_v48  ;;  %9612 = vmatprep.subr.bf16.mxu0 %v17416_v4  ;;  %v12258_v48 = vld [vmem:[%s17264_s8 + $0x78] sm:$0xff]   ;;  %v17442_v15 = vld [vmem:[#allocation66_spill] sm:$0xff] }
 0x99a   : > { %v8972_v52 = vadd.f32 %v16136_v62, %v8797_v56  ;;  %v9035_v18 = vmax.f32 %v8971_v12, 0.0 }
 0x99b   : > { %9613 = vmatpush1.bf16.msra.mxu0 %v12257_v21 }
 0x99c   : > { %v9036_v39 = vmax.f32 %v8972_v52, 0.0  ;;  %9614 = vmatprep.subr.bf16.mxu0 %v17416_v4 }
 0x99d   : > { %v8801_v2 = vpop.f32.mrb[124].mxu1 }
 0x99e   : > { %v8802_v38 = vadd.f32 %v16085_v32, %v8801_v2  ;;  %v8803_v55 = vpop.f32.mrb[125].mxu1  ;;  %v9117_v3 = vpack.c.bf16 %v9036_v39, %v9035_v18  ;;  %v17443_v18 = vld [vmem:[#allocation67_spill] sm:$0xff] }
 0x99f   : > { %v8804_v61 = vpop.f32.mrb[126].mxu1  ;;  %9615 = vmatpush1.bf16.msra.mxu0 %v12258_v48 }
 0x9a0   : > { %v8973_v63 = vadd.f32 %v16136_v62, %v8802_v38  ;;  %v8805_v33 = vadd.f32 %v16089_v30, %v8804_v61  ;;  %v8806_v58 = vpop.f32.mrb[127].mxu1  ;;  %11563 = vmatprep.mubr.bf16.mxu0 %v9117_v3 }
 0x9a2   : > { %v8974_v59 = vadd.f32 %v16136_v62, %v8805_v33  ;;  %v9037_v1 = vmax.f32 %v8973_v63, 0.0 }
 0x9a4   : > { %v9038_v10 = vmax.f32 %v8974_v59, 0.0 }
 0x9a5   : > { %v8809_v42 = vpop.f32.mrb[128].mxu1 }
 0x9a6   : > { %v9118_v53 = vpack.c.bf16 %v9038_v10, %v9037_v1  ;;  %v8810_v32 = vadd.f32 %v8809_v42, %v16138_v7  ;;  %v8811_v36 = vpop.f32.mrb[129].mxu1 }
 0x9a7   : > { %v8812_v40 = vpop.f32.mrb[130].mxu1 }
 0x9a8   : > { %v8975_v49 = vadd.f32 %v16136_v62, %v8810_v32  ;;  %v8813_v30 = vadd.f32 %v8812_v40, %v16143_v54  ;;  %v8814_v6 = vpop.f32.mrb[131].mxu1  ;;  %11564 = vmatmul.mubr.bf16.gmra.mrb[156].mxu0 %v9118_v53 }
 0x9aa   : > { %v8976_v57 = vadd.f32 %v16136_v62, %v8813_v30  ;;  %v9039_v7 = vmax.f32 %v8975_v49, 0.0 }
 0x9ac   : > { %v9040_v13 = vmax.f32 %v8976_v57, 0.0 }
 0x9ad   : > { %v8817_v35 = vpop.f32.mrb[132].mxu1 }
 0x9ae   : > { %v8818_v12 = vadd.f32 %v17442_v15, %v8817_v35  ;;  %v8819_v56 = vpop.f32.mrb[133].mxu1  ;;  %v9119_v27 = vpack.c.bf16 %v9040_v13, %v9039_v7 }
 0x9af   : > { %v8820_v54 = vpop.f32.mrb[134].mxu1 }
 0x9b0   : > { %v8977_v52 = vadd.f32 %v16136_v62, %v8818_v12  ;;  %v8821_v39 = vadd.f32 %v17443_v18, %v8820_v54  ;;  %v8822_v34 = vpop.f32.mrb[135].mxu1  ;;  %11567 = vmatprep.mubr.bf16.mxu0 %v9119_v27 }
 0x9b2   : > { %v8978_v2 = vadd.f32 %v16136_v62, %v8821_v39  ;;  %v9041_v38 = vmax.f32 %v8977_v52, 0.0 }
 0x9b4   : > { %v9042_v55 = vmax.f32 %v8978_v2, 0.0 }
 0x9b5   : > { %v8825_v4 = vpop.f32.mrb[136].mxu1 }
 0x9b6   : > { %v9120_v3 = vpack.c.bf16 %v9042_v55, %v9041_v38  ;;  %v8826_v61 = vadd.f32 %v8825_v4, %v16160_v45  ;;  %v8827_v63 = vpop.f32.mrb[137].mxu1 }
 0x9b7   : > { %v8828_v33 = vpop.f32.mrb[138].mxu1 }
 0x9b8   : > { %v8979_v58 = vadd.f32 %v16136_v62, %v8826_v61  ;;  %v8829_v59 = vadd.f32 %v8828_v33, %v16168_v14  ;;  %v8830_v1 = vpop.f32.mrb[139].mxu1  ;;  %11568 = vmatmul.mubr.bf16.gmra.mrb[160].mxu0 %v9120_v3 }
 0x9ba   : > { %v8980_v10 = vadd.f32 %v16136_v62, %v8829_v59  ;;  %v9043_v42 = vmax.f32 %v8979_v58, 0.0 }
 0x9bc   : > { %v9044_v53 = vmax.f32 %v8980_v10, 0.0 }
 0x9bd   : > { %v8833_v32 = vpop.f32.mrb[140].mxu1 }
 0x9be   : > { %v8834_v36 = vadd.f32 %v16158_v50, %v8833_v32  ;;  %v8835_v21 = vpop.f32.mrb[141].mxu1  ;;  %v9121_v40 = vpack.c.bf16 %v9044_v53, %v9043_v42 }
 0x9bf   : > { %v8836_v49 = vpop.f32.mrb[142].mxu1 }
 0x9c0   : > { %v8981_v45 = vadd.f32 %v16136_v62, %v8834_v36  ;;  %v8837_v30 = vadd.f32 %v16166_v25, %v8836_v49  ;;  %v8838_v6 = vpop.f32.mrb[143].mxu1  ;;  %11571 = vmatprep.mubr.bf16.mxu0 %v9121_v40 }
 0x9c2   : > { %v8982_v14 = vadd.f32 %v16136_v62, %v8837_v30  ;;  %v9045_v48 = vmax.f32 %v8981_v45, 0.0 }
 0x9c4   : > { %v9046_v57 = vmax.f32 %v8982_v14, 0.0 }
 0x9c5   : > { %v8841_v7 = vpop.f32.mrb[144].mxu1 }
 0x9c6   : > { %v9122_v13 = vpack.c.bf16 %v9046_v57, %v9045_v48  ;;  %v8842_v35 = vadd.f32 %v8841_v7, %v16193_v37  ;;  %v8843_v15 = vpop.f32.mrb[145].mxu1 }
 0x9c7   : > { %v8844_v12 = vpop.f32.mrb[146].mxu1 }
 0x9c8   : > { %v8983_v50 = vadd.f32 %v16136_v62, %v8842_v35  ;;  %v8845_v56 = vadd.f32 %v8844_v12, %v16201_v44  ;;  %v8846_v27 = vpop.f32.mrb[147].mxu1  ;;  %11572 = vmatmul.mubr.bf16.gmra.mrb[164].mxu0 %v9122_v13 }
 0x9ca   : > { %v8984_v25 = vadd.f32 %v16136_v62, %v8845_v56  ;;  %v9047_v54 = vmax.f32 %v8983_v50, 0.0 }
 0x9cc   : > { %v9048_v52 = vmax.f32 %v8984_v25, 0.0 }
 0x9cd   : > { %v8849_v18 = vpop.f32.mrb[148].mxu1 }
 0x9ce   : > { %v8850_v39 = vadd.f32 %v16191_v23, %v8849_v18  ;;  %v8851_v34 = vpop.f32.mrb[149].mxu1  ;;  %v9123_v2 = vpack.c.bf16 %v9048_v52, %v9047_v54 }
 0x9cf   : > { %v8852_v38 = vpop.f32.mrb[150].mxu1 }
 0x9d0   : > { %v8985_v37 = vadd.f32 %v16136_v62, %v8850_v39  ;;  %v8853_v55 = vadd.f32 %v16199_v0, %v8852_v38  ;;  %v8854_v4 = vpop.f32.mrb[151].mxu1  ;;  %11575 = vmatprep.mubr.bf16.mxu0 %v9123_v2 }
 0x9d2   : > { %v8986_v44 = vadd.f32 %v16136_v62, %v8853_v55  ;;  %v9049_v3 = vmax.f32 %v8985_v37, 0.0 }
 0x9d4   : > { %v9050_v61 = vmax.f32 %v8986_v44, 0.0 }
 0x9d5   : > { %v8857_v63 = vpop.f32.mrb[152].mxu1 }
 0x9d6   : > { %v9124_v33 = vpack.c.bf16 %v9050_v61, %v9049_v3  ;;  %v8858_v58 = vadd.f32 %v8857_v63, %v16220_v20  ;;  %v8859_v59 = vpop.f32.mrb[153].mxu1 }
 0x9d7   : > { %v8860_v1 = vpop.f32.mrb[154].mxu1 }
 0x9d8   : > { %v8987_v23 = vadd.f32 %v16136_v62, %v8858_v58  ;;  %v8861_v10 = vadd.f32 %v8860_v1, %v16228_v51  ;;  %v8862_v42 = vpop.f32.mrb[155].mxu1  ;;  %11576 = vmatmul.mubr.bf16.gmra.mrb[168].mxu0 %v9124_v33 }
 0x9da   : > { %v8988_v0 = vadd.f32 %v16136_v62, %v8861_v10  ;;  %v9051_v53 = vmax.f32 %v8987_v23, 0.0 }
 0x9dc   : > { %v9052_v32 = vmax.f32 %v8988_v0, 0.0 }
 0x9dd   : > { %v8865_v36 = vpop.f32.mrb[156].mxu1 }
 0x9de   : > { %v8866_v21 = vadd.f32 %v16218_v24, %v8865_v36  ;;  %v8867_v40 = vpop.f32.mrb[157].mxu1  ;;  %v9125_v49 = vpack.c.bf16 %v9052_v32, %v9051_v53 }
 0x9df   : > { %v8868_v45 = vpop.f32.mrb[158].mxu1 }
 0x9e0   : > { %v8989_v20 = vadd.f32 %v16136_v62, %v8866_v21  ;;  %v8869_v30 = vadd.f32 %v16226_v29, %v8868_v45  ;;  %v8870_v6 = vpop.f32.mrb[159].mxu1  ;;  %11579 = vmatprep.mubr.bf16.mxu0 %v9125_v49 }
 0x9e2   : > { %v8990_v51 = vadd.f32 %v16136_v62, %v8869_v30  ;;  %v9053_v14 = vmax.f32 %v8989_v20, 0.0 }
 0x9e4   : > { %v9054_v48 = vmax.f32 %v8990_v51, 0.0 }
 0x9e5   : > { %v8873_v57 = vpop.f32.mrb[160].mxu1 }
 0x9e6   : > { %v9126_v7 = vpack.c.bf16 %v9054_v48, %v9053_v14  ;;  %v8874_v13 = vadd.f32 %v8873_v57, %v16244_v11  ;;  %v8875_v35 = vpop.f32.mrb[161].mxu1 }
 0x9e7   : > { %v8876_v15 = vpop.f32.mrb[162].mxu1 }
 0x9e8   : > { %v8991_v24 = vadd.f32 %v16136_v62, %v8874_v13  ;;  %v8877_v12 = vadd.f32 %v8876_v15, %v16252_v46  ;;  %v8878_v50 = vpop.f32.mrb[163].mxu1  ;;  %11580 = vmatmul.mubr.bf16.gmra.mrb[172].mxu0 %v9126_v7 }
 0x9ea   : > { %v8992_v29 = vadd.f32 %v16136_v62, %v8877_v12  ;;  %v9055_v56 = vmax.f32 %v8991_v24, 0.0 }
 0x9ec   : > { %v9056_v27 = vmax.f32 %v8992_v29, 0.0 }
 0x9ed   : > { %v8881_v25 = vpop.f32.mrb[164].mxu1 }
 0x9ee   : > { %v8882_v54 = vadd.f32 %v16242_v16, %v8881_v25  ;;  %v8883_v52 = vpop.f32.mrb[165].mxu1  ;;  %v9127_v18 = vpack.c.bf16 %v9056_v27, %v9055_v56 }
 0x9ef   : > { %v8884_v39 = vpop.f32.mrb[166].mxu1 }
 0x9f0   : > { %v8993_v11 = vadd.f32 %v16136_v62, %v8882_v54  ;;  %v8885_v34 = vadd.f32 %v16250_v47, %v8884_v39  ;;  %v8886_v2 = vpop.f32.mrb[167].mxu1  ;;  %11583 = vmatprep.mubr.bf16.mxu0 %v9127_v18 }
 0x9f2   : > { %v8994_v46 = vadd.f32 %v16136_v62, %v8885_v34  ;;  %v9057_v38 = vmax.f32 %v8993_v11, 0.0 }
 0x9f4   : > { %v9058_v37 = vmax.f32 %v8994_v46, 0.0 }
 0x9f5   : > { %v8889_v55 = vpop.f32.mrb[168].mxu1 }
 0x9f6   : > { %v9128_v4 = vpack.c.bf16 %v9058_v37, %v9057_v38  ;;  %v8890_v44 = vadd.f32 %v8889_v55, %v16268_v43  ;;  %v8891_v3 = vpop.f32.mrb[169].mxu1 }
 0x9f7   : > { %v8892_v61 = vpop.f32.mrb[170].mxu1 }
 0x9f8   : > { %v8995_v16 = vadd.f32 %v16136_v62, %v8890_v44  ;;  %v8893_v63 = vadd.f32 %v8892_v61, %v16276_v60  ;;  %v8894_v33 = vpop.f32.mrb[171].mxu1  ;;  %11584 = vmatmul.mubr.bf16.gmra.mrb[176].mxu0 %v9128_v4 }
 0x9fa   : > { %v8996_v47 = vadd.f32 %v16136_v62, %v8893_v63  ;;  %v9059_v58 = vmax.f32 %v8995_v16, 0.0 }
 0x9fc   : > { %v9060_v59 = vmax.f32 %v8996_v47, 0.0 }
 0x9fd   : > { %v8897_v1 = vpop.f32.mrb[172].mxu1 }
 0x9fe   : > { %v8898_v23 = vadd.f32 %v16266_v41, %v8897_v1  ;;  %v8899_v10 = vpop.f32.mrb[173].mxu1  ;;  %v9129_v42 = vpack.c.bf16 %v9060_v59, %v9059_v58 }
 0x9ff   : > { %v8900_v0 = vpop.f32.mrb[174].mxu1 }
 0xa00   : > { %v8997_v43 = vadd.f32 %v16136_v62, %v8898_v23  ;;  %v8901_v53 = vadd.f32 %v16274_v9, %v8900_v0  ;;  %v8902_v32 = vpop.f32.mrb[175].mxu1  ;;  %11587 = vmatprep.mubr.bf16.mxu0 %v9129_v42  ;;  %v17444_v42 = vld [vmem:[#allocation3_spill] sm:$0xff] }
 0xa01   : > { %v17445_v32 = vld [vmem:[#allocation2_spill] sm:$0xff] }
 0xa02   : > { %v8998_v60 = vadd.f32 %v16136_v62, %v8901_v53  ;;  %v9061_v36 = vmax.f32 %v8997_v43, 0.0 }
 0xa04   : > { %v9062_v21 = vmax.f32 %v8998_v60, 0.0  ;;  %v17447_v60 = vld [vmem:[#allocation4_spill] sm:$0xff] }
 0xa05   : > { %v8905_v40 = vpop.f32.mrb[176].mxu1 }
 0xa06   : > { %v9130_v49 = vpack.c.bf16 %v9062_v21, %v9061_v36  ;;  %v8906_v45 = vadd.f32 %v8905_v40, %v16292_v5  ;;  %v8907_v20 = vpop.f32.mrb[177].mxu1 }
 0xa07   : > { %v8908_v30 = vpop.f32.mrb[178].mxu1  ;;  %v17450_v20 = vld [vmem:[#allocation9_spill] sm:$0xff] }
 0xa08   : > { %v8999_v41 = vadd.f32 %v16136_v62, %v8906_v45  ;;  %v8909_v6 = vadd.f32 %v8908_v30, %v16300_v8  ;;  %v8910_v51 = vpop.f32.mrb[179].mxu1  ;;  %11588 = vmatmul.mubr.bf16.gmra.mrb[180].mxu0 %v9130_v49  ;;  %v17449_v45 = vld [vmem:[#allocation6_spill] sm:$0xff]  ;;  %v17451_v30 = vld [vmem:[#allocation8_spill] sm:$0xff] }
 0xa0a   : > { %v9000_v9 = vadd.f32 %v16136_v62, %v8909_v6  ;;  %v9063_v48 = vmax.f32 %v8999_v41, 0.0  ;;  %v17452_v41 = vld [vmem:[#allocation11_spill] sm:$0xff] }
 0xa0b   : > { %v16397_v14 = vpop.f32.mrb[128].mxu0 }
 0xa0c   : > { %v9064_v57 = vmax.f32 %v9000_v9, 0.0  ;;  %v16399_v7 = vpop.f32.mrb[129].mxu0 }
 0xa0d   : > { %v8913_v13 = vpop.f32.mrb[180].mxu1  ;;  %v16401_v35 = vpop.f32.mrb[130].mxu0 }
 0xa0e   : > { %v8914_v5 = vadd.f32 %v16290_v28, %v8913_v13  ;;  %v8915_v15 = vpop.f32.mrb[181].mxu1  ;;  %v16404_v24 = vpop.f32.mrb[131].mxu0  ;;  %v9131_v12 = vpack.c.bf16 %v9064_v57, %v9063_v48  ;;  %v17453_v57 = vld [vmem:[#allocation10_spill] sm:$0xff]  ;;  %v17454_v13 = vld [vmem:[#allocation13_spill] sm:$0xff] }
 0xa0f   : > { %v8916_v8 = vpop.f32.mrb[182].mxu1  ;;  %v17456_v15 = vld [vmem:[#allocation15_spill] sm:$0xff] }
 0xa10   : > { %v9001_v50 = vadd.f32 %v16136_v62, %v8914_v5  ;;  %v8917_v29 = vadd.f32 %v16294_v31, %v8916_v8  ;;  %v8918_v56 = vpop.f32.mrb[183].mxu1  ;;  %11591 = vmatprep.mubr.bf16.mxu0 %v9131_v12  ;;  %v17455_v5 = vld [vmem:[#allocation12_spill] sm:$0xff] }
 0xa11   : > { %v17457_v56 = vld [vmem:[#allocation14_spill] sm:$0xff] }
 0xa12   : > { %v9002_v27 = vadd.f32 %v16136_v62, %v8917_v29  ;;  %v9065_v25 = vmax.f32 %v9001_v50, 0.0 }
 0xa14   : > { %v9066_v54 = vmax.f32 %v9002_v27, 0.0  ;;  %v17458_v27 = vld [vmem:[#allocation17_spill] sm:$0xff] }
 0xa15   : > { %v8921_v52 = vpop.f32.mrb[184].mxu1 }
 0xa16   : > { %v9132_v18 = vpack.c.bf16 %v9066_v54, %v9065_v25  ;;  %v8922_v39 = vadd.f32 %v8921_v52, %v16306_v26  ;;  %v8923_v28 = vpop.f32.mrb[185].mxu1  ;;  %v17459_v25 = vld [vmem:[#allocation16_spill] sm:$0xff]  ;;  %v17460_v54 = vld [vmem:[#allocation19_spill] sm:$0xff] }
 0xa17   : > { %v8924_v11 = vpop.f32.mrb[186].mxu1 }
 0xa18   : > { %v9003_v34 = vadd.f32 %v16136_v62, %v8922_v39  ;;  %v8925_v2 = vadd.f32 %v8924_v11, %v16312_v19  ;;  %v8926_v46 = vpop.f32.mrb[187].mxu1  ;;  %11592 = vmatmul.mubr.bf16.gmra.mrb[184].mxu0 %v9132_v18  ;;  %v17461_v11 = vld [vmem:[#allocation18_spill] sm:$0xff] }
 0xa19   : > { %v17464_v46 = vld [vmem:[#allocation23_spill] sm:$0xff] }
 0xa1a   : > { %v9004_v31 = vadd.f32 %v16136_v62, %v8925_v2  ;;  %v9067_v37 = vmax.f32 %v9003_v34, 0.0  ;;  %v17462_v34 = vld [vmem:[#allocation21_spill] sm:$0xff]  ;;  %v17463_v2 = vld [vmem:[#allocation20_spill] sm:$0xff] }
 0xa1b   : > { %v16413_v38 = vpop.f32.mrb[132].mxu0 }
 0xa1c   : > { %v9068_v55 = vmax.f32 %v9004_v31, 0.0  ;;  %v16415_v4 = vpop.f32.mrb[133].mxu0 }
 0xa1d   : > { %v8929_v44 = vpop.f32.mrb[188].mxu1  ;;  %v16417_v3 = vpop.f32.mrb[134].mxu0 }
 0xa1e   : > { %v8930_v26 = vadd.f32 %v16302_v22, %v8929_v44  ;;  %v8931_v61 = vpop.f32.mrb[189].mxu1  ;;  %v16420_v16 = vpop.f32.mrb[135].mxu0  ;;  %v9133_v63 = vpack.c.bf16 %v9068_v55, %v9067_v37 }
 0xa1f   : > { %v8932_v19 = vpop.f32.mrb[190].mxu1  ;;  %v17466_v61 = vld [vmem:[#allocation25_spill] sm:$0xff] }
 0xa20   : > { %v9005_v33 = vadd.f32 %v16136_v62, %v8930_v26  ;;  %v8933_v47 = vadd.f32 %v16308_v17, %v8932_v19  ;;  %v8934_v58 = vpop.f32.mrb[191].mxu1  ;;  %11595 = vmatprep.mubr.bf16.mxu0 %v9133_v63  ;;  %v17446_v17 = vld [vmem:[#allocation5_spill] sm:$0xff]  ;;  %v17465_v26 = vld [vmem:[#allocation22_spill] sm:$0xff]  ;;  %v17467_v63 = vld [vmem:[#allocation24_spill] sm:$0xff] }
 0xa21   : > { %v17468_v19 = vld [vmem:[#allocation27_spill] sm:$0xff] }
 0xa22   : > { %v9006_v59 = vadd.f32 %v16136_v62, %v8933_v47  ;;  %v9069_v1 = vmax.f32 %v9005_v33, 0.0  ;;  %v17448_v62 = vld [vmem:[#allocation7_spill] sm:$0xff] }
 0xa24   : > { %v9070_v23 = vmax.f32 %v9006_v59, 0.0 }
 0xa26   : > { %v9134_v10 = vpack.c.bf16 %v9070_v23, %v9069_v1  ;;  %v17469_v1 = vld [vmem:[#allocation26_spill] sm:$0xff]  ;;  %v17470_v23 = vld [vmem:[#allocation29_spill] sm:$0xff] }
 0xa28   : > { %11596 = vmatmul.mubr.bf16.gmra.mrb[188].mxu0 %v9134_v10  ;;  %v17471_v10 = vld [vmem:[#allocation28_spill] sm:$0xff] }
 0xa29   : > { %9616 = vmatprep.mubr.bf16.mxu0 %v17444_v42  ;;  %v17472_v42 = vld [vmem:[#allocation31_spill] sm:$0xff] }
 0xa2b   : > { %v16426_v22 = vpop.f32.mrb[136].mxu0 }
 0xa2c   : > { %v16428_v0 = vpop.f32.mrb[137].mxu0 }
 0xa2d   : > { %v16430_v43 = vpop.f32.mrb[138].mxu0 }
 0xa2e   : > { %v16432_v53 = vpop.f32.mrb[139].mxu0 }
 0xa30   : > { %9617 = vmatmul.mubr.bf16.vlgmr.msra.gmra.mrb[192].mxu0 %v17445_v32 }
 0xa31   : > { %9624 = vmatprep.mubr.bf16.mxu0 %v17446_v17 }
 0xa38   : > { %9625 = vmatmul.mubr.bf16.gmra.mrb[196].mxu0 %v17447_v60 }
 0xa39   : > { %9632 = vmatprep.mubr.bf16.mxu0 %v17448_v62 }
 0xa3b   : > { %v16438_v36 = vpop.f32.mrb[140].mxu0 }
 0xa3c   : > { %v16440_v21 = vpop.f32.mrb[141].mxu0 }
 0xa3d   : > { %v16442_v40 = vpop.f32.mrb[142].mxu0 }
 0xa3e   : > { %v16444_v49 = vpop.f32.mrb[143].mxu0 }
 0xa40   : > { %9633 = vmatmul.mubr.bf16.gmra.mrb[200].mxu0 %v17449_v45  ;;  %v17473_v45 = vld [vmem:[#allocation30_spill] sm:$0xff] }
 0xa41   : > { %9640 = vmatprep.mubr.bf16.mxu0 %v17450_v20  ;;  %v17474_v20 = vld [vmem:[#allocation33_spill] sm:$0xff] }
 0xa48   : > { %9641 = vmatmul.mubr.bf16.gmra.mrb[204].mxu0 %v17451_v30  ;;  %v17475_v30 = vld [vmem:[#allocation32_spill] sm:$0xff] }
 0xa49   : > { %9648 = vmatprep.mubr.bf16.mxu0 %v17452_v41  ;;  %v17476_v41 = vld [vmem:[#allocation35_spill] sm:$0xff] }
 0xa4b   : > { %v16450_v6 = vpop.f32.mrb[144].mxu0 }
 0xa4c   : > { %v16452_v51 = vpop.f32.mrb[145].mxu0 }
 0xa4d   : > { %v16454_v9 = vpop.f32.mrb[146].mxu0 }
 0xa4e   : > { %v16456_v48 = vpop.f32.mrb[147].mxu0 }
 0xa50   : > { %9649 = vmatmul.mubr.bf16.gmra.mrb[208].mxu0 %v17453_v57 }
 0xa51   : > { %9656 = vmatprep.mubr.bf16.mxu0 %v17454_v13 }
 0xa58   : > { %9657 = vmatmul.mubr.bf16.gmra.mrb[212].mxu0 %v17455_v5 }
 0xa59   : > { %9664 = vmatprep.mubr.bf16.mxu0 %v17456_v15 }
 0xa5b   : > { %v16462_v12 = vpop.f32.mrb[148].mxu0 }
 0xa5c   : > { %v16464_v8 = vpop.f32.mrb[149].mxu0 }
 0xa5d   : > { %v16466_v50 = vpop.f32.mrb[150].mxu0 }
 0xa5e   : > { %v16468_v29 = vpop.f32.mrb[151].mxu0 }
 0xa60   : > { %9665 = vmatmul.mubr.bf16.gmra.mrb[216].mxu0 %v17457_v56  ;;  %v17477_v56 = vld [vmem:[#allocation34_spill] sm:$0xff] }
 0xa61   : > { %9672 = vmatprep.mubr.bf16.mxu0 %v17458_v27  ;;  %v17478_v27 = vld [vmem:[#allocation37_spill] sm:$0xff] }
 0xa68   : > { %9673 = vmatmul.mubr.bf16.gmra.mrb[220].mxu0 %v17459_v25  ;;  %v17479_v25 = vld [vmem:[#allocation36_spill] sm:$0xff] }
 0xa69   : > { %9680 = vmatprep.mubr.bf16.mxu0 %v17460_v54  ;;  %v17480_v54 = vld [vmem:[#allocation39_spill] sm:$0xff] }
 0xa6b   : > { %v16474_v52 = vpop.f32.mrb[152].mxu0 }
 0xa6c   : > { %v16476_v18 = vpop.f32.mrb[153].mxu0 }
 0xa6d   : > { %v16478_v39 = vpop.f32.mrb[154].mxu0 }
 0xa6e   : > { %v16480_v28 = vpop.f32.mrb[155].mxu0 }
 0xa70   : > { %9681 = vmatmul.mubr.bf16.gmra.mrb[224].mxu0 %v17461_v11 }
 0xa71   : > { %9688 = vmatprep.mubr.bf16.mxu0 %v17462_v34 }
 0xa78   : > { %9689 = vmatmul.mubr.bf16.gmra.mrb[228].mxu0 %v17463_v2 }
 0xa79   : > { %9696 = vmatprep.mubr.bf16.mxu0 %v17464_v46 }
 0xa7b   : > { %v16486_v31 = vpop.f32.mrb[156].mxu0 }
 0xa7c   : > { %v16488_v37 = vpop.f32.mrb[157].mxu0 }
 0xa7d   : > { %v16490_v55 = vpop.f32.mrb[158].mxu0 }
 0xa7e   : > { %v16492_v44 = vpop.f32.mrb[159].mxu0 }
 0xa80   : > { %9697 = vmatmul.mubr.bf16.gmra.mrb[232].mxu0 %v17465_v26  ;;  %v17481_v26 = vld [vmem:[#allocation38_spill] sm:$0xff] }
 0xa81   : > { %9704 = vmatprep.mubr.bf16.mxu0 %v17466_v61  ;;  %v17482_v61 = vld [vmem:[#allocation41_spill] sm:$0xff] }
 0xa88   : > { %9705 = vmatmul.mubr.bf16.gmra.mrb[236].mxu0 %v17467_v63  ;;  %v17483_v63 = vld [vmem:[#allocation40_spill] sm:$0xff] }
 0xa89   : > { %9712 = vmatprep.mubr.bf16.mxu0 %v17468_v19  ;;  %v17484_v19 = vld [vmem:[#allocation43_spill] sm:$0xff] }
 0xa8b   : > { %v16498_v33 = vpop.f32.mrb[160].mxu0 }
 0xa8c   : > { %v16500_v47 = vpop.f32.mrb[161].mxu0 }
 0xa8d   : > { %v16502_v58 = vpop.f32.mrb[162].mxu0 }
 0xa8e   : > { %v16504_v59 = vpop.f32.mrb[163].mxu0 }
 0xa90   : > { %9713 = vmatmul.mubr.bf16.gmra.mrb[240].mxu0 %v17469_v1 }
 0xa91   : > { %9720 = vmatprep.mubr.bf16.mxu0 %v17470_v23 }
 0xa98   : > { %9721 = vmatmul.mubr.bf16.gmra.mrb[244].mxu0 %v17471_v10 }
 0xa99   : > { %9728 = vmatprep.mubr.bf16.mxu0 %v17472_v42 }
 0xa9b   : > { %v16510_v32 = vpop.f32.mrb[164].mxu0 }
 0xa9c   : > { %v16512_v17 = vpop.f32.mrb[165].mxu0 }
 0xa9d   : > { %v16514_v60 = vpop.f32.mrb[166].mxu0 }
 0xa9e   : > { %v16516_v62 = vpop.f32.mrb[167].mxu0 }
 0xaa0   : > { %9729 = vmatmul.mubr.bf16.gmra.mrb[248].mxu0 %v17473_v45  ;;  %v17488_v45 = vld [vmem:[#allocation42_spill] sm:$0xff] }
 0xaa1   : > { %9736 = vmatprep.mubr.bf16.mxu0 %v17474_v20  ;;  %v17489_v20 = vld [vmem:[#allocation45_spill] sm:$0xff] }
 0xaa8   : > { %9737 = vmatmul.mubr.bf16.gmra.mrb[252].mxu0 %v17475_v30  ;;  %v17490_v30 = vld [vmem:[#allocation44_spill] sm:$0xff] }
 0xaa9   : > { %9744 = vmatprep.mubr.bf16.mxu0 %v17476_v41  ;;  %v17491_v41 = vld [vmem:[#allocation47_spill] sm:$0xff] }
 0xaab   : > { %v16522_v57 = vpop.f32.mrb[168].mxu0 }
 0xaac   : > { %v16524_v13 = vpop.f32.mrb[169].mxu0 }
 0xaad   : > { %v16526_v5 = vpop.f32.mrb[170].mxu0 }
 0xaae   : > { %v16528_v15 = vpop.f32.mrb[171].mxu0 }
 0xab0   : > { %9745 = vmatmul.mubr.bf16.gmra.mrb[0].mxu0 %v17477_v56 }
 0xab1   : > { %9752 = vmatprep.mubr.bf16.mxu0 %v17478_v27 }
 0xab8   : > { %9753 = vmatmul.mubr.bf16.gmra.mrb[4].mxu0 %v17479_v25 }
 0xab9   : > { %9760 = vmatprep.mubr.bf16.mxu0 %v17480_v54 }
 0xabb   : > { %v16534_v11 = vpop.f32.mrb[172].mxu0 }
 0xabc   : > { %v16536_v34 = vpop.f32.mrb[173].mxu0 }
 0xabd   : > { %v16538_v2 = vpop.f32.mrb[174].mxu0 }
 0xabe   : > { %v16540_v46 = vpop.f32.mrb[175].mxu0 }
 0xac0   : > { %9761 = vmatmul.mubr.bf16.gmra.mrb[8].mxu0 %v17481_v26  ;;  %v17496_v26 = vld [vmem:[#allocation46_spill] sm:$0xff] }
 0xac1   : > { %9768 = vmatprep.mubr.bf16.mxu0 %v17482_v61  ;;  %v17497_v61 = vld [vmem:[#allocation49_spill] sm:$0xff] }
 0xac8   : > { %9769 = vmatmul.mubr.bf16.gmra.mrb[12].mxu0 %v17483_v63  ;;  %v17498_v63 = vld [vmem:[#allocation48_spill] sm:$0xff] }
 0xac9   : > { %9776 = vmatprep.mubr.bf16.mxu0 %v17484_v19  ;;  %v17499_v19 = vld [vmem:[#allocation51_spill] sm:$0xff] }
 0xacb   : > { %v16546_v1 = vpop.f32.mrb[176].mxu0 }
 0xacc   : > { %17485 = vst [vmem:[#allocation66_spill] sm:$0xff] %v16546_v1  ;;  %v16548_v23 = vpop.f32.mrb[177].mxu0 }
 0xacd   : > { %v16550_v10 = vpop.f32.mrb[178].mxu0 }
 0xace   : > { %17486 = vst [vmem:[#allocation67_spill] sm:$0xff] %v16550_v10  ;;  %v16552_v42 = vpop.f32.mrb[179].mxu0 }
 0xacf   : > { %17487 = vst [vmem:[#allocation3_spill] sm:$0xff] %v16552_v42 }
 0xad0   : > { %9777 = vmatmul.mubr.bf16.gmra.mrb[16].mxu0 %v17488_v45 }
 0xad1   : > { %9784 = vmatprep.mubr.bf16.mxu0 %v17489_v20 }
 0xad8   : > { %9785 = vmatmul.mubr.bf16.gmra.mrb[20].mxu0 %v17490_v30 }
 0xad9   : > { %9792 = vmatprep.mubr.bf16.mxu0 %v17491_v41 }
 0xadb   : > { %v16558_v56 = vpop.f32.mrb[180].mxu0 }
 0xadc   : > { %17492 = vst [vmem:[#allocation2_spill] sm:$0xff] %v16558_v56  ;;  %v16560_v27 = vpop.f32.mrb[181].mxu0  ;;  %v17504_v56 = vld [vmem:[#allocation50_spill] sm:$0xff] }
 0xadd   : > { %17493 = vst [vmem:[#allocation5_spill] sm:$0xff] %v16560_v27  ;;  %v16562_v25 = vpop.f32.mrb[182].mxu0  ;;  %v17515_v27 = vld [vmem:[#allocation59_spill] sm:$0xff] }
 0xade   : > { %17494 = vst [vmem:[#allocation4_spill] sm:$0xff] %v16562_v25  ;;  %v16564_v54 = vpop.f32.mrb[183].mxu0  ;;  %v17505_v25 = vld [vmem:[#allocation53_spill] sm:$0xff] }
 0xadf   : > { %17495 = vst [vmem:[#allocation7_spill] sm:$0xff] %v16564_v54  ;;  %v17506_v54 = vld [vmem:[#allocation52_spill] sm:$0xff] }
 0xae0   : > { %9793 = vmatmul.mubr.bf16.gmra.mrb[24].mxu0 %v17496_v26  ;;  %v17507_v26 = vld [vmem:[#allocation55_spill] sm:$0xff] }
 0xae1   : > { %9800 = vmatprep.mubr.bf16.mxu0 %v17497_v61 }
 0xae8   : > { %9801 = vmatmul.mubr.bf16.gmra.mrb[28].mxu0 %v17498_v63 }
 0xae9   : > { %9808 = vmatprep.mubr.bf16.mxu0 %v17499_v19 }
 0xaeb   : > { %v16570_v45 = vpop.f32.mrb[184].mxu0 }
 0xaec   : > { %17500 = vst [vmem:[#allocation6_spill] sm:$0xff] %v16570_v45  ;;  %v16572_v20 = vpop.f32.mrb[185].mxu0 }
 0xaed   : > { %17501 = vst [vmem:[#allocation9_spill] sm:$0xff] %v16572_v20  ;;  %v16574_v30 = vpop.f32.mrb[186].mxu0  ;;  %v17512_v20 = vld [vmem:[#allocation54_spill] sm:$0xff] }
 0xaee   : > { %17502 = vst [vmem:[#allocation8_spill] sm:$0xff] %v16574_v30  ;;  %v16576_v41 = vpop.f32.mrb[187].mxu0  ;;  %v17513_v30 = vld [vmem:[#allocation57_spill] sm:$0xff] }
 0xaef   : > { %17503 = vst [vmem:[#allocation11_spill] sm:$0xff] %v16576_v41 }
 0xaf0   : > { %9809 = vmatmul.mubr.bf16.gmra.mrb[32].mxu0 %v17504_v56  ;;  %v16595_v56 = vld [vmem:[%s17266_s10] ss:$0 sm:$0xff] }
 0xaf1   : > { %9816 = vmatprep.mubr.bf16.mxu0 %v17505_v25 }
 0xaf8   : > { %9817 = vmatmul.mubr.bf16.gmra.mrb[36].mxu0 %v17506_v54 }
 0xaf9   : > { %9824 = vmatprep.mubr.bf16.mxu0 %v17507_v26 }
 0xafb   : > { %v16582_v61 = vpop.f32.mrb[188].mxu0 }
 0xafc   : > { %17508 = vst [vmem:[#allocation10_spill] sm:$0xff] %v16582_v61  ;;  %v16584_v63 = vpop.f32.mrb[189].mxu0 }
 0xafd   : > { %17509 = vst [vmem:[#allocation13_spill] sm:$0xff] %v16584_v63  ;;  %v16586_v19 = vpop.f32.mrb[190].mxu0  ;;  %v17514_v63 = vld [vmem:[#allocation56_spill] sm:$0xff] }
 0xafe   : > { %17510 = vst [vmem:[#allocation12_spill] sm:$0xff] %v16586_v19  ;;  %v16588_v45 = vpop.f32.mrb[191].mxu0 }
 0xaff   : > { %17511 = vst [vmem:[#allocation15_spill] sm:$0xff] %v16588_v45 }
 0xb00   : > { %9825 = vmatmul.mubr.bf16.gmra.mrb[40].mxu0 %v17512_v20 }
 0xb01   : > { %9832 = vmatprep.mubr.bf16.mxu0 %v17513_v30 }
 0xb03   : > { %v9618_v41 = vpop.f32.mrb[192].mxu0 }
 0xb04   : > { %v9619_v25 = vadd.f32 %v9618_v41, %v16399_v7  ;;  %v9620_v54 = vpop.f32.mrb[193].mxu0 }
 0xb05   : > { %v9621_v26 = vpop.f32.mrb[194].mxu0 }
 0xb06   : > { %v16599_v61 = vadd.f32 %v16595_v56, %v9619_v25  ;;  %v9622_v19 = vadd.f32 %v9621_v26, %v16404_v24  ;;  %v9623_v45 = vpop.f32.mrb[195].mxu0 }
 0xb08   : > { %v11311_v20 = vmul.f32 -1.442695, %v16599_v61  ;;  %v16604_v30 = vadd.f32 %v16595_v56, %v9622_v19  ;;  %9833 = vmatmul.mubr.bf16.gmra.mrb[44].mxu0 %v17514_v63 }
 0xb09   : > { %9840 = vmatprep.mubr.bf16.mxu0 %v17515_v27  ;;  %v17516_v27 = vld [vmem:[#allocation58_spill] sm:$0xff] }
 0xb0a   : > { %12259 = vpow2.f32 %v11311_v20  ;;  %v11312_v7 = vmul.f32 -1.442695, %v16604_v30  ;;  %v17517_v20 = vld [vmem:[#allocation61_spill] sm:$0xff] }
 0xb0b   : > { %v9626_v41 = vpop.f32.mrb[196].mxu0 }
 0xb0c   : > { %12261 = vpow2.f32 %v11312_v7  ;;  %v9627_v25 = vadd.f32 %v16397_v14, %v9626_v41  ;;  %v9628_v54 = vpop.f32.mrb[197].mxu0 }
 0xb0d   : > { %v9629_v10 = vpop.f32.mrb[198].mxu0 }
 0xb0e   : > { %v16611_v24 = vadd.f32 %v16595_v56, %v9627_v25  ;;  %v9630_v45 = vadd.f32 %v16401_v35, %v9629_v10  ;;  %v9631_v19 = vpop.f32.mrb[199].mxu0 }
 0xb10   : > { %v11313_v26 = vmul.f32 -1.442695, %v16611_v24  ;;  %v16616_v63 = vadd.f32 %v16595_v56, %v9630_v45  ;;  %9841 = vmatmul.mubr.bf16.gmra.mrb[48].mxu0 %v17516_v27 }
 0xb11   : > { %9848 = vmatprep.mubr.bf16.mxu0 %v17517_v20 }
 0xb12   : > { %12263 = vpow2.f32 %v11313_v26  ;;  %v11314_v14 = vmul.f32 -1.442695, %v16616_v63 }
 0xb13   : > { %v9634_v7 = vpop.f32.mrb[200].mxu0 }
 0xb14   : > { %v12260_v41 = vpop.eup %12259  ;;  %12265 = vpow2.f32 %v11314_v14  ;;  %v9635_v25 = vadd.f32 %v9634_v7, %v16415_v4  ;;  %v9636_v54 = vpop.f32.mrb[201].mxu0  ;;  %v17518_v14 = vld [vmem:[#allocation60_spill] sm:$0xff]  ;;  %v17519_v4 = vld [vmem:[#allocation63_spill] sm:$0xff] }
 0xb15   : > { %v10139_v35 = vadd.f32 1.0, %v12260_v41  ;;  %v9637_v10 = vpop.f32.mrb[202].mxu0  ;;  %v17520_v41 = vlaneseq }
 0xb16   : > { %v12262_v19 = vpop.eup %12261  ;;  %v16623_v1 = vadd.f32 %v16595_v56, %v9635_v25  ;;  %v9638_v45 = vadd.f32 %v9637_v10, %v16420_v16  ;;  %v9639_v27 = vpop.f32.mrb[203].mxu0 }
 0xb17   : > { %12267 = vrcp.f32 %v10139_v35  ;;  %v10140_v26 = vadd.f32 1.0, %v12262_v19  ;;  %v16634_v25 = vand.u32 127, %v17520_v41 }
 0xb18   : > { %v11315_v20 = vmul.f32 -1.442695, %v16623_v1  ;;  %v16628_v42 = vadd.f32 %v16595_v56, %v9638_v45  ;;  %9849 = vmatmul.mubr.bf16.gmra.mrb[52].mxu0 %v17518_v14 }
 0xb19   : > { %12269 = vrcp.f32 %v10140_v26  ;;  %9856 = vmatprep.mubr.bf16.mxu0 %v17519_v4  ;;  %vm9946_vm6 = vcmp.lt.s32.totalorder %v16634_v25, 3 }
 0xb1a   : > { %12271 = vpow2.f32 %v11315_v20  ;;  %v11316_v7 = vmul.f32 -1.442695, %v16628_v42 }
 0xb1b   : > { %v9642_v16 = vpop.f32.mrb[204].mxu0 }
 0xb1c   : > { %v12264_v54 = vpop.eup %12263  ;;  %12273 = vpow2.f32 %v11316_v7  ;;  %v9643_v35 = vadd.f32 %v16413_v38, %v9642_v16  ;;  %v9644_v10 = vpop.f32.mrb[205].mxu0  ;;  %v10331_v38 = vmax.f32 %v16599_v61, 0.0 }
 0xb1d   : > { %v10141_v19 = vadd.f32 1.0, %v12264_v54  ;;  %v9645_v45 = vpop.f32.mrb[206].mxu0  ;;  %v17522_v54 = vld [vmem:[#allocation65_spill] sm:$0xff]  ;;  %v10332_v10 = vmax.f32 %v16604_v30, 0.0 }
 0xb1e   : > { %v12266_v27 = vpop.eup %12265  ;;  %v16639_v26 = vadd.f32 %v16595_v56, %v9643_v35  ;;  %v9646_v20 = vadd.f32 %v16417_v3, %v9645_v45  ;;  %v9647_v14 = vpop.f32.mrb[207].mxu0  ;;  %v17521_v3 = vld [vmem:[#allocation62_spill] sm:$0xff] }
 0xb1f   : > { %12275 = vrcp.f32 %v10141_v19  ;;  %v10142_v4 = vadd.f32 1.0, %v12266_v27 }
 0xb20   : > { %v11317_v7 = vmul.f32 -1.442695, %v16639_v26  ;;  %v16651_v41 = vadd.f32 %v16595_v56, %v9646_v20  ;;  %9857 = vmatmul.mubr.bf16.gmra.mrb[56].mxu0 %v17521_v3 }
 0xb21   : > { %v12268_v16 = vpop.eup %12267  ;;  %12277 = vrcp.f32 %v10142_v4  ;;  %9864 = vmatprep.mubr.bf16.mxu0 %v17522_v54 }
 0xb22   : > { %v10395_v35 = vsel %vm9946_vm6, %v12268_v16, %v10331_v38  ;;  %12279 = vpow2.f32 %v11317_v7  ;;  %v11318_v61 = vmul.f32 -1.442695, %v16651_v41 }
 0xb23   : > { %v12270_v19 = vpop.eup %12269  ;;  %10460 = vst.msk [vmem:[%s16646_s29] sm:$0xff] %vm10459_vm7, %v10395_v35  ;;  %v9650_v45 = vpop.f32.mrb[208].mxu0 }
 0xb24   : > { %v12272_v27 = vpop.eup %12271  ;;  %v10396_v20 = vsel %vm9946_vm6, %v12270_v19, %v10332_v10  ;;  %12281 = vpow2.f32 %v11318_v61  ;;  %v9651_v14 = vadd.f32 %v9650_v45, %v16428_v0  ;;  %v9652_v4 = vpop.f32.mrb[209].mxu0  ;;  %v10333_v10 = vmax.f32 %v16611_v24, 0.0  ;;  %v17523_v19 = vld [vmem:[#allocation64_spill] sm:$0xff] }
 0xb25   : > { %10461 = vst.msk [vmem:[%s16646_s29 + $0x8] sm:$0xff] %vm10459_vm7, %v10396_v20  ;;  %v10143_v38 = vadd.f32 1.0, %v12272_v27  ;;  %v9653_v3 = vpop.f32.mrb[210].mxu0 }
 0xb26   : > { %v12274_v30 = vpop.eup %12273  ;;  %v16667_v7 = vadd.f32 %v16595_v56, %v9651_v14  ;;  %v9654_v16 = vadd.f32 %v9653_v3, %v16432_v53  ;;  %v9655_v54 = vpop.f32.mrb[211].mxu0  ;;  %v10334_v53 = vmax.f32 %v16616_v63, 0.0 }
 0xb27   : > { %12283 = vrcp.f32 %v10143_v38  ;;  %v10144_v35 = vadd.f32 1.0, %v12274_v30 }
 0xb28   : > { %v11319_v61 = vmul.f32 -1.442695, %v16667_v7  ;;  %v16673_v0 = vadd.f32 %v16595_v56, %v9654_v16  ;;  %9865 = vmatmul.mubr.bf16.gmra.mrb[60].mxu0 %v17523_v19 }
 0xb29   : > { %v12276_v45 = vpop.eup %12275  ;;  %12285 = vrcp.f32 %v10144_v35 }
 0xb2a   : > { %v10397_v27 = vsel %vm9946_vm6, %v12276_v45, %v10333_v10  ;;  %12287 = vpow2.f32 %v11319_v61  ;;  %v11320_v20 = vmul.f32 -1.442695, %v16673_v0  ;;  %v10335_v45 = vmax.f32 %v16623_v1, 0.0 }
 0xb2b   : > { %v12278_v14 = vpop.eup %12277  ;;  %10462 = vst.msk [vmem:[%s16646_s29 + $0x10] sm:$0xff] %vm10459_vm7, %v10397_v27  ;;  %v9658_v24 = vpop.f32.mrb[212].mxu0 }
 0xb2c   : > { %v12280_v4 = vpop.eup %12279  ;;  %v10398_v38 = vsel %vm9946_vm6, %v12278_v14, %v10334_v53  ;;  %12289 = vpow2.f32 %v11320_v20  ;;  %v9659_v3 = vadd.f32 %v16426_v22, %v9658_v24  ;;  %v9660_v30 = vpop.f32.mrb[213].mxu0  ;;  %v10336_v14 = vmax.f32 %v16628_v42, 0.0 }
 0xb2d   : > { %10463 = vst.msk [vmem:[%s16646_s29 + $0x18] sm:$0xff] %vm10459_vm7, %v10398_v38  ;;  %v10145_v16 = vadd.f32 1.0, %v12280_v4  ;;  %v9661_v54 = vpop.f32.mrb[214].mxu0 }
 0xb2e   : > { %v12282_v63 = vpop.eup %12281  ;;  %v16688_v35 = vadd.f32 %v16595_v56, %v9659_v3  ;;  %v9662_v10 = vadd.f32 %v16430_v43, %v9661_v54  ;;  %v9663_v61 = vpop.f32.mrb[215].mxu0 }
 0xb2f   : > { %12291 = vrcp.f32 %v10145_v16  ;;  %v10146_v19 = vadd.f32 1.0, %v12282_v63 }
 0xb30   : > { %v11321_v27 = vmul.f32 -1.442695, %v16688_v35  ;;  %v16694_v22 = vadd.f32 %v16595_v56, %v9662_v10 }
 0xb31   : > { %v12284_v53 = vpop.eup %12283  ;;  %12293 = vrcp.f32 %v10146_v19 }
 0xb32   : > { %v10399_v20 = vsel %vm9946_vm6, %v12284_v53, %v10335_v45  ;;  %12295 = vpow2.f32 %v11321_v27  ;;  %v11322_v43 = vmul.f32 -1.442695, %v16694_v22  ;;  %v10337_v45 = vmax.f32 %v16639_v26, 0.0 }
 0xb33   : > { %v12286_v24 = vpop.eup %12285  ;;  %10464 = vst.msk [vmem:[%s16646_s29 + $0x20] sm:$0xff] %vm10459_vm7, %v10399_v20  ;;  %v9666_v1 = vpop.f32.mrb[216].mxu0 }
 0xb34   : > { %v12288_v4 = vpop.eup %12287  ;;  %v10400_v38 = vsel %vm9946_vm6, %v12286_v24, %v10336_v14  ;;  %12297 = vpow2.f32 %v11322_v43  ;;  %v9667_v3 = vadd.f32 %v9666_v1, %v16440_v21  ;;  %v9668_v30 = vpop.f32.mrb[217].mxu0  ;;  %v10338_v14 = vmax.f32 %v16651_v41, 0.0 }
 0xb35   : > { %10465 = vst.msk [vmem:[%s16646_s29 + $0x28] sm:$0xff] %vm10459_vm7, %v10400_v38  ;;  %v10147_v16 = vadd.f32 1.0, %v12288_v4  ;;  %v9669_v54 = vpop.f32.mrb[218].mxu0 }
 0xb36   : > { %v12290_v42 = vpop.eup %12289  ;;  %v16708_v63 = vadd.f32 %v16595_v56, %v9667_v3  ;;  %v9670_v10 = vadd.f32 %v9669_v54, %v16444_v49  ;;  %v9671_v61 = vpop.f32.mrb[219].mxu0 }
 0xb37   : > { %12299 = vrcp.f32 %v10147_v16  ;;  %v10148_v19 = vadd.f32 1.0, %v12290_v42  ;;  %v10339_v61 = vmax.f32 %v16667_v7, 0.0 }
 0xb38   : > { %v11323_v27 = vmul.f32 -1.442695, %v16708_v63  ;;  %v16714_v21 = vadd.f32 %v16595_v56, %v9670_v10 }
 0xb39   : > { %v12292_v53 = vpop.eup %12291  ;;  %12301 = vrcp.f32 %v10148_v19 }
 0xb3a   : > { %v10401_v20 = vsel %vm9946_vm6, %v12292_v53, %v10337_v45  ;;  %12303 = vpow2.f32 %v11323_v27  ;;  %v11324_v49 = vmul.f32 -1.442695, %v16714_v21  ;;  %v10340_v53 = vmax.f32 %v16673_v0, 0.0 }
 0xb3b   : > { %v12294_v43 = vpop.eup %12293  ;;  %10466 = vst.msk [vmem:[%s16646_s29 + $0x30] sm:$0xff] %vm10459_vm7, %v10401_v20  ;;  %v9674_v26 = vpop.f32.mrb[220].mxu0 }
 0xb3c   : > { %v12296_v24 = vpop.eup %12295  ;;  %v10402_v1 = vsel %vm9946_vm6, %v12294_v43, %v10338_v14  ;;  %12305 = vpow2.f32 %v11324_v49  ;;  %v9675_v4 = vadd.f32 %v16438_v36, %v9674_v26  ;;  %v9676_v38 = vpop.f32.mrb[221].mxu0 }
 0xb3d   : > { %10467 = vst.msk [vmem:[%s16646_s29 + $0x38] sm:$0xff] %vm10459_vm7, %v10402_v1  ;;  %v10149_v3 = vadd.f32 1.0, %v12296_v24  ;;  %v9677_v30 = vpop.f32.mrb[222].mxu0 }
 0xb3e   : > { %v12298_v41 = vpop.eup %12297  ;;  %v16728_v16 = vadd.f32 %v16595_v56, %v9675_v4  ;;  %v9678_v54 = vadd.f32 %v16442_v40, %v9677_v30  ;;  %v9679_v42 = vpop.f32.mrb[223].mxu0 }
 0xb3f   : > { %12307 = vrcp.f32 %v10149_v3  ;;  %v10150_v10 = vadd.f32 1.0, %v12298_v41  ;;  %v10341_v41 = vmax.f32 %v16688_v35, 0.0 }
 0xb40   : > { %v11325_v19 = vmul.f32 -1.442695, %v16728_v16  ;;  %v16734_v36 = vadd.f32 %v16595_v56, %v9678_v54 }
 0xb41   : > { %v12300_v45 = vpop.eup %12299  ;;  %12309 = vrcp.f32 %v10150_v10 }
 0xb42   : > { %v10403_v27 = vsel %vm9946_vm6, %v12300_v45, %v10339_v61  ;;  %12311 = vpow2.f32 %v11325_v19  ;;  %v11326_v40 = vmul.f32 -1.442695, %v16734_v36  ;;  %v10342_v61 = vmax.f32 %v16694_v22, 0.0 }
 0xb43   : > { %v12302_v20 = vpop.eup %12301  ;;  %10468 = vst.msk [vmem:[%s16646_s29 + $0x40] sm:$0xff] %vm10459_vm7, %v10403_v27  ;;  %v9682_v7 = vpop.f32.mrb[224].mxu0 }
 0xb44   : > { %v12304_v14 = vpop.eup %12303  ;;  %v10404_v49 = vsel %vm9946_vm6, %v12302_v20, %v10340_v53  ;;  %12313 = vpow2.f32 %v11326_v40  ;;  %v9683_v43 = vadd.f32 %v9682_v7, %v16452_v51  ;;  %v9684_v26 = vpop.f32.mrb[225].mxu0 }
 0xb45   : > { %10469 = vst.msk [vmem:[%s16646_s29 + $0x48] sm:$0xff] %vm10459_vm7, %v10404_v49  ;;  %v10151_v24 = vadd.f32 1.0, %v12304_v14  ;;  %v9685_v1 = vpop.f32.mrb[226].mxu0 }
 0xb46   : > { %v12306_v0 = vpop.eup %12305  ;;  %v16748_v4 = vadd.f32 %v16595_v56, %v9683_v43  ;;  %v9686_v38 = vadd.f32 %v9685_v1, %v16456_v48  ;;  %v9687_v3 = vpop.f32.mrb[227].mxu0 }
 0xb47   : > { %12315 = vrcp.f32 %v10151_v24  ;;  %v10152_v30 = vadd.f32 1.0, %v12306_v0  ;;  %v10343_v24 = vmax.f32 %v16708_v63, 0.0  ;;  %v10344_v3 = vmax.f32 %v16714_v21, 0.0 }
 0xb48   : > { %v11327_v54 = vmul.f32 -1.442695, %v16748_v4  ;;  %v16754_v51 = vadd.f32 %v16595_v56, %v9686_v38 }
 0xb49   : > { %v12308_v42 = vpop.eup %12307  ;;  %12317 = vrcp.f32 %v10152_v30 }
 0xb4a   : > { %v10405_v10 = vsel %vm9946_vm6, %v12308_v42, %v10341_v41  ;;  %12319 = vpow2.f32 %v11327_v54  ;;  %v11328_v48 = vmul.f32 -1.442695, %v16754_v51 }
 0xb4b   : > { %v12310_v19 = vpop.eup %12309  ;;  %10470 = vst.msk [vmem:[%s16646_s29 + $0x50] sm:$0xff] %vm10459_vm7, %v10405_v10  ;;  %v9690_v35 = vpop.f32.mrb[228].mxu0 }
 0xb4c   : > { %v12312_v45 = vpop.eup %12311  ;;  %v10406_v27 = vsel %vm9946_vm6, %v12310_v19, %v10342_v61  ;;  %12321 = vpow2.f32 %v11328_v48  ;;  %v9691_v53 = vadd.f32 %v16450_v6, %v9690_v35  ;;  %v9692_v40 = vpop.f32.mrb[229].mxu0 }
 0xb4d   : > { %10471 = vst.msk [vmem:[%s16646_s29 + $0x58] sm:$0xff] %vm10459_vm7, %v10406_v27  ;;  %v10153_v20 = vadd.f32 1.0, %v12312_v45  ;;  %v9693_v7 = vpop.f32.mrb[230].mxu0 }
 0xb4e   : > { %v12314_v22 = vpop.eup %12313  ;;  %v16768_v14 = vadd.f32 %v16595_v56, %v9691_v53  ;;  %v9694_v49 = vadd.f32 %v16454_v9, %v9693_v7  ;;  %v9695_v43 = vpop.f32.mrb[231].mxu0  ;;  %v10345_v53 = vmax.f32 %v16728_v16, 0.0 }
 0xb4f   : > { %12323 = vrcp.f32 %v10153_v20  ;;  %v10154_v26 = vadd.f32 1.0, %v12314_v22  ;;  %v10346_v22 = vmax.f32 %v16734_v36, 0.0 }
 0xb50   : > { %v11329_v1 = vmul.f32 -1.442695, %v16768_v14  ;;  %v16774_v6 = vadd.f32 %v16595_v56, %v9694_v49 }
 0xb51   : > { %v12316_v0 = vpop.eup %12315  ;;  %12325 = vrcp.f32 %v10154_v26 }
 0xb52   : > { %v10407_v38 = vsel %vm9946_vm6, %v12316_v0, %v10343_v24  ;;  %12327 = vpow2.f32 %v11329_v1  ;;  %v11330_v9 = vmul.f32 -1.442695, %v16774_v6 }
 0xb53   : > { %v12318_v30 = vpop.eup %12317  ;;  %10472 = vst.msk [vmem:[%s16646_s29 + $0x60] sm:$0xff] %vm10459_vm7, %v10407_v38  ;;  %v9698_v63 = vpop.f32.mrb[232].mxu0 }
 0xb54   : > { %v12320_v41 = vpop.eup %12319  ;;  %v10408_v54 = vsel %vm9946_vm6, %v12318_v30, %v10344_v3  ;;  %12329 = vpow2.f32 %v11330_v9  ;;  %v9699_v42 = vadd.f32 %v9698_v63, %v16464_v8  ;;  %v9700_v10 = vpop.f32.mrb[233].mxu0 }
 0xb55   : > { %10473 = vst.msk [vmem:[%s16646_s29 + $0x68] sm:$0xff] %vm10459_vm7, %v10408_v54  ;;  %v10155_v61 = vadd.f32 1.0, %v12320_v41  ;;  %v9701_v48 = vpop.f32.mrb[234].mxu0  ;;  %v10347_v41 = vmax.f32 %v16748_v4, 0.0 }
 0xb56   : > { %v12322_v21 = vpop.eup %12321  ;;  %v16788_v19 = vadd.f32 %v16595_v56, %v9699_v42  ;;  %v9702_v35 = vadd.f32 %v9701_v48, %v16468_v29  ;;  %v9703_v45 = vpop.f32.mrb[235].mxu0 }
 0xb57   : > { %12331 = vrcp.f32 %v10155_v61  ;;  %v10156_v27 = vadd.f32 1.0, %v12322_v21  ;;  %v10348_v61 = vmax.f32 %v16754_v51, 0.0 }
 0xb58   : > { %v11331_v40 = vmul.f32 -1.442695, %v16788_v19  ;;  %v16794_v8 = vadd.f32 %v16595_v56, %v9702_v35 }
 0xb59   : > { %v12324_v20 = vpop.eup %12323  ;;  %12333 = vrcp.f32 %v10156_v27 }
 0xb5a   : > { %v10409_v7 = vsel %vm9946_vm6, %v12324_v20, %v10345_v53  ;;  %12335 = vpow2.f32 %v11331_v40  ;;  %v11332_v29 = vmul.f32 -1.442695, %v16794_v8 }
 0xb5b   : > { %v12326_v49 = vpop.eup %12325  ;;  %10474 = vst.msk [vmem:[%s16646_s29 + $0x70] sm:$0xff] %vm10459_vm7, %v10409_v7  ;;  %v9706_v16 = vpop.f32.mrb[236].mxu0 }
 0xb5c   : > { %v12328_v43 = vpop.eup %12327  ;;  %v10410_v26 = vsel %vm9946_vm6, %v12326_v49, %v10346_v22  ;;  %12337 = vpow2.f32 %v11332_v29  ;;  %v9707_v24 = vadd.f32 %v16462_v12, %v9706_v16  ;;  %v9708_v1 = vpop.f32.mrb[237].mxu0  ;;  %v10349_v49 = vmax.f32 %v16768_v14, 0.0 }
 0xb5d   : > { %10475 = vst.msk [vmem:[%s16646_s29 + $0x78] sm:$0xff] %vm10459_vm7, %v10410_v26  ;;  %v10157_v0 = vadd.f32 1.0, %v12328_v43  ;;  %v9709_v38 = vpop.f32.mrb[238].mxu0 }
 0xb5e   : > { %v12330_v36 = vpop.eup %12329  ;;  %v16808_v3 = vadd.f32 %v16595_v56, %v9707_v24  ;;  %v9710_v9 = vadd.f32 %v16466_v50, %v9709_v38  ;;  %v9711_v30 = vpop.f32.mrb[239].mxu0  ;;  %v10350_v24 = vmax.f32 %v16774_v6, 0.0 }
 0xb5f   : > { %12339 = vrcp.f32 %v10157_v0  ;;  %v10158_v63 = vadd.f32 1.0, %v12330_v36 }
 0xb60   : > { %v11333_v54 = vmul.f32 -1.442695, %v16808_v3  ;;  %v16814_v12 = vadd.f32 %v16595_v56, %v9710_v9 }
 0xb61   : > { %v12332_v42 = vpop.eup %12331  ;;  %12341 = vrcp.f32 %v10158_v63 }
 0xb62   : > { %v10411_v10 = vsel %vm9946_vm6, %v12332_v42, %v10347_v41  ;;  %12343 = vpow2.f32 %v11333_v54  ;;  %v11334_v50 = vmul.f32 -1.442695, %v16814_v12 }
 0xb63   : > { %v12334_v48 = vpop.eup %12333  ;;  %10476 = vst.msk [vmem:[%s16646_s29 + $0x80] sm:$0xff] %vm10459_vm7, %v10411_v10  ;;  %v9714_v4 = vpop.f32.mrb[240].mxu0 }
 0xb64   : > { %v12336_v21 = vpop.eup %12335  ;;  %v10412_v35 = vsel %vm9946_vm6, %v12334_v48, %v10348_v61  ;;  %12345 = vpow2.f32 %v11334_v50  ;;  %v9715_v45 = vadd.f32 %v9714_v4, %v16476_v18  ;;  %v9716_v27 = vpop.f32.mrb[241].mxu0  ;;  %v10351_v61 = vmax.f32 %v16788_v19, 0.0 }
 0xb65   : > { %10477 = vst.msk [vmem:[%s16646_s29 + $0x88] sm:$0xff] %vm10459_vm7, %v10412_v35  ;;  %v10159_v53 = vadd.f32 1.0, %v12336_v21  ;;  %v9717_v40 = vpop.f32.mrb[242].mxu0  ;;  %v10352_v21 = vmax.f32 %v16794_v8, 0.0 }
 0xb66   : > { %v12338_v51 = vpop.eup %12337  ;;  %v16828_v20 = vadd.f32 %v16595_v56, %v9715_v45  ;;  %v9718_v7 = vadd.f32 %v9717_v40, %v16480_v28  ;;  %v9719_v22 = vpop.f32.mrb[243].mxu0 }
 0xb67   : > { %12347 = vrcp.f32 %v10159_v53  ;;  %v10160_v29 = vadd.f32 1.0, %v12338_v51 }
 0xb68   : > { %v11335_v16 = vmul.f32 -1.442695, %v16828_v20  ;;  %v16834_v18 = vadd.f32 %v16595_v56, %v9718_v7 }
 0xb69   : > { %v12340_v43 = vpop.eup %12339  ;;  %12349 = vrcp.f32 %v10160_v29 }
 0xb6a   : > { %v10413_v26 = vsel %vm9946_vm6, %v12340_v43, %v10349_v49  ;;  %12351 = vpow2.f32 %v11335_v16  ;;  %v11336_v28 = vmul.f32 -1.442695, %v16834_v18  ;;  %v10353_v43 = vmax.f32 %v16808_v3, 0.0 }
 0xb6b   : > { %v12342_v1 = vpop.eup %12341  ;;  %10478 = vst.msk [vmem:[%s16646_s29 + $0x90] sm:$0xff] %vm10459_vm7, %v10413_v26  ;;  %v9722_v14 = vpop.f32.mrb[244].mxu0 }
 0xb6c   : > { %v12344_v0 = vpop.eup %12343  ;;  %v10414_v38 = vsel %vm9946_vm6, %v12342_v1, %v10350_v24  ;;  %12353 = vpow2.f32 %v11336_v28  ;;  %v9723_v36 = vadd.f32 %v16474_v52, %v9722_v14  ;;  %v9724_v9 = vpop.f32.mrb[245].mxu0  ;;  %v10354_v1 = vmax.f32 %v16814_v12, 0.0 }
 0xb6d   : > { %10479 = vst.msk [vmem:[%s16646_s29 + $0x98] sm:$0xff] %vm10459_vm7, %v10414_v38  ;;  %v10161_v30 = vadd.f32 1.0, %v12344_v0  ;;  %v9725_v63 = vpop.f32.mrb[246].mxu0 }
 0xb6e   : > { %v12346_v6 = vpop.eup %12345  ;;  %v16848_v41 = vadd.f32 %v16595_v56, %v9723_v36  ;;  %v9726_v54 = vadd.f32 %v16478_v39, %v9725_v63  ;;  %v9727_v42 = vpop.f32.mrb[247].mxu0 }
 0xb6f   : > { %12355 = vrcp.f32 %v10161_v30  ;;  %v10162_v10 = vadd.f32 1.0, %v12346_v6 }
 0xb70   : > { %v11337_v50 = vmul.f32 -1.442695, %v16848_v41  ;;  %v16854_v52 = vadd.f32 %v16595_v56, %v9726_v54 }
 0xb71   : > { %v12348_v48 = vpop.eup %12347  ;;  %12357 = vrcp.f32 %v10162_v10 }
 0xb72   : > { %v10415_v4 = vsel %vm9946_vm6, %v12348_v48, %v10351_v61  ;;  %12359 = vpow2.f32 %v11337_v50  ;;  %v11338_v39 = vmul.f32 -1.442695, %v16854_v52  ;;  %v10355_v61 = vmax.f32 %v16828_v20, 0.0 }
 0xb73   : > { %v12350_v35 = vpop.eup %12349  ;;  %10480 = vst.msk [vmem:[%s16646_s29 + $0xa0] sm:$0xff] %vm10459_vm7, %v10415_v4  ;;  %v9730_v19 = vpop.f32.mrb[248].mxu0 }
 0xb74   : > { %v12352_v45 = vpop.eup %12351  ;;  %v10416_v27 = vsel %vm9946_vm6, %v12350_v35, %v10352_v21  ;;  %12361 = vpow2.f32 %v11338_v39  ;;  %v9731_v53 = vadd.f32 %v9730_v19, %v16488_v37  ;;  %v9732_v40 = vpop.f32.mrb[249].mxu0  ;;  %v10356_v21 = vmax.f32 %v16834_v18, 0.0 }
 0xb75   : > { %10481 = vst.msk [vmem:[%s16646_s29 + $0xa8] sm:$0xff] %vm10459_vm7, %v10416_v27  ;;  %v10163_v51 = vadd.f32 1.0, %v12352_v45  ;;  %v9733_v7 = vpop.f32.mrb[250].mxu0 }
 0xb76   : > { %v12354_v8 = vpop.eup %12353  ;;  %v16868_v22 = vadd.f32 %v16595_v56, %v9731_v53  ;;  %v9734_v29 = vadd.f32 %v9733_v7, %v16492_v44  ;;  %v9735_v49 = vpop.f32.mrb[251].mxu0 }
 0xb77   : > { %12363 = vrcp.f32 %v10163_v51  ;;  %v10164_v16 = vadd.f32 1.0, %v12354_v8  ;;  %v10357_v49 = vmax.f32 %v16848_v41, 0.0 }
 0xb78   : > { %v11339_v26 = vmul.f32 -1.442695, %v16868_v22  ;;  %v16874_v37 = vadd.f32 %v16595_v56, %v9734_v29 }
 0xb79   : > { %v12356_v24 = vpop.eup %12355  ;;  %12365 = vrcp.f32 %v10164_v16 }
 0xb7a   : > { %v10417_v28 = vsel %vm9946_vm6, %v12356_v24, %v10353_v43  ;;  %12367 = vpow2.f32 %v11339_v26  ;;  %v11340_v44 = vmul.f32 -1.442695, %v16874_v37  ;;  %v10358_v24 = vmax.f32 %v16854_v52, 0.0 }
 0xb7b   : > { %v12358_v14 = vpop.eup %12357  ;;  %10482 = vst.msk [vmem:[%s16646_s29 + $0xb0] sm:$0xff] %vm10459_vm7, %v10417_v28  ;;  %v9738_v3 = vpop.f32.mrb[252].mxu0 }
 0xb7c   : > { %v12360_v0 = vpop.eup %12359  ;;  %v10418_v38 = vsel %vm9946_vm6, %v12358_v14, %v10354_v1  ;;  %12369 = vpow2.f32 %v11340_v44  ;;  %v9739_v36 = vadd.f32 %v16486_v31, %v9738_v3  ;;  %v9740_v9 = vpop.f32.mrb[253].mxu0 }
 0xb7d   : > { %10483 = vst.msk [vmem:[%s16646_s29 + $0xb8] sm:$0xff] %vm10459_vm7, %v10418_v38  ;;  %v10165_v30 = vadd.f32 1.0, %v12360_v0  ;;  %v9741_v63 = vpop.f32.mrb[254].mxu0 }
 0xb7e   : > { %v12362_v12 = vpop.eup %12361  ;;  %v16888_v6 = vadd.f32 %v16595_v56, %v9739_v36  ;;  %v9742_v54 = vadd.f32 %v16490_v55, %v9741_v63  ;;  %v9743_v42 = vpop.f32.mrb[255].mxu0 }
 0xb7f   : > { %12371 = vrcp.f32 %v10165_v30  ;;  %v10166_v10 = vadd.f32 1.0, %v12362_v12  ;;  %v10359_v12 = vmax.f32 %v16868_v22, 0.0 }
 0xb80   : > { %v11341_v50 = vmul.f32 -1.442695, %v16888_v6  ;;  %v16894_v31 = vadd.f32 %v16595_v56, %v9742_v54 }
 0xb81   : > { %v12364_v48 = vpop.eup %12363  ;;  %12373 = vrcp.f32 %v10166_v10 }
 0xb82   : > { %v10419_v4 = vsel %vm9946_vm6, %v12364_v48, %v10355_v61  ;;  %12375 = vpow2.f32 %v11341_v50  ;;  %v11342_v55 = vmul.f32 -1.442695, %v16894_v31  ;;  %v10360_v61 = vmax.f32 %v16874_v37, 0.0 }
 0xb83   : > { %v12366_v39 = vpop.eup %12365  ;;  %10484 = vst.msk [vmem:[%s16646_s29 + $0xc0] sm:$0xff] %vm10459_vm7, %v10419_v4  ;;  %v9746_v20 = vpop.f32.mrb[0].mxu0 }
 0xb84   : > { %v12368_v35 = vpop.eup %12367  ;;  %v10420_v19 = vsel %vm9946_vm6, %v12366_v39, %v10356_v21  ;;  %12377 = vpow2.f32 %v11342_v55  ;;  %v9747_v45 = vadd.f32 %v9746_v20, %v16500_v47  ;;  %v9748_v27 = vpop.f32.mrb[1].mxu0 }
 0xb85   : > { %10485 = vst.msk [vmem:[%s16646_s29 + $0xc8] sm:$0xff] %vm10459_vm7, %v10420_v19  ;;  %v10167_v53 = vadd.f32 1.0, %v12368_v35  ;;  %v9749_v40 = vpop.f32.mrb[2].mxu0 }
 0xb86   : > { %v12370_v18 = vpop.eup %12369  ;;  %v16908_v51 = vadd.f32 %v16595_v56, %v9747_v45  ;;  %v9750_v7 = vadd.f32 %v9749_v40, %v16504_v59  ;;  %v9751_v8 = vpop.f32.mrb[3].mxu0 }
 0xb87   : > { %12379 = vrcp.f32 %v10167_v53  ;;  %v10168_v29 = vadd.f32 1.0, %v12370_v18  ;;  %v10361_v53 = vmax.f32 %v16888_v6, 0.0  ;;  %v10362_v8 = vmax.f32 %v16894_v31, 0.0 }
 0xb88   : > { %v11343_v16 = vmul.f32 -1.442695, %v16908_v51  ;;  %v16914_v47 = vadd.f32 %v16595_v56, %v9750_v7 }
 0xb89   : > { %v12372_v43 = vpop.eup %12371  ;;  %12381 = vrcp.f32 %v10168_v29 }
 0xb8a   : > { %v10421_v26 = vsel %vm9946_vm6, %v12372_v43, %v10357_v49  ;;  %12383 = vpow2.f32 %v11343_v16  ;;  %v11344_v59 = vmul.f32 -1.442695, %v16914_v47 }
 0xb8b   : > { %v12374_v28 = vpop.eup %12373  ;;  %10486 = vst.msk [vmem:[%s16646_s29 + $0xd0] sm:$0xff] %vm10459_vm7, %v10421_v26  ;;  %v9754_v41 = vpop.f32.mrb[4].mxu0 }
 0xb8c   : > { %v12376_v1 = vpop.eup %12375  ;;  %v10422_v44 = vsel %vm9946_vm6, %v12374_v28, %v10358_v24  ;;  %12385 = vpow2.f32 %v11344_v59  ;;  %v9755_v14 = vadd.f32 %v16498_v33, %v9754_v41  ;;  %v9756_v3 = vpop.f32.mrb[5].mxu0 }
 0xb8d   : > { %10487 = vst.msk [vmem:[%s16646_s29 + $0xd8] sm:$0xff] %vm10459_vm7, %v10422_v44  ;;  %v10169_v0 = vadd.f32 1.0, %v12376_v1  ;;  %v9757_v38 = vpop.f32.mrb[6].mxu0 }
 0xb8e   : > { %v12378_v52 = vpop.eup %12377  ;;  %v16928_v36 = vadd.f32 %v16595_v56, %v9755_v14  ;;  %v9758_v9 = vadd.f32 %v16502_v58, %v9757_v38  ;;  %v9759_v30 = vpop.f32.mrb[7].mxu0  ;;  %v10363_v14 = vmax.f32 %v16908_v51, 0.0 }
 0xb8f   : > { %12387 = vrcp.f32 %v10169_v0  ;;  %v10170_v63 = vadd.f32 1.0, %v12378_v52  ;;  %v10364_v52 = vmax.f32 %v16914_v47, 0.0 }
 0xb90   : > { %v11345_v54 = vmul.f32 -1.442695, %v16928_v36  ;;  %v16934_v33 = vadd.f32 %v16595_v56, %v9758_v9 }
 0xb91   : > { %v12380_v42 = vpop.eup %12379  ;;  %12389 = vrcp.f32 %v10170_v63 }
 0xb92   : > { %v10423_v10 = vsel %vm9946_vm6, %v12380_v42, %v10359_v12  ;;  %12391 = vpow2.f32 %v11345_v54  ;;  %v11346_v58 = vmul.f32 -1.442695, %v16934_v33 }
 0xb93   : > { %v12382_v50 = vpop.eup %12381  ;;  %10488 = vst.msk [vmem:[%s16646_s29 + $0xe0] sm:$0xff] %vm10459_vm7, %v10423_v10  ;;  %v9762_v22 = vpop.f32.mrb[8].mxu0 }
 0xb94   : > { %v12384_v48 = vpop.eup %12383  ;;  %v10424_v4 = vsel %vm9946_vm6, %v12382_v50, %v10360_v61  ;;  %12393 = vpow2.f32 %v11346_v58  ;;  %v9763_v21 = vadd.f32 %v9762_v22, %v16512_v17  ;;  %v9764_v55 = vpop.f32.mrb[9].mxu0 }
 0xb95   : > { %10489 = vst.msk [vmem:[%s16646_s29 + $0xe8] sm:$0xff] %vm10459_vm7, %v10424_v4  ;;  %v10171_v39 = vadd.f32 1.0, %v12384_v48  ;;  %v9765_v20 = vpop.f32.mrb[10].mxu0  ;;  %v10365_v48 = vmax.f32 %v16928_v36, 0.0  ;;  %v10366_v55 = vmax.f32 %v16934_v33, 0.0 }
 0xb96   : > { %v12386_v37 = vpop.eup %12385  ;;  %v16948_v35 = vadd.f32 %v16595_v56, %v9763_v21  ;;  %v9766_v19 = vadd.f32 %v9765_v20, %v16516_v62  ;;  %v9767_v45 = vpop.f32.mrb[11].mxu0 }
 0xb97   : > { %12395 = vrcp.f32 %v10171_v39  ;;  %v10172_v27 = vadd.f32 1.0, %v12386_v37 }
 0xb98   : > { %v11347_v40 = vmul.f32 -1.442695, %v16948_v35  ;;  %v16954_v17 = vadd.f32 %v16595_v56, %v9766_v19 }
 0xb99   : > { %v12388_v18 = vpop.eup %12387  ;;  %12397 = vrcp.f32 %v10172_v27 }
 0xb9a   : > { %v10425_v7 = vsel %vm9946_vm6, %v12388_v18, %v10361_v53  ;;  %12399 = vpow2.f32 %v11347_v40  ;;  %v11348_v62 = vmul.f32 -1.442695, %v16954_v17 }
 0xb9b   : > { %v12390_v29 = vpop.eup %12389  ;;  %10490 = vst.msk [vmem:[%s16646_s29 + $0xf0] sm:$0xff] %vm10459_vm7, %v10425_v7  ;;  %v9770_v6 = vpop.f32.mrb[12].mxu0 }
 0xb9c   : > { %v12392_v49 = vpop.eup %12391  ;;  %v10426_v16 = vsel %vm9946_vm6, %v12390_v29, %v10362_v8  ;;  %12401 = vpow2.f32 %v11348_v62  ;;  %v9771_v43 = vadd.f32 %v16510_v32, %v9770_v6  ;;  %v9772_v26 = vpop.f32.mrb[13].mxu0  ;;  %v10367_v29 = vmax.f32 %v16948_v35, 0.0 }
 0xb9d   : > { %10491 = vst.msk [vmem:[%s16646_s29 + $0xf8] sm:$0xff] %vm10459_vm7, %v10426_v16  ;;  %v10173_v24 = vadd.f32 1.0, %v12392_v49  ;;  %v9773_v59 = vpop.f32.mrb[14].mxu0 }
 0xb9e   : > { %v12394_v31 = vpop.eup %12393  ;;  %v16968_v28 = vadd.f32 %v16595_v56, %v9771_v43  ;;  %v9774_v41 = vadd.f32 %v16514_v60, %v9773_v59  ;;  %v9775_v1 = vpop.f32.mrb[15].mxu0  ;;  %v10368_v43 = vmax.f32 %v16954_v17, 0.0 }
 0xb9f   : > { %12403 = vrcp.f32 %v10173_v24  ;;  %v10174_v44 = vadd.f32 1.0, %v12394_v31 }
 0xba0   : > { %v11349_v3 = vmul.f32 -1.442695, %v16968_v28  ;;  %v16974_v32 = vadd.f32 %v16595_v56, %v9774_v41 }
 0xba1   : > { %v12396_v0 = vpop.eup %12395  ;;  %12405 = vrcp.f32 %v10174_v44 }
 0xba2   : > { %v10427_v38 = vsel %vm9946_vm6, %v12396_v0, %v10363_v14  ;;  %12407 = vpow2.f32 %v11349_v3  ;;  %v11350_v60 = vmul.f32 -1.442695, %v16974_v32 }
 0xba3   : > { %v12398_v9 = vpop.eup %12397  ;;  %10492 = vst.msk [vmem:[%s16646_s29 + $0x100] sm:$0xff] %vm10459_vm7, %v10427_v38  ;;  %v9778_v51 = vpop.f32.mrb[16].mxu0 }
 0xba4   : > { %v12400_v30 = vpop.eup %12399  ;;  %v10428_v63 = vsel %vm9946_vm6, %v12398_v9, %v10364_v52  ;;  %12409 = vpow2.f32 %v11350_v60  ;;  %v9779_v12 = vadd.f32 %v9778_v51, %v16524_v13  ;;  %v9780_v54 = vpop.f32.mrb[17].mxu0  ;;  %v16996_v13 = vld [vmem:[%s17266_s10] ss:$0 sm:$0xff]  ;;  %v10369_v52 = vmax.f32 %v16968_v28, 0.0 }
 0xba5   : > { %10493 = vst.msk [vmem:[%s16646_s29 + $0x108] sm:$0xff] %vm10459_vm7, %v10428_v63  ;;  %v10175_v42 = vadd.f32 1.0, %v12400_v30  ;;  %v9781_v10 = vpop.f32.mrb[18].mxu0  ;;  %v10370_v30 = vmax.f32 %v16974_v32, 0.0 }
 0xba6   : > { %v12402_v47 = vpop.eup %12401  ;;  %v16988_v61 = vadd.f32 %v16595_v56, %v9779_v12  ;;  %v9782_v58 = vadd.f32 %v9781_v10, %v16528_v15  ;;  %v9783_v50 = vpop.f32.mrb[19].mxu0 }
 0xba7   : > { %12411 = vrcp.f32 %v10175_v42  ;;  %v10176_v22 = vadd.f32 1.0, %v12402_v47 }
 0xba8   : > { %v11351_v4 = vmul.f32 -1.442695, %v16988_v61  ;;  %v16999_v21 = vadd.f32 %v16996_v13, %v9782_v58 }
 0xba9   : > { %v12404_v56 = vpop.eup %12403  ;;  %12413 = vrcp.f32 %v10176_v22 }
 0xbaa   : > { %v10429_v15 = vsel %vm9946_vm6, %v12404_v56, %v10365_v48  ;;  %12415 = vpow2.f32 %v11351_v4  ;;  %v11352_v36 = vmul.f32 -1.442695, %v16999_v21  ;;  %v10371_v56 = vmax.f32 %v16988_v61, 0.0 }
 0xbab   : > { %v12406_v39 = vpop.eup %12405  ;;  %10494 = vst.msk [vmem:[%s16646_s29 + $0x110] sm:$0xff] %vm10459_vm7, %v10429_v15  ;;  %v9786_v20 = vpop.f32.mrb[20].mxu0 }
 0xbac   : > { %v12408_v37 = vpop.eup %12407  ;;  %v10430_v19 = vsel %vm9946_vm6, %v12406_v39, %v10366_v55  ;;  %12417 = vpow2.f32 %v11352_v36  ;;  %v9787_v45 = vadd.f32 %v16522_v57, %v9786_v20  ;;  %v9788_v27 = vpop.f32.mrb[21].mxu0  ;;  %v10372_v39 = vmax.f32 %v16999_v21, 0.0 }
 0xbad   : > { %10495 = vst.msk [vmem:[%s16646_s29 + $0x118] sm:$0xff] %vm10459_vm7, %v10430_v19  ;;  %v10177_v53 = vadd.f32 1.0, %v12408_v37  ;;  %v9789_v40 = vpop.f32.mrb[22].mxu0 }
 0xbae   : > { %v12410_v33 = vpop.eup %12409  ;;  %v17013_v18 = vadd.f32 %v16996_v13, %v9787_v45  ;;  %v9790_v7 = vadd.f32 %v16526_v5, %v9789_v40  ;;  %v9791_v8 = vpop.f32.mrb[23].mxu0 }
 0xbaf   : > { %12419 = vrcp.f32 %v10177_v53  ;;  %v10178_v62 = vadd.f32 1.0, %v12410_v33 }
 0xbb0   : > { %v11353_v6 = vmul.f32 -1.442695, %v17013_v18  ;;  %v17019_v57 = vadd.f32 %v16996_v13, %v9790_v7  ;;  %v17524_v7 = vld [vmem:[#allocation3_spill] sm:$0xff] }
 0xbb1   : > { %v12412_v49 = vpop.eup %12411  ;;  %12421 = vrcp.f32 %v10178_v62 }
 0xbb2   : > { %v10431_v16 = vsel %vm9946_vm6, %v12412_v49, %v10367_v29  ;;  %12423 = vpow2.f32 %v11353_v6  ;;  %v11354_v5 = vmul.f32 -1.442695, %v17019_v57  ;;  %v10373_v6 = vmax.f32 %v17013_v18, 0.0 }
 0xbb3   : > { %v12414_v26 = vpop.eup %12413  ;;  %10496 = vst.msk [vmem:[%s16646_s29 + $0x120] sm:$0xff] %vm10459_vm7, %v10431_v16  ;;  %v9794_v35 = vpop.f32.mrb[24].mxu0 }
 0xbb4   : > { %v12416_v24 = vpop.eup %12415  ;;  %v10432_v59 = vsel %vm9946_vm6, %v12414_v26, %v10368_v43  ;;  %12425 = vpow2.f32 %v11354_v5  ;;  %v9795_v31 = vadd.f32 %v9794_v35, %v16536_v34  ;;  %v9796_v41 = vpop.f32.mrb[25].mxu0  ;;  %v10374_v5 = vmax.f32 %v17019_v57, 0.0 }
 0xbb5   : > { %10497 = vst.msk [vmem:[%s16646_s29 + $0x128] sm:$0xff] %vm10459_vm7, %v10432_v59  ;;  %v10179_v1 = vadd.f32 1.0, %v12416_v24  ;;  %v9797_v44 = vpop.f32.mrb[26].mxu0 }
 0xbb6   : > { %v12418_v17 = vpop.eup %12417  ;;  %v17033_v14 = vadd.f32 %v16996_v13, %v9795_v31  ;;  %v9798_v3 = vadd.f32 %v9797_v44, %v16540_v46  ;;  %v9799_v0 = vpop.f32.mrb[27].mxu0  ;;  %v17525_v31 = vld [vmem:[#allocation66_spill] sm:$0xff] }
 0xbb7   : > { %12427 = vrcp.f32 %v10179_v1  ;;  %v10180_v38 = vadd.f32 1.0, %v12418_v17  ;;  %v17526_v0 = vld [vmem:[#allocation67_spill] sm:$0xff] }
 0xbb8   : > { %v11355_v60 = vmul.f32 -1.442695, %v17033_v14  ;;  %v17039_v34 = vadd.f32 %v16996_v13, %v9798_v3 }
 0xbb9   : > { %v12420_v9 = vpop.eup %12419  ;;  %12429 = vrcp.f32 %v10180_v38 }
 0xbba   : > { %v10433_v51 = vsel %vm9946_vm6, %v12420_v9, %v10369_v52  ;;  %12431 = vpow2.f32 %v11355_v60  ;;  %v11356_v46 = vmul.f32 -1.442695, %v17039_v34  ;;  %v10375_v9 = vmax.f32 %v17033_v14, 0.0 }
 0xbbb   : > { %v12422_v63 = vpop.eup %12421  ;;  %10498 = vst.msk [vmem:[%s16646_s29 + $0x130] sm:$0xff] %vm10459_vm7, %v10433_v51  ;;  %v9802_v28 = vpop.f32.mrb[28].mxu0 }
 0xbbc   : > { %v12424_v12 = vpop.eup %12423  ;;  %v10434_v54 = vsel %vm9946_vm6, %v12422_v63, %v10370_v30  ;;  %12433 = vpow2.f32 %v11356_v46  ;;  %v9803_v42 = vadd.f32 %v16534_v11, %v9802_v28  ;;  %v9804_v10 = vpop.f32.mrb[29].mxu0  ;;  %v10376_v28 = vmax.f32 %v17039_v34, 0.0 }
 0xbbd   : > { %10499 = vst.msk [vmem:[%s16646_s29 + $0x138] sm:$0xff] %vm10459_vm7, %v10434_v54  ;;  %v10181_v47 = vadd.f32 1.0, %v12424_v12  ;;  %v9805_v58 = vpop.f32.mrb[30].mxu0 }
 0xbbe   : > { %v12426_v32 = vpop.eup %12425  ;;  %v17053_v50 = vadd.f32 %v16996_v13, %v9803_v42  ;;  %v9806_v22 = vadd.f32 %v16538_v2, %v9805_v58  ;;  %v9807_v48 = vpop.f32.mrb[31].mxu0 }
 0xbbf   : > { %12435 = vrcp.f32 %v10181_v47  ;;  %v10182_v4 = vadd.f32 1.0, %v12426_v32  ;;  %v17527_v47 = vld [vmem:[#allocation5_spill] sm:$0xff] }
 0xbc0   : > { %v11357_v15 = vmul.f32 -1.442695, %v17053_v50  ;;  %v17059_v11 = vadd.f32 %v16996_v13, %v9806_v22 }
 0xbc1   : > { %v12428_v55 = vpop.eup %12427  ;;  %12437 = vrcp.f32 %v10182_v4 }
 0xbc2   : > { %v10435_v36 = vsel %vm9946_vm6, %v12428_v55, %v10371_v56  ;;  %12439 = vpow2.f32 %v11357_v15  ;;  %v11358_v2 = vmul.f32 -1.442695, %v17059_v11  ;;  %v17528_v56 = vld [vmem:[#allocation7_spill] sm:$0xff] }
 0xbc3   : > { %v12430_v20 = vpop.eup %12429  ;;  %10500 = vst.msk [vmem:[%s16646_s29 + $0x140] sm:$0xff] %vm10459_vm7, %v10435_v36  ;;  %v9810_v61 = vpop.f32.mrb[32].mxu0 }
 0xbc4   : > { %v12432_v37 = vpop.eup %12431  ;;  %v10436_v19 = vsel %vm9946_vm6, %v12430_v20, %v10372_v39  ;;  %12441 = vpow2.f32 %v11358_v2  ;;  %v9811_v45 = vadd.f32 %v9810_v61, %v16548_v23  ;;  %v9812_v27 = vpop.f32.mrb[33].mxu0  ;;  %v10377_v39 = vmax.f32 %v17053_v50, 0.0 }
 0xbc5   : > { %10501 = vst.msk [vmem:[%s16646_s29 + $0x148] sm:$0xff] %vm10459_vm7, %v10436_v19  ;;  %v10183_v53 = vadd.f32 1.0, %v12432_v37  ;;  %v9813_v40 = vpop.f32.mrb[34].mxu0  ;;  %v10378_v19 = vmax.f32 %v17059_v11, 0.0 }
 0xbc6   : > { %v12434_v21 = vpop.eup %12433  ;;  %v17073_v33 = vadd.f32 %v16996_v13, %v9811_v45  ;;  %v9814_v8 = vadd.f32 %v9813_v40, %v17524_v7  ;;  %v9815_v62 = vpop.f32.mrb[35].mxu0 }
 0xbc7   : > { %12443 = vrcp.f32 %v10183_v53  ;;  %v10184_v29 = vadd.f32 1.0, %v12434_v21  ;;  %v17529_v21 = vld [vmem:[#allocation2_spill] sm:$0xff] }
 0xbc8   : > { %v11359_v49 = vmul.f32 -1.442695, %v17073_v33  ;;  %v17079_v23 = vadd.f32 %v16996_v13, %v9814_v8 }
 0xbc9   : > { %v12436_v16 = vpop.eup %12435  ;;  %12445 = vrcp.f32 %v10184_v29 }
 0xbca   : > { %v10437_v43 = vsel %vm9946_vm6, %v12436_v16, %v10373_v6  ;;  %12447 = vpow2.f32 %v11359_v49  ;;  %v11360_v26 = vmul.f32 -1.442695, %v17079_v23  ;;  %v17530_v49 = vld [vmem:[#allocation4_spill] sm:$0xff] }
 0xbcb   : > { %v12438_v35 = vpop.eup %12437  ;;  %10502 = vst.msk [vmem:[%s16646_s29 + $0x150] sm:$0xff] %vm10459_vm7, %v10437_v43  ;;  %v9818_v18 = vpop.f32.mrb[36].mxu0 }
 0xbcc   : > { %v12440_v24 = vpop.eup %12439  ;;  %v10438_v59 = vsel %vm9946_vm6, %v12438_v35, %v10374_v5  ;;  %12449 = vpow2.f32 %v11360_v26  ;;  %v9819_v41 = vadd.f32 %v17525_v31, %v9818_v18  ;;  %v9820_v1 = vpop.f32.mrb[37].mxu0  ;;  %v10379_v26 = vmax.f32 %v17073_v33, 0.0 }
 0xbcd   : > { %10503 = vst.msk [vmem:[%s16646_s29 + $0x158] sm:$0xff] %vm10459_vm7, %v10438_v59  ;;  %v10185_v44 = vadd.f32 1.0, %v12440_v24  ;;  %v9821_v17 = vpop.f32.mrb[38].mxu0  ;;  %v10380_v31 = vmax.f32 %v17079_v23, 0.0 }
 0xbce   : > { %v12442_v57 = vpop.eup %12441  ;;  %v17093_v3 = vadd.f32 %v16996_v13, %v9819_v41  ;;  %v9822_v38 = vadd.f32 %v17526_v0, %v9821_v17  ;;  %v9823_v52 = vpop.f32.mrb[39].mxu0 }
 0xbcf   : > { %12451 = vrcp.f32 %v10185_v44  ;;  %v10186_v60 = vadd.f32 1.0, %v12442_v57  ;;  %v17531_v57 = vld [vmem:[#allocation9_spill] sm:$0xff] }
 0xbd0   : > { %v11361_v51 = vmul.f32 -1.442695, %v17093_v3  ;;  %v17099_v30 = vadd.f32 %v16996_v13, %v9822_v38 }
 0xbd1   : > { %v12444_v46 = vpop.eup %12443  ;;  %12453 = vrcp.f32 %v10186_v60 }
 0xbd2   : > { %v10439_v63 = vsel %vm9946_vm6, %v12444_v46, %v10375_v9  ;;  %12455 = vpow2.f32 %v11361_v51  ;;  %v11362_v12 = vmul.f32 -1.442695, %v17099_v30  ;;  %v17532_v51 = vld [vmem:[#allocation11_spill] sm:$0xff] }
 0xbd3   : > { %v12446_v54 = vpop.eup %12445  ;;  %10504 = vst.msk [vmem:[%s16646_s29 + $0x160] sm:$0xff] %vm10459_vm7, %v10439_v63  ;;  %v9826_v14 = vpop.f32.mrb[40].mxu0 }
 0xbd4   : > { %v12448_v42 = vpop.eup %12447  ;;  %v10440_v10 = vsel %vm9946_vm6, %v12446_v54, %v10376_v28  ;;  %12457 = vpow2.f32 %v11362_v12  ;;  %v9827_v58 = vadd.f32 %v9826_v14, %v17527_v47  ;;  %v9828_v32 = vpop.f32.mrb[41].mxu0  ;;  %v10381_v12 = vmax.f32 %v17093_v3, 0.0 }
 0xbd5   : > { %10505 = vst.msk [vmem:[%s16646_s29 + $0x168] sm:$0xff] %vm10459_vm7, %v10440_v10  ;;  %v10187_v22 = vadd.f32 1.0, %v12448_v42  ;;  %v9829_v48 = vpop.f32.mrb[42].mxu0  ;;  %v10382_v47 = vmax.f32 %v17099_v30, 0.0 }
 0xbd6   : > { %v12450_v34 = vpop.eup %12449  ;;  %v17113_v4 = vadd.f32 %v16996_v13, %v9827_v58  ;;  %v9830_v15 = vadd.f32 %v9829_v48, %v17528_v56  ;;  %v9831_v55 = vpop.f32.mrb[43].mxu0 }
 0xbd7   : > { %12459 = vrcp.f32 %v10187_v22  ;;  %v10188_v36 = vadd.f32 1.0, %v12450_v34  ;;  %v17533_v34 = vld [vmem:[#allocation6_spill] sm:$0xff] }
 0xbd8   : > { %v11363_v2 = vmul.f32 -1.442695, %v17113_v4  ;;  %v17119_v20 = vadd.f32 %v16996_v13, %v9830_v15 }
 0xbd9   : > { %v12452_v61 = vpop.eup %12451  ;;  %12461 = vrcp.f32 %v10188_v36 }
 0xbda   : > { %v10441_v37 = vsel %vm9946_vm6, %v12452_v61, %v10377_v39  ;;  %12463 = vpow2.f32 %v11363_v2  ;;  %v11364_v45 = vmul.f32 -1.442695, %v17119_v20  ;;  %v17534_v2 = vld [vmem:[#allocation8_spill] sm:$0xff] }
 0xbdb   : > { %v12454_v27 = vpop.eup %12453  ;;  %10506 = vst.msk [vmem:[%s16646_s29 + $0x170] sm:$0xff] %vm10459_vm7, %v10441_v37  ;;  %v9834_v50 = vpop.f32.mrb[44].mxu0 }
 0xbdc   : > { %v12456_v53 = vpop.eup %12455  ;;  %v10442_v40 = vsel %vm9946_vm6, %v12454_v27, %v10378_v19  ;;  %12465 = vpow2.f32 %v11364_v45  ;;  %v9835_v7 = vadd.f32 %v17529_v21, %v9834_v50  ;;  %v9836_v8 = vpop.f32.mrb[45].mxu0  ;;  %v10383_v45 = vmax.f32 %v17113_v4, 0.0 }
 0xbdd   : > { %10507 = vst.msk [vmem:[%s16646_s29 + $0x178] sm:$0xff] %vm10459_vm7, %v10442_v40  ;;  %v10189_v62 = vadd.f32 1.0, %v12456_v53  ;;  %v9837_v29 = vpop.f32.mrb[46].mxu0  ;;  %v10384_v21 = vmax.f32 %v17119_v20, 0.0 }
 0xbde   : > { %v12458_v11 = vpop.eup %12457  ;;  %v17133_v6 = vadd.f32 %v16996_v13, %v9835_v7  ;;  %v9838_v16 = vadd.f32 %v17530_v49, %v9837_v29  ;;  %v9839_v43 = vpop.f32.mrb[47].mxu0 }
 0xbdf   : > { %12467 = vrcp.f32 %v10189_v62  ;;  %v10190_v5 = vadd.f32 1.0, %v12458_v11  ;;  %v17535_v11 = vld [vmem:[#allocation13_spill] sm:$0xff] }
 0xbe0   : > { %v11365_v35 = vmul.f32 -1.442695, %v17133_v6  ;;  %v17139_v18 = vadd.f32 %v16996_v13, %v9838_v16 }
 0xbe1   : > { %v12460_v24 = vpop.eup %12459  ;;  %12469 = vrcp.f32 %v10190_v5 }
 0xbe2   : > { %v10443_v59 = vsel %vm9946_vm6, %v12460_v24, %v10379_v26  ;;  %12471 = vpow2.f32 %v11365_v35  ;;  %v11366_v41 = vmul.f32 -1.442695, %v17139_v18  ;;  %v17536_v35 = vld [vmem:[#allocation15_spill] sm:$0xff] }
 0xbe3   : > { %v12462_v1 = vpop.eup %12461  ;;  %10508 = vst.msk [vmem:[%s16646_s29 + $0x180] sm:$0xff] %vm10459_vm7, %v10443_v59  ;;  %v9842_v33 = vpop.f32.mrb[48].mxu0 }
 0xbe4   : > { %v12464_v44 = vpop.eup %12463  ;;  %v10444_v17 = vsel %vm9946_vm6, %v12462_v1, %v10380_v31  ;;  %12473 = vpow2.f32 %v11366_v41  ;;  %v9843_v0 = vadd.f32 %v9842_v33, %v17531_v57  ;;  %v9844_v38 = vpop.f32.mrb[49].mxu0  ;;  %v10385_v41 = vmax.f32 %v17133_v6, 0.0 }
 0xbe5   : > { %10509 = vst.msk [vmem:[%s16646_s29 + $0x188] sm:$0xff] %vm10459_vm7, %v10444_v17  ;;  %v10191_v52 = vadd.f32 1.0, %v12464_v44  ;;  %v9845_v60 = vpop.f32.mrb[50].mxu0  ;;  %v10386_v57 = vmax.f32 %v17139_v18, 0.0 }
 0xbe6   : > { %v12466_v23 = vpop.eup %12465  ;;  %v17153_v9 = vadd.f32 %v16996_v13, %v9843_v0  ;;  %v9846_v46 = vadd.f32 %v9845_v60, %v17532_v51  ;;  %v9847_v63 = vpop.f32.mrb[51].mxu0 }
 0xbe7   : > { %12475 = vrcp.f32 %v10191_v52  ;;  %v10192_v28 = vadd.f32 1.0, %v12466_v23  ;;  %v17537_v23 = vld [vmem:[#allocation10_spill] sm:$0xff] }
 0xbe8   : > { %v11367_v54 = vmul.f32 -1.442695, %v17153_v9  ;;  %v17159_v14 = vadd.f32 %v16996_v13, %v9846_v46 }
 0xbe9   : > { %v12468_v42 = vpop.eup %12467  ;;  %12477 = vrcp.f32 %v10192_v28 }
 0xbea   : > { %v10445_v10 = vsel %vm9946_vm6, %v12468_v42, %v10381_v12  ;;  %12479 = vpow2.f32 %v11367_v54  ;;  %v11368_v58 = vmul.f32 -1.442695, %v17159_v14  ;;  %v17538_v54 = vld [vmem:[#allocation12_spill] sm:$0xff] }
 0xbeb   : > { %v12470_v32 = vpop.eup %12469  ;;  %10510 = vst.msk [vmem:[%s16646_s29 + $0x190] sm:$0xff] %vm10459_vm7, %v10445_v10  ;;  %v9850_v3 = vpop.f32.mrb[52].mxu0 }
 0xbec   : > { %v12472_v22 = vpop.eup %12471  ;;  %v10446_v48 = vsel %vm9946_vm6, %v12470_v32, %v10382_v47  ;;  %12481 = vpow2.f32 %v11368_v58  ;;  %v9851_v56 = vadd.f32 %v17533_v34, %v9850_v3  ;;  %v9852_v15 = vpop.f32.mrb[53].mxu0  ;;  %v10387_v58 = vmax.f32 %v17153_v9, 0.0 }
 0xbed   : > { %10511 = vst.msk [vmem:[%s16646_s29 + $0x198] sm:$0xff] %vm10459_vm7, %v10446_v48  ;;  %v10193_v55 = vadd.f32 1.0, %v12472_v22  ;;  %v9853_v36 = vpop.f32.mrb[54].mxu0  ;;  %v10388_v34 = vmax.f32 %v17159_v14, 0.0 }
 0xbee   : > { %v12474_v30 = vpop.eup %12473  ;;  %v17173_v39 = vadd.f32 %v16996_v13, %v9851_v56  ;;  %v9854_v61 = vadd.f32 %v17534_v2, %v9853_v36  ;;  %v9855_v37 = vpop.f32.mrb[55].mxu0 }
 0xbef   : > { %12483 = vrcp.f32 %v10193_v55  ;;  %v10194_v19 = vadd.f32 1.0, %v12474_v30 }
 0xbf0   : > { %v11369_v27 = vmul.f32 -1.442695, %v17173_v39  ;;  %v17179_v50 = vadd.f32 %v16996_v13, %v9854_v61  ;;  %v10389_v14 = vmax.f32 %v17173_v39, 0.0 }
 0xbf1   : > { %v12476_v53 = vpop.eup %12475  ;;  %12485 = vrcp.f32 %v10194_v19 }
 0xbf2   : > { %v10447_v40 = vsel %vm9946_vm6, %v12476_v53, %v10383_v45  ;;  %12487 = vpow2.f32 %v11369_v27  ;;  %v11370_v7 = vmul.f32 -1.442695, %v17179_v50  ;;  %v10390_v37 = vmax.f32 %v17179_v50, 0.0 }
 0xbf3   : > { %v12478_v8 = vpop.eup %12477  ;;  %10512 = vst.msk [vmem:[%s16646_s29 + $0x1a0] sm:$0xff] %vm10459_vm7, %v10447_v40  ;;  %v9858_v4 = vpop.f32.mrb[56].mxu0 }
 0xbf4   : > { %v12480_v62 = vpop.eup %12479  ;;  %v10448_v29 = vsel %vm9946_vm6, %v12478_v8, %v10384_v21  ;;  %12489 = vpow2.f32 %v11370_v7  ;;  %v9859_v49 = vadd.f32 %v9858_v4, %v17535_v11  ;;  %v9860_v16 = vpop.f32.mrb[57].mxu0 }
 0xbf5   : > { %10513 = vst.msk [vmem:[%s16646_s29 + $0x1a8] sm:$0xff] %vm10459_vm7, %v10448_v29  ;;  %v10195_v43 = vadd.f32 1.0, %v12480_v62  ;;  %v9861_v5 = vpop.f32.mrb[58].mxu0 }
 0xbf6   : > { %v12482_v20 = vpop.eup %12481  ;;  %v17193_v26 = vadd.f32 %v16996_v13, %v9859_v49  ;;  %v9862_v24 = vadd.f32 %v9861_v5, %v17536_v35  ;;  %v9863_v59 = vpop.f32.mrb[59].mxu0 }
 0xbf7   : > { %12491 = vrcp.f32 %v10195_v43  ;;  %v10196_v31 = vadd.f32 1.0, %v12482_v20 }
 0xbf8   : > { %v11371_v1 = vmul.f32 -1.442695, %v17193_v26  ;;  %v17199_v33 = vadd.f32 %v16996_v13, %v9862_v24  ;;  %v10391_v21 = vmax.f32 %v17193_v26, 0.0 }
 0xbf9   : > { %v12484_v44 = vpop.eup %12483  ;;  %12493 = vrcp.f32 %v10196_v31 }
 0xbfa   : > { %v10449_v17 = vsel %vm9946_vm6, %v12484_v44, %v10385_v41  ;;  %12495 = vpow2.f32 %v11371_v1  ;;  %v11372_v0 = vmul.f32 -1.442695, %v17199_v33  ;;  %v10392_v8 = vmax.f32 %v17199_v33, 0.0 }
 0xbfb   : > { %v12486_v38 = vpop.eup %12485  ;;  %10514 = vst.msk [vmem:[%s16646_s29 + $0x1b0] sm:$0xff] %vm10459_vm7, %v10449_v17  ;;  %v9866_v6 = vpop.f32.mrb[60].mxu0 }
 0xbfc   : > { %v12488_v52 = vpop.eup %12487  ;;  %v10450_v60 = vsel %vm9946_vm6, %v12486_v38, %v10386_v57  ;;  %12497 = vpow2.f32 %v11372_v0  ;;  %v9867_v51 = vadd.f32 %v17537_v23, %v9866_v6  ;;  %v9868_v46 = vpop.f32.mrb[61].mxu0 }
 0xbfd   : > { %10515 = vst.msk [vmem:[%s16646_s29 + $0x1b8] sm:$0xff] %vm10459_vm7, %v10450_v60  ;;  %v10197_v63 = vadd.f32 1.0, %v12488_v52  ;;  %v9869_v28 = vpop.f32.mrb[62].mxu0 }
 0xbfe   : > { %v12490_v18 = vpop.eup %12489  ;;  %v9942_v12 = vadd.f32 %v16996_v13, %v9867_v51  ;;  %v9870_v42 = vadd.f32 %v17538_v54, %v9869_v28  ;;  %v9871_v10 = vpop.f32.mrb[63].mxu0 }
 0xbff   : > { %12499 = vrcp.f32 %v10197_v63  ;;  %v10198_v47 = vadd.f32 1.0, %v12490_v18 }
 0xc00   : > { %v11373_v32 = vmul.f32 -1.442695, %v9942_v12  ;;  %v9943_v3 = vadd.f32 %v16996_v13, %v9870_v42  ;;  %v10393_v29 = vmax.f32 %v9942_v12, 0.0 }
 0xc01   : > { %v12492_v22 = vpop.eup %12491  ;;  %12501 = vrcp.f32 %v10198_v47 }
 0xc02   : > { %v10451_v48 = vsel %vm9946_vm6, %v12492_v22, %v10387_v58  ;;  %12503 = vpow2.f32 %v11373_v32  ;;  %v11374_v56 = vmul.f32 -1.442695, %v9943_v3  ;;  %v10394_v16 = vmax.f32 %v9943_v3, 0.0 }
 0xc03   : > { %v12494_v15 = vpop.eup %12493  ;;  %10516 = vst.msk [vmem:[%s16646_s29 + $0x1c0] sm:$0xff] %vm10459_vm7, %v10451_v48 }
 0xc04   : > { %v12496_v55 = vpop.eup %12495  ;;  %v10452_v9 = vsel %vm9946_vm6, %v12494_v15, %v10388_v34  ;;  %12505 = vpow2.f32 %v11374_v56 }
 0xc05   : > { %10517 = vst.msk [vmem:[%s16646_s29 + $0x1c8] sm:$0xff] %vm10459_vm7, %v10452_v9  ;;  %v10199_v13 = vadd.f32 1.0, %v12496_v55 }
 0xc06   : > { %v12498_v36 = vpop.eup %12497 }
 0xc07   : > { %12507 = vrcp.f32 %v10199_v13  ;;  %v10200_v30 = vadd.f32 1.0, %v12498_v36 }
 0xc09   : > { %v12500_v2 = vpop.eup %12499  ;;  %12509 = vrcp.f32 %v10200_v30 }
 0xc0a   : > { %v10453_v61 = vsel %vm9946_vm6, %v12500_v2, %v10389_v14 }
 0xc0b   : > { %v12502_v19 = vpop.eup %12501  ;;  %10518 = vst.msk [vmem:[%s16646_s29 + $0x1d0] sm:$0xff] %vm10459_vm7, %v10453_v61 }
 0xc0c   : > { %v12504_v45 = vpop.eup %12503  ;;  %v10454_v27 = vsel %vm9946_vm6, %v12502_v19, %v10390_v37 }
 0xc0d   : > { %10519 = vst.msk [vmem:[%s16646_s29 + $0x1d8] sm:$0xff] %vm10459_vm7, %v10454_v27  ;;  %v10201_v53 = vadd.f32 1.0, %v12504_v45 }
 0xc0e   : > { %v12506_v39 = vpop.eup %12505 }
 0xc0f   : > { %12511 = vrcp.f32 %v10201_v53  ;;  %v10202_v40 = vadd.f32 1.0, %v12506_v39 }
 0xc11   : > { %v12508_v50 = vpop.eup %12507  ;;  %12513 = vrcp.f32 %v10202_v40 }
 0xc12   : > { %v10455_v7 = vsel %vm9946_vm6, %v12508_v50, %v10391_v21 }
 0xc13   : > { %v12510_v4 = vpop.eup %12509  ;;  %10520 = vst.msk [vmem:[%s16646_s29 + $0x1e0] sm:$0xff] %vm10459_vm7, %v10455_v7 }
 0xc14   : > { %v10456_v62 = vsel %vm9946_vm6, %v12510_v4, %v10392_v8 }
 0xc15   : > { %10521 = vst.msk [vmem:[%s16646_s29 + $0x1e8] sm:$0xff] %vm10459_vm7, %v10456_v62 }
 0xc19   : > { %v12512_v11 = vpop.eup %12511 }
 0xc1a   : > { %v10457_v49 = vsel %vm9946_vm6, %v12512_v11, %v10393_v29 }
 0xc1b   : > { %v12514_v43 = vpop.eup %12513  ;;  %10522 = vst.msk [vmem:[%s16646_s29 + $0x1f0] sm:$0xff] %vm10459_vm7, %v10457_v49 }
 0xc1c   : > { %v10458_v5 = vsel %vm9946_vm6, %v12514_v43, %v10394_v16 }
 0xc1d   : > { %10523 = vst.msk [vmem:[%s16646_s29 + $0x1f8] sm:$0xff] %vm10459_vm7, %v10458_v5 }
 0xc1e PF: > { %s21_s17 = sadd.s32 1, %s12542_s17  }
 0xc1f   : > { %p18_p4 = scmp.ge.s32.totalorder %s21_s17, 4  }
 0xc21   :  { %20 = sbr.rel (!%p18_p4) target bundleno = 1 (0x1), region = 112 }

</bundles_post_ra>
